<compile_context>
chip_gen: v6e
topology: v6e:2x2x1
jax: 0.10.0
libtpu: 0.0.40
codegen_flags: <defaults>
</compile_context>

<pallas_src>
import functools

import jax
import jax.numpy as jnp
from jax.experimental import pallas as pl
from jax.experimental.pallas import tpu as pltpu

EPS = 1e-5          # PyTorch BatchNorm2d default eps
LANES = 128
_VMEM_LIMIT = 32 * 1024 * 1024


def _round_up(x, m):
    return (x + m - 1) // m * m


def _pick_tile(extent, candidates):
    for cand in candidates:
        if extent % cand == 0:
            return cand
    return extent


# ----------------------------- Pallas kernels ------------------------------ #

def _conv3x3_bn_stats_kernel(x_ref, w_ref, scale_ref, shift_ref,
                             z_ref, stats_ref, pt_ref, acc_ref, *,
                             tile_h, width, cp, fuse_bn_relu):
    """3x3 'SAME' conv on one (batch, H-tile) block + BN-stats accumulation.

    x_ref    : (H, W, Cp)          unpadded input image, bf16, resident per n
    w_ref    : (3, 3*Cp, Cp)       taps, dh major, K ordered (dw, Cin), bf16
    scale_ref: (1, Cp) f32         fused input-BN scale  (used when fuse_bn_relu)
    shift_ref: (1, Cp) f32         fused input-BN shift  (used when fuse_bn_relu)
    z_ref    : (tile_h, W, Cp)     conv output tile, bf16
    stats_ref: (2, Cp) f32         per-image [sum(z); sum(z*z)], carried over t
    pt_ref   : (tile_h+2, W+2, Cp) bf16 VMEM scratch: halo-padded input tile
    acc_ref  : (tile_h*W, Cp) f32  VMEM scratch: MXU accumulator
    """
    t = pl.program_id(1)
    nt = pl.num_programs(1)
    h0 = pl.multiple_of(t * tile_h, tile_h)

    @pl.when(t == 0)
    def _():
        stats_ref[...] = jnp.zeros_like(stats_ref)

    def pre(v):
        # Optionally apply the previous layer's BatchNorm + ReLU on the fly.
        if fuse_bn_relu:
            v = jnp.maximum(v.astype(jnp.float32) * scale_ref[...] +
                            shift_ref[...], 0.0)
        return v.astype(jnp.bfloat16)

    # Build the halo-padded tile in VMEM scratch (ring stays zero).
    pt_ref[...] = jnp.zeros_like(pt_ref)
    pt_ref[1:tile_h + 1, 1:width + 1, :] = pre(x_ref[pl.ds(h0, tile_h), :, :])

    @pl.when(t > 0)
    def _():
        pt_ref[0:1, 1:width + 1, :] = pre(x_ref[pl.ds(h0 - 1, 1), :, :])

    @pl.when(t < nt - 1)
    def _():
        pt_ref[tile_h + 1:tile_h + 2, 1:width + 1, :] = \
            pre(x_ref[pl.ds(h0 + tile_h, 1), :, :])

    # 3 K-folded MXU matmuls (K = 3*Cp), f32 accumulation in VMEM scratch.
    for dh in range(3):
        patch = jnp.concatenate(
            [pt_ref[dh:dh + tile_h, dw:dw + width, :] for dw in range(3)],
            axis=-1).reshape(tile_h * width, 3 * cp)
        contrib = jnp.dot(patch, w_ref[dh], preferred_element_type=jnp.float32)
        if dh == 0:
            acc_ref[...] = contrib
        else:
            acc_ref[...] += contrib

    z = acc_ref[...]
    z_ref[...] = z.reshape(tile_h, width, cp).astype(z_ref.dtype)
    stats_ref[...] += jnp.concatenate(
        [jnp.sum(z, axis=0, keepdims=True),
         jnp.sum(z * z, axis=0, keepdims=True)], axis=0)


def _bn_residual_kernel(z_ref, scale_ref, shift_ref, r_ref, o_ref):
    """out = z*scale + shift + residual (math in f32, bf16 in/out streams)."""
    y = z_ref[...].astype(jnp.float32) * scale_ref[...] + shift_ref[...]
    o_ref[...] = (y + r_ref[...].astype(jnp.float32)).astype(o_ref.dtype)


# ------------------------------ pallas_call glue ---------------------------- #

def _conv3x3_with_stats(x, w3, scale, shift, tile_h, *, fuse_bn_relu):
    """x: (N, H, W, Cp) bf16, w3: (3, 3*Cp, Cp) bf16 -> (z bf16, stats f32)."""
    n, h, width, cp = x.shape
    kernel = functools.partial(
        _conv3x3_bn_stats_kernel, tile_h=tile_h, width=width, cp=cp,
        fuse_bn_relu=fuse_bn_relu)
    return pl.pallas_call(
        kernel,
        out_shape=(jax.ShapeDtypeStruct((n, h, width, cp), jnp.bfloat16),
                   jax.ShapeDtypeStruct((n, 2, cp), jnp.float32)),
        grid_spec=pltpu.PrefetchScalarGridSpec(
            num_scalar_prefetch=0,
            grid=(n, h // tile_h),
            in_specs=[
                # Full (unpadded) image: block index constant across the H-tile
                # axis -> DMA'd once per image, stays VMEM-resident across t.
                pl.BlockSpec((None, h, width, cp), lambda i, t: (i, 0, 0, 0)),
                # Weights / fused-BN scale+shift: loaded once, grid-resident.
                pl.BlockSpec((3, 3 * cp, cp), lambda i, t: (0, 0, 0)),
                pl.BlockSpec((1, cp), lambda i, t: (0, 0)),
                pl.BlockSpec((1, cp), lambda i, t: (0, 0)),
            ],
            out_specs=(
                pl.BlockSpec((None, tile_h, width, cp),
                             lambda i, t: (i, t, 0, 0)),
                # Per-image BN-stat partials: carried only across the H-tile
                # ("arbitrary") axis, so the batch axis can run in parallel.
                pl.BlockSpec((None, 2, cp), lambda i, t: (i, 0, 0)),
            ),
            scratch_shapes=[
                pltpu.VMEM((tile_h + 2, width + 2, cp), jnp.bfloat16),
                pltpu.VMEM((tile_h * width, cp), jnp.float32),
            ],
        ),
        compiler_params=pltpu.CompilerParams(
            dimension_semantics=("parallel", "arbitrary"),
            vmem_limit_bytes=_VMEM_LIMIT),
    )(x, w3, scale, shift)


def _bn_residual_apply(z2d, scale, shift, resid2d, tile_m):
    m, cp = z2d.shape
    row_spec = pl.BlockSpec((tile_m, cp), lambda i: (i, 0))
    const_spec = pl.BlockSpec((1, cp), lambda i: (0, 0))
    return pl.pallas_call(
        _bn_residual_kernel,
        out_shape=jax.ShapeDtypeStruct((m, cp), jnp.bfloat16),
        grid_spec=pltpu.PrefetchScalarGridSpec(
            num_scalar_prefetch=0,
            grid=(m // tile_m,),
            in_specs=[row_spec, const_spec, const_spec, row_spec],
            out_specs=row_spec),
        compiler_params=pltpu.CompilerParams(
            dimension_semantics=("parallel",),
            vmem_limit_bytes=_VMEM_LIMIT),
    )(z2d, scale, shift, resid2d)


# --------------------------------- wrapper ---------------------------------- #

def _bn_scale_shift(stats, gamma, beta, count):
    """(N, 2, Cp) partial sums -> per-channel BN scale/shift, each (1, Cp) f32."""
    s = jnp.sum(stats, axis=0)                                     # (2, Cp)
    inv = 1.0 / count
    mean = s[0] * inv
    var = jnp.maximum(s[1] * inv - mean * mean, 0.0)               # biased var
    scale = gamma * jax.lax.rsqrt(var + EPS)
    shift = beta - mean * scale
    cp = scale.shape[-1]
    return scale.reshape(1, cp), shift.reshape(1, cp)


def residual_block_forward(x_nchw, params):
    n, c, h, w = x_nchw.shape
    cp = _round_up(c, LANES)
    m = n * h * w
    tile_h = _pick_tile(h, (32, 16, 8))
    tile_m = _pick_tile(m, (4096, 2048, 1024, 512, 256, 128, 64, 32, 16, 8))

    # NCHW f32 -> NHWC, zero-pad channels to a lane multiple, cast to bf16.
    x_nhwc = jnp.transpose(x_nchw, (0, 2, 3, 1)).astype(jnp.float32)
    x_b = jnp.pad(x_nhwc, ((0, 0), (0, 0), (0, 0), (0, cp - c))) \
             .astype(jnp.bfloat16)                                 # (N, H, W, Cp)

    def prep_w(wk):   # (3,3,Cin,Cout) HWIO -> (3, 3*Cp, Cp) bf16, K = (dw, Cin)
        wk = jnp.pad(wk.astype(jnp.float32),
                     ((0, 0), (0, 0), (0, cp - c), (0, cp - c)))
        return wk.reshape(3, 3 * cp, cp).astype(jnp.bfloat16)

    def prep_v(v):    # (C,) -> (Cp,) f32
        return jnp.pad(v.astype(jnp.float32), (0, cp - c))

    w1, w2 = prep_w(params["w1"]), prep_w(params["w2"])
    g1, b1 = prep_v(params["g1"]), prep_v(params["b1"])
    g2, b2 = prep_v(params["g2"]), prep_v(params["b2"])
    ident_s = jnp.ones((1, cp), jnp.float32)      # unused identity (conv1 path)
    ident_t = jnp.zeros((1, cp), jnp.float32)

    # conv1 + BN1 batch-stats reduction (no fused input transform).
    z1, stats1 = _conv3x3_with_stats(x_b, w1, ident_s, ident_t, tile_h,
                                     fuse_bn_relu=False)
    scale1, shift1 = _bn_scale_shift(stats1, g1, b1, m)
    # conv2 with BN1-apply + ReLU fused on its input, plus BN2 stats reduction.
    z2, stats2 = _conv3x3_with_stats(z1, w2, scale1, shift1, tile_h,
                                     fuse_bn_relu=True)
    scale2, shift2 = _bn_scale_shift(stats2, g2, b2, m)
    # BN2 apply + residual add (all big streams bf16, math in f32).
    out = _bn_residual_apply(z2.reshape(m, cp), scale2, shift2,
                             x_b.reshape(m, cp), tile_m)

    out = out.reshape(n, h, w, cp)[..., :c]
    return jnp.transpose(out, (0, 3, 1, 2)).astype(x_nchw.dtype)


def init_params(key, dim_in, dim_out):
    """Deterministic synthetic init (shapes from the module's __init__)."""
    k1, k2 = jax.random.split(key)
    s1 = 1.0 / (9 * dim_in) ** 0.5
    s2 = 1.0 / (9 * dim_out) ** 0.5
    return {
        # conv weights stored HWIO; PyTorch OIHW maps via transpose(2,3,1,0)
        "w1": jax.random.normal(k1, (3, 3, dim_in, dim_out), jnp.float32) * s1,
        "w2": jax.random.normal(k2, (3, 3, dim_out, dim_out), jnp.float32) * s2,
        "g1": jnp.ones((dim_out,), jnp.float32),   # BN affine defaults
        "b1": jnp.zeros((dim_out,), jnp.float32),
        "g2": jnp.ones((dim_out,), jnp.float32),
        "b2": jnp.zeros((dim_out,), jnp.float32),
    }


# ------------------------------ pure-JAX reference --------------------------- #

def _reference(x_nchw, params):
    x = jnp.transpose(x_nchw, (0, 2, 3, 1)).astype(jnp.float32)

    def conv(hh, wk):
        return jax.lax.conv_general_dilated(
            hh, wk, (1, 1), "SAME", dimension_numbers=("NHWC", "HWIO", "NHWC"))

    def bn(z, g, b):
        mean = jnp.mean(z, axis=(0, 1, 2), keepdims=True)
        var = jnp.mean(jnp.square(z - mean), axis=(0, 1, 2), keepdims=True)
        return (z - mean) * jax.lax.rsqrt(var + EPS) * g.reshape(1, 1, 1, -1) \
            + b.reshape(1, 1, 1, -1)

    hcur = jnp.maximum(bn(conv(x, params["w1"]), params["g1"], params["b1"]), 0.0)
    hcur = bn(conv(hcur, params["w2"]), params["g2"], params["b2"])
    return jnp.transpose(x + hcur, (0, 3, 1, 2))


if __name__ == "__main__":
    key = jax.random.PRNGKey(0)
    kx, kp = jax.random.split(key)

    N, C, H, W = 2, 4, 16, 16          # dim_in == dim_out (needed by residual)
    x = jax.random.normal(kx, (N, C, H, W), jnp.float32)
    params = init_params(kp, C, C)

    out = jax.jit(residual_block_forward)(x, params)
    jax.block_until_ready(out)

    ref = _reference(x, params)
    assert out.shape == x.shape and out.dtype == x.dtype
    # bf16 MXU inputs + bf16 z/residual/output streams vs f32 reference
    assert jnp.allclose(out, ref, atol=5e-2, rtol=2e-2), \
        float(jnp.max(jnp.abs(out - ref)))

    print("KERNEL_OK")
</pallas_src>

<mosaic_0001>
module attributes {stable_mosaic.version = 11 : i64} {
  func.func @_bn_residual_kernel(%arg0: i32, %arg1: memref<512x128xbf16, #tpu.memory_space<vmem>>, %arg2: memref<1x128xf32, #tpu.memory_space<vmem>>, %arg3: memref<1x128xf32, #tpu.memory_space<vmem>>, %arg4: memref<512x128xbf16, #tpu.memory_space<vmem>>, %arg5: memref<512x128xbf16, #tpu.memory_space<vmem>>) attributes {dimension_semantics = [#tpu.dimension_semantics<parallel>], iteration_bounds = array<i64: 1>, scalar_prefetch = 0 : i64, scratch_operands = 0 : i64, tpu.core_type = #tpu.core_type<tc>, window_params = [{transform_indices = @transform_0, window_bounds = array<i64: 512, 128>}, {pipeline_mode = #tpu.pipeline_mode<synchronous>, transform_indices = @transform_1, window_bounds = array<i64: 1, 128>}, {pipeline_mode = #tpu.pipeline_mode<synchronous>, transform_indices = @transform_2, window_bounds = array<i64: 1, 128>}, {transform_indices = @transform_3, window_bounds = array<i64: 512, 128>}, {transform_indices = @transform_4, window_bounds = array<i64: 512, 128>}]} {
    %c0 = arith.constant 0 : index
    %c0_0 = arith.constant 0 : index
    %0 = vector.load %arg1[%c0, %c0_0] : memref<512x128xbf16, #tpu.memory_space<vmem>>, vector<512x128xbf16>
    %1 = arith.extf %0 : vector<512x128xbf16> to vector<512x128xf32>
    %c0_1 = arith.constant 0 : index
    %c0_2 = arith.constant 0 : index
    %2 = vector.load %arg2[%c0_1, %c0_2] : memref<1x128xf32, #tpu.memory_space<vmem>>, vector<1x128xf32>
    %3 = vector.broadcast %2 : vector<1x128xf32> to vector<512x128xf32>
    %4 = arith.mulf %1, %3 : vector<512x128xf32>
    %c0_3 = arith.constant 0 : index
    %c0_4 = arith.constant 0 : index
    %5 = vector.load %arg3[%c0_3, %c0_4] : memref<1x128xf32, #tpu.memory_space<vmem>>, vector<1x128xf32>
    %6 = vector.broadcast %5 : vector<1x128xf32> to vector<512x128xf32>
    %7 = arith.addf %4, %6 : vector<512x128xf32>
    %c0_5 = arith.constant 0 : index
    %c0_6 = arith.constant 0 : index
    %8 = vector.load %arg4[%c0_5, %c0_6] : memref<512x128xbf16, #tpu.memory_space<vmem>>, vector<512x128xbf16>
    %9 = arith.extf %8 : vector<512x128xbf16> to vector<512x128xf32>
    %10 = arith.addf %7, %9 : vector<512x128xf32>
    %11 = arith.truncf %10 : vector<512x128xf32> to vector<512x128xbf16>
    %c0_7 = arith.constant 0 : index
    %c0_8 = arith.constant 0 : index
    %12 = vector.load %arg5[%c0_7, %c0_8] : memref<512x128xbf16, #tpu.memory_space<vmem>>, vector<512x128xbf16>
    tpu.vector_store %arg5[%c0_7, %c0_8], %11 {strides = array<i32>} : memref<512x128xbf16, #tpu.memory_space<vmem>>, vector<512x128xbf16>,
    return
  }
  func.func @transform_0(%arg0: i32) -> (i32, i32) {
    %c0_i32 = arith.constant 0 : i32
    %c0_i32_0 = arith.constant 0 : i32
    return %arg0, %c0_i32 : i32, i32
  }
  func.func @transform_1(%arg0: i32) -> (i32, i32) {
    %c0_i32 = arith.constant 0 : i32
    %c0_i32_0 = arith.constant 0 : i32
    %c0_i32_1 = arith.constant 0 : i32
    return %c0_i32, %c0_i32_0 : i32, i32
  }
  func.func @transform_2(%arg0: i32) -> (i32, i32) {
    %c0_i32 = arith.constant 0 : i32
    %c0_i32_0 = arith.constant 0 : i32
    %c0_i32_1 = arith.constant 0 : i32
    return %c0_i32, %c0_i32_0 : i32, i32
  }
  func.func @transform_3(%arg0: i32) -> (i32, i32) {
    %c0_i32 = arith.constant 0 : i32
    %c0_i32_0 = arith.constant 0 : i32
    return %arg0, %c0_i32 : i32, i32
  }
  func.func @transform_4(%arg0: i32) -> (i32, i32) {
    %c0_i32 = arith.constant 0 : i32
    %c0_i32_0 = arith.constant 0 : i32
    return %arg0, %c0_i32 : i32, i32
  }
}

module attributes {stable_mosaic.version = 11 : i64} {
  func.func @_conv3x3_bn_stats_kernel(%arg0: i32, %arg1: i32, %arg2: memref<1x16x16x128xbf16, #tpu.memory_space<vmem>>, %arg3: memref<3x384x128xbf16, #tpu.memory_space<vmem>>, %arg4: memref<1x128xf32, #tpu.memory_space<vmem>>, %arg5: memref<1x128xf32, #tpu.memory_space<vmem>>, %arg6: memref<1x16x16x128xbf16, #tpu.memory_space<vmem>>, %arg7: memref<1x2x128xf32, #tpu.memory_space<vmem>>, %arg8: memref<18x18x128xbf16, #tpu.memory_space<vmem>>, %arg9: memref<256x128xf32, #tpu.memory_space<vmem>>) attributes {dimension_semantics = [#tpu.dimension_semantics<parallel>, #tpu.dimension_semantics<arbitrary>], iteration_bounds = array<i64: 2, 1>, scalar_prefetch = 0 : i64, scratch_operands = 2 : i64, tpu.core_type = #tpu.core_type<tc>, window_params = [{transform_indices = @transform_0, window_bounds = array<i64: 1, 16, 16, 128>}, {pipeline_mode = #tpu.pipeline_mode<synchronous>, transform_indices = @transform_1, window_bounds = array<i64: 3, 384, 128>}, {pipeline_mode = #tpu.pipeline_mode<synchronous>, transform_indices = @transform_2, window_bounds = array<i64: 1, 128>}, {pipeline_mode = #tpu.pipeline_mode<synchronous>, transform_indices = @transform_3, window_bounds = array<i64: 1, 128>}, {transform_indices = @transform_4, window_bounds = array<i64: 1, 16, 16, 128>}, {transform_indices = @transform_5, window_bounds = array<i64: 1, 2, 128>}]} {
    %c16_i32 = arith.constant 16 : i32
    %0 = arith.muli %arg1, %c16_i32 : i32
    %1 = tpu.assume_multiple %0, 16 : i32
    %c0_i32 = arith.constant 0 : i32
    %2 = arith.cmpi eq, %arg1, %c0_i32 : i32
    %3 = arith.extui %2 : i1 to i32
    %c0_i32_0 = arith.constant 0 : i32
    %4 = arith.cmpi ne, %3, %c0_i32_0 : i32
    scf.if %4 {
      %cst_74 = arith.constant 0.000000e+00 : f32
      %66 = vector.broadcast %cst_74 : f32 to vector<2x128xf32>
      %c0_75 = arith.constant 0 : index
      %c0_76 = arith.constant 0 : index
      %c0_77 = arith.constant 0 : index
      %67 = vector.load %arg7[%c0_75, %c0_76, %c0_77] : memref<1x2x128xf32, #tpu.memory_space<vmem>>, vector<1x2x128xf32>
      %68 = vector.shape_cast %67 : vector<1x2x128xf32> to vector<2x128xf32>
      %69 = vector.shape_cast %66 : vector<2x128xf32> to vector<1x2x128xf32>
      tpu.vector_store %arg7[%c0_75, %c0_76, %c0_77], %69 {strides = array<i32>} : memref<1x2x128xf32, #tpu.memory_space<vmem>>, vector<1x2x128xf32>,
    } else {
    }
    %cst = arith.constant 0.000000e+00 : bf16
    %5 = vector.broadcast %cst : bf16 to vector<18x18x128xbf16>
    %c0 = arith.constant 0 : index
    %c0_1 = arith.constant 0 : index
    %c0_2 = arith.constant 0 : index
    %6 = vector.load %arg8[%c0, %c0_1, %c0_2] : memref<18x18x128xbf16, #tpu.memory_space<vmem>>, vector<18x18x128xbf16>
    tpu.vector_store %arg8[%c0, %c0_1, %c0_2], %5 {strides = array<i32>} : memref<18x18x128xbf16, #tpu.memory_space<vmem>>, vector<18x18x128xbf16>,
    %c0_3 = arith.constant 0 : index
    %7 = arith.index_cast %1 : i32 to index
    %c0_4 = arith.constant 0 : index
    %c0_5 = arith.constant 0 : index
    %8 = vector.load %arg2[%c0_3, %7, %c0_4, %c0_5] : memref<1x16x16x128xbf16, #tpu.memory_space<vmem>>, vector<1x16x16x128xbf16>
    %9 = vector.shape_cast %8 : vector<1x16x16x128xbf16> to vector<16x16x128xbf16>
    %c1 = arith.constant 1 : index
    %c1_6 = arith.constant 1 : index
    %c0_7 = arith.constant 0 : index
    %10 = vector.load %arg8[%c1, %c1_6, %c0_7] : memref<18x18x128xbf16, #tpu.memory_space<vmem>>, vector<16x16x128xbf16>
    tpu.vector_store %arg8[%c1, %c1_6, %c0_7], %9 {strides = array<i32>} : memref<18x18x128xbf16, #tpu.memory_space<vmem>>, vector<16x16x128xbf16>,
    %c0_i32_8 = arith.constant 0 : i32
    %11 = arith.cmpi sgt, %arg1, %c0_i32_8 : i32
    %12 = arith.extui %11 : i1 to i32
    %c0_i32_9 = arith.constant 0 : i32
    %13 = arith.cmpi ne, %12, %c0_i32_9 : i32
    scf.if %13 {
      %c1_i32 = arith.constant 1 : i32
      %66 = arith.subi %1, %c1_i32 : i32
      %c0_74 = arith.constant 0 : index
      %67 = arith.index_cast %66 : i32 to index
      %c0_75 = arith.constant 0 : index
      %c0_76 = arith.constant 0 : index
      %68 = vector.load %arg2[%c0_74, %67, %c0_75, %c0_76] : memref<1x16x16x128xbf16, #tpu.memory_space<vmem>>, vector<1x1x16x128xbf16>
      %69 = vector.shape_cast %68 : vector<1x1x16x128xbf16> to vector<1x16x128xbf16>
      %c0_77 = arith.constant 0 : index
      %c1_78 = arith.constant 1 : index
      %c0_79 = arith.constant 0 : index
      %70 = vector.load %arg8[%c0_77, %c1_78, %c0_79] : memref<18x18x128xbf16, #tpu.memory_space<vmem>>, vector<1x16x128xbf16>
      tpu.vector_store %arg8[%c0_77, %c1_78, %c0_79], %69 {strides = array<i32>} : memref<18x18x128xbf16, #tpu.memory_space<vmem>>, vector<1x16x128xbf16>,
    } else {
    }
    %c0_i32_10 = arith.constant 0 : i32
    %14 = arith.cmpi slt, %arg1, %c0_i32_10 : i32
    %15 = arith.extui %14 : i1 to i32
    %c0_i32_11 = arith.constant 0 : i32
    %16 = arith.cmpi ne, %15, %c0_i32_11 : i32
    scf.if %16 {
      %c16_i32_74 = arith.constant 16 : i32
      %66 = arith.addi %1, %c16_i32_74 : i32
      %c0_75 = arith.constant 0 : index
      %67 = arith.index_cast %66 : i32 to index
      %c0_76 = arith.constant 0 : index
      %c0_77 = arith.constant 0 : index
      %68 = vector.load %arg2[%c0_75, %67, %c0_76, %c0_77] : memref<1x16x16x128xbf16, #tpu.memory_space<vmem>>, vector<1x1x16x128xbf16>
      %69 = vector.shape_cast %68 : vector<1x1x16x128xbf16> to vector<1x16x128xbf16>
      %c17 = arith.constant 17 : index
      %c1_78 = arith.constant 1 : index
      %c0_79 = arith.constant 0 : index
      %70 = vector.load %arg8[%c17, %c1_78, %c0_79] : memref<18x18x128xbf16, #tpu.memory_space<vmem>>, vector<1x16x128xbf16>
      tpu.vector_store %arg8[%c17, %c1_78, %c0_79], %69 {strides = array<i32>} : memref<18x18x128xbf16, #tpu.memory_space<vmem>>, vector<1x16x128xbf16>,
    } else {
    }
    %c0_12 = arith.constant 0 : index
    %c0_13 = arith.constant 0 : index
    %c0_14 = arith.constant 0 : index
    %17 = vector.load %arg8[%c0_12, %c0_13, %c0_14] : memref<18x18x128xbf16, #tpu.memory_space<vmem>>, vector<16x16x128xbf16>
    %c0_15 = arith.constant 0 : index
    %c1_16 = arith.constant 1 : index
    %c0_17 = arith.constant 0 : index
    %18 = vector.load %arg8[%c0_15, %c1_16, %c0_17] : memref<18x18x128xbf16, #tpu.memory_space<vmem>>, vector<16x16x128xbf16>
    %c0_18 = arith.constant 0 : index
    %c2 = arith.constant 2 : index
    %c0_19 = arith.constant 0 : index
    %19 = vector.load %arg8[%c0_18, %c2, %c0_19] : memref<18x18x128xbf16, #tpu.memory_space<vmem>>, vector<16x16x128xbf16>
    %20 = tpu.concatenate %17, %18, %19 in 2 : vector<16x16x128xbf16>, vector<16x16x128xbf16>, vector<16x16x128xbf16> -> vector<16x16x384xbf16>
    %21 = vector.shape_cast %20 : vector<16x16x384xbf16> to vector<256x384xbf16>
    %c0_20 = arith.constant 0 : index
    %c0_21 = arith.constant 0 : index
    %c0_22 = arith.constant 0 : index
    %22 = vector.load %arg3[%c0_20, %c0_21, %c0_22] : memref<3x384x128xbf16, #tpu.memory_space<vmem>>, vector<1x384x128xbf16>
    %23 = vector.shape_cast %22 : vector<1x384x128xbf16> to vector<384x128xbf16>
    %cst_23 = arith.constant dense<0.000000e+00> : vector<256x128xf32>
    %24 = tpu.matmul %21, %23, %cst_23 {dimension_numbers = #tpu.dot_dimension_numbers<[1], [0], [0], [1], [0, 0, 1, 1], [], []>} : vector<256x384xbf16>, vector<384x128xbf16>, vector<256x128xf32> -> vector<256x128xf32>
    %c0_24 = arith.constant 0 : index
    %c0_25 = arith.constant 0 : index
    %25 = vector.load %arg9[%c0_24, %c0_25] : memref<256x128xf32, #tpu.memory_space<vmem>>, vector<256x128xf32>
    tpu.vector_store %arg9[%c0_24, %c0_25], %24 {strides = array<i32>} : memref<256x128xf32, #tpu.memory_space<vmem>>, vector<256x128xf32>,
    %c1_26 = arith.constant 1 : index
    %c0_27 = arith.constant 0 : index
    %c0_28 = arith.constant 0 : index
    %26 = vector.load %arg8[%c1_26, %c0_27, %c0_28] : memref<18x18x128xbf16, #tpu.memory_space<vmem>>, vector<16x16x128xbf16>
    %c1_29 = arith.constant 1 : index
    %c1_30 = arith.constant 1 : index
    %c0_31 = arith.constant 0 : index
    %27 = vector.load %arg8[%c1_29, %c1_30, %c0_31] : memref<18x18x128xbf16, #tpu.memory_space<vmem>>, vector<16x16x128xbf16>
    %c1_32 = arith.constant 1 : index
    %c2_33 = arith.constant 2 : index
    %c0_34 = arith.constant 0 : index
    %28 = vector.load %arg8[%c1_32, %c2_33, %c0_34] : memref<18x18x128xbf16, #tpu.memory_space<vmem>>, vector<16x16x128xbf16>
    %29 = tpu.concatenate %26, %27, %28 in 2 : vector<16x16x128xbf16>, vector<16x16x128xbf16>, vector<16x16x128xbf16> -> vector<16x16x384xbf16>
    %30 = vector.shape_cast %29 : vector<16x16x384xbf16> to vector<256x384xbf16>
    %c1_35 = arith.constant 1 : index
    %c0_36 = arith.constant 0 : index
    %c0_37 = arith.constant 0 : index
    %31 = vector.load %arg3[%c1_35, %c0_36, %c0_37] : memref<3x384x128xbf16, #tpu.memory_space<vmem>>, vector<1x384x128xbf16>
    %32 = vector.shape_cast %31 : vector<1x384x128xbf16> to vector<384x128xbf16>
    %cst_38 = arith.constant dense<0.000000e+00> : vector<256x128xf32>
    %33 = tpu.matmul %30, %32, %cst_38 {dimension_numbers = #tpu.dot_dimension_numbers<[1], [0], [0], [1], [0, 0, 1, 1], [], []>} : vector<256x384xbf16>, vector<384x128xbf16>, vector<256x128xf32> -> vector<256x128xf32>
    %c0_39 = arith.constant 0 : index
    %c0_40 = arith.constant 0 : index
    %34 = vector.load %arg9[%c0_39, %c0_40] : memref<256x128xf32, #tpu.memory_space<vmem>>, vector<256x128xf32>
    %35 = arith.addf %34, %33 : vector<256x128xf32>
    %c0_41 = arith.constant 0 : index
    %c0_42 = arith.constant 0 : index
    %36 = vector.load %arg9[%c0_41, %c0_42] : memref<256x128xf32, #tpu.memory_space<vmem>>, vector<256x128xf32>
    tpu.vector_store %arg9[%c0_41, %c0_42], %35 {strides = array<i32>} : memref<256x128xf32, #tpu.memory_space<vmem>>, vector<256x128xf32>,
    %c2_43 = arith.constant 2 : index
    %c0_44 = arith.constant 0 : index
    %c0_45 = arith.constant 0 : index
    %37 = vector.load %arg8[%c2_43, %c0_44, %c0_45] : memref<18x18x128xbf16, #tpu.memory_space<vmem>>, vector<16x16x128xbf16>
    %c2_46 = arith.constant 2 : index
    %c1_47 = arith.constant 1 : index
    %c0_48 = arith.constant 0 : index
    %38 = vector.load %arg8[%c2_46, %c1_47, %c0_48] : memref<18x18x128xbf16, #tpu.memory_space<vmem>>, vector<16x16x128xbf16>
    %c2_49 = arith.constant 2 : index
    %c2_50 = arith.constant 2 : index
    %c0_51 = arith.constant 0 : index
    %39 = vector.load %arg8[%c2_49, %c2_50, %c0_51] : memref<18x18x128xbf16, #tpu.memory_space<vmem>>, vector<16x16x128xbf16>
    %40 = tpu.concatenate %37, %38, %39 in 2 : vector<16x16x128xbf16>, vector<16x16x128xbf16>, vector<16x16x128xbf16> -> vector<16x16x384xbf16>
    %41 = vector.shape_cast %40 : vector<16x16x384xbf16> to vector<256x384xbf16>
    %c2_52 = arith.constant 2 : index
    %c0_53 = arith.constant 0 : index
    %c0_54 = arith.constant 0 : index
    %42 = vector.load %arg3[%c2_52, %c0_53, %c0_54] : memref<3x384x128xbf16, #tpu.memory_space<vmem>>, vector<1x384x128xbf16>
    %43 = vector.shape_cast %42 : vector<1x384x128xbf16> to vector<384x128xbf16>
    %cst_55 = arith.constant dense<0.000000e+00> : vector<256x128xf32>
    %44 = tpu.matmul %41, %43, %cst_55 {dimension_numbers = #tpu.dot_dimension_numbers<[1], [0], [0], [1], [0, 0, 1, 1], [], []>} : vector<256x384xbf16>, vector<384x128xbf16>, vector<256x128xf32> -> vector<256x128xf32>
    %c0_56 = arith.constant 0 : index
    %c0_57 = arith.constant 0 : index
    %45 = vector.load %arg9[%c0_56, %c0_57] : memref<256x128xf32, #tpu.memory_space<vmem>>, vector<256x128xf32>
    %46 = arith.addf %45, %44 : vector<256x128xf32>
    %c0_58 = arith.constant 0 : index
    %c0_59 = arith.constant 0 : index
    %47 = vector.load %arg9[%c0_58, %c0_59] : memref<256x128xf32, #tpu.memory_space<vmem>>, vector<256x128xf32>
    tpu.vector_store %arg9[%c0_58, %c0_59], %46 {strides = array<i32>} : memref<256x128xf32, #tpu.memory_space<vmem>>, vector<256x128xf32>,
    %c0_60 = arith.constant 0 : index
    %c0_61 = arith.constant 0 : index
    %48 = vector.load %arg9[%c0_60, %c0_61] : memref<256x128xf32, #tpu.memory_space<vmem>>, vector<256x128xf32>
    %49 = vector.shape_cast %48 : vector<256x128xf32> to vector<16x16x128xf32>
    %50 = arith.truncf %49 : vector<16x16x128xf32> to vector<16x16x128xbf16>
    %c0_62 = arith.constant 0 : index
    %c0_63 = arith.constant 0 : index
    %c0_64 = arith.constant 0 : index
    %c0_65 = arith.constant 0 : index
    %51 = vector.load %arg6[%c0_62, %c0_63, %c0_64, %c0_65] : memref<1x16x16x128xbf16, #tpu.memory_space<vmem>>, vector<1x16x16x128xbf16>
    %52 = vector.shape_cast %51 : vector<1x16x16x128xbf16> to vector<16x16x128xbf16>
    %53 = vector.shape_cast %50 : vector<16x16x128xbf16> to vector<1x16x16x128xbf16>
    tpu.vector_store %arg6[%c0_62, %c0_63, %c0_64, %c0_65], %53 {strides = array<i32>} : memref<1x16x16x128xbf16, #tpu.memory_space<vmem>>, vector<1x16x16x128xbf16>,
    %c0_66 = arith.constant 0 : index
    %c0_67 = arith.constant 0 : index
    %c0_68 = arith.constant 0 : index
    %54 = vector.load %arg7[%c0_66, %c0_67, %c0_68] : memref<1x2x128xf32, #tpu.memory_space<vmem>>, vector<1x2x128xf32>
    %55 = vector.shape_cast %54 : vector<1x2x128xf32> to vector<2x128xf32>
    %cst_69 = arith.constant dense<0.000000e+00> : vector<128xf32>
    %56 = vector.multi_reduction <add>, %48, %cst_69 [0] : vector<256x128xf32> to vector<128xf32>
    %57 = vector.shape_cast %56 : vector<128xf32> to vector<1x128xf32>
    %58 = arith.mulf %48, %48 : vector<256x128xf32>
    %cst_70 = arith.constant dense<0.000000e+00> : vector<128xf32>
    %59 = vector.multi_reduction <add>, %58, %cst_70 [0] : vector<256x128xf32> to vector<128xf32>
    %60 = vector.shape_cast %59 : vector<128xf32> to vector<1x128xf32>
    %61 = tpu.concatenate %57, %60 in 0 : vector<1x128xf32>, vector<1x128xf32> -> vector<2x128xf32>
    %62 = arith.addf %55, %61 : vector<2x128xf32>
    %c0_71 = arith.constant 0 : index
    %c0_72 = arith.constant 0 : index
    %c0_73 = arith.constant 0 : index
    %63 = vector.load %arg7[%c0_71, %c0_72, %c0_73] : memref<1x2x128xf32, #tpu.memory_space<vmem>>, vector<1x2x128xf32>
    %64 = vector.shape_cast %63 : vector<1x2x128xf32> to vector<2x128xf32>
    %65 = vector.shape_cast %62 : vector<2x128xf32> to vector<1x2x128xf32>
    tpu.vector_store %arg7[%c0_71, %c0_72, %c0_73], %65 {strides = array<i32>} : memref<1x2x128xf32, #tpu.memory_space<vmem>>, vector<1x2x128xf32>,
    return
  }
  func.func @transform_0(%arg0: i32, %arg1: i32) -> (i32, i32, i32, i32) {
    %c0_i32 = arith.constant 0 : i32
    %c0_i32_0 = arith.constant 0 : i32
    %c0_i32_1 = arith.constant 0 : i32
    %c0_i32_2 = arith.constant 0 : i32
    return %arg0, %c0_i32, %c0_i32_0, %c0_i32_1 : i32, i32, i32, i32
  }
  func.func @transform_1(%arg0: i32, %arg1: i32) -> (i32, i32, i32) {
    %c0_i32 = arith.constant 0 : i32
    %c0_i32_0 = arith.constant 0 : i32
    %c0_i32_1 = arith.constant 0 : i32
    %c0_i32_2 = arith.constant 0 : i32
    return %c0_i32, %c0_i32_0, %c0_i32_1 : i32, i32, i32
  }
  func.func @transform_2(%arg0: i32, %arg1: i32) -> (i32, i32) {
    %c0_i32 = arith.constant 0 : i32
    %c0_i32_0 = arith.constant 0 : i32
    %c0_i32_1 = arith.constant 0 : i32
    return %c0_i32, %c0_i32_0 : i32, i32
  }
  func.func @transform_3(%arg0: i32, %arg1: i32) -> (i32, i32) {
    %c0_i32 = arith.constant 0 : i32
    %c0_i32_0 = arith.constant 0 : i32
    %c0_i32_1 = arith.constant 0 : i32
    return %c0_i32, %c0_i32_0 : i32, i32
  }
  func.func @transform_4(%arg0: i32, %arg1: i32) -> (i32, i32, i32, i32) {
    %c0_i32 = arith.constant 0 : i32
    %c0_i32_0 = arith.constant 0 : i32
    %c0_i32_1 = arith.constant 0 : i32
    return %arg0, %arg1, %c0_i32, %c0_i32_0 : i32, i32, i32, i32
  }
  func.func @transform_5(%arg0: i32, %arg1: i32) -> (i32, i32, i32) {
    %c0_i32 = arith.constant 0 : i32
    %c0_i32_0 = arith.constant 0 : i32
    %c0_i32_1 = arith.constant 0 : i32
    return %arg0, %c0_i32, %c0_i32_0 : i32, i32, i32
  }
}

module attributes {stable_mosaic.version = 11 : i64} {
  func.func @_conv3x3_bn_stats_kernel(%arg0: i32, %arg1: i32, %arg2: memref<1x16x16x128xbf16, #tpu.memory_space<vmem>>, %arg3: memref<3x384x128xbf16, #tpu.memory_space<vmem>>, %arg4: memref<1x128xf32, #tpu.memory_space<vmem>>, %arg5: memref<1x128xf32, #tpu.memory_space<vmem>>, %arg6: memref<1x16x16x128xbf16, #tpu.memory_space<vmem>>, %arg7: memref<1x2x128xf32, #tpu.memory_space<vmem>>, %arg8: memref<18x18x128xbf16, #tpu.memory_space<vmem>>, %arg9: memref<256x128xf32, #tpu.memory_space<vmem>>) attributes {dimension_semantics = [#tpu.dimension_semantics<parallel>, #tpu.dimension_semantics<arbitrary>], iteration_bounds = array<i64: 2, 1>, scalar_prefetch = 0 : i64, scratch_operands = 2 : i64, tpu.core_type = #tpu.core_type<tc>, window_params = [{transform_indices = @transform_0, window_bounds = array<i64: 1, 16, 16, 128>}, {pipeline_mode = #tpu.pipeline_mode<synchronous>, transform_indices = @transform_1, window_bounds = array<i64: 3, 384, 128>}, {pipeline_mode = #tpu.pipeline_mode<synchronous>, transform_indices = @transform_2, window_bounds = array<i64: 1, 128>}, {pipeline_mode = #tpu.pipeline_mode<synchronous>, transform_indices = @transform_3, window_bounds = array<i64: 1, 128>}, {transform_indices = @transform_4, window_bounds = array<i64: 1, 16, 16, 128>}, {transform_indices = @transform_5, window_bounds = array<i64: 1, 2, 128>}]} {
    %c16_i32 = arith.constant 16 : i32
    %0 = arith.muli %arg1, %c16_i32 : i32
    %1 = tpu.assume_multiple %0, 16 : i32
    %c0_i32 = arith.constant 0 : i32
    %2 = arith.cmpi eq, %arg1, %c0_i32 : i32
    %3 = arith.extui %2 : i1 to i32
    %c0_i32_0 = arith.constant 0 : i32
    %4 = arith.cmpi ne, %3, %c0_i32_0 : i32
    scf.if %4 {
      %cst_79 = arith.constant 0.000000e+00 : f32
      %78 = vector.broadcast %cst_79 : f32 to vector<2x128xf32>
      %c0_80 = arith.constant 0 : index
      %c0_81 = arith.constant 0 : index
      %c0_82 = arith.constant 0 : index
      %79 = vector.load %arg7[%c0_80, %c0_81, %c0_82] : memref<1x2x128xf32, #tpu.memory_space<vmem>>, vector<1x2x128xf32>
      %80 = vector.shape_cast %79 : vector<1x2x128xf32> to vector<2x128xf32>
      %81 = vector.shape_cast %78 : vector<2x128xf32> to vector<1x2x128xf32>
      tpu.vector_store %arg7[%c0_80, %c0_81, %c0_82], %81 {strides = array<i32>} : memref<1x2x128xf32, #tpu.memory_space<vmem>>, vector<1x2x128xf32>,
    } else {
    }
    %cst = arith.constant 0.000000e+00 : bf16
    %5 = vector.broadcast %cst : bf16 to vector<18x18x128xbf16>
    %c0 = arith.constant 0 : index
    %c0_1 = arith.constant 0 : index
    %c0_2 = arith.constant 0 : index
    %6 = vector.load %arg8[%c0, %c0_1, %c0_2] : memref<18x18x128xbf16, #tpu.memory_space<vmem>>, vector<18x18x128xbf16>
    tpu.vector_store %arg8[%c0, %c0_1, %c0_2], %5 {strides = array<i32>} : memref<18x18x128xbf16, #tpu.memory_space<vmem>>, vector<18x18x128xbf16>,
    %c0_3 = arith.constant 0 : index
    %7 = arith.index_cast %1 : i32 to index
    %c0_4 = arith.constant 0 : index
    %c0_5 = arith.constant 0 : index
    %8 = vector.load %arg2[%c0_3, %7, %c0_4, %c0_5] : memref<1x16x16x128xbf16, #tpu.memory_space<vmem>>, vector<1x16x16x128xbf16>
    %9 = vector.shape_cast %8 : vector<1x16x16x128xbf16> to vector<16x16x128xbf16>
    %10 = arith.extf %9 : vector<16x16x128xbf16> to vector<16x16x128xf32>
    %c0_6 = arith.constant 0 : index
    %c0_7 = arith.constant 0 : index
    %11 = vector.load %arg4[%c0_6, %c0_7] : memref<1x128xf32, #tpu.memory_space<vmem>>, vector<1x128xf32>
    %12 = vector.shape_cast %11 : vector<1x128xf32> to vector<1x1x128xf32>
    %13 = vector.broadcast %12 : vector<1x1x128xf32> to vector<16x16x128xf32>
    %14 = arith.mulf %10, %13 : vector<16x16x128xf32>
    %c0_8 = arith.constant 0 : index
    %c0_9 = arith.constant 0 : index
    %15 = vector.load %arg5[%c0_8, %c0_9] : memref<1x128xf32, #tpu.memory_space<vmem>>, vector<1x128xf32>
    %16 = vector.shape_cast %15 : vector<1x128xf32> to vector<1x1x128xf32>
    %17 = vector.broadcast %16 : vector<1x1x128xf32> to vector<16x16x128xf32>
    %18 = arith.addf %14, %17 : vector<16x16x128xf32>
    %cst_10 = arith.constant 0.000000e+00 : f32
    %19 = vector.broadcast %cst_10 : f32 to vector<16x16x128xf32>
    %20 = arith.maximumf %18, %19 : vector<16x16x128xf32>
    %21 = arith.truncf %20 : vector<16x16x128xf32> to vector<16x16x128xbf16>
    %c1 = arith.constant 1 : index
    %c1_11 = arith.constant 1 : index
    %c0_12 = arith.constant 0 : index
    %22 = vector.load %arg8[%c1, %c1_11, %c0_12] : memref<18x18x128xbf16, #tpu.memory_space<vmem>>, vector<16x16x128xbf16>
    tpu.vector_store %arg8[%c1, %c1_11, %c0_12], %21 {strides = array<i32>} : memref<18x18x128xbf16, #tpu.memory_space<vmem>>, vector<16x16x128xbf16>,
    %c0_i32_13 = arith.constant 0 : i32
    %23 = arith.cmpi sgt, %arg1, %c0_i32_13 : i32
    %24 = arith.extui %23 : i1 to i32
    %c0_i32_14 = arith.constant 0 : i32
    %25 = arith.cmpi ne, %24, %c0_i32_14 : i32
    scf.if %25 {
      %c1_i32 = arith.constant 1 : i32
      %78 = arith.subi %1, %c1_i32 : i32
      %c0_79 = arith.constant 0 : index
      %79 = arith.index_cast %78 : i32 to index
      %c0_80 = arith.constant 0 : index
      %c0_81 = arith.constant 0 : index
      %80 = vector.load %arg2[%c0_79, %79, %c0_80, %c0_81] : memref<1x16x16x128xbf16, #tpu.memory_space<vmem>>, vector<1x1x16x128xbf16>
      %81 = vector.shape_cast %80 : vector<1x1x16x128xbf16> to vector<1x16x128xbf16>
      %82 = arith.extf %81 : vector<1x16x128xbf16> to vector<1x16x128xf32>
      %c0_82 = arith.constant 0 : index
      %c0_83 = arith.constant 0 : index
      %83 = vector.load %arg4[%c0_82, %c0_83] : memref<1x128xf32, #tpu.memory_space<vmem>>, vector<1x128xf32>
      %84 = vector.shape_cast %83 : vector<1x128xf32> to vector<1x1x128xf32>
      %85 = vector.broadcast %84 : vector<1x1x128xf32> to vector<1x16x128xf32>
      %86 = arith.mulf %82, %85 : vector<1x16x128xf32>
      %c0_84 = arith.constant 0 : index
      %c0_85 = arith.constant 0 : index
      %87 = vector.load %arg5[%c0_84, %c0_85] : memref<1x128xf32, #tpu.memory_space<vmem>>, vector<1x128xf32>
      %88 = vector.shape_cast %87 : vector<1x128xf32> to vector<1x1x128xf32>
      %89 = vector.broadcast %88 : vector<1x1x128xf32> to vector<1x16x128xf32>
      %90 = arith.addf %86, %89 : vector<1x16x128xf32>
      %cst_86 = arith.constant 0.000000e+00 : f32
      %91 = vector.broadcast %cst_86 : f32 to vector<1x16x128xf32>
      %92 = arith.maximumf %90, %91 : vector<1x16x128xf32>
      %93 = arith.truncf %92 : vector<1x16x128xf32> to vector<1x16x128xbf16>
      %c0_87 = arith.constant 0 : index
      %c1_88 = arith.constant 1 : index
      %c0_89 = arith.constant 0 : index
      %94 = vector.load %arg8[%c0_87, %c1_88, %c0_89] : memref<18x18x128xbf16, #tpu.memory_space<vmem>>, vector<1x16x128xbf16>
      tpu.vector_store %arg8[%c0_87, %c1_88, %c0_89], %93 {strides = array<i32>} : memref<18x18x128xbf16, #tpu.memory_space<vmem>>, vector<1x16x128xbf16>,
    } else {
    }
    %c0_i32_15 = arith.constant 0 : i32
    %26 = arith.cmpi slt, %arg1, %c0_i32_15 : i32
    %27 = arith.extui %26 : i1 to i32
    %c0_i32_16 = arith.constant 0 : i32
    %28 = arith.cmpi ne, %27, %c0_i32_16 : i32
    scf.if %28 {
      %c16_i32_79 = arith.constant 16 : i32
      %78 = arith.addi %1, %c16_i32_79 : i32
      %c0_80 = arith.constant 0 : index
      %79 = arith.index_cast %78 : i32 to index
      %c0_81 = arith.constant 0 : index
      %c0_82 = arith.constant 0 : index
      %80 = vector.load %arg2[%c0_80, %79, %c0_81, %c0_82] : memref<1x16x16x128xbf16, #tpu.memory_space<vmem>>, vector<1x1x16x128xbf16>
      %81 = vector.shape_cast %80 : vector<1x1x16x128xbf16> to vector<1x16x128xbf16>
      %82 = arith.extf %81 : vector<1x16x128xbf16> to vector<1x16x128xf32>
      %c0_83 = arith.constant 0 : index
      %c0_84 = arith.constant 0 : index
      %83 = vector.load %arg4[%c0_83, %c0_84] : memref<1x128xf32, #tpu.memory_space<vmem>>, vector<1x128xf32>
      %84 = vector.shape_cast %83 : vector<1x128xf32> to vector<1x1x128xf32>
      %85 = vector.broadcast %84 : vector<1x1x128xf32> to vector<1x16x128xf32>
      %86 = arith.mulf %82, %85 : vector<1x16x128xf32>
      %c0_85 = arith.constant 0 : index
      %c0_86 = arith.constant 0 : index
      %87 = vector.load %arg5[%c0_85, %c0_86] : memref<1x128xf32, #tpu.memory_space<vmem>>, vector<1x128xf32>
      %88 = vector.shape_cast %87 : vector<1x128xf32> to vector<1x1x128xf32>
      %89 = vector.broadcast %88 : vector<1x1x128xf32> to vector<1x16x128xf32>
      %90 = arith.addf %86, %89 : vector<1x16x128xf32>
      %cst_87 = arith.constant 0.000000e+00 : f32
      %91 = vector.broadcast %cst_87 : f32 to vector<1x16x128xf32>
      %92 = arith.maximumf %90, %91 : vector<1x16x128xf32>
      %93 = arith.truncf %92 : vector<1x16x128xf32> to vector<1x16x128xbf16>
      %c17 = arith.constant 17 : index
      %c1_88 = arith.constant 1 : index
      %c0_89 = arith.constant 0 : index
      %94 = vector.load %arg8[%c17, %c1_88, %c0_89] : memref<18x18x128xbf16, #tpu.memory_space<vmem>>, vector<1x16x128xbf16>
      tpu.vector_store %arg8[%c17, %c1_88, %c0_89], %93 {strides = array<i32>} : memref<18x18x128xbf16, #tpu.memory_space<vmem>>, vector<1x16x128xbf16>,
    } else {
    }
    %c0_17 = arith.constant 0 : index
    %c0_18 = arith.constant 0 : index
    %c0_19 = arith.constant 0 : index
    %29 = vector.load %arg8[%c0_17, %c0_18, %c0_19] : memref<18x18x128xbf16, #tpu.memory_space<vmem>>, vector<16x16x128xbf16>
    %c0_20 = arith.constant 0 : index
    %c1_21 = arith.constant 1 : index
    %c0_22 = arith.constant 0 : index
    %30 = vector.load %arg8[%c0_20, %c1_21, %c0_22] : memref<18x18x128xbf16, #tpu.memory_space<vmem>>, vector<16x16x128xbf16>
    %c0_23 = arith.constant 0 : index
    %c2 = arith.constant 2 : index
    %c0_24 = arith.constant 0 : index
    %31 = vector.load %arg8[%c0_23, %c2, %c0_24] : memref<18x18x128xbf16, #tpu.memory_space<vmem>>, vector<16x16x128xbf16>
    %32 = tpu.concatenate %29, %30, %31 in 2 : vector<16x16x128xbf16>, vector<16x16x128xbf16>, vector<16x16x128xbf16> -> vector<16x16x384xbf16>
    %33 = vector.shape_cast %32 : vector<16x16x384xbf16> to vector<256x384xbf16>
    %c0_25 = arith.constant 0 : index
    %c0_26 = arith.constant 0 : index
    %c0_27 = arith.constant 0 : index
    %34 = vector.load %arg3[%c0_25, %c0_26, %c0_27] : memref<3x384x128xbf16, #tpu.memory_space<vmem>>, vector<1x384x128xbf16>
    %35 = vector.shape_cast %34 : vector<1x384x128xbf16> to vector<384x128xbf16>
    %cst_28 = arith.constant dense<0.000000e+00> : vector<256x128xf32>
    %36 = tpu.matmul %33, %35, %cst_28 {dimension_numbers = #tpu.dot_dimension_numbers<[1], [0], [0], [1], [0, 0, 1, 1], [], []>} : vector<256x384xbf16>, vector<384x128xbf16>, vector<256x128xf32> -> vector<256x128xf32>
    %c0_29 = arith.constant 0 : index
    %c0_30 = arith.constant 0 : index
    %37 = vector.load %arg9[%c0_29, %c0_30] : memref<256x128xf32, #tpu.memory_space<vmem>>, vector<256x128xf32>
    tpu.vector_store %arg9[%c0_29, %c0_30], %36 {strides = array<i32>} : memref<256x128xf32, #tpu.memory_space<vmem>>, vector<256x128xf32>,
    %c1_31 = arith.constant 1 : index
    %c0_32 = arith.constant 0 : index
    %c0_33 = arith.constant 0 : index
    %38 = vector.load %arg8[%c1_31, %c0_32, %c0_33] : memref<18x18x128xbf16, #tpu.memory_space<vmem>>, vector<16x16x128xbf16>
    %c1_34 = arith.constant 1 : index
    %c1_35 = arith.constant 1 : index
    %c0_36 = arith.constant 0 : index
    %39 = vector.load %arg8[%c1_34, %c1_35, %c0_36] : memref<18x18x128xbf16, #tpu.memory_space<vmem>>, vector<16x16x128xbf16>
    %c1_37 = arith.constant 1 : index
    %c2_38 = arith.constant 2 : index
    %c0_39 = arith.constant 0 : index
    %40 = vector.load %arg8[%c1_37, %c2_38, %c0_39] : memref<18x18x128xbf16, #tpu.memory_space<vmem>>, vector<16x16x128xbf16>
    %41 = tpu.concatenate %38, %39, %40 in 2 : vector<16x16x128xbf16>, vector<16x16x128xbf16>, vector<16x16x128xbf16> -> vector<16x16x384xbf16>
    %42 = vector.shape_cast %41 : vector<16x16x384xbf16> to vector<256x384xbf16>
    %c1_40 = arith.constant 1 : index
    %c0_41 = arith.constant 0 : index
    %c0_42 = arith.constant 0 : index
    %43 = vector.load %arg3[%c1_40, %c0_41, %c0_42] : memref<3x384x128xbf16, #tpu.memory_space<vmem>>, vector<1x384x128xbf16>
    %44 = vector.shape_cast %43 : vector<1x384x128xbf16> to vector<384x128xbf16>
    %cst_43 = arith.constant dense<0.000000e+00> : vector<256x128xf32>
    %45 = tpu.matmul %42, %44, %cst_43 {dimension_numbers = #tpu.dot_dimension_numbers<[1], [0], [0], [1], [0, 0, 1, 1], [], []>} : vector<256x384xbf16>, vector<384x128xbf16>, vector<256x128xf32> -> vector<256x128xf32>
    %c0_44 = arith.constant 0 : index
    %c0_45 = arith.constant 0 : index
    %46 = vector.load %arg9[%c0_44, %c0_45] : memref<256x128xf32, #tpu.memory_space<vmem>>, vector<256x128xf32>
    %47 = arith.addf %46, %45 : vector<256x128xf32>
    %c0_46 = arith.constant 0 : index
    %c0_47 = arith.constant 0 : index
    %48 = vector.load %arg9[%c0_46, %c0_47] : memref<256x128xf32, #tpu.memory_space<vmem>>, vector<256x128xf32>
    tpu.vector_store %arg9[%c0_46, %c0_47], %47 {strides = array<i32>} : memref<256x128xf32, #tpu.memory_space<vmem>>, vector<256x128xf32>,
    %c2_48 = arith.constant 2 : index
    %c0_49 = arith.constant 0 : index
    %c0_50 = arith.constant 0 : index
    %49 = vector.load %arg8[%c2_48, %c0_49, %c0_50] : memref<18x18x128xbf16, #tpu.memory_space<vmem>>, vector<16x16x128xbf16>
    %c2_51 = arith.constant 2 : index
    %c1_52 = arith.constant 1 : index
    %c0_53 = arith.constant 0 : index
    %50 = vector.load %arg8[%c2_51, %c1_52, %c0_53] : memref<18x18x128xbf16, #tpu.memory_space<vmem>>, vector<16x16x128xbf16>
    %c2_54 = arith.constant 2 : index
    %c2_55 = arith.constant 2 : index
    %c0_56 = arith.constant 0 : index
    %51 = vector.load %arg8[%c2_54, %c2_55, %c0_56] : memref<18x18x128xbf16, #tpu.memory_space<vmem>>, vector<16x16x128xbf16>
    %52 = tpu.concatenate %49, %50, %51 in 2 : vector<16x16x128xbf16>, vector<16x16x128xbf16>, vector<16x16x128xbf16> -> vector<16x16x384xbf16>
    %53 = vector.shape_cast %52 : vector<16x16x384xbf16> to vector<256x384xbf16>
    %c2_57 = arith.constant 2 : index
    %c0_58 = arith.constant 0 : index
    %c0_59 = arith.constant 0 : index
    %54 = vector.load %arg3[%c2_57, %c0_58, %c0_59] : memref<3x384x128xbf16, #tpu.memory_space<vmem>>, vector<1x384x128xbf16>
    %55 = vector.shape_cast %54 : vector<1x384x128xbf16> to vector<384x128xbf16>
    %cst_60 = arith.constant dense<0.000000e+00> : vector<256x128xf32>
    %56 = tpu.matmul %53, %55, %cst_60 {dimension_numbers = #tpu.dot_dimension_numbers<[1], [0], [0], [1], [0, 0, 1, 1], [], []>} : vector<256x384xbf16>, vector<384x128xbf16>, vector<256x128xf32> -> vector<256x128xf32>
    %c0_61 = arith.constant 0 : index
    %c0_62 = arith.constant 0 : index
    %57 = vector.load %arg9[%c0_61, %c0_62] : memref<256x128xf32, #tpu.memory_space<vmem>>, vector<256x128xf32>
    %58 = arith.addf %57, %56 : vector<256x128xf32>
    %c0_63 = arith.constant 0 : index
    %c0_64 = arith.constant 0 : index
    %59 = vector.load %arg9[%c0_63, %c0_64] : memref<256x128xf32, #tpu.memory_space<vmem>>, vector<256x128xf32>
    tpu.vector_store %arg9[%c0_63, %c0_64], %58 {strides = array<i32>} : memref<256x128xf32, #tpu.memory_space<vmem>>, vector<256x128xf32>,
    %c0_65 = arith.constant 0 : index
    %c0_66 = arith.constant 0 : index
    %60 = vector.load %arg9[%c0_65, %c0_66] : memref<256x128xf32, #tpu.memory_space<vmem>>, vector<256x128xf32>
    %61 = vector.shape_cast %60 : vector<256x128xf32> to vector<16x16x128xf32>
    %62 = arith.truncf %61 : vector<16x16x128xf32> to vector<16x16x128xbf16>
    %c0_67 = arith.constant 0 : index
    %c0_68 = arith.constant 0 : index
    %c0_69 = arith.constant 0 : index
    %c0_70 = arith.constant 0 : index
    %63 = vector.load %arg6[%c0_67, %c0_68, %c0_69, %c0_70] : memref<1x16x16x128xbf16, #tpu.memory_space<vmem>>, vector<1x16x16x128xbf16>
    %64 = vector.shape_cast %63 : vector<1x16x16x128xbf16> to vector<16x16x128xbf16>
    %65 = vector.shape_cast %62 : vector<16x16x128xbf16> to vector<1x16x16x128xbf16>
    tpu.vector_store %arg6[%c0_67, %c0_68, %c0_69, %c0_70], %65 {strides = array<i32>} : memref<1x16x16x128xbf16, #tpu.memory_space<vmem>>, vector<1x16x16x128xbf16>,
    %c0_71 = arith.constant 0 : index
    %c0_72 = arith.constant 0 : index
    %c0_73 = arith.constant 0 : index
    %66 = vector.load %arg7[%c0_71, %c0_72, %c0_73] : memref<1x2x128xf32, #tpu.memory_space<vmem>>, vector<1x2x128xf32>
    %67 = vector.shape_cast %66 : vector<1x2x128xf32> to vector<2x128xf32>
    %cst_74 = arith.constant dense<0.000000e+00> : vector<128xf32>
    %68 = vector.multi_reduction <add>, %60, %cst_74 [0] : vector<256x128xf32> to vector<128xf32>
    %69 = vector.shape_cast %68 : vector<128xf32> to vector<1x128xf32>
    %70 = arith.mulf %60, %60 : vector<256x128xf32>
    %cst_75 = arith.constant dense<0.000000e+00> : vector<128xf32>
    %71 = vector.multi_reduction <add>, %70, %cst_75 [0] : vector<256x128xf32> to vector<128xf32>
    %72 = vector.shape_cast %71 : vector<128xf32> to vector<1x128xf32>
    %73 = tpu.concatenate %69, %72 in 0 : vector<1x128xf32>, vector<1x128xf32> -> vector<2x128xf32>
    %74 = arith.addf %67, %73 : vector<2x128xf32>
    %c0_76 = arith.constant 0 : index
    %c0_77 = arith.constant 0 : index
    %c0_78 = arith.constant 0 : index
    %75 = vector.load %arg7[%c0_76, %c0_77, %c0_78] : memref<1x2x128xf32, #tpu.memory_space<vmem>>, vector<1x2x128xf32>
    %76 = vector.shape_cast %75 : vector<1x2x128xf32> to vector<2x128xf32>
    %77 = vector.shape_cast %74 : vector<2x128xf32> to vector<1x2x128xf32>
    tpu.vector_store %arg7[%c0_76, %c0_77, %c0_78], %77 {strides = array<i32>} : memref<1x2x128xf32, #tpu.memory_space<vmem>>, vector<1x2x128xf32>,
    return
  }
  func.func @transform_0(%arg0: i32, %arg1: i32) -> (i32, i32, i32, i32) {
    %c0_i32 = arith.constant 0 : i32
    %c0_i32_0 = arith.constant 0 : i32
    %c0_i32_1 = arith.constant 0 : i32
    %c0_i32_2 = arith.constant 0 : i32
    return %arg0, %c0_i32, %c0_i32_0, %c0_i32_1 : i32, i32, i32, i32
  }
  func.func @transform_1(%arg0: i32, %arg1: i32) -> (i32, i32, i32) {
    %c0_i32 = arith.constant 0 : i32
    %c0_i32_0 = arith.constant 0 : i32
    %c0_i32_1 = arith.constant 0 : i32
    %c0_i32_2 = arith.constant 0 : i32
    return %c0_i32, %c0_i32_0, %c0_i32_1 : i32, i32, i32
  }
  func.func @transform_2(%arg0: i32, %arg1: i32) -> (i32, i32) {
    %c0_i32 = arith.constant 0 : i32
    %c0_i32_0 = arith.constant 0 : i32
    %c0_i32_1 = arith.constant 0 : i32
    return %c0_i32, %c0_i32_0 : i32, i32
  }
  func.func @transform_3(%arg0: i32, %arg1: i32) -> (i32, i32) {
    %c0_i32 = arith.constant 0 : i32
    %c0_i32_0 = arith.constant 0 : i32
    %c0_i32_1 = arith.constant 0 : i32
    return %c0_i32, %c0_i32_0 : i32, i32
  }
  func.func @transform_4(%arg0: i32, %arg1: i32) -> (i32, i32, i32, i32) {
    %c0_i32 = arith.constant 0 : i32
    %c0_i32_0 = arith.constant 0 : i32
    %c0_i32_1 = arith.constant 0 : i32
    return %arg0, %arg1, %c0_i32, %c0_i32_0 : i32, i32, i32, i32
  }
  func.func @transform_5(%arg0: i32, %arg1: i32) -> (i32, i32, i32) {
    %c0_i32 = arith.constant 0 : i32
    %c0_i32_0 = arith.constant 0 : i32
    %c0_i32_1 = arith.constant 0 : i32
    return %arg0, %c0_i32, %c0_i32_0 : i32, i32, i32
  }
}

</mosaic_0001>

<bundles_post_ra>
// kernel: residual_block_forward.5
= control target key start
LH: loop header
LB: loop body
LE: loop exit
PB: predicated region body
PF: predicated region fallthrough
CT: control target
= control target key end

     0   :  { %s1893_s0 = inlined_call_operand.vmem [shape: bf16[512,128], index: 0, kind: input, shape index: {}]   ;;  %s1894_s1 = inlined_call_operand.vmem [shape: f32[1,128], index: 1, kind: input, shape index: {}]   ;;  %s1895_s2 = inlined_call_operand.vmem [shape: f32[1,128], index: 2, kind: input, shape index: {}]   ;;  %s1896_s3 = inlined_call_operand.vmem [shape: bf16[512,128], index: 3, kind: input, shape index: {}]   ;;  %s1897_s4 = inlined_call_operand.vmem [shape: bf16[512,128], index: 4, kind: output, shape index: {}]  }
   0x1   :  { %v934_v0 = vld [vmem:[%s1893_s0] sm:$0xff]   ;;  %v1349_v5 = vld [vmem:[%s1893_s0 + $0x8] sm:$0xff]   ;;  %v1350_v12 = vld [vmem:[%s1893_s0 + $0x10] sm:$0xff]  }
   0x2   :  { %v1473_v1 = vld [vmem:[%s1894_s1] ss:$0 sm:$0xff]  ;;  %v935_v2 = vunpack.c.l.bf16 %v934_v0  ;;  %v936_v3 = vunpack.c.h.bf16 %v934_v0  ;;  %v1380_v6 = vld [vmem:[%s1896_s3 + $0x8] sm:$0xff]   ;;  %v939_v10 = vunpack.c.l.bf16 %v1349_v5  ;;  %v940_v11 = vunpack.c.h.bf16 %v1349_v5  ;;  %v1381_v13 = vld [vmem:[%s1896_s3 + $0x10] sm:$0xff]  }
   0x3   :  { %v1062_v4 = vld [vmem:[%s1896_s3] sm:$0xff]   ;;  %v1067_v16 = vunpack.c.l.bf16 %v1380_v6  ;;  %v1068_v17 = vunpack.c.h.bf16 %v1380_v6  ;;  %v943_v20 = vunpack.c.l.bf16 %v1350_v12  ;;  %v944_v21 = vunpack.c.h.bf16 %v1350_v12  ;;  %v1351_v22 = vld [vmem:[%s1893_s0 + $0x18] sm:$0xff]   ;;  %v1353_v46 = vld [vmem:[%s1893_s0 + $0x28] sm:$0xff]  }
   0x4   :  { %v1487_v7 = vld [vmem:[%s1895_s2] ss:$0 sm:$0xff]  ;;  %v1063_v8 = vunpack.c.l.bf16 %v1062_v4  ;;  %v1064_v9 = vunpack.c.h.bf16 %v1062_v4  ;;  %v152_v14 = vmul.f32 %v935_v2, %v1473_v1  ;;  %v153_v15 = vmul.f32 %v936_v3, %v1473_v1  ;;  %v1382_v31 = vld [vmem:[%s1896_s3 + $0x18] sm:$0xff]   ;;  %v1384_v55 = vld [vmem:[%s1896_s3 + $0x28] sm:$0xff]  }
   0x5   :  { %v154_v18 = vmul.f32 %v939_v10, %v1473_v1  ;;  %v155_v19 = vmul.f32 %v940_v11, %v1473_v1  ;;  %v1071_v25 = vunpack.c.l.bf16 %v1381_v13  ;;  %v1072_v26 = vunpack.c.h.bf16 %v1381_v13  ;;  %v1352_v40 = vld [vmem:[%s1893_s0 + $0x20] sm:$0xff]   ;;  %v1354_v60 = vld [vmem:[%s1893_s0 + $0x30] sm:$0xff]   ;;  %v1355_v12 = vld [vmem:[%s1893_s0 + $0x38] sm:$0xff]  }
   0x6   :  { %v223_v23 = vadd.f32 %v1487_v7, %v152_v14  ;;  %v224_v24 = vadd.f32 %v1487_v7, %v153_v15  ;;  %v156_v29 = vmul.f32 %v943_v20, %v1473_v1  ;;  %v157_v30 = vmul.f32 %v944_v21, %v1473_v1  ;;  %v1383_v45 = vld [vmem:[%s1896_s3 + $0x20] sm:$0xff]   ;;  %v1385_v2 = vld [vmem:[%s1896_s3 + $0x30] sm:$0xff]  }
   0x7   :  { %v225_v27 = vadd.f32 %v1487_v7, %v154_v18  ;;  %v226_v28 = vadd.f32 %v1487_v7, %v155_v19  ;;  %v947_v34 = vunpack.c.l.bf16 %v1351_v22  ;;  %v948_v35 = vunpack.c.h.bf16 %v1351_v22 }
   0x8   :  { %v415_v32 = vadd.f32 %v1063_v8, %v223_v23  ;;  %v416_v33 = vadd.f32 %v1064_v9, %v224_v24  ;;  %v227_v38 = vadd.f32 %v1487_v7, %v156_v29  ;;  %v228_v39 = vadd.f32 %v1487_v7, %v157_v30 }
   0x9   :  { %v417_v36 = vadd.f32 %v1067_v16, %v225_v27  ;;  %v418_v37 = vadd.f32 %v1068_v17, %v226_v28  ;;  %v158_v42 = vmul.f32 %v947_v34, %v1473_v1  ;;  %v159_v43 = vmul.f32 %v948_v35, %v1473_v1  ;;  %v1386_v17 = vld [vmem:[%s1896_s3 + $0x38] sm:$0xff]  }
   0xa   :  { %v1192_v41 = vpack.c.bf16 %v416_v33, %v415_v32  ;;  %v1075_v44 = vunpack.c.l.bf16 %v1382_v31  ;;  %v419_v48 = vadd.f32 %v1071_v25, %v227_v38  ;;  %v420_v49 = vadd.f32 %v1072_v26, %v228_v39  ;;  %v1356_v26 = vld [vmem:[%s1893_s0 + $0x40] sm:$0xff]  }
   0xb   :  { %v1197_v47 = vpack.c.bf16 %v418_v37, %v417_v36  ;;  %v1076_v50 = vunpack.c.h.bf16 %v1382_v31  ;;  %v229_v51 = vadd.f32 %v1487_v7, %v158_v42  ;;  %v230_v52 = vadd.f32 %v1487_v7, %v159_v43  ;;  %v1387_v31 = vld [vmem:[%s1896_s3 + $0x40] sm:$0xff]  }
   0xc   :  { %1193 = vst [vmem:[%s1897_s4] sm:$0xff] %v1192_v41   ;;  %v951_v53 = vunpack.c.l.bf16 %v1352_v40  ;;  %v952_v54 = vunpack.c.h.bf16 %v1352_v40  ;;  %v1202_v56 = vpack.c.bf16 %v420_v49, %v419_v48  ;;  %v1079_v57 = vunpack.c.l.bf16 %v1383_v45  ;;  %v1357_v40 = vld [vmem:[%s1893_s0 + $0x48] sm:$0xff]  }
   0xd   :  { %1411 = vst [vmem:[%s1897_s4 + $0x8] sm:$0xff] %v1197_v47   ;;  %v1080_v58 = vunpack.c.h.bf16 %v1383_v45  ;;  %v955_v59 = vunpack.c.l.bf16 %v1353_v46  ;;  %v421_v61 = vadd.f32 %v1075_v44, %v229_v51  ;;  %v422_v62 = vadd.f32 %v1076_v50, %v230_v52  ;;  %v1388_v45 = vld [vmem:[%s1896_s3 + $0x48] sm:$0xff]   ;;  %v1358_v50 = vld [vmem:[%s1893_s0 + $0x50] sm:$0xff]  }
   0xe   :  { %v160_v63 = vmul.f32 %v951_v53, %v1473_v1  ;;  %v161_v0 = vmul.f32 %v952_v54, %v1473_v1  ;;  %1412 = vst [vmem:[%s1897_s4 + $0x10] sm:$0xff] %v1202_v56   ;;  %v956_v3 = vunpack.c.h.bf16 %v1353_v46  ;;  %v1083_v5 = vunpack.c.l.bf16 %v1384_v55 }
   0xf   :  { %v162_v4 = vmul.f32 %v955_v59, %v1473_v1  ;;  %v1084_v6 = vunpack.c.h.bf16 %v1384_v55  ;;  %v1207_v8 = vpack.c.bf16 %v422_v62, %v421_v61  ;;  %v959_v11 = vunpack.c.l.bf16 %v1354_v60  ;;  %v1389_v59 = vld [vmem:[%s1896_s3 + $0x50] sm:$0xff]  }
  0x10   :  { %v231_v9 = vadd.f32 %v1487_v7, %v160_v63  ;;  %v232_v10 = vadd.f32 %v1487_v7, %v161_v0  ;;  %v163_v13 = vmul.f32 %v956_v3, %v1473_v1  ;;  %v960_v15 = vunpack.c.h.bf16 %v1354_v60  ;;  %v1359_v0 = vld [vmem:[%s1893_s0 + $0x58] sm:$0xff]  }
  0x11   :  { %v233_v14 = vadd.f32 %v1487_v7, %v162_v4  ;;  %v1087_v16 = vunpack.c.l.bf16 %v1385_v2  ;;  %1413 = vst [vmem:[%s1897_s4 + $0x18] sm:$0xff] %v1207_v8   ;;  %v164_v20 = vmul.f32 %v959_v11, %v1473_v1  ;;  %v1088_v21 = vunpack.c.h.bf16 %v1385_v2  ;;  %v1390_v11 = vld [vmem:[%s1896_s3 + $0x58] sm:$0xff]  }
  0x12   :  { %v423_v18 = vadd.f32 %v1079_v57, %v231_v9  ;;  %v424_v19 = vadd.f32 %v1080_v58, %v232_v10  ;;  %v234_v22 = vadd.f32 %v1487_v7, %v163_v13  ;;  %v165_v24 = vmul.f32 %v960_v15, %v1473_v1 }
  0x13   :  { %v425_v23 = vadd.f32 %v1083_v5, %v233_v14  ;;  %v963_v25 = vunpack.c.l.bf16 %v1355_v12  ;;  %v235_v28 = vadd.f32 %v1487_v7, %v164_v20  ;;  %v964_v29 = vunpack.c.h.bf16 %v1355_v12 }
  0x14   :  { %v1212_v27 = vpack.c.bf16 %v424_v19, %v423_v18  ;;  %v1091_v30 = vunpack.c.l.bf16 %v1386_v17  ;;  %v426_v32 = vadd.f32 %v1084_v6, %v234_v22  ;;  %v236_v33 = vadd.f32 %v1487_v7, %v165_v24 }
  0x15   :  { %v166_v34 = vmul.f32 %v963_v25, %v1473_v1  ;;  %v1092_v35 = vunpack.c.h.bf16 %v1386_v17  ;;  %v427_v36 = vadd.f32 %v1087_v16, %v235_v28  ;;  %v167_v37 = vmul.f32 %v964_v29, %v1473_v1  ;;  %v1360_v16 = vld [vmem:[%s1893_s0 + $0x60] sm:$0xff]  }
  0x16   :  { %1414 = vst [vmem:[%s1897_s4 + $0x20] sm:$0xff] %v1212_v27   ;;  %v967_v38 = vunpack.c.l.bf16 %v1356_v26  ;;  %v968_v39 = vunpack.c.h.bf16 %v1356_v26  ;;  %v1217_v41 = vpack.c.bf16 %v426_v32, %v425_v23  ;;  %v428_v42 = vadd.f32 %v1088_v21, %v236_v33  ;;  %v1391_v21 = vld [vmem:[%s1896_s3 + $0x60] sm:$0xff]   ;;  %v1361_v26 = vld [vmem:[%s1893_s0 + $0x68] sm:$0xff]  }
  0x17   :  { %v237_v43 = vadd.f32 %v1487_v7, %v166_v34  ;;  %v1095_v44 = vunpack.c.l.bf16 %v1387_v31  ;;  %v238_v46 = vadd.f32 %v1487_v7, %v167_v37  ;;  %v1096_v49 = vunpack.c.h.bf16 %v1387_v31 }
  0x18   :  { %v168_v47 = vmul.f32 %v967_v38, %v1473_v1  ;;  %v169_v48 = vmul.f32 %v968_v39, %v1473_v1  ;;  %1415 = vst [vmem:[%s1897_s4 + $0x28] sm:$0xff] %v1217_v41   ;;  %v1222_v51 = vpack.c.bf16 %v428_v42, %v427_v36  ;;  %v971_v53 = vunpack.c.l.bf16 %v1357_v40 }
  0x19   :  { %v429_v52 = vadd.f32 %v1091_v30, %v237_v43  ;;  %v972_v54 = vunpack.c.h.bf16 %v1357_v40  ;;  %v430_v55 = vadd.f32 %v1092_v35, %v238_v46  ;;  %v1099_v58 = vunpack.c.l.bf16 %v1388_v45  ;;  %v1392_v35 = vld [vmem:[%s1896_s3 + $0x68] sm:$0xff]   ;;  %v1362_v40 = vld [vmem:[%s1893_s0 + $0x70] sm:$0xff]  }
  0x1a   :  { %v239_v56 = vadd.f32 %v1487_v7, %v168_v47  ;;  %v240_v57 = vadd.f32 %v1487_v7, %v169_v48  ;;  %1416 = vst [vmem:[%s1897_s4 + $0x30] sm:$0xff] %v1222_v51   ;;  %v170_v60 = vmul.f32 %v971_v53, %v1473_v1  ;;  %v1100_v62 = vunpack.c.h.bf16 %v1388_v45 }
  0x1b   :  { %v171_v61 = vmul.f32 %v972_v54, %v1473_v1  ;;  %v975_v63 = vunpack.c.l.bf16 %v1358_v50  ;;  %v1227_v2 = vpack.c.bf16 %v430_v55, %v429_v52  ;;  %v976_v5 = vunpack.c.h.bf16 %v1358_v50  ;;  %v1363_v54 = vld [vmem:[%s1893_s0 + $0x78] sm:$0xff]  }
  0x1c   :  { %v431_v3 = vadd.f32 %v1095_v44, %v239_v56  ;;  %v432_v4 = vadd.f32 %v1096_v49, %v240_v57  ;;  %v241_v6 = vadd.f32 %v1487_v7, %v170_v60  ;;  %v1103_v10 = vunpack.c.l.bf16 %v1389_v59  ;;  %v1393_v49 = vld [vmem:[%s1896_s3 + $0x70] sm:$0xff]  }
  0x1d   :  { %v242_v8 = vadd.f32 %v1487_v7, %v171_v61  ;;  %v172_v9 = vmul.f32 %v975_v63, %v1473_v1  ;;  %1417 = vst [vmem:[%s1897_s4 + $0x38] sm:$0xff] %v1227_v2   ;;  %v173_v13 = vmul.f32 %v976_v5, %v1473_v1  ;;  %v1104_v14 = vunpack.c.h.bf16 %v1389_v59  ;;  %v1394_v63 = vld [vmem:[%s1896_s3 + $0x78] sm:$0xff]   ;;  %v1364_v5 = vld [vmem:[%s1893_s0 + $0x80] sm:$0xff]  }
  0x1e   :  { %v1232_v12 = vpack.c.bf16 %v432_v4, %v431_v3  ;;  %v979_v15 = vunpack.c.l.bf16 %v1359_v0  ;;  %v433_v17 = vadd.f32 %v1099_v58, %v241_v6  ;;  %v980_v20 = vunpack.c.h.bf16 %v1359_v0 }
  0x1f   :  { %v434_v18 = vadd.f32 %v1100_v62, %v242_v8  ;;  %v243_v19 = vadd.f32 %v1487_v7, %v172_v9  ;;  %v244_v22 = vadd.f32 %v1487_v7, %v173_v13  ;;  %v1107_v24 = vunpack.c.l.bf16 %v1390_v11 }
  0x20   :  { %1418 = vst [vmem:[%s1897_s4 + $0x40] sm:$0xff] %v1232_v12   ;;  %v174_v23 = vmul.f32 %v979_v15, %v1473_v1  ;;  %v1108_v25 = vunpack.c.h.bf16 %v1390_v11  ;;  %v175_v29 = vmul.f32 %v980_v20, %v1473_v1  ;;  %v983_v30 = vunpack.c.l.bf16 %v1360_v16  ;;  %v1395_v11 = vld [vmem:[%s1896_s3 + $0x80] sm:$0xff]  }
  0x21   :  { %v1237_v27 = vpack.c.bf16 %v434_v18, %v433_v17  ;;  %v435_v28 = vadd.f32 %v1103_v10, %v243_v19  ;;  %v436_v31 = vadd.f32 %v1104_v14, %v244_v22  ;;  %v984_v33 = vunpack.c.h.bf16 %v1360_v16  ;;  %v1365_v16 = vld [vmem:[%s1893_s0 + $0x88] sm:$0xff]  }
  0x22   :  { %v245_v32 = vadd.f32 %v1487_v7, %v174_v23  ;;  %v1111_v34 = vunpack.c.l.bf16 %v1391_v21  ;;  %v246_v36 = vadd.f32 %v1487_v7, %v175_v29  ;;  %v176_v37 = vmul.f32 %v983_v30, %v1473_v1  ;;  %v1366_v30 = vld [vmem:[%s1893_s0 + $0x90] sm:$0xff]  }
  0x23   :  { %1419 = vst [vmem:[%s1897_s4 + $0x48] sm:$0xff] %v1237_v27   ;;  %v1112_v38 = vunpack.c.h.bf16 %v1391_v21  ;;  %v987_v39 = vunpack.c.l.bf16 %v1361_v26  ;;  %v1242_v41 = vpack.c.bf16 %v436_v31, %v435_v28  ;;  %v177_v43 = vmul.f32 %v984_v33, %v1473_v1 }
  0x24   :  { %v437_v42 = vadd.f32 %v1107_v24, %v245_v32  ;;  %v988_v44 = vunpack.c.h.bf16 %v1361_v26  ;;  %v438_v45 = vadd.f32 %v1108_v25, %v246_v36  ;;  %v247_v46 = vadd.f32 %v1487_v7, %v176_v37  ;;  %v1396_v25 = vld [vmem:[%s1896_s3 + $0x88] sm:$0xff]  }
  0x25   :  { %v178_v47 = vmul.f32 %v987_v39, %v1473_v1  ;;  %v1115_v48 = vunpack.c.l.bf16 %v1392_v35  ;;  %1420 = vst [vmem:[%s1897_s4 + $0x50] sm:$0xff] %v1242_v41   ;;  %v248_v50 = vadd.f32 %v1487_v7, %v177_v43  ;;  %v1116_v52 = vunpack.c.h.bf16 %v1392_v35  ;;  %v1397_v39 = vld [vmem:[%s1896_s3 + $0x90] sm:$0xff]  }
  0x26   :  { %v179_v51 = vmul.f32 %v988_v44, %v1473_v1  ;;  %v991_v53 = vunpack.c.l.bf16 %v1362_v40  ;;  %v1247_v55 = vpack.c.bf16 %v438_v45, %v437_v42  ;;  %v439_v56 = vadd.f32 %v1111_v34, %v247_v46  ;;  %v1367_v44 = vld [vmem:[%s1893_s0 + $0x98] sm:$0xff]  }
  0x27   :  { %v249_v57 = vadd.f32 %v1487_v7, %v178_v47  ;;  %v992_v58 = vunpack.c.h.bf16 %v1362_v40  ;;  %v440_v59 = vadd.f32 %v1112_v38, %v248_v50  ;;  %v1119_v62 = vunpack.c.l.bf16 %v1393_v49 }
  0x28   :  { %v250_v60 = vadd.f32 %v1487_v7, %v179_v51  ;;  %v180_v61 = vmul.f32 %v991_v53, %v1473_v1  ;;  %1421 = vst [vmem:[%s1897_s4 + $0x58] sm:$0xff] %v1247_v55   ;;  %v1120_v3 = vunpack.c.h.bf16 %v1393_v49  ;;  %v995_v4 = vunpack.c.l.bf16 %v1363_v54  ;;  %v1398_v53 = vld [vmem:[%s1896_s3 + $0x98] sm:$0xff]  }
  0x29   :  { %v441_v0 = vadd.f32 %v1115_v48, %v249_v57  ;;  %v181_v2 = vmul.f32 %v992_v58, %v1473_v1  ;;  %v1252_v6 = vpack.c.bf16 %v440_v59, %v439_v56  ;;  %v996_v10 = vunpack.c.h.bf16 %v1363_v54  ;;  %v1368_v58 = vld [vmem:[%s1893_s0 + $0xa0] sm:$0xff]  }
  0x2a   :  { %v442_v8 = vadd.f32 %v1116_v52, %v250_v60  ;;  %v251_v9 = vadd.f32 %v1487_v7, %v180_v61  ;;  %v182_v13 = vmul.f32 %v995_v4, %v1473_v1  ;;  %v1123_v14 = vunpack.c.l.bf16 %v1394_v63 }
  0x2b   :  { %v252_v12 = vadd.f32 %v1487_v7, %v181_v2  ;;  %v1124_v15 = vunpack.c.h.bf16 %v1394_v63  ;;  %1422 = vst [vmem:[%s1897_s4 + $0x60] sm:$0xff] %v1252_v6   ;;  %v183_v19 = vmul.f32 %v996_v10, %v1473_v1  ;;  %v999_v20 = vunpack.c.l.bf16 %v1364_v5  ;;  %v1399_v63 = vld [vmem:[%s1896_s3 + $0xa0] sm:$0xff]  }
  0x2c   :  { %v1257_v17 = vpack.c.bf16 %v442_v8, %v441_v0  ;;  %v443_v18 = vadd.f32 %v1119_v62, %v251_v9  ;;  %v253_v22 = vadd.f32 %v1487_v7, %v182_v13  ;;  %v1000_v23 = vunpack.c.h.bf16 %v1364_v5  ;;  %v1369_v5 = vld [vmem:[%s1893_s0 + $0xa8] sm:$0xff]  }
  0x2d   :  { %v444_v21 = vadd.f32 %v1120_v3, %v252_v12  ;;  %v1127_v24 = vunpack.c.l.bf16 %v1395_v11  ;;  %v254_v26 = vadd.f32 %v1487_v7, %v183_v19  ;;  %v184_v27 = vmul.f32 %v999_v20, %v1473_v1  ;;  %v1370_v20 = vld [vmem:[%s1893_s0 + $0xb0] sm:$0xff]  }
  0x2e   :  { %1423 = vst [vmem:[%s1897_s4 + $0x68] sm:$0xff] %v1257_v17   ;;  %v1128_v28 = vunpack.c.h.bf16 %v1395_v11  ;;  %v1003_v29 = vunpack.c.l.bf16 %v1365_v16  ;;  %v445_v32 = vadd.f32 %v1123_v14, %v253_v22  ;;  %v185_v33 = vmul.f32 %v1000_v23, %v1473_v1 }
  0x2f   :  { %v1262_v31 = vpack.c.bf16 %v444_v21, %v443_v18  ;;  %v1004_v34 = vunpack.c.h.bf16 %v1365_v16  ;;  %v446_v35 = vadd.f32 %v1124_v15, %v254_v26  ;;  %v255_v36 = vadd.f32 %v1487_v7, %v184_v27  ;;  %v1400_v15 = vld [vmem:[%s1896_s3 + $0xa8] sm:$0xff]  }
  0x30   :  { %v186_v37 = vmul.f32 %v1003_v29, %v1473_v1  ;;  %v1131_v38 = vunpack.c.l.bf16 %v1396_v25  ;;  %v256_v40 = vadd.f32 %v1487_v7, %v185_v33  ;;  %v1132_v42 = vunpack.c.h.bf16 %v1396_v25  ;;  %v1401_v29 = vld [vmem:[%s1896_s3 + $0xb0] sm:$0xff]  }
  0x31   :  { %1424 = vst [vmem:[%s1897_s4 + $0x70] sm:$0xff] %v1262_v31   ;;  %v187_v41 = vmul.f32 %v1004_v34, %v1473_v1  ;;  %v1007_v43 = vunpack.c.l.bf16 %v1366_v30  ;;  %v1267_v45 = vpack.c.bf16 %v446_v35, %v445_v32  ;;  %v447_v46 = vadd.f32 %v1127_v24, %v255_v36  ;;  %v1371_v34 = vld [vmem:[%s1893_s0 + $0xb8] sm:$0xff]  }
  0x32   :  { %v257_v47 = vadd.f32 %v1487_v7, %v186_v37  ;;  %v1008_v48 = vunpack.c.h.bf16 %v1366_v30  ;;  %v448_v49 = vadd.f32 %v1128_v28, %v256_v40  ;;  %v1135_v52 = vunpack.c.l.bf16 %v1397_v39 }
  0x33   :  { %v258_v50 = vadd.f32 %v1487_v7, %v187_v41  ;;  %v188_v51 = vmul.f32 %v1007_v43, %v1473_v1  ;;  %1425 = vst [vmem:[%s1897_s4 + $0x78] sm:$0xff] %v1267_v45   ;;  %v1136_v56 = vunpack.c.h.bf16 %v1397_v39  ;;  %v1011_v57 = vunpack.c.l.bf16 %v1367_v44  ;;  %v1402_v43 = vld [vmem:[%s1896_s3 + $0xb8] sm:$0xff]  }
  0x34   :  { %v449_v54 = vadd.f32 %v1131_v38, %v257_v47  ;;  %v189_v55 = vmul.f32 %v1008_v48, %v1473_v1  ;;  %v1272_v59 = vpack.c.bf16 %v448_v49, %v447_v46  ;;  %v1012_v62 = vunpack.c.h.bf16 %v1367_v44  ;;  %v1372_v48 = vld [vmem:[%s1893_s0 + $0xc0] sm:$0xff]  }
  0x35   :  { %v450_v60 = vadd.f32 %v1132_v42, %v258_v50  ;;  %v259_v61 = vadd.f32 %v1487_v7, %v188_v51  ;;  %v190_v2 = vmul.f32 %v1011_v57, %v1473_v1  ;;  %v1139_v3 = vunpack.c.l.bf16 %v1398_v53 }
  0x36   :  { %v260_v0 = vadd.f32 %v1487_v7, %v189_v55  ;;  %v1140_v4 = vunpack.c.h.bf16 %v1398_v53  ;;  %1426 = vst [vmem:[%s1897_s4 + $0x80] sm:$0xff] %v1272_v59   ;;  %v191_v9 = vmul.f32 %v1012_v62, %v1473_v1  ;;  %v1015_v10 = vunpack.c.l.bf16 %v1368_v58  ;;  %v1403_v53 = vld [vmem:[%s1896_s3 + $0xc0] sm:$0xff]  }
  0x37   :  { %v1277_v6 = vpack.c.bf16 %v450_v60, %v449_v54  ;;  %v451_v8 = vadd.f32 %v1135_v52, %v259_v61  ;;  %v261_v12 = vadd.f32 %v1487_v7, %v190_v2  ;;  %v1016_v13 = vunpack.c.h.bf16 %v1368_v58  ;;  %v1373_v58 = vld [vmem:[%s1893_s0 + $0xc8] sm:$0xff]  }
  0x38   :  { %v452_v11 = vadd.f32 %v1136_v56, %v260_v0  ;;  %v1143_v14 = vunpack.c.l.bf16 %v1399_v63  ;;  %v262_v16 = vadd.f32 %v1487_v7, %v191_v9  ;;  %v192_v17 = vmul.f32 %v1015_v10, %v1473_v1  ;;  %v1374_v10 = vld [vmem:[%s1893_s0 + $0xd0] sm:$0xff]  }
  0x39   :  { %1427 = vst [vmem:[%s1897_s4 + $0x88] sm:$0xff] %v1277_v6   ;;  %v1144_v18 = vunpack.c.h.bf16 %v1399_v63  ;;  %v1019_v19 = vunpack.c.l.bf16 %v1369_v5  ;;  %v453_v22 = vadd.f32 %v1139_v3, %v261_v12  ;;  %v193_v23 = vmul.f32 %v1016_v13, %v1473_v1 }
  0x3a   :  { %v1282_v21 = vpack.c.bf16 %v452_v11, %v451_v8  ;;  %v1020_v24 = vunpack.c.h.bf16 %v1369_v5  ;;  %v454_v25 = vadd.f32 %v1140_v4, %v262_v16  ;;  %v263_v26 = vadd.f32 %v1487_v7, %v192_v17  ;;  %v1404_v4 = vld [vmem:[%s1896_s3 + $0xc8] sm:$0xff]  }
  0x3b   :  { %v194_v27 = vmul.f32 %v1019_v19, %v1473_v1  ;;  %v1147_v28 = vunpack.c.l.bf16 %v1400_v15  ;;  %v264_v30 = vadd.f32 %v1487_v7, %v193_v23  ;;  %v1148_v32 = vunpack.c.h.bf16 %v1400_v15  ;;  %v1405_v19 = vld [vmem:[%s1896_s3 + $0xd0] sm:$0xff]  }
  0x3c   :  { %1428 = vst [vmem:[%s1897_s4 + $0x90] sm:$0xff] %v1282_v21   ;;  %v195_v31 = vmul.f32 %v1020_v24, %v1473_v1  ;;  %v1023_v33 = vunpack.c.l.bf16 %v1370_v20  ;;  %v1287_v35 = vpack.c.bf16 %v454_v25, %v453_v22  ;;  %v455_v36 = vadd.f32 %v1143_v14, %v263_v26  ;;  %v1375_v24 = vld [vmem:[%s1893_s0 + $0xd8] sm:$0xff]  }
  0x3d   :  { %v265_v37 = vadd.f32 %v1487_v7, %v194_v27  ;;  %v1024_v38 = vunpack.c.h.bf16 %v1370_v20  ;;  %v456_v39 = vadd.f32 %v1144_v18, %v264_v30  ;;  %v1151_v42 = vunpack.c.l.bf16 %v1401_v29 }
  0x3e   :  { %v266_v40 = vadd.f32 %v1487_v7, %v195_v31  ;;  %v196_v41 = vmul.f32 %v1023_v33, %v1473_v1  ;;  %1429 = vst [vmem:[%s1897_s4 + $0x98] sm:$0xff] %v1287_v35   ;;  %v1152_v46 = vunpack.c.h.bf16 %v1401_v29  ;;  %v1027_v47 = vunpack.c.l.bf16 %v1371_v34  ;;  %v1406_v33 = vld [vmem:[%s1896_s3 + $0xd8] sm:$0xff]  }
  0x3f   :  { %v457_v44 = vadd.f32 %v1147_v28, %v265_v37  ;;  %v197_v45 = vmul.f32 %v1024_v38, %v1473_v1  ;;  %v1292_v49 = vpack.c.bf16 %v456_v39, %v455_v36  ;;  %v1028_v52 = vunpack.c.h.bf16 %v1371_v34  ;;  %v1376_v38 = vld [vmem:[%s1893_s0 + $0xe0] sm:$0xff]  }
  0x40   :  { %v458_v50 = vadd.f32 %v1148_v32, %v266_v40  ;;  %v267_v51 = vadd.f32 %v1487_v7, %v196_v41  ;;  %v198_v55 = vmul.f32 %v1027_v47, %v1473_v1  ;;  %v1155_v56 = vunpack.c.l.bf16 %v1402_v43 }
  0x41   :  { %v268_v54 = vadd.f32 %v1487_v7, %v197_v45  ;;  %v1156_v57 = vunpack.c.h.bf16 %v1402_v43  ;;  %1430 = vst [vmem:[%s1897_s4 + $0xa0] sm:$0xff] %v1292_v49   ;;  %v199_v61 = vmul.f32 %v1028_v52, %v1473_v1  ;;  %v1031_v62 = vunpack.c.l.bf16 %v1372_v48  ;;  %v1407_v43 = vld [vmem:[%s1896_s3 + $0xe0] sm:$0xff]  }
  0x42   :  { %v1297_v59 = vpack.c.bf16 %v458_v50, %v457_v44  ;;  %v459_v60 = vadd.f32 %v1151_v42, %v267_v51  ;;  %v269_v0 = vadd.f32 %v1487_v7, %v198_v55  ;;  %v1032_v2 = vunpack.c.h.bf16 %v1372_v48  ;;  %v1377_v48 = vld [vmem:[%s1893_s0 + $0xe8] sm:$0xff]  }
  0x43   :  { %v460_v63 = vadd.f32 %v1152_v46, %v268_v54  ;;  %v1159_v3 = vunpack.c.l.bf16 %v1403_v53  ;;  %v270_v5 = vadd.f32 %v1487_v7, %v199_v61  ;;  %v200_v6 = vmul.f32 %v1031_v62, %v1473_v1  ;;  %v1378_v62 = vld [vmem:[%s1893_s0 + $0xf0] sm:$0xff]  }
  0x44   :  { %1431 = vst [vmem:[%s1897_s4 + $0xa8] sm:$0xff] %v1297_v59   ;;  %v1160_v8 = vunpack.c.h.bf16 %v1403_v53  ;;  %v1035_v9 = vunpack.c.l.bf16 %v1373_v58  ;;  %v461_v12 = vadd.f32 %v1155_v56, %v269_v0  ;;  %v201_v13 = vmul.f32 %v1032_v2, %v1473_v1 }
  0x45   :  { %v1302_v11 = vpack.c.bf16 %v460_v63, %v459_v60  ;;  %v1036_v14 = vunpack.c.h.bf16 %v1373_v58  ;;  %v462_v15 = vadd.f32 %v1156_v57, %v270_v5  ;;  %v271_v16 = vadd.f32 %v1487_v7, %v200_v6  ;;  %v1408_v57 = vld [vmem:[%s1896_s3 + $0xe8] sm:$0xff]  }
  0x46   :  { %v202_v17 = vmul.f32 %v1035_v9, %v1473_v1  ;;  %v1163_v18 = vunpack.c.l.bf16 %v1404_v4  ;;  %v272_v20 = vadd.f32 %v1487_v7, %v201_v13  ;;  %v1164_v22 = vunpack.c.h.bf16 %v1404_v4  ;;  %v1409_v9 = vld [vmem:[%s1896_s3 + $0xf0] sm:$0xff]  }
  0x47   :  { %1432 = vst [vmem:[%s1897_s4 + $0xb0] sm:$0xff] %v1302_v11   ;;  %v203_v21 = vmul.f32 %v1036_v14, %v1473_v1  ;;  %v1039_v23 = vunpack.c.l.bf16 %v1374_v10  ;;  %v1307_v25 = vpack.c.bf16 %v462_v15, %v461_v12  ;;  %v463_v26 = vadd.f32 %v1159_v3, %v271_v16  ;;  %v1379_v14 = vld [vmem:[%s1893_s0 + $0xf8] sm:$0xff]  }
  0x48   :  { %v273_v27 = vadd.f32 %v1487_v7, %v202_v17  ;;  %v1040_v28 = vunpack.c.h.bf16 %v1374_v10  ;;  %v464_v29 = vadd.f32 %v1160_v8, %v272_v20  ;;  %v1167_v32 = vunpack.c.l.bf16 %v1405_v19 }
  0x49   :  { %v274_v30 = vadd.f32 %v1487_v7, %v203_v21  ;;  %v204_v31 = vmul.f32 %v1039_v23, %v1473_v1  ;;  %1433 = vst [vmem:[%s1897_s4 + $0xb8] sm:$0xff] %v1307_v25   ;;  %v1168_v36 = vunpack.c.h.bf16 %v1405_v19  ;;  %v1043_v37 = vunpack.c.l.bf16 %v1375_v24  ;;  %v1410_v23 = vld [vmem:[%s1896_s3 + $0xf8] sm:$0xff]  }
  0x4a   :  { %v465_v34 = vadd.f32 %v1163_v18, %v273_v27  ;;  %v205_v35 = vmul.f32 %v1040_v28, %v1473_v1  ;;  %v1312_v39 = vpack.c.bf16 %v464_v29, %v463_v26  ;;  %v1044_v42 = vunpack.c.h.bf16 %v1375_v24 }
  0x4b   :  { %v466_v40 = vadd.f32 %v1164_v22, %v274_v30  ;;  %v275_v41 = vadd.f32 %v1487_v7, %v204_v31  ;;  %v206_v45 = vmul.f32 %v1043_v37, %v1473_v1  ;;  %v1171_v46 = vunpack.c.l.bf16 %v1406_v33 }
  0x4c   :  { %v276_v44 = vadd.f32 %v1487_v7, %v205_v35  ;;  %v1172_v47 = vunpack.c.h.bf16 %v1406_v33  ;;  %1434 = vst [vmem:[%s1897_s4 + $0xc0] sm:$0xff] %v1312_v39   ;;  %v207_v51 = vmul.f32 %v1044_v42, %v1473_v1  ;;  %v1047_v52 = vunpack.c.l.bf16 %v1376_v38 }
  0x4d   :  { %v1317_v49 = vpack.c.bf16 %v466_v40, %v465_v34  ;;  %v467_v50 = vadd.f32 %v1167_v32, %v275_v41  ;;  %v277_v54 = vadd.f32 %v1487_v7, %v206_v45  ;;  %v1048_v55 = vunpack.c.h.bf16 %v1376_v38 }
  0x4e   :  { %v468_v53 = vadd.f32 %v1168_v36, %v276_v44  ;;  %v1175_v56 = vunpack.c.l.bf16 %v1407_v43  ;;  %v278_v58 = vadd.f32 %v1487_v7, %v207_v51  ;;  %v208_v59 = vmul.f32 %v1047_v52, %v1473_v1 }
  0x4f   :  { %1435 = vst [vmem:[%s1897_s4 + $0xc8] sm:$0xff] %v1317_v49   ;;  %v1176_v60 = vunpack.c.h.bf16 %v1407_v43  ;;  %v1051_v61 = vunpack.c.l.bf16 %v1377_v48  ;;  %v469_v0 = vadd.f32 %v1171_v46, %v277_v54  ;;  %v209_v2 = vmul.f32 %v1048_v55, %v1473_v1 }
  0x50   :  { %v1322_v63 = vpack.c.bf16 %v468_v53, %v467_v50  ;;  %v1052_v3 = vunpack.c.h.bf16 %v1377_v48  ;;  %v470_v4 = vadd.f32 %v1172_v47, %v278_v58  ;;  %v279_v5 = vadd.f32 %v1487_v7, %v208_v59 }
  0x51   :  { %v210_v6 = vmul.f32 %v1051_v61, %v1473_v1  ;;  %v1179_v8 = vunpack.c.l.bf16 %v1408_v57  ;;  %v280_v10 = vadd.f32 %v1487_v7, %v209_v2  ;;  %v1180_v12 = vunpack.c.h.bf16 %v1408_v57 }
  0x52   :  { %1436 = vst [vmem:[%s1897_s4 + $0xd0] sm:$0xff] %v1322_v63   ;;  %v211_v11 = vmul.f32 %v1052_v3, %v1473_v1  ;;  %v1055_v13 = vunpack.c.l.bf16 %v1378_v62  ;;  %v1327_v15 = vpack.c.bf16 %v470_v4, %v469_v0  ;;  %v471_v16 = vadd.f32 %v1175_v56, %v279_v5 }
  0x53   :  { %v281_v17 = vadd.f32 %v1487_v7, %v210_v6  ;;  %v1056_v18 = vunpack.c.h.bf16 %v1378_v62  ;;  %v472_v19 = vadd.f32 %v1176_v60, %v280_v10  ;;  %v1183_v22 = vunpack.c.l.bf16 %v1409_v9 }
  0x54   :  { %v282_v20 = vadd.f32 %v1487_v7, %v211_v11  ;;  %v212_v21 = vmul.f32 %v1055_v13, %v1473_v1  ;;  %1437 = vst [vmem:[%s1897_s4 + $0xd8] sm:$0xff] %v1327_v15   ;;  %v1184_v26 = vunpack.c.h.bf16 %v1409_v9  ;;  %v1059_v27 = vunpack.c.l.bf16 %v1379_v14 }
  0x55   :  { %v473_v24 = vadd.f32 %v1179_v8, %v281_v17  ;;  %v213_v25 = vmul.f32 %v1056_v18, %v1473_v1  ;;  %v1332_v28 = vpack.c.bf16 %v472_v19, %v471_v16  ;;  %v1060_v31 = vunpack.c.h.bf16 %v1379_v14 }
  0x56   :  { %v474_v29 = vadd.f32 %v1180_v12, %v282_v20  ;;  %v283_v30 = vadd.f32 %v1487_v7, %v212_v21  ;;  %v214_v33 = vmul.f32 %v1059_v27, %v1473_v1  ;;  %v1187_v34 = vunpack.c.l.bf16 %v1410_v23 }
  0x57   :  { %v284_v32 = vadd.f32 %v1487_v7, %v213_v25  ;;  %1438 = vst [vmem:[%s1897_s4 + $0xe0] sm:$0xff] %v1332_v28   ;;  %v215_v37 = vmul.f32 %v1060_v31, %v1473_v1  ;;  %v1188_v38 = vunpack.c.h.bf16 %v1410_v23 }
  0x58   :  { %v1337_v35 = vpack.c.bf16 %v474_v29, %v473_v24  ;;  %v475_v36 = vadd.f32 %v1183_v22, %v283_v30  ;;  %v285_v40 = vadd.f32 %v1487_v7, %v214_v33 }
  0x59   :  { %v476_v39 = vadd.f32 %v1184_v26, %v284_v32  ;;  %v286_v41 = vadd.f32 %v1487_v7, %v215_v37 }
  0x5a   :  { %1439 = vst [vmem:[%s1897_s4 + $0xe8] sm:$0xff] %v1337_v35   ;;  %v477_v43 = vadd.f32 %v1187_v34, %v285_v40 }
  0x5b   :  { %v1342_v42 = vpack.c.bf16 %v476_v39, %v475_v36  ;;  %v478_v44 = vadd.f32 %v1188_v38, %v286_v41 }
  0x5d   :  { %1440 = vst [vmem:[%s1897_s4 + $0xf0] sm:$0xff] %v1342_v42   ;;  %v1347_v45 = vpack.c.bf16 %v478_v44, %v477_v43 }
  0x5f   :  { %1441 = vst [vmem:[%s1897_s4 + $0xf8] sm:$0xff] %v1347_v45  }

// kernel: residual_block_forward.4
= control target key start
LH: loop header
LB: loop body
LE: loop exit
PB: predicated region body
PF: predicated region fallthrough
CT: control target
= control target key end

     0   :  { %s6471_s18 = smov 0   ;;  %s6473_s19 = smov 0   ;;  %s8080_s0 = inlined_call_operand.vmem [shape: bf16[2,16,16,128], index: 0, kind: input, shape index: {}]   ;;  %s8081_s1 = inlined_call_operand.vmem [shape: bf16[3,384,128], index: 1, kind: input, shape index: {}]   ;;  %s8082_s2 = inlined_call_operand.vmem [shape: f32[1,128], index: 2, kind: input, shape index: {}]   ;;  %s8083_s3 = inlined_call_operand.vmem [shape: f32[1,128], index: 3, kind: input, shape index: {}]   ;;  %s8084_s4 = inlined_call_operand.vmem [shape: bf16[2,16,16,128], index: 4, kind: output, shape index: {0}]   ;;  %s8085_s5 = inlined_call_operand.vmem [shape: f32[2,2,128], index: 5, kind: output, shape index: {1}]  }
   0x1   :  { %s6475_s20 = smov 0  }
   0x2 LB: > { %s28_s21 = sadd.s32 1, %s6433_s19  ;;  %p4955_p0 = scmp.ge.s32.totalorder %s6437_s20, 1  ;;  %s6437_s20 = sphi %s6475_s20, %s16_s20   ;;  %s6433_s19 = sphi %s6473_s19, %s8137_s19   ;;  %s6429_s18 = sphi %s6471_s18, %s8136_s18  }
   0x3   : > { %p30_p1 = scmp.ge.s32.totalorder %s28_s21, 2  ;;  %p204_p2 = scmp.lt.s32.totalorder %s6437_s20, 3 }
   0x5   : > { %s8139_s21 = smov (%p30_p1, %s28_s21), 0  ;;  %p205_p3 = pnand %p4955_p0, %p204_p2 }
   0x7   : > { %208 = sbr.rel (%p205_p3) target bundleno = 608 (0x260), region = 36 }
   0xc   : > { %v6191_v0 = vld [vmem:[%s8081_s1 + $0x78] sm:$0xff]   ;;  %v6439_v2 = vmov 0   ;;  %v6193_v3 = vld [vmem:[%s8081_s1 + $0x70] sm:$0xff]   ;;  %p241_p4 = scmp.lt.s32.totalorder %s6429_s18, 1  ;;  %v6195_v5 = vld [vmem:[%s8081_s1 + $0x68] sm:$0xff]   ;;  %vm919_vm0 = vcmask 1043456  }
   0xd   : > { %v6192_v1 = vld [vmem:[%s8081_s1 + $0x38] sm:$0xff]   ;;  %268 = vst [vmem:[#allocation2] sm:$0xf] %v6439_v2  ;;  %269 = vst [vmem:[#allocation2 + $0x4] sm:$0xf] %v6439_v2  ;;  %5597 = vmatprep.subr.bf16.mxu0 %v6191_v0  ;;  %6149 = vmatprep.subr.bf16.mxu1 %v6191_v0  ;;  %v6194_v4 = vld [vmem:[%s8081_s1 + $0x30] sm:$0xff]  }
   0xe   : > { %270 = vst [vmem:[#allocation2 + $0x8] sm:$0x1] %v6439_v2  ;;  %271 = vst [vmem:[#allocation2 + $0xc] sm:$0xf] %v6439_v2  ;;  %5598 = vmatpush3.bf16.msra.mxu0 %v6192_v1  ;;  %6157 = vmatpush3.bf16.msra.mxu1 %v6192_v1  ;;  %v6196_v6 = vld [vmem:[%s8081_s1 + $0x28] sm:$0xff]   ;;  %s8141_s18 = smov (!%p241_p4, %s6429_s18), 1 }
   0xf   : > { %272 = vst [vmem:[#allocation2 + $0x10] sm:$0xf] %v6439_v2  ;;  %273 = vst [vmem:[#allocation2 + $0x14] sm:$0x1] %v6439_v2  ;;  %5599 = vmatprep.subr.bf16.mxu0 %v6193_v3  ;;  %6150 = vmatprep.subr.bf16.mxu1 %v6193_v3  ;;  %v6197_v7 = vld [vmem:[%s8081_s1 + $0x60] sm:$0xff]   ;;  %s5353_s13 = sshll.u32 %s8141_s18, 7 }
  0x10   : > { %274 = vst [vmem:[#allocation2 + $0x18] sm:$0xf] %v6439_v2  ;;  %275 = vst [vmem:[#allocation2 + $0x1c] sm:$0xf] %v6439_v2  ;;  %v6198_v8 = vld [vmem:[%s8081_s1 + $0x20] sm:$0xff]   ;;  %v6199_v9 = vld [vmem:[%s8081_s1 + $0x58] sm:$0xff]   ;;  %s6531_s24 = scalar_lea.vmem %s8080_s0, %s5353_s13  ;;  %s7933_s27 = scalar_lea.vmem %s8084_s4, %s5353_s13 }
  0x11   : > { %276 = vst [vmem:[#allocation2 + $0x20] sm:$0x1] %v6439_v2  ;;  %277 = vst [vmem:[#allocation2 + $0x24] sm:$0xf] %v6439_v2  ;;  %v6200_v10 = vld [vmem:[%s8081_s1 + $0x18] sm:$0xff]   ;;  %v6201_v11 = vld [vmem:[%s8081_s1 + $0x50] sm:$0xff]  }
  0x12   : > { %278 = vst [vmem:[#allocation2 + $0x28] sm:$0xf] %v6439_v2  ;;  %279 = vst [vmem:[#allocation2 + $0x2c] sm:$0x1] %v6439_v2  ;;  %5600 = vmatpush3.bf16.msra.mxu0 %v6194_v4  ;;  %6158 = vmatpush3.bf16.msra.mxu1 %v6194_v4  ;;  %v5577_v16 = vld [vmem:[%s6531_s24 + $0x58] sm:$0xff]   ;;  %v6202_v20 = vld [vmem:[%s8081_s1 + $0x10] sm:$0xff]  }
  0x13   : > { %280 = vst [vmem:[#allocation2 + $0x30] sm:$0xf] %v6439_v2  ;;  %281 = vst [vmem:[#allocation2 + $0x34] sm:$0xf] %v6439_v2  ;;  %5601 = vmatprep.subr.bf16.mxu0 %v6195_v5  ;;  %6151 = vmatprep.subr.bf16.mxu1 %v6195_v5  ;;  %v5469_v17 = vunpack.c.l.bf16 %v5577_v16  ;;  %v5470_v18 = vunpack.c.h.bf16 %v5577_v16  ;;  %v6547_v19 = vld [vmem:[%s8082_s2] ss:$0 sm:$0xff] }
  0x14   : > { %282 = vst [vmem:[#allocation2 + $0x38] sm:$0x1] %v6439_v2  ;;  %283 = vst [vmem:[#allocation2 + $0x3c] sm:$0xf] %v6439_v2  ;;  %v1167_v12 = vld [vmem:[#allocation2] sm:$0xf] }
  0x15   : > { %284 = vst [vmem:[#allocation2 + $0x40] sm:$0xf] %v6439_v2  ;;  %285 = vst [vmem:[#allocation2 + $0x44] sm:$0x1] %v6439_v2  ;;  %v6536_v13 = vld [vmem:[#allocation2 + $0x4] sm:$0xf]  ;;  %v418_v26 = vmul.f32 %v5469_v17, %v6547_v19  ;;  %v419_v27 = vmul.f32 %v5470_v18, %v6547_v19 }
  0x16   : > { %286 = vst [vmem:[#allocation2 + $0x48] sm:$0xf] %v6439_v2  ;;  %287 = vst [vmem:[#allocation2 + $0x4c] sm:$0xf] %v6439_v2  ;;  %5602 = vmatpush3.bf16.msra.mxu0 %v6196_v6  ;;  %6159 = vmatpush3.bf16.msra.mxu1 %v6196_v6  ;;  %v6539_v14 = vcombine.low %v1167_v12, %v6536_v13  ;;  %v6558_v24 = vld [vmem:[%s8083_s3] ss:$0 sm:$0xff] }
  0x17   : > { %288 = vst [vmem:[#allocation2 + $0x50] sm:$0x1] %v6439_v2  ;;  %289 = vst [vmem:[#allocation2 + $0x54] sm:$0xf] %v6439_v2  ;;  %5603 = vmatprep.subr.bf16.mxu0 %v6197_v7  ;;  %6152 = vmatprep.subr.bf16.mxu1 %v6197_v7  ;;  %v6203_v25 = vld [vmem:[%s8081_s1 + $0x48] sm:$0xff]   ;;  %v6205_v31 = vld [vmem:[%s8081_s1 + $0x40] sm:$0xff]   ;;  %v457_v32 = vadd.f32 %v6558_v24, %v418_v26  ;;  %v458_v33 = vadd.f32 %v6558_v24, %v419_v27 }
  0x18   : > { %290 = vst [vmem:[#allocation2 + $0x58] sm:$0xf] %v6439_v2  ;;  %291 = vst [vmem:[#allocation2 + $0x5c] sm:$0x1] %v6439_v2  ;;  %v1377_v21 = vshrl.u32 %v6539_v14, 16  ;;  %v1379_v22 = vshll.u32 %v6539_v14, 16 }
  0x19   : > { %292 = vst [vmem:[#allocation2 + $0x60] sm:$0xf] %v6439_v2  ;;  %293 = vst [vmem:[#allocation2 + $0x64] sm:$0xf] %v6439_v2  ;;  %v6204_v30 = vld [vmem:[%s8081_s1 + $0x8] sm:$0xff]   ;;  %vm926_vm2 = vcmask 1040384  }
  0x1a   : > { %294 = vst [vmem:[#allocation2 + $0x68] sm:$0x1] %v6439_v2  ;;  %295 = vst [vmem:[#allocation2 + $0x6c] sm:$0xf] %v6439_v2  ;;  %5604 = vmatpush3.bf16.msra.mxu0 %v6198_v8  ;;  %6160 = vmatpush3.bf16.msra.mxu1 %v6198_v8  ;;  %v1381_v28 = vrot.slane %v1379_v22, 1  ;;  %v5424_v34 = vld [vmem:[%s6531_s24] sm:$0xff]  }
  0x1b   : > { %296 = vst [vmem:[#allocation2 + $0x70] sm:$0xf] %v6439_v2  ;;  %297 = vst [vmem:[#allocation2 + $0x74] sm:$0x1] %v6439_v2  ;;  %5605 = vmatprep.subr.bf16.mxu0 %v6199_v9  ;;  %6153 = vmatprep.subr.bf16.mxu1 %v6199_v9  ;;  %vm1375_vm1 = vsmask.f32 7424  ;;  %v5425_v36 = vunpack.c.l.bf16 %v5424_v34  ;;  %v5426_v37 = vunpack.c.h.bf16 %v5424_v34 }
  0x1c   : > { %298 = vst [vmem:[#allocation2 + $0x78] sm:$0xf] %v6439_v2  ;;  %299 = vst [vmem:[#allocation2 + $0x7c] sm:$0xf] %v6439_v2  ;;  %v1382_v35 = vor.u32 %v1381_v28, %v1377_v21  ;;  %vm595_vm3 = vsmask.f32 256 }
  0x1d   : > { %300 = vst [vmem:[#allocation2 + $0x80] sm:$0x1] %v6439_v2  ;;  %301 = vst [vmem:[#allocation2 + $0x84] sm:$0xf] %v6439_v2  ;;  %v489_v38 = vmax.f32 %v457_v32, 0.0  ;;  %v490_v39 = vmax.f32 %v458_v33, 0.0  ;;  %v396_v41 = vmul.f32 %v5425_v36, %v6547_v19  ;;  %v397_v42 = vmul.f32 %v5426_v37, %v6547_v19 }
  0x1e   : > { %302 = vst [vmem:[#allocation2 + $0x88] sm:$0xf] %v6439_v2  ;;  %303 = vst [vmem:[#allocation2 + $0x8c] sm:$0x1] %v6439_v2  ;;  %5606 = vmatpush3.bf16.msra.mxu0 %v6200_v10  ;;  %6161 = vmatpush3.bf16.msra.mxu1 %v6200_v10  ;;  %vm596_vm4 = vsmask.f32 4368 }
  0x1f   : > { %304 = vst [vmem:[#allocation2 + $0x90] sm:$0xf] %v6439_v2  ;;  %305 = vst [vmem:[#allocation2 + $0x94] sm:$0xf] %v6439_v2  ;;  %5607 = vmatprep.subr.bf16.mxu0 %v6201_v11  ;;  %6154 = vmatprep.subr.bf16.mxu1 %v6201_v11  ;;  %v5578_v43 = vld [vmem:[%s6531_s24 + $0x60] sm:$0xff]   ;;  %v5377_v44 = vpack.c.bf16 %v489_v38, %v489_v38  ;;  %v5378_v45 = vpack.c.bf16 %v490_v39, %v490_v39  ;;  %v5567_v51 = vld [vmem:[%s6531_s24 + $0x8] sm:$0xff]  }
  0x20   : > { %306 = vst [vmem:[#allocation2 + $0x98] sm:$0x1] %v6439_v2  ;;  %307 = vst [vmem:[#allocation2 + $0x9c] sm:$0xf] %v6439_v2  ;;  %v5473_v46 = vunpack.c.l.bf16 %v5578_v43  ;;  %v5474_v47 = vunpack.c.h.bf16 %v5578_v43  ;;  %v6206_v48 = vld [vmem:[%s8081_s1] sm:$0xff]   ;;  %v435_v49 = vadd.f32 %v6558_v24, %v396_v41  ;;  %v436_v50 = vadd.f32 %v6558_v24, %v397_v42  ;;  %v6588_v57 = vld [vmem:[%s8081_s1 + $0xb8] sm:$0xff]  }
  0x21   : > { %308 = vst [vmem:[#allocation2 + $0xa0] sm:$0xf] %v6439_v2  ;;  %309 = vst [vmem:[#allocation2 + $0xa4] sm:$0x1] %v6439_v2  ;;  %vm920_vm5 = vsmask.f32 7938  ;;  %v5429_v4 = vunpack.c.l.bf16 %v5567_v51  ;;  %v5430_v10 = vunpack.c.h.bf16 %v5567_v51 }
  0x22   : > { %310 = vst [vmem:[#allocation2 + $0xa8] sm:$0xf] %v6439_v2  ;;  %311 = vst [vmem:[#allocation2 + $0xac] sm:$0xf] %v6439_v2  ;;  %5608 = vmatpush3.bf16.msra.mxu0 %v6202_v20  ;;  %6162 = vmatpush3.bf16.msra.mxu1 %v6202_v20  ;;  %v786_v53 = vshrl.u32 %v5377_v44, 16  ;;  %v789_v54 = vshll.u32 %v5377_v44, 16  ;;  %v420_v62 = vmul.f32 %v5473_v46, %v6547_v19 }
  0x23   : > { %312 = vst [vmem:[#allocation2 + $0xb0] sm:$0x1] %v6439_v2  ;;  %313 = vst [vmem:[#allocation2 + $0xb4] sm:$0xf] %v6439_v2  ;;  %5609 = vmatprep.subr.bf16.mxu0 %v6203_v25  ;;  %6155 = vmatprep.subr.bf16.mxu1 %v6203_v25  ;;  %v794_v55 = vshrl.u32 %v5378_v45, 16  ;;  %v797_v56 = vshll.u32 %v5378_v45, 16  ;;  %v421_v3 = vmul.f32 %v5474_v47, %v6547_v19 }
  0x24   : > { %314 = vst [vmem:[#allocation2 + $0xb8] sm:$0xf] %v6439_v2  ;;  %315 = vst [vmem:[#allocation2 + $0xbc] sm:$0x1] %v6439_v2  ;;  %v6214_v58 = vld [vmem:[%s8081_s1 + $0x178] sm:$0xff]   ;;  %v467_v60 = vmax.f32 %v435_v49, 0.0  ;;  %v459_v9 = vadd.f32 %v6558_v24, %v420_v62  ;;  %v398_v34 = vmul.f32 %v5429_v4, %v6547_v19  ;;  %v399_v36 = vmul.f32 %v5430_v10, %v6547_v19 }
  0x25   : > { %316 = vst [vmem:[#allocation2 + $0xc0] sm:$0xf] %v6439_v2  ;;  %317 = vst [vmem:[#allocation2 + $0xc4] sm:$0xf] %v6439_v2  ;;  %v468_v61 = vmax.f32 %v436_v50, 0.0  ;;  %v788_v0 = vrot.slane %v786_v53, 7 }
  0x26   : > { %318 = vst [vmem:[#allocation2 + $0xc8] sm:$0x1] %v6439_v2  ;;  %319 = vst [vmem:[#allocation2 + $0xcc] sm:$0xf] %v6439_v2  ;;  %5610 = vmatpush3.bf16.msra.mxu0 %v6204_v30  ;;  %6163 = vmatpush3.bf16.msra.mxu1 %v6204_v30  ;;  %v796_v1 = vrot.slane %v794_v55, 7  ;;  %v5355_v7 = vpack.c.bf16 %v467_v60, %v467_v60  ;;  %v6222_v18 = vld [vmem:[%s8081_s1 + $0x170] sm:$0xff]   ;;  %v460_v30 = vadd.f32 %v6558_v24, %v421_v3 }
  0x27   : > { %320 = vst [vmem:[#allocation2 + $0xd0] sm:$0xf] %v6439_v2  ;;  %321 = vst [vmem:[#allocation2 + $0xd4] sm:$0x1] %v6439_v2  ;;  %5611 = vmatprep.subr.bf16.mxu0 %v6205_v31  ;;  %6156 = vmatprep.subr.bf16.mxu1 %v6205_v31  ;;  %v1001_v2 = vld [vmem:[#allocation2 + $0x90] sm:$0xf]  ;;  %v5356_v8 = vpack.c.bf16 %v468_v61, %v468_v61  ;;  %v791_v11 = vor.u32 %v789_v54, %v788_v0 }
  0x28   : > { %v6541_v15 = vld [vmem:[#allocation2 + $0x8] ss:$0 sps:$4 sm:$0x11]   ;;  %vm6595_vm6 = vmand %vm926_vm2, %vm595_vm3  ;;  %v1005_v6 = vld [vmem:[#allocation2 + $0x98] sm:$0x1]  ;;  %v792_v12 = vrot.slane %v788_v0, 4  ;;  %v799_v16 = vor.u32 %v797_v56, %v796_v1  ;;  %v437_v45 = vadd.f32 %v6558_v24, %v398_v34  ;;  %v438_v46 = vadd.f32 %v6558_v24, %v399_v36 }
  0x29   : > { %v1384_v23 = vshll.u32 %v6541_v15, 16  ;;  %v1634_v52 = vrot.slane %v6541_v15, 1  ;;  %vm6602_vm7 = vmor %vm595_vm3, %vm596_vm4  ;;  %v801_v17 = vrot.slane %v796_v1, 4  ;;  %v5579_v20 = vld [vmem:[%s6531_s24 + $0x68] sm:$0xff]   ;;  %v599_v21 = vshrl.u32 %v5355_v7, 16  ;;  %v6639_v51 = vld [vmem:[%s6531_s24 + $0x10] sm:$0xff]  }
  0x2a   : > { %5612 = vmatpush3.bf16.msra.mxu0 %v6206_v48  ;;  %6164 = vmatpush3.bf16.msra.mxu1 %v6206_v48  ;;  %vm6609_vm8 = vmand %vm919_vm0, %vm920_vm5  ;;  %v602_v22 = vshll.u32 %v5355_v7, 16  ;;  %v610_v25 = vshll.u32 %v5356_v8, 16  ;;  %v800_v26 = vsel %vm6602_vm7, %v792_v12, %v799_v16  ;;  %v928_v33 = vld [vmem:[#allocation2 + $0x14] sm:$0x1]  ;;  %v5477_v37 = vunpack.c.l.bf16 %v5579_v20  ;;  %v6234_v1 = vld [vmem:[%s8081_s1 + $0x168] sm:$0xff]   ;;  %s4960_s17 = sshll.u32 %s8141_s18, 1 }
  0x2b   : > { %v1386_v29 = vrot.slane %v1384_v23, 1  ;;  %6005 = vmatprep.subr.bf16.mxu1 %v6588_v57  ;;  %6053 = vmatprep.subr.bf16.mxu0 %v6214_v58  ;;  %v607_v23 = vshrl.u32 %v5356_v8, 16  ;;  %v1002_v27 = vsel %vm6609_vm8, %v791_v11, %v1001_v2  ;;  %v1006_v28 = vsel %vm6595_vm6, %v801_v17, %v1005_v6  ;;  %1004 = vst [vmem:[#allocation2 + $0x94] sm:$0xf] %v800_v26  ;;  %v6642_v53 = vld [vmem:[%s6531_s24 + $0x70] sm:$0xff]   ;;  %s7785_s25 = scalar_lea.vmem %s8085_s5, %s4960_s17 }
  0x2c   : > { %1003 = vst [vmem:[#allocation2 + $0x90] sm:$0xf] %v1002_v27  ;;  %1007 = vst [vmem:[#allocation2 + $0x98] sm:$0x1] %v1006_v28  ;;  %v601_v31 = vrot.slane %v599_v21, 7  ;;  %v5478_v38 = vunpack.c.h.bf16 %v5579_v20  ;;  %v422_v50 = vmul.f32 %v5477_v37, %v6547_v19  ;;  %v469_v60 = vmax.f32 %v437_v45, 0.0 }
  0x2d   : > { %v1387_v40 = vsel %vm1375_vm1, %v1382_v35, %v1386_v29  ;;  %v922_v29 = vld [vmem:[#allocation2 + $0xc] sm:$0xf]  ;;  %v609_v32 = vrot.slane %v607_v23, 7  ;;  %v492_v35 = vmax.f32 %v460_v30, 0.0  ;;  %v470_v61 = vmax.f32 %v438_v46, 0.0 }
  0x2e   : > { %1921 = vmatprep.mubr.bf16.mxu0 %v1387_v40  ;;  %v604_v39 = vor.u32 %v602_v22, %v601_v31  ;;  %v605_v40 = vrot.slane %v601_v31, 4  ;;  %v423_v62 = vmul.f32 %v5478_v38, %v6547_v19  ;;  %v461_v0 = vadd.f32 %v6558_v24, %v422_v50  ;;  %v1008_v4 = vld [vmem:[#allocation2 + $0x9c] sm:$0xf]  ;;  %v1012_v28 = vld [vmem:[#allocation2 + $0xa4] sm:$0x1] }
  0x2f   : > { %1922 = vmatmul.mubr.bf16.vlgmr.msra.gmra.mxu0 %v6539_v14  ;;  %v491_v14 = vmax.f32 %v459_v9, 0.0  ;;  %v612_v41 = vor.u32 %v610_v25, %v609_v32  ;;  %v614_v42 = vrot.slane %v609_v32, 4  ;;  %v5380_v44 = vpack.c.bf16 %v492_v35, %v492_v35 }
  0x30   : > { %6054 = vmatpush3.bf16.msra.mxu0 %v6214_v58  ;;  %v923_v48 = vsel %vm6609_vm8, %v604_v39, %v922_v29  ;;  %v5433_v6 = vunpack.c.l.bf16 %v6639_v51  ;;  %v5434_v7 = vunpack.c.h.bf16 %v6639_v51  ;;  %v5481_v8 = vunpack.c.l.bf16 %v6642_v53 }
  0x31   : > { %6055 = vmatprep.subr.bf16.mxu0 %v6222_v18  ;;  %v5379_v43 = vpack.c.bf16 %v491_v14, %v491_v14  ;;  %v613_v47 = vsel %vm6602_vm7, %v605_v40, %v612_v41  ;;  %v929_v49 = vsel %vm6595_vm6, %v614_v42, %v928_v33  ;;  %924 = vst [vmem:[#allocation2 + $0xc] sm:$0xf] %v923_v48  ;;  %v811_v56 = vshrl.u32 %v5380_v44, 16  ;;  %v6242_v33 = vld [vmem:[%s8081_s1 + $0x160] sm:$0xff]  }
  0x32   : > { %925 = vst [vmem:[#allocation2 + $0x10] sm:$0xf] %v613_v47  ;;  %930 = vst [vmem:[#allocation2 + $0x14] sm:$0x1] %v929_v49  ;;  %v814_v58 = vshll.u32 %v5380_v44, 16  ;;  %v5482_v9 = vunpack.c.h.bf16 %v6642_v53  ;;  %v5357_v17 = vpack.c.bf16 %v469_v60, %v469_v60  ;;  %v462_v20 = vadd.f32 %v6558_v24, %v423_v62 }
  0x33   : > { %v803_v54 = vshrl.u32 %v5379_v43, 16  ;;  %v806_v55 = vshll.u32 %v5379_v43, 16  ;;  %v1191_v2 = vld [vmem:[#allocation2 + $0x90] sm:$0xf]  ;;  %v1192_v3 = vld [vmem:[#allocation2 + $0x94] sm:$0xf]  ;;  %v400_v22 = vmul.f32 %v5433_v6, %v6547_v19 }
  0x34   : > { %6056 = vmatpush3.bf16.msra.mxu0 %v6222_v18  ;;  %v5019_v10 = vcombine.low %v1191_v2, %v1192_v3  ;;  %v6210_v11 = vld [vmem:[#allocation2 + $0x98] ss:$0 sps:$4 sm:$0x11]   ;;  %v813_v16 = vrot.slane %v811_v56, 7  ;;  %v5358_v18 = vpack.c.bf16 %v470_v61, %v470_v61  ;;  %v493_v21 = vmax.f32 %v461_v0, 0.0  ;;  %v6218_v6 = vld [vmem:[%s8081_s1 + $0xa8] sm:$0xff]  }
  0x35   : > { %v805_v12 = vrot.slane %v803_v54, 7  ;;  %6057 = vmatprep.subr.bf16.mxu0 %v6234_v1  ;;  %v1528_v26 = vshll.u32 %v6210_v11, 16  ;;  %v616_v32 = vshrl.u32 %v5357_v17, 16  ;;  %v619_v45 = vshll.u32 %v5357_v17, 16  ;;  %v935_v62 = vld [vmem:[#allocation2 + $0x20] sm:$0x1] }
  0x36   : > { %v1521_v23 = vshrl.u32 %v5019_v10, 16  ;;  %v1523_v25 = vshll.u32 %v5019_v10, 16  ;;  %v816_v30 = vor.u32 %v814_v58, %v813_v16  ;;  %v818_v31 = vrot.slane %v813_v16, 4  ;;  %v6215_v58 = vld [vmem:[%s8081_s1 + $0xb0] sm:$0xff]  }
  0x37   : > { %v808_v27 = vor.u32 %v806_v55, %v805_v12  ;;  %v809_v29 = vrot.slane %v805_v12, 4  ;;  %v1530_v34 = vrot.slane %v1528_v26, 1  ;;  %v5381_v38 = vpack.c.bf16 %v493_v21, %v493_v21  ;;  %v931_v55 = vld [vmem:[#allocation2 + $0x18] sm:$0xf] }
  0x38   : > { %6058 = vmatpush3.bf16.msra.mxu0 %v6234_v1  ;;  %v1525_v14 = vrot.slane %v1523_v25, 1  ;;  %v1169_v35 = vld [vmem:[#allocation2 + $0xc] sm:$0xf]  ;;  %v1013_v42 = vsel %vm6595_vm6, %v818_v31, %v1012_v28  ;;  %v618_v43 = vrot.slane %v616_v32, 7  ;;  %v624_v46 = vshrl.u32 %v5358_v18, 16  ;;  %v6689_v25 = vld [vmem:[%s6531_s24 + $0x18] sm:$0xff]  }
  0x39   : > { %v6658_v36 = vld [vmem:[#allocation2 + $0x10] sm:$0xf]  ;;  %v1009_v37 = vsel %vm6609_vm8, %v808_v27, %v1008_v4  ;;  %v6665_v40 = vld [vmem:[#allocation2 + $0x14] ss:$0 sps:$4 sm:$0x11]   ;;  %v817_v41 = vsel %vm6602_vm7, %v809_v29, %v816_v30  ;;  %6059 = vmatprep.subr.bf16.mxu0 %v6242_v33  ;;  %v627_v47 = vshll.u32 %v5358_v18, 16 }
  0x3a   : > { %v6663_v39 = vcombine.low %v1169_v35, %v6658_v36  ;;  %1010 = vst [vmem:[#allocation2 + $0x9c] sm:$0xf] %v1009_v37  ;;  %v1526_v44 = vor.u32 %v1525_v14, %v1521_v23  ;;  %1011 = vst [vmem:[#allocation2 + $0xa0] sm:$0xf] %v817_v41  ;;  %v1396_v50 = vshll.u32 %v6665_v40, 16  ;;  %v622_v54 = vrot.slane %v618_v43, 4 }
  0x3b   : > { %1014 = vst [vmem:[#allocation2 + $0xa4] sm:$0x1] %v1013_v42  ;;  %v621_v60 = vor.u32 %v619_v45, %v618_v43  ;;  %v626_v61 = vrot.slane %v624_v46, 7  ;;  %v494_v0 = vmax.f32 %v462_v20, 0.0  ;;  %v820_v3 = vshrl.u32 %v5381_v38, 16  ;;  %v6221_v37 = vld [vmem:[%s8081_s1 + $0xa0] sm:$0xff]  }
  0x3c   : > { %6060 = vmatpush3.bf16.msra.mxu0 %v6242_v33  ;;  %v1389_v48 = vshrl.u32 %v6663_v39, 16  ;;  %v1391_v49 = vshll.u32 %v6663_v39, 16  ;;  %v1531_v56 = vsel %vm1375_vm1, %v1526_v44, %v1530_v34  ;;  %v1398_v2 = vrot.slane %v1396_v50, 1  ;;  %v1015_v18 = vld [vmem:[#allocation2 + $0xa8] sm:$0xf] }
  0x3d   : > { %2017 = vmatprep.mubr.bf16.mxu1 %v1531_v56  ;;  %v823_v4 = vshll.u32 %v5381_v38, 16  ;;  %v629_v11 = vor.u32 %v627_v47, %v626_v61  ;;  %v631_v12 = vrot.slane %v626_v61, 4  ;;  %v932_v16 = vsel %vm6609_vm8, %v621_v60, %v931_v55  ;;  %v1019_v41 = vld [vmem:[#allocation2 + $0xb0] sm:$0x1]  ;;  %v6255_v47 = vld [vmem:[%s8081_s1 + $0x158] sm:$0xff]  }
  0x3e   : > { %v1393_v1 = vrot.slane %v1391_v49, 1  ;;  %2018 = vmatmul.mubr.bf16.vlgmr.msra.gmra.mxu1 %v5019_v10  ;;  %v5382_v17 = vpack.c.bf16 %v494_v0, %v494_v0  ;;  %933 = vst [vmem:[#allocation2 + $0x18] sm:$0xf] %v932_v16  ;;  %v822_v20 = vrot.slane %v820_v3, 7  ;;  %v401_v10 = vmul.f32 %v5434_v7, %v6547_v19  ;;  %6061 = vmatprep.subr.bf16.mxu0 %v6255_v47  ;;  %v6225_v61 = vld [vmem:[%s8081_s1 + $0x98] sm:$0xff]  }
  0x3f   : > { %6006 = vmatpush3.bf16.msra.mxu1 %v6588_v57  ;;  %v439_v23 = vadd.f32 %v6558_v24, %v400_v22  ;;  %v630_v27 = vsel %vm6602_vm7, %v622_v54, %v629_v11  ;;  %v936_v28 = vsel %vm6595_vm6, %v631_v12, %v935_v62  ;;  %v424_v35 = vmul.f32 %v5481_v8, %v6547_v19 }
  0x40   : > { %v1394_v21 = vor.u32 %v1393_v1, %v1389_v48  ;;  %6007 = vmatprep.subr.bf16.mxu1 %v6215_v58  ;;  %v828_v29 = vshrl.u32 %v5382_v17, 16  ;;  %v831_v57 = vshll.u32 %v5382_v17, 16  ;;  %934 = vst [vmem:[#allocation2 + $0x1c] sm:$0xf] %v630_v27  ;;  %937 = vst [vmem:[#allocation2 + $0x20] sm:$0x1] %v936_v28  ;;  %v825_v51 = vor.u32 %v823_v4, %v822_v20 }
  0x41   : > { %v1193_v26 = vld [vmem:[#allocation2 + $0x9c] sm:$0xf]  ;;  %v1194_v31 = vld [vmem:[#allocation2 + $0xa0] sm:$0xf]  ;;  %v826_v7 = vrot.slane %v822_v20, 4  ;;  %v440_v22 = vadd.f32 %v6558_v24, %v401_v10  ;;  %v471_v34 = vmax.f32 %v439_v23, 0.0  ;;  %v425_v43 = vmul.f32 %v5482_v9, %v6547_v19  ;;  %6062 = vmatpush3.bf16.msra.mxu0 %v6255_v47 }
  0x42   : > { %v1399_v30 = vsel %vm1375_vm1, %v1394_v21, %v1398_v2  ;;  %v6697_v32 = vcombine.low %v1193_v26, %v1194_v31  ;;  %v6217_v33 = vld [vmem:[#allocation2 + $0xa4] ss:$0 sps:$4 sm:$0x11]   ;;  %v830_v14 = vrot.slane %v828_v29, 7  ;;  %v1016_v38 = vsel %vm6609_vm8, %v825_v51, %v1015_v18  ;;  %v942_v23 = vld [vmem:[#allocation2 + $0x2c] sm:$0x1] }
  0x43   : > { %1929 = vmatprep.mubr.bf16.mxu0 %v1399_v30  ;;  %6008 = vmatpush3.bf16.msra.mxu1 %v6215_v58  ;;  %v472_v42 = vmax.f32 %v440_v22, 0.0  ;;  %v5437_v44 = vunpack.c.l.bf16 %v6689_v25  ;;  %v1540_v45 = vshll.u32 %v6217_v33, 16  ;;  %1017 = vst [vmem:[#allocation2 + $0xa8] sm:$0xf] %v1016_v38  ;;  %v5359_v49 = vpack.c.bf16 %v471_v34, %v471_v34  ;;  %v938_v10 = vld [vmem:[#allocation2 + $0x24] sm:$0xf] }
  0x44   : > { %1930 = vmatmul.mubr.bf16.gmra.mxu0 %v6663_v39  ;;  %v1533_v8 = vshrl.u32 %v6697_v32, 16  ;;  %v1535_v39 = vshll.u32 %v6697_v32, 16  ;;  %6009 = vmatprep.subr.bf16.mxu1 %v6218_v6  ;;  %v833_v46 = vor.u32 %v831_v57, %v830_v14  ;;  %v835_v48 = vrot.slane %v830_v14, 4  ;;  %v6228_v51 = vld [vmem:[%s8081_s1 + $0x90] sm:$0xff]  }
  0x45   : > { %v5360_v50 = vpack.c.bf16 %v472_v42, %v472_v42  ;;  %v463_v53 = vadd.f32 %v6558_v24, %v424_v35  ;;  %v1542_v54 = vrot.slane %v1540_v45, 1  ;;  %v1171_v55 = vld [vmem:[#allocation2 + $0x18] sm:$0xf]  ;;  %v464_v58 = vadd.f32 %v6558_v24, %v425_v43  ;;  %v6262_v42 = vld [vmem:[%s8081_s1 + $0x150] sm:$0xff]  }
  0x46   : > { %v1537_v9 = vrot.slane %v1535_v39, 1  ;;  %v834_v56 = vsel %vm6602_vm7, %v826_v7, %v833_v46  ;;  %v1020_v60 = vsel %vm6595_vm6, %v835_v48, %v1019_v41  ;;  %v633_v62 = vshrl.u32 %v5359_v49, 16  ;;  %v1215_v7 = vld [vmem:[#allocation2] sm:$0xe]  ;;  %6063 = vmatprep.subr.bf16.mxu0 %v6262_v42 }
  0x47   : > { %6010 = vmatpush3.bf16.msra.mxu1 %v6218_v6  ;;  %1018 = vst [vmem:[#allocation2 + $0xac] sm:$0xf] %v834_v56  ;;  %v636_v0 = vshll.u32 %v5359_v49, 16  ;;  %v641_v1 = vshrl.u32 %v5360_v50, 16  ;;  %v6726_v3 = vld [vmem:[#allocation2 + $0x1c] sm:$0xf]  ;;  %v5438_v6 = vunpack.c.h.bf16 %v6689_v25  ;;  %v402_v27 = vmul.f32 %v5437_v44, %v6547_v19  ;;  %6064 = vmatpush3.bf16.msra.mxu0 %v6262_v42 }
  0x48   : > { %v1538_v2 = vor.u32 %v1537_v9, %v1533_v8  ;;  %6011 = vmatprep.subr.bf16.mxu1 %v6221_v37  ;;  %1021 = vst [vmem:[#allocation2 + $0xb0] sm:$0x1] %v1020_v60  ;;  %v644_v4 = vshll.u32 %v5360_v50, 16  ;;  %v495_v11 = vmax.f32 %v463_v53, 0.0  ;;  %v6730_v12 = vcombine.low %v1171_v55, %v6726_v3  ;;  %v1022_v49 = vld [vmem:[#allocation2 + $0xb4] sm:$0xf] }
  0x49   : > { %v6732_v16 = vld [vmem:[#allocation2 + $0x20] ss:$0 sps:$4 sm:$0x11]   ;;  %v635_v17 = vrot.slane %v633_v62, 7  ;;  %v643_v18 = vrot.slane %v641_v1, 7  ;;  %v496_v21 = vmax.f32 %v464_v58, 0.0  ;;  %v403_v28 = vmul.f32 %v5438_v6, %v6547_v19 }
  0x4a   : > { %v1543_v20 = vsel %vm1375_vm1, %v1538_v2, %v1542_v54  ;;  %v5383_v26 = vpack.c.bf16 %v495_v11, %v495_v11  ;;  %v1401_v25 = vshrl.u32 %v6730_v12, 16  ;;  %v1403_v29 = vshll.u32 %v6730_v12, 16  ;;  %v1195_v30 = vld [vmem:[#allocation2 + $0xa8] sm:$0xf]  ;;  %v1026_v50 = vld [vmem:[#allocation2 + $0xbc] sm:$0x1] }
  0x4b   : > { %2025 = vmatprep.mubr.bf16.mxu1 %v1543_v20  ;;  %v1408_v57 = vshll.u32 %v6732_v16, 16  ;;  %6012 = vmatpush3.bf16.msra.mxu1 %v6221_v37  ;;  %v638_v31 = vor.u32 %v636_v0, %v635_v17  ;;  %vm1632_vm9 = vcmask 1046528   ;;  %v639_v22 = vrot.slane %v635_v17, 4  ;;  %v6231_v55 = vld [vmem:[%s8081_s1 + $0x88] sm:$0xff]   ;;  %v5570_v1 = vld [vmem:[%s6531_s24 + $0x20] sm:$0xff]  }
  0x4c   : > { %2026 = vmatmul.mubr.bf16.gmra.mxu1 %v6697_v32  ;;  %6013 = vmatprep.subr.bf16.mxu1 %v6225_v61  ;;  %v646_v33 = vor.u32 %v644_v4, %v643_v18  ;;  %v648_v14 = vrot.slane %v643_v18, 4  ;;  %v5384_v34 = vpack.c.bf16 %v496_v21, %v496_v21  ;;  %v1405_v35 = vrot.slane %v1403_v29, 1  ;;  %v1216_v2 = vld [vmem:[#allocation2 + $0xc] sm:$0xe]  ;;  %v1217_v42 = vld [vmem:[#allocation2 + $0x18] sm:$0xe] }
  0x4d   : > { %v1410_v38 = vrot.slane %v1408_v57, 1  ;;  %v939_v37 = vsel %vm6609_vm8, %v638_v31, %v938_v10  ;;  %v837_v41 = vshrl.u32 %v5383_v26, 16  ;;  %v840_v8 = vshll.u32 %v5383_v26, 16 }
  0x4e   : > { %v1196_v43 = vld [vmem:[#allocation2 + $0xac] sm:$0xf]  ;;  %v647_v44 = vsel %vm6602_vm7, %v639_v22, %v646_v33  ;;  %940 = vst [vmem:[#allocation2 + $0x24] sm:$0xf] %v939_v37  ;;  %v943_v32 = vsel %vm6595_vm6, %v648_v14, %v942_v23  ;;  %v845_v39 = vshrl.u32 %v5384_v34, 16  ;;  %v1406_v45 = vor.u32 %v1405_v35, %v1401_v25 }
  0x4f   : > { %v6753_v46 = vcombine.low %v1195_v30, %v1196_v43  ;;  %v6224_v47 = vld [vmem:[#allocation2 + $0xb0] ss:$0 sps:$4 sm:$0x11]   ;;  %941 = vst [vmem:[#allocation2 + $0x28] sm:$0xf] %v647_v44  ;;  %6014 = vmatpush3.bf16.msra.mxu1 %v6225_v61  ;;  %v839_v48 = vrot.slane %v837_v41, 7  ;;  %v441_v53 = vadd.f32 %v6558_v24, %v402_v27  ;;  %v442_v56 = vadd.f32 %v6558_v24, %v403_v28 }
  0x50   : > { %944 = vst [vmem:[#allocation2 + $0x2c] sm:$0x1] %v943_v32  ;;  %6015 = vmatprep.subr.bf16.mxu1 %v6228_v51  ;;  %v847_v9 = vrot.slane %v845_v39, 7  ;;  %v848_v54 = vshll.u32 %v5384_v34, 16  ;;  %v5039_v58 = vcombine.low %v1215_v7, %v6536_v13  ;;  %v1411_v60 = vsel %vm1375_vm1, %v1406_v45, %v1410_v38  ;;  %v6235_v27 = vld [vmem:[%s8081_s1 + $0x80] sm:$0xff]   ;;  %v5571_v43 = vld [vmem:[%s6531_s24 + $0x28] sm:$0xff]  }
  0x51   : > { %v1545_v61 = vshrl.u32 %v6753_v46, 16  ;;  %v1547_v62 = vshll.u32 %v6753_v46, 16  ;;  %v1552_v0 = vshll.u32 %v6224_v47, 16  ;;  %1937 = vmatprep.mubr.bf16.mxu0 %v1411_v60  ;;  %v842_v4 = vor.u32 %v840_v8, %v839_v48  ;;  %v945_v47 = vld [vmem:[#allocation2 + $0x30] sm:$0xf] }
  0x52   : > { %v843_v11 = vrot.slane %v839_v48, 4  ;;  %v850_v6 = vor.u32 %v848_v54, %v847_v9  ;;  %v852_v17 = vrot.slane %v847_v9, 4  ;;  %1938 = vmatmul.mubr.bf16.gmra.mxu0 %v6730_v12  ;;  %v473_v13 = vmax.f32 %v441_v53, 0.0 }
  0x53   : > { %v1549_v18 = vrot.slane %v1547_v62, 1  ;;  %v1554_v21 = vrot.slane %v1552_v0, 1  ;;  %6016 = vmatpush3.bf16.msra.mxu1 %v6228_v51  ;;  %v474_v20 = vmax.f32 %v442_v56, 0.0  ;;  %v1023_v23 = vsel %vm6609_vm8, %v842_v4, %v1022_v49  ;;  %v949_v56 = vld [vmem:[#allocation2 + $0x38] sm:$0x1] }
  0x54   : > { %v851_v10 = vsel %vm6602_vm7, %v843_v11, %v850_v6  ;;  %v1027_v26 = vsel %vm6595_vm6, %v852_v17, %v1026_v50  ;;  %6017 = vmatprep.subr.bf16.mxu1 %v6231_v55  ;;  %v1633_v12 = vrot.slane %v5039_v58, 1  ;;  %1024 = vst [vmem:[#allocation2 + $0xb4] sm:$0xf] %v1023_v23  ;;  %v5361_v29 = vpack.c.bf16 %v473_v13, %v473_v13 }
  0x55   : > { %v1550_v28 = vor.u32 %v1549_v18, %v1545_v61  ;;  %v1173_v25 = vld [vmem:[#allocation2 + $0x24] sm:$0xf]  ;;  %1025 = vst [vmem:[#allocation2 + $0xb8] sm:$0xf] %v851_v10  ;;  %1028 = vst [vmem:[#allocation2 + $0xbc] sm:$0x1] %v1027_v26  ;;  %v5362_v57 = vpack.c.bf16 %v474_v20, %v474_v20  ;;  %v5441_v30 = vunpack.c.l.bf16 %v5570_v1  ;;  %v5442_v7 = vunpack.c.h.bf16 %v5570_v1 }
  0x56   : > { %v6775_v31 = vld [vmem:[#allocation2 + $0x28] sm:$0xf]  ;;  %v6780_v51 = vsel %vm1632_vm9, %v1633_v12, %v1634_v52  ;;  %v5040_v22 = vcombine.low %v1216_v2, %v6658_v36  ;;  %v1637_v33 = vrot.slane %v6665_v40, 1  ;;  %v650_v38 = vshrl.u32 %v5361_v29, 16  ;;  %v6237_v52 = vld [vmem:[%s8081_s1 + $0x138] sm:$0xff]  }
  0x57   : > { %v1555_v14 = vsel %vm1375_vm1, %v1550_v28, %v1554_v21  ;;  %v5010_v34 = vcombine.low %v1173_v25, %v6775_v31  ;;  %v6786_v35 = vld [vmem:[#allocation2 + $0x2c] ss:$0 sps:$4 sm:$0x11]   ;;  %v653_v37 = vshll.u32 %v5361_v29, 16  ;;  %6018 = vmatpush3.bf16.msra.mxu1 %v6231_v55  ;;  %v658_v15 = vshrl.u32 %v5362_v57, 16  ;;  %v6817_v29 = vld [vmem:[%s6531_s24 + $0x30] sm:$0xff]  }
  0x58   : > { %2033 = vmatprep.mubr.bf16.mxu1 %v1555_v14  ;;  %v661_v41 = vshll.u32 %v5362_v57, 16  ;;  %6019 = vmatprep.subr.bf16.mxu1 %v6235_v27  ;;  %v404_v36 = vmul.f32 %v5441_v30, %v6547_v19  ;;  %v405_v40 = vmul.f32 %v5442_v7, %v6547_v19  ;;  %v1420_v8 = vshll.u32 %v6786_v35, 16  ;;  %v1218_v25 = vld [vmem:[#allocation2 + $0x24] sm:$0xe]  ;;  %v6277_v57 = vld [vmem:[%s8081_s1 + $0x148] sm:$0xff]  }
  0x59   : > { %v1413_v44 = vshrl.u32 %v5010_v34, 16  ;;  %v1415_v32 = vshll.u32 %v5010_v34, 16  ;;  %2034 = vmatmul.mubr.bf16.gmra.mxu1 %v6753_v46  ;;  %v652_v39 = vrot.slane %v650_v38, 7  ;;  %v660_v45 = vrot.slane %v658_v15, 7  ;;  %6065 = vmatprep.subr.bf16.mxu0 %v6277_v57 }
  0x5a   : > { %v443_v48 = vadd.f32 %v6558_v24, %v404_v36  ;;  %v444_v49 = vadd.f32 %v6558_v24, %v405_v40  ;;  %v1636_v50 = vrot.slane %v5040_v22, 1  ;;  %v1422_v9 = vrot.slane %v1420_v8, 1  ;;  %6066 = vmatpush3.bf16.msra.mxu0 %v6277_v57 }
  0x5b   : > { %v1417_v53 = vrot.slane %v1415_v32, 1  ;;  %v655_v54 = vor.u32 %v653_v37, %v652_v39  ;;  %v656_v55 = vrot.slane %v652_v39, 4  ;;  %6020 = vmatpush3.bf16.msra.mxu1 %v6235_v27  ;;  %v1197_v58 = vld [vmem:[#allocation2 + $0xb4] sm:$0xf]  ;;  %v663_v61 = vor.u32 %v661_v41, %v660_v45  ;;  %v952_v41 = vld [vmem:[#allocation2 + $0x3c] sm:$0xf] }
  0x5c   : > { %v6798_v60 = vld [vmem:[#allocation2 + $0xb8] sm:$0xf]  ;;  %5733 = vmatprep.subr.bf16.mxu1 %v6237_v52  ;;  %v6801_v46 = vsel %vm1632_vm9, %v1636_v50, %v1637_v33  ;;  %v5041_v62 = vcombine.low %v1217_v42, %v6726_v3  ;;  %v5445_v0 = vunpack.c.l.bf16 %v5571_v43  ;;  %v6805_v4 = vld [vmem:[#allocation2 + $0xbc] ss:$0 sps:$4 sm:$0x11]   ;;  %v665_v11 = vrot.slane %v660_v45, 4 }
  0x5d   : > { %v1418_v1 = vor.u32 %v1417_v53, %v1413_v44  ;;  %v5022_v2 = vcombine.low %v1197_v58, %v6798_v60  ;;  %v946_v6 = vsel %vm6609_vm8, %v655_v54, %v945_v47  ;;  %v664_v17 = vsel %vm6602_vm7, %v656_v55, %v663_v61 }
  0x5e   : > { %947 = vst [vmem:[#allocation2 + $0x30] sm:$0xf] %v946_v6  ;;  %v475_v18 = vmax.f32 %v443_v48, 0.0  ;;  %v476_v21 = vmax.f32 %v444_v49, 0.0  ;;  %v1639_v13 = vrot.slane %v5041_v62, 1  ;;  %v1564_v23 = vshll.u32 %v6805_v4, 16 }
  0x5f   : > { %v1423_v3 = vsel %vm1375_vm1, %v1418_v1, %v1422_v9  ;;  %v1557_v20 = vshrl.u32 %v5022_v2, 16  ;;  %v1559_v10 = vshll.u32 %v5022_v2, 16  ;;  %948 = vst [vmem:[#allocation2 + $0x34] sm:$0xf] %v664_v17  ;;  %v950_v26 = vsel %vm6595_vm6, %v665_v11, %v949_v56  ;;  %v6282_v1 = vld [vmem:[%s8081_s1 + $0x140] sm:$0xff]  }
  0x60   : > { %1945 = vmatprep.mubr.bf16.mxu0 %v1423_v3  ;;  %v5363_v27 = vpack.c.bf16 %v475_v18, %v475_v18  ;;  %v5364_v12 = vpack.c.bf16 %v476_v21, %v476_v21  ;;  %v1640_v28 = vrot.slane %v6732_v16, 1  ;;  %v1566_v7 = vrot.slane %v1564_v23, 1  ;;  %951 = vst [vmem:[#allocation2 + $0x38] sm:$0x1] %v950_v26  ;;  %v959_v21 = vld [vmem:[#allocation2 + $0x48] sm:$0xf]  ;;  %6067 = vmatprep.subr.bf16.mxu0 %v6282_v1 }
  0x61   : > { %1946 = vmatmul.mubr.bf16.gmra.mxu0 %v5010_v34  ;;  %v1561_v30 = vrot.slane %v1559_v10, 1  ;;  %v5446_v22 = vunpack.c.h.bf16 %v5571_v43  ;;  %v406_v33 = vmul.f32 %v5445_v0, %v6547_v19  ;;  %v956_v43 = vld [vmem:[#allocation2 + $0x44] sm:$0x1]  ;;  %v5042_v44 = vcombine.low %v1218_v25, %v6775_v31 }
  0x62   : > { %v667_v14 = vshrl.u32 %v5363_v27, 16  ;;  %v670_v38 = vshll.u32 %v5363_v27, 16  ;;  %v675_v37 = vshrl.u32 %v5364_v12, 16  ;;  %v678_v15 = vshll.u32 %v5364_v12, 16  ;;  %6068 = vmatpush3.bf16.msra.mxu0 %v6282_v1  ;;  %v6293_v1 = vld [vmem:[%s8081_s1 + $0x1f8] sm:$0xff]  }
  0x63   : > { %v1562_v16 = vor.u32 %v1561_v30, %v1557_v20  ;;  %v6824_v52 = vsel %vm1632_vm9, %v1639_v13, %v1640_v28  ;;  %v407_v36 = vmul.f32 %v5446_v22, %v6547_v19  ;;  %v445_v34 = vadd.f32 %v6558_v24, %v406_v33  ;;  %v5573_v20 = vld [vmem:[%s6531_s24 + $0x38] sm:$0xff]   ;;  %v6858_v30 = vld [vmem:[%s8082_s2] ss:$0 sm:$0xff]  ;;  %5869 = vmatprep.subr.bf16.mxu0 %v6293_v1 }
  0x64   : > { %v669_v40 = vrot.slane %v667_v14, 7  ;;  %v677_v42 = vrot.slane %v675_v37, 7  ;;  %v1643_v32 = vrot.slane %v6786_v35, 1  ;;  %v5449_v49 = vunpack.c.l.bf16 %v6817_v29  ;;  %v6241_v28 = vld [vmem:[%s8081_s1 + $0xf8] sm:$0xff]   ;;  %v6862_v22 = vld [vmem:[%s6531_s24 + $0x40] sm:$0xff]  }
  0x65   : > { %v1567_v8 = vsel %vm1375_vm1, %v1562_v16, %v1566_v7  ;;  %v1175_v39 = vld [vmem:[#allocation2 + $0x30] sm:$0xf]  ;;  %v446_v45 = vadd.f32 %v6558_v24, %v407_v36  ;;  %v477_v47 = vmax.f32 %v445_v34, 0.0  ;;  %v1642_v56 = vrot.slane %v5042_v44, 1  ;;  %v6874_v36 = vld [vmem:[%s8083_s3] ss:$0 sm:$0xff] }
  0x66   : > { %v1219_v48 = vld [vmem:[#allocation2 + $0x30] sm:$0xe]  ;;  %2041 = vmatprep.mubr.bf16.mxu1 %v1567_v8  ;;  %v1176_v19 = vld [vmem:[#allocation2 + $0x34] sm:$0xf]  ;;  %v672_v50 = vor.u32 %v670_v38, %v669_v40  ;;  %v673_v53 = vrot.slane %v669_v40, 4  ;;  %v680_v9 = vor.u32 %v678_v15, %v677_v42  ;;  %v682_v54 = vrot.slane %v677_v42, 4 }
  0x67   : > { %v6833_v55 = vcombine.low %v1175_v39, %v1176_v19  ;;  %2042 = vmatmul.mubr.bf16.gmra.mxu1 %v5022_v2  ;;  %v478_v31 = vmax.f32 %v446_v45, 0.0  ;;  %v5365_v35 = vpack.c.bf16 %v477_v47, %v477_v47  ;;  %v6233_v58 = vld [vmem:[#allocation2 + $0x38] ss:$0 sps:$4 sm:$0x11]   ;;  %v5043_v0 = vcombine.low %v1219_v48, %v1176_v19  ;;  %v6244_v15 = vld [vmem:[%s8081_s1 + $0x130] sm:$0xff]   ;;  %v6250_v39 = vld [vmem:[%s8081_s1 + $0x128] sm:$0xff]  }
  0x68   : > { %6021 = vmatprep.mubr.bf16.mxu1 %v6780_v51  ;;  %v681_v24 = vsel %vm6602_vm7, %v673_v53, %v680_v9  ;;  %v953_v61 = vsel %vm6609_vm8, %v672_v50, %v952_v41  ;;  %v957_v62 = vsel %vm6595_vm6, %v682_v54, %v956_v43  ;;  %v1432_v17 = vshll.u32 %v6233_v58, 16  ;;  %v963_v16 = vld [vmem:[#allocation2 + $0x50] sm:$0x1] }
  0x69   : > { %v1425_v2 = vshrl.u32 %v6833_v55, 16  ;;  %v1427_v11 = vshll.u32 %v6833_v55, 16  ;;  %954 = vst [vmem:[#allocation2 + $0x3c] sm:$0xf] %v953_v61  ;;  %955 = vst [vmem:[#allocation2 + $0x40] sm:$0xf] %v681_v24  ;;  %v5366_v51 = vpack.c.bf16 %v478_v31, %v478_v31  ;;  %v6848_v13 = vsel %vm1632_vm9, %v1642_v56, %v1643_v32 }
  0x6a   : > { %958 = vst [vmem:[#allocation2 + $0x44] sm:$0x1] %v957_v62  ;;  %v684_v6 = vshrl.u32 %v5365_v35, 16  ;;  %v687_v18 = vshll.u32 %v5365_v35, 16  ;;  %v1645_v3 = vrot.slane %v5043_v0, 1  ;;  %v1434_v12 = vrot.slane %v1432_v17, 1 }
  0x6b   : > { %v1429_v10 = vrot.slane %v1427_v11, 1  ;;  %v692_v26 = vshrl.u32 %v5366_v51, 16  ;;  %v695_v27 = vshll.u32 %v5366_v51, 16  ;;  %v1646_v25 = vrot.slane %v6233_v58, 1  ;;  %v6248_v8 = vld [vmem:[%s8081_s1 + $0xf0] sm:$0xff]   ;;  %v6257_v17 = vld [vmem:[%s8081_s1 + $0x120] sm:$0xff]  }
  0x6c   : > { %v686_v23 = vrot.slane %v684_v6, 7  ;;  %v5450_v57 = vunpack.c.h.bf16 %v6817_v29  ;;  %v408_v7 = vmul.f32 %v6858_v30, %v5449_v49  ;;  %v5453_v40 = vunpack.c.l.bf16 %v5573_v20  ;;  %v6254_v6 = vld [vmem:[%s8081_s1 + $0xe8] sm:$0xff]  }
  0x6d   : > { %v1430_v33 = vor.u32 %v1429_v10, %v1425_v2  ;;  %v694_v37 = vrot.slane %v692_v26, 7  ;;  %v6868_v29 = vsel %vm1632_vm9, %v1645_v3, %v1646_v25  ;;  %v5454_v48 = vunpack.c.h.bf16 %v5573_v20 }
  0x6e   : > { %v689_v14 = vor.u32 %v687_v18, %v686_v23  ;;  %v690_v38 = vrot.slane %v686_v23, 4  ;;  %v409_v41 = vmul.f32 %v6858_v30, %v5450_v57  ;;  %v447_v34 = vadd.f32 %v6874_v36, %v408_v7 }
  0x6f   : > { %v1435_v42 = vsel %vm1375_vm1, %v1430_v33, %v1434_v12  ;;  %6022 = vmatmul.mubr.bf16.vlgmr.msra.gmra.mxu1 %v6801_v46  ;;  %v697_v43 = vor.u32 %v695_v27, %v694_v37  ;;  %v699_v44 = vrot.slane %v694_v37, 4  ;;  %v410_v49 = vmul.f32 %v6858_v30, %v5453_v40  ;;  %v966_v12 = vld [vmem:[#allocation2 + $0x54] sm:$0xf] }
  0x70   : > { %v960_v32 = vsel %vm6609_vm8, %v689_v14, %v959_v21  ;;  %1953 = vmatprep.mubr.bf16.mxu0 %v1435_v42  ;;  %v1177_v45 = vld [vmem:[#allocation2 + $0x3c] sm:$0xf]  ;;  %v1178_v47 = vld [vmem:[#allocation2 + $0x40] sm:$0xf]  ;;  %5734 = vmatpush3.bf16.msra.mxu1 %v6241_v28  ;;  %v448_v46 = vadd.f32 %v6874_v36, %v409_v41  ;;  %v5457_v19 = vunpack.c.l.bf16 %v6862_v22  ;;  %v479_v31 = vmax.f32 %v447_v34, 0.0  ;;  %v6913_v21 = vld [vmem:[%s6531_s24 + $0x48] sm:$0xff]  }
  0x71   : > { %961 = vst [vmem:[#allocation2 + $0x48] sm:$0xf] %v960_v32  ;;  %1954 = vmatmul.mubr.bf16.gmra.mxu0 %v6833_v55  ;;  %v6891_v50 = vcombine.low %v1177_v45, %v1178_v47  ;;  %v6239_v53 = vld [vmem:[#allocation2 + $0x44] ss:$0 sps:$4 sm:$0x11]   ;;  %6025 = vmatprep.mubr.bf16.mxu1 %v6824_v52  ;;  %v698_v9 = vsel %vm6602_vm7, %v690_v38, %v697_v43  ;;  %v5458_v37 = vunpack.c.h.bf16 %v6862_v22  ;;  %v5461_v42 = vunpack.c.l.bf16 %v6913_v21 }
  0x72   : > { %v964_v54 = vsel %vm6595_vm6, %v699_v44, %v963_v16  ;;  %v1220_v35 = vld [vmem:[#allocation2 + $0x3c] sm:$0xe]  ;;  %5735 = vmatprep.subr.bf16.mxu1 %v6244_v15  ;;  %962 = vst [vmem:[#allocation2 + $0x4c] sm:$0xf] %v698_v9  ;;  %v480_v56 = vmax.f32 %v448_v46, 0.0  ;;  %v411_v55 = vmul.f32 %v6858_v30, %v5454_v48  ;;  %v449_v24 = vadd.f32 %v6874_v36, %v410_v49  ;;  %v6261_v34 = vld [vmem:[%s8081_s1 + $0xe0] sm:$0xff]  }
  0x73   : > { %965 = vst [vmem:[#allocation2 + $0x50] sm:$0x1] %v964_v54  ;;  %v5044_v58 = vcombine.low %v1220_v35, %v1178_v47  ;;  %v1437_v52 = vshrl.u32 %v6891_v50, 16  ;;  %v1439_v61 = vshll.u32 %v6891_v50, 16  ;;  %v1444_v62 = vshll.u32 %v6239_v53, 16 }
  0x74   : > { %v5367_v0 = vpack.c.bf16 %v479_v31, %v479_v31  ;;  %5736 = vmatpush3.bf16.msra.mxu1 %v6248_v8  ;;  %v5368_v2 = vpack.c.bf16 %v480_v56, %v480_v56  ;;  %v1649_v51 = vrot.slane %v6239_v53, 1  ;;  %v450_v18 = vadd.f32 %v6874_v36, %v411_v55  ;;  %v970_v16 = vld [vmem:[#allocation2 + $0x5c] sm:$0x1] }
  0x75   : > { %v1648_v11 = vrot.slane %v5044_v58, 1  ;;  %v1441_v3 = vrot.slane %v1439_v61, 1  ;;  %v1446_v20 = vrot.slane %v1444_v62, 1  ;;  %5737 = vmatprep.subr.bf16.mxu1 %v6250_v39  ;;  %v481_v25 = vmax.f32 %v449_v24, 0.0  ;;  %v6272_v61 = vld [vmem:[%s8081_s1 + $0x110] sm:$0xff]  }
  0x76   : > { %v701_v10 = vshrl.u32 %v5367_v0, 16  ;;  %v704_v23 = vshll.u32 %v5367_v0, 16  ;;  %v709_v26 = vshrl.u32 %v5368_v2, 16  ;;  %v712_v27 = vshll.u32 %v5368_v2, 16 }
  0x77   : > { %v1650_v28 = vsel %vm1632_vm9, %v1648_v11, %v1649_v51  ;;  %v1442_v57 = vor.u32 %v1441_v3, %v1437_v52  ;;  %6026 = vmatmul.mubr.bf16.gmra.mxu1 %v6848_v13  ;;  %v482_v38 = vmax.f32 %v450_v18, 0.0  ;;  %v5369_v41 = vpack.c.bf16 %v481_v25, %v481_v25  ;;  %v973_v52 = vld [vmem:[#allocation2 + $0x60] sm:$0xf] }
  0x78   : > { %v1179_v7 = vld [vmem:[#allocation2 + $0x48] sm:$0xf]  ;;  %v703_v33 = vrot.slane %v701_v10, 7  ;;  %6029 = vmatprep.mubr.bf16.mxu1 %v6868_v29  ;;  %v711_v15 = vrot.slane %v709_v26, 7  ;;  %5738 = vmatpush3.bf16.msra.mxu1 %v6254_v6  ;;  %v412_v40 = vmul.f32 %v6858_v30, %v5457_v19  ;;  %v6264_v29 = vld [vmem:[%s8081_s1 + $0x118] sm:$0xff]   ;;  %v413_v18 = vmul.f32 %v6858_v30, %v5458_v37  ;;  %v5576_v26 = vld [vmem:[%s6531_s24 + $0x50] sm:$0xff]  }
  0x79   : > { %v1221_v14 = vld [vmem:[#allocation2 + $0x48] sm:$0xe]  ;;  %v1447_v13 = vsel %vm1375_vm1, %v1442_v57, %v1446_v20  ;;  %v1180_v43 = vld [vmem:[#allocation2 + $0x4c] sm:$0xf]  ;;  %5739 = vmatprep.subr.bf16.mxu1 %v6257_v17  ;;  %v5370_v22 = vpack.c.bf16 %v482_v38, %v482_v38  ;;  %v718_v49 = vshrl.u32 %v5369_v41, 16  ;;  %v721_v19 = vshll.u32 %v5369_v41, 16 }
  0x7a   : > { %v706_v44 = vor.u32 %v704_v23, %v703_v33  ;;  %v707_v32 = vrot.slane %v703_v33, 4  ;;  %1961 = vmatprep.mubr.bf16.mxu0 %v1447_v13  ;;  %v6928_v8 = vcombine.low %v1179_v7, %v1180_v43  ;;  %v6246_v39 = vld [vmem:[#allocation2 + $0x50] ss:$0 sps:$4 sm:$0x11]   ;;  %v714_v45 = vor.u32 %v712_v27, %v711_v15  ;;  %v977_v17 = vld [vmem:[#allocation2 + $0x68] sm:$0x1] }
  0x7b   : > { %v716_v47 = vrot.slane %v711_v15, 4  ;;  %v5045_v46 = vcombine.low %v1221_v14, %v1180_v43  ;;  %1962 = vmatmul.mubr.bf16.gmra.mxu0 %v6891_v50  ;;  %v726_v53 = vshrl.u32 %v5370_v22, 16  ;;  %v1456_v31 = vshll.u32 %v6246_v39, 16  ;;  %v6268_v50 = vld [vmem:[%s8081_s1 + $0xd8] sm:$0xff]   ;;  %v6276_v27 = vld [vmem:[%s8081_s1 + $0xd0] sm:$0xff]   ;;  %v6279_v7 = vld [vmem:[%s8081_s1 + $0x108] sm:$0xff]  }
  0x7c   : > { %v967_v48 = vsel %vm6609_vm8, %v706_v44, %v966_v12  ;;  %v1449_v9 = vshrl.u32 %v6928_v8, 16  ;;  %v1451_v54 = vshll.u32 %v6928_v8, 16  ;;  %v715_v35 = vsel %vm6602_vm7, %v707_v32, %v714_v45  ;;  %5740 = vmatpush3.bf16.msra.mxu1 %v6261_v34  ;;  %v6281_v44 = vld [vmem:[%s8081_s1 + $0xc8] sm:$0xff]  }
  0x7d   : > { %968 = vst [vmem:[#allocation2 + $0x54] sm:$0xf] %v967_v48  ;;  %969 = vst [vmem:[#allocation2 + $0x58] sm:$0xf] %v715_v35  ;;  %v971_v56 = vsel %vm6595_vm6, %v716_v47, %v970_v16  ;;  %v1651_v58 = vrot.slane %v5045_v46, 1  ;;  %v1652_v55 = vrot.slane %v6246_v39, 1  ;;  %5741 = vmatprep.subr.bf16.mxu1 %v6264_v29  ;;  %v451_v23 = vadd.f32 %v6874_v36, %v412_v40 }
  0x7e   : > { %v720_v24 = vrot.slane %v718_v49, 7  ;;  %v1453_v62 = vrot.slane %v1451_v54, 1  ;;  %v1458_v0 = vrot.slane %v1456_v31, 1  ;;  %972 = vst [vmem:[#allocation2 + $0x5c] sm:$0x1] %v971_v56  ;;  %v728_v1 = vrot.slane %v726_v53, 7 }
  0x7f   : > { %v729_v2 = vshll.u32 %v5370_v22, 16  ;;  %6030 = vmatmul.mubr.bf16.gmra.mxu1 %v1650_v28  ;;  %v1653_v11 = vsel %vm1632_vm9, %v1651_v58, %v1652_v55  ;;  %v452_v28 = vadd.f32 %v6874_v36, %v413_v18  ;;  %v5462_v25 = vunpack.c.h.bf16 %v6913_v21  ;;  %v6284_v47 = vld [vmem:[%s8081_s1 + $0x100] sm:$0xff]   ;;  %v980_v31 = vld [vmem:[#allocation2 + $0x6c] sm:$0xf] }
  0x80   : > { %v723_v51 = vor.u32 %v721_v19, %v720_v24  ;;  %v724_v6 = vrot.slane %v720_v24, 4  ;;  %v1454_v3 = vor.u32 %v1453_v62, %v1449_v9  ;;  %6033 = vmatprep.mubr.bf16.mxu1 %v1653_v11  ;;  %v733_v10 = vrot.slane %v728_v1, 4  ;;  %5742 = vmatpush3.bf16.msra.mxu1 %v6268_v50  ;;  %v6286_v55 = vld [vmem:[%s8081_s1 + $0xc0] sm:$0xff]   ;;  %v6982_v24 = vld [vmem:[%s8081_s1 + $0x238] sm:$0xff]  }
  0x81   : > { %v731_v20 = vor.u32 %v729_v2, %v728_v1  ;;  %v414_v57 = vmul.f32 %v6858_v30, %v5461_v42  ;;  %5743 = vmatprep.subr.bf16.mxu1 %v6272_v61  ;;  %v483_v37 = vmax.f32 %v451_v23, 0.0  ;;  %v484_v16 = vmax.f32 %v452_v28, 0.0 }
  0x82   : > { %v974_v12 = vsel %vm6609_vm8, %v723_v51, %v973_v52  ;;  %v1459_v33 = vsel %vm1375_vm1, %v1454_v3, %v1458_v0  ;;  %v978_v38 = vsel %vm6595_vm6, %v733_v10, %v977_v17  ;;  %v415_v41 = vmul.f32 %v6858_v30, %v5462_v25 }
  0x83   : > { %v732_v14 = vsel %vm6602_vm7, %v724_v6, %v731_v20  ;;  %975 = vst [vmem:[#allocation2 + $0x60] sm:$0xf] %v974_v12  ;;  %1969 = vmatprep.mubr.bf16.mxu0 %v1459_v33  ;;  %979 = vst [vmem:[#allocation2 + $0x68] sm:$0x1] %v978_v38  ;;  %v453_v34 = vadd.f32 %v6874_v36, %v414_v57  ;;  %v5465_v40 = vunpack.c.l.bf16 %v5576_v26  ;;  %v5466_v43 = vunpack.c.h.bf16 %v5576_v26  ;;  %v984_v26 = vld [vmem:[#allocation2 + $0x74] sm:$0x1] }
  0x84   : > { %v1181_v15 = vld [vmem:[#allocation2 + $0x54] sm:$0xf]  ;;  %976 = vst [vmem:[#allocation2 + $0x64] sm:$0xf] %v732_v14  ;;  %1970 = vmatmul.mubr.bf16.gmra.mxu0 %v6928_v8  ;;  %v1182_v42 = vld [vmem:[#allocation2 + $0x58] sm:$0xf]  ;;  %v5371_v13 = vpack.c.bf16 %v483_v37, %v483_v37  ;;  %5744 = vmatpush3.bf16.msra.mxu1 %v6276_v27  ;;  %v5372_v39 = vpack.c.bf16 %v484_v16, %v484_v16 }
  0x85   : > { %v1222_v21 = vld [vmem:[#allocation2 + $0x54] sm:$0xe]  ;;  %v5014_v32 = vcombine.low %v1181_v15, %v1182_v42  ;;  %v6252_v22 = vld [vmem:[#allocation2 + $0x5c] ss:$0 sps:$4 sm:$0x11]   ;;  %v454_v45 = vadd.f32 %v6874_v36, %v415_v41  ;;  %5745 = vmatprep.subr.bf16.mxu1 %v6279_v7  ;;  %v485_v48 = vmax.f32 %v453_v34, 0.0  ;;  %v416_v49 = vmul.f32 %v6858_v30, %v5465_v40 }
  0x86   : > { %v5046_v29 = vcombine.low %v1222_v21, %v1182_v42  ;;  %v735_v8 = vshrl.u32 %v5371_v13, 16  ;;  %v738_v46 = vshll.u32 %v5371_v13, 16  ;;  %v1468_v9 = vshll.u32 %v6252_v22, 16 }
  0x87   : > { %v1461_v19 = vshrl.u32 %v5014_v32, 16  ;;  %v1463_v53 = vshll.u32 %v5014_v32, 16  ;;  %v1655_v35 = vrot.slane %v6252_v22, 1  ;;  %v743_v56 = vshrl.u32 %v5372_v39, 16 }
  0x88   : > { %v1654_v54 = vrot.slane %v5046_v29, 1  ;;  %v737_v50 = vrot.slane %v735_v8, 7  ;;  %v746_v58 = vshll.u32 %v5372_v39, 16  ;;  %5746 = vmatpush3.bf16.msra.mxu1 %v6281_v44  ;;  %v1470_v61 = vrot.slane %v1468_v9, 1 }
  0x89   : > { %v1465_v52 = vrot.slane %v1463_v53, 1  ;;  %v5373_v1 = vpack.c.bf16 %v485_v48, %v485_v48  ;;  %v417_v2 = vmul.f32 %v6858_v30, %v5466_v43  ;;  %5747 = vmatprep.subr.bf16.mxu1 %v6284_v47  ;;  %v745_v18 = vrot.slane %v743_v56, 7  ;;  %v987_v47 = vld [vmem:[#allocation2 + $0x78] sm:$0xf] }
  0x8a   : > { %v1183_v62 = vld [vmem:[#allocation2 + $0x60] sm:$0xf]  ;;  %v1656_v51 = vsel %vm1632_vm9, %v1654_v54, %v1655_v35  ;;  %v740_v6 = vor.u32 %v738_v46, %v737_v50  ;;  %v741_v17 = vrot.slane %v737_v50, 4  ;;  %v6259_v10 = vld [vmem:[#allocation2 + $0x68] ss:$0 sps:$4 sm:$0x11]   ;;  %v455_v44 = vadd.f32 %v6874_v36, %v416_v49 }
  0x8b   : > { %v1223_v0 = vld [vmem:[#allocation2 + $0x60] sm:$0xe]  ;;  %v1184_v11 = vld [vmem:[#allocation2 + $0x64] sm:$0xf]  ;;  %v1466_v3 = vor.u32 %v1465_v52, %v1461_v19  ;;  %6034 = vmatmul.mubr.bf16.gmra.mxu1 %v1656_v51  ;;  %v486_v27 = vmax.f32 %v454_v45, 0.0  ;;  %v748_v12 = vor.u32 %v746_v58, %v745_v18  ;;  %v750_v28 = vrot.slane %v745_v18, 4 }
  0x8c   : > { %v5015_v20 = vcombine.low %v1183_v62, %v1184_v11  ;;  %v5047_v23 = vcombine.low %v1223_v0, %v1184_v11  ;;  %v981_v25 = vsel %vm6609_vm8, %v740_v6, %v980_v31  ;;  %v752_v57 = vshrl.u32 %v5373_v1, 16  ;;  %5748 = vmatpush3.bf16.msra.mxu1 %v6286_v55  ;;  %v1230_v55 = vld [vmem:[#allocation2 + $0xb4] sm:$0xe] }
  0x8d   : > { %v1471_v7 = vsel %vm1375_vm1, %v1466_v3, %v1470_v61  ;;  %v1480_v38 = vshll.u32 %v6259_v10, 16  ;;  %982 = vst [vmem:[#allocation2 + $0x6c] sm:$0xf] %v981_v25  ;;  %6101 = vmatprep.subr.bf16.mxu1 %v6982_v24  ;;  %v1658_v15 = vrot.slane %v6259_v10, 1  ;;  %v749_v21 = vsel %vm6602_vm7, %v741_v17, %v748_v12 }
  0x8e   : > { %v1473_v33 = vshrl.u32 %v5015_v20, 16  ;;  %v1475_v14 = vshll.u32 %v5015_v20, 16  ;;  %1977 = vmatprep.mubr.bf16.mxu0 %v1471_v7  ;;  %v1657_v37 = vrot.slane %v5047_v23, 1  ;;  %v985_v16 = vsel %vm6595_vm6, %v750_v28, %v984_v26  ;;  %983 = vst [vmem:[#allocation2 + $0x70] sm:$0xf] %v749_v21 }
  0x8f   : > { %1978 = vmatmul.mubr.bf16.gmra.mxu0 %v5014_v32  ;;  %v1482_v34 = vrot.slane %v1480_v38, 1  ;;  %986 = vst [vmem:[#allocation2 + $0x74] sm:$0x1] %v985_v16  ;;  %v5374_v40 = vpack.c.bf16 %v486_v27, %v486_v27  ;;  %v754_v42 = vrot.slane %v752_v57, 7  ;;  %v755_v43 = vshll.u32 %v5373_v1, 16 }
  0x90   : > { %v1477_v41 = vrot.slane %v1475_v14, 1  ;;  %v1659_v13 = vsel %vm1632_vm9, %v1657_v37, %v1658_v15  ;;  %v456_v22 = vadd.f32 %v6874_v36, %v417_v2  ;;  %v991_v32 = vld [vmem:[#allocation2 + $0x80] sm:$0x1]  ;;  %v487_v46 = vmax.f32 %v455_v44, 0.0  ;;  %v994_v27 = vld [vmem:[#allocation2 + $0x84] sm:$0xf] }
  0x91   : > { %6037 = vmatprep.mubr.bf16.mxu1 %v1659_v13  ;;  %v760_v39 = vshrl.u32 %v5374_v40, 16  ;;  %v763_v45 = vshll.u32 %v5374_v40, 16  ;;  %v757_v8 = vor.u32 %v755_v43, %v754_v42  ;;  %v758_v53 = vrot.slane %v754_v42, 4  ;;  %v998_v14 = vld [vmem:[#allocation2 + $0x8c] sm:$0x1] }
  0x92   : > { %v1478_v29 = vor.u32 %v1477_v41, %v1473_v33  ;;  %v488_v48 = vmax.f32 %v456_v22, 0.0  ;;  %v5375_v35 = vpack.c.bf16 %v487_v46, %v487_v46  ;;  %v5054_v3 = vcombine.low %v1230_v55, %v6798_v60  ;;  %v1227_v43 = vld [vmem:[#allocation2 + $0x90] sm:$0xe] }
  0x93   : > { %v762_v9 = vrot.slane %v760_v39, 7  ;;  %v988_v49 = vsel %vm6609_vm8, %v757_v8, %v987_v47  ;;  %v1679_v40 = vrot.slane %v6805_v4, 1  ;;  %v6409_v4 = vld [vmem:[#allocation2 + $0x94] sm:$0xf]  ;;  %v2244_v55 = vld [vmem:[#allocation2 + $0x10] sm:$0xf] }
  0x94   : > { %v1483_v19 = vsel %vm1375_vm1, %v1478_v29, %v1482_v34  ;;  %v1185_v54 = vld [vmem:[#allocation2 + $0x6c] sm:$0xf]  ;;  %v5376_v50 = vpack.c.bf16 %v488_v48, %v488_v48  ;;  %989 = vst [vmem:[#allocation2 + $0x78] sm:$0xf] %v988_v49  ;;  %v769_v61 = vshrl.u32 %v5375_v35, 16  ;;  %v772_v62 = vshll.u32 %v5375_v35, 16 }
  0x95   : > { %1985 = vmatprep.mubr.bf16.mxu0 %v1483_v19  ;;  %v1224_v31 = vld [vmem:[#allocation2 + $0x6c] sm:$0xe]  ;;  %v765_v56 = vor.u32 %v763_v45, %v762_v9  ;;  %v767_v58 = vrot.slane %v762_v9, 4  ;;  %v1186_v52 = vld [vmem:[#allocation2 + $0x70] sm:$0xf]  ;;  %v1678_v34 = vrot.slane %v5054_v3, 1  ;;  %v5051_v8 = vcombine.low %v1227_v43, %v6409_v4 }
  0x96   : > { %v5016_v0 = vcombine.low %v1185_v54, %v1186_v52  ;;  %v6266_v1 = vld [vmem:[#allocation2 + $0x74] ss:$0 sps:$4 sm:$0x11]   ;;  %v5048_v2 = vcombine.low %v1224_v31, %v1186_v52  ;;  %v771_v6 = vrot.slane %v769_v61, 7  ;;  %v777_v17 = vshrl.u32 %v5376_v50, 16 }
  0x97   : > { %1986 = vmatmul.mubr.bf16.gmra.mxu0 %v5015_v20  ;;  %v766_v11 = vsel %vm6602_vm7, %v758_v53, %v765_v56  ;;  %v992_v51 = vsel %vm6595_vm6, %v767_v58, %v991_v32  ;;  %v780_v18 = vshll.u32 %v5376_v50, 16  ;;  %v1492_v26 = vshll.u32 %v6266_v1, 16  ;;  %v1228_v9 = vld [vmem:[#allocation2 + $0x9c] sm:$0xe]  ;;  %v1229_v54 = vld [vmem:[#allocation2 + $0xa8] sm:$0xe] }
  0x98   : > { %990 = vst [vmem:[#allocation2 + $0x7c] sm:$0xf] %v766_v11  ;;  %993 = vst [vmem:[#allocation2 + $0x80] sm:$0x1] %v992_v51  ;;  %v1485_v10 = vshrl.u32 %v5016_v0, 16  ;;  %v1487_v23 = vshll.u32 %v5016_v0, 16  ;;  %v774_v28 = vor.u32 %v772_v62, %v771_v6  ;;  %v7015_v29 = vsel %vm1632_vm9, %v1678_v34, %v1679_v40 }
  0x99   : > { %v1660_v20 = vrot.slane %v5048_v2, 1  ;;  %v1661_v12 = vrot.slane %v6266_v1, 1  ;;  %v775_v25 = vrot.slane %v771_v6, 4  ;;  %v779_v57 = vrot.slane %v777_v17, 7  ;;  %v2243_v58 = vld [vmem:[#allocation2 + $0xc] sm:$0xf] }
  0x9a   : > { %v1489_v7 = vrot.slane %v1487_v23, 1  ;;  %v1494_v33 = vrot.slane %v1492_v26, 1  ;;  %v995_v60 = vsel %vm6609_vm8, %v774_v28, %v994_v27  ;;  %v2291_v52 = vld [vmem:[#allocation2 + $0xc] sm:$0xe] }
  0x9b   : > { %v1662_v38 = vsel %vm1632_vm9, %v1660_v20, %v1661_v12  ;;  %v1187_v37 = vld [vmem:[#allocation2 + $0x78] sm:$0xf]  ;;  %v782_v15 = vor.u32 %v780_v18, %v779_v57  ;;  %v784_v21 = vrot.slane %v779_v57, 4  ;;  %996 = vst [vmem:[#allocation2 + $0x84] sm:$0xf] %v995_v60  ;;  %v5111_v20 = vcombine.low %v2291_v52, %v2244_v55 }
  0x9c   : > { %v1490_v16 = vor.u32 %v1489_v7, %v1485_v10  ;;  %6038 = vmatmul.mubr.bf16.gmra.mxu1 %v1662_v38  ;;  %v1225_v41 = vld [vmem:[#allocation2 + $0x78] sm:$0xe]  ;;  %v6410_v1 = vld [vmem:[#allocation2 + $0x98] ss:$0 sps:$4 sm:$0x11]  }
  0x9d   : > { %v783_v42 = vsel %vm6602_vm7, %v775_v25, %v782_v15  ;;  %v999_v13 = vsel %vm6595_vm6, %v784_v21, %v998_v14  ;;  %v1670_v2 = vrot.slane %v6410_v1, 1  ;;  %v6411_v18 = vld [vmem:[#allocation2 + $0xa0] sm:$0xf]  ;;  %v6412_v10 = vld [vmem:[#allocation2 + $0xac] sm:$0xf]  ;;  %v2707_v40 = vrot.slane %v5111_v20, 1 }
  0x9e   : > { %v1495_v44 = vsel %vm1375_vm1, %v1490_v16, %v1494_v33  ;;  %997 = vst [vmem:[#allocation2 + $0x88] sm:$0xf] %v783_v42  ;;  %1000 = vst [vmem:[#allocation2 + $0x8c] sm:$0x1] %v999_v13  ;;  %v5052_v3 = vcombine.low %v1228_v9, %v6411_v18  ;;  %v5053_v23 = vcombine.low %v1229_v54, %v6412_v10  ;;  %v2246_v14 = vld [vmem:[#allocation2 + $0x1c] sm:$0xf] }
  0x9f   : > { %v1188_v22 = vld [vmem:[#allocation2 + $0x7c] sm:$0xf]  ;;  %1993 = vmatprep.mubr.bf16.mxu0 %v1495_v44  ;;  %v6270_v45 = vld [vmem:[#allocation2 + $0x80] ss:$0 sps:$4 sm:$0x11]   ;;  %v7020_v33 = vcombine.low %v2243_v58, %v2244_v55 }
  0xa0   : > { %v5017_v39 = vcombine.low %v1187_v37, %v1188_v22  ;;  %v5049_v47 = vcombine.low %v1225_v41, %v1188_v22  ;;  %1994 = vmatmul.mubr.bf16.gmra.mxu0 %v5016_v0  ;;  %v1664_v46 = vrot.slane %v6270_v45, 1  ;;  %v1504_v53 = vshll.u32 %v6270_v45, 16  ;;  %v6288_v26 = vld [vmem:[#allocation2 + $0x14] ss:$0 sps:$4 sm:$0x11]   ;;  %v6294_v18 = vld [vmem:[%s8081_s1 + $0x1b8] sm:$0xff]  }
  0xa1   : > { %v1669_v0 = vrot.slane %v5051_v8, 1  ;;  %v2292_v38 = vld [vmem:[#allocation2 + $0x18] sm:$0xe]  ;;  %v6413_v21 = vld [vmem:[#allocation2 + $0xa4] ss:$0 sps:$4 sm:$0x11]  }
  0xa2   : > { %v1663_v32 = vrot.slane %v5049_v47, 1  ;;  %v1497_v48 = vshrl.u32 %v5017_v39, 16  ;;  %v1499_v19 = vshll.u32 %v5017_v39, 16  ;;  %v1189_v35 = vld [vmem:[#allocation2 + $0x84] sm:$0xf]  ;;  %v1506_v56 = vrot.slane %v1504_v53, 1 }
  0xa3   : > { %v1226_v50 = vld [vmem:[#allocation2 + $0x84] sm:$0xe]  ;;  %v1671_v57 = vsel %vm1632_vm9, %v1669_v0, %v1670_v2  ;;  %v1673_v60 = vrot.slane %v6413_v21, 1  ;;  %v2248_v16 = vld [vmem:[#allocation2 + $0x28] sm:$0xf]  ;;  %v1672_v34 = vrot.slane %v5052_v3, 1  ;;  %v5112_v8 = vcombine.low %v2292_v38, %v2246_v14 }
  0xa4   : > { %v1665_v31 = vsel %vm1632_vm9, %v1663_v32, %v1664_v46  ;;  %v1501_v49 = vrot.slane %v1499_v19, 1  ;;  %v2708_v42 = vrot.slane %v6288_v26, 1  ;;  %v2293_v13 = vld [vmem:[#allocation2 + $0x24] sm:$0xe]  ;;  %v1675_v44 = vrot.slane %v5053_v23, 1  ;;  %v6311_v38 = vld [vmem:[%s8081_s1 + $0x1e8] sm:$0xff]  }
  0xa5   : > { %6041 = vmatprep.mubr.bf16.mxu1 %v1665_v31  ;;  %v1190_v62 = vld [vmem:[#allocation2 + $0x88] sm:$0xf]  ;;  %v6274_v51 = vld [vmem:[#allocation2 + $0x8c] ss:$0 sps:$4 sm:$0x11]   ;;  %v2454_v47 = vshll.u32 %v7020_v33, 16  ;;  %v5113_v19 = vcombine.low %v2293_v13, %v2248_v16  ;;  %v1674_v53 = vsel %vm1632_vm9, %v1672_v34, %v1673_v60 }
  0xa6   : > { %v1502_v61 = vor.u32 %v1501_v49, %v1497_v48  ;;  %v5018_v11 = vcombine.low %v1189_v35, %v1190_v62  ;;  %v5050_v6 = vcombine.low %v1226_v50, %v1190_v62  ;;  %v1667_v12 = vrot.slane %v6274_v51, 1  ;;  %v6414_v22 = vld [vmem:[#allocation2 + $0xb0] ss:$0 sps:$4 sm:$0x11]   ;;  %v2245_v32 = vld [vmem:[#allocation2 + $0x18] sm:$0xf] }
  0xa7   : > { %v1516_v7 = vshll.u32 %v6274_v51, 16  ;;  %v7023_v45 = vld [vmem:[#allocation2 + $0x20] ss:$0 sps:$4 sm:$0x11]   ;;  %v2709_v46 = vsel %vm1632_vm9, %v2707_v40, %v2708_v42  ;;  %v2452_v54 = vshrl.u32 %v7020_v33, 16  ;;  %v2456_v31 = vrot.slane %v2454_v47, 1 }
  0xa8   : > { %v1507_v17 = vsel %vm1375_vm1, %v1502_v61, %v1506_v56  ;;  %v1666_v27 = vrot.slane %v5050_v6, 1  ;;  %v1509_v28 = vshrl.u32 %v5018_v11, 16  ;;  %v1511_v25 = vshll.u32 %v5018_v11, 16  ;;  %v7028_v48 = vld [vmem:[#allocation2 + $0x2c] ss:$0 sps:$4 sm:$0x11]  }
  0xa9   : > { %2001 = vmatprep.mubr.bf16.mxu0 %v1507_v17  ;;  %v1518_v41 = vrot.slane %v1516_v7, 1  ;;  %v2459_v49 = vshll.u32 %v6288_v26, 16  ;;  %v7033_v35 = vcombine.low %v2245_v32, %v2246_v14  ;;  %v2710_v50 = vrot.slane %v5112_v8, 1  ;;  %v2250_v58 = vld [vmem:[#allocation2 + $0x34] sm:$0xf] }
  0xaa   : > { %2002 = vmatmul.mubr.bf16.gmra.mxu0 %v5017_v39  ;;  %v1668_v37 = vsel %vm1632_vm9, %v1666_v27, %v1667_v12  ;;  %v1513_v15 = vrot.slane %v1511_v25, 1  ;;  %v1676_v39 = vrot.slane %v6414_v22, 1  ;;  %v2711_v56 = vrot.slane %v7023_v45, 1  ;;  %v2294_v61 = vld [vmem:[#allocation2 + $0x30] sm:$0xe] }
  0xab   : > { %6042 = vmatmul.mubr.bf16.gmra.mxu1 %v1668_v37  ;;  %v2713_v55 = vrot.slane %v5113_v19, 1  ;;  %v2714_v52 = vrot.slane %v7028_v48, 1  ;;  %v2247_v62 = vld [vmem:[#allocation2 + $0x24] sm:$0xf]  ;;  %v7037_v0 = vld [vmem:[#allocation2 + $0x40] sm:$0xf]  ;;  %v2457_v2 = vor.u32 %v2456_v31, %v2452_v54  ;;  %v5114_v3 = vcombine.low %v2294_v61, %v2250_v58 }
  0xac   : > { %6045 = vmatprep.mubr.bf16.mxu1 %v1671_v57  ;;  %v1514_v43 = vor.u32 %v1513_v15, %v1509_v28  ;;  %v1677_v9 = vsel %vm1632_vm9, %v1675_v44, %v1676_v39  ;;  %v2295_v1 = vld [vmem:[#allocation2 + $0x3c] sm:$0xe]  ;;  %v7039_v51 = vld [vmem:[#allocation2 + $0x38] ss:$0 sps:$4 sm:$0x11]   ;;  %v2466_v6 = vshll.u32 %v7033_v35, 16  ;;  %v2712_v17 = vsel %vm1632_vm9, %v2710_v50, %v2711_v56 }
  0xad   : > { %v7046_v10 = vld [vmem:[#allocation2 + $0x44] ss:$0 sps:$4 sm:$0x11]   ;;  %v2715_v23 = vsel %vm1632_vm9, %v2713_v55, %v2714_v52  ;;  %v6302_v26 = vld [vmem:[%s8081_s1 + $0x1f0] sm:$0xff]   ;;  %v5115_v20 = vcombine.low %v2295_v1, %v7037_v0  ;;  %v7053_v27 = vcombine.low %v2247_v62, %v2248_v16  ;;  %v2464_v25 = vshrl.u32 %v7033_v35, 16  ;;  %v5581_v37 = vld [vmem:[%s6531_s24 + $0x78] sm:$0xff]  }
  0xae   : > { %v1519_v4 = vsel %vm1375_vm1, %v1514_v43, %v1518_v41  ;;  %v6303_v12 = vld [vmem:[%s8081_s1 + $0x1b0] sm:$0xff]   ;;  %v2468_v57 = vrot.slane %v2466_v6, 1  ;;  %v2471_v7 = vshll.u32 %v7023_v45, 16  ;;  %v7061_v14 = vld [vmem:[#allocation2 + $0x4c] sm:$0xf]  ;;  %v2716_v15 = vrot.slane %v5114_v3, 1 }
  0xaf   : > { %2009 = vmatprep.mubr.bf16.mxu0 %v1519_v4  ;;  %v2717_v21 = vrot.slane %v7039_v51, 1  ;;  %v2296_v60 = vld [vmem:[#allocation2 + $0x48] sm:$0xe]  ;;  %v2719_v16 = vrot.slane %v5115_v20, 1  ;;  %v2720_v41 = vrot.slane %v7046_v10, 1  ;;  %v2478_v42 = vshll.u32 %v7053_v27, 16 }
  0xb0   : > { %v7070_v34 = vld [vmem:[#allocation2 + $0x58] sm:$0xf]  ;;  %v2297_v40 = vld [vmem:[#allocation2 + $0x54] sm:$0xe]  ;;  %v5485_v13 = vunpack.c.l.bf16 %v5581_v37  ;;  %v2249_v43 = vld [vmem:[#allocation2 + $0x30] sm:$0xf]  ;;  %v2469_v44 = vor.u32 %v2468_v57, %v2464_v25  ;;  %v5116_v47 = vcombine.low %v2296_v60, %v7061_v14  ;;  %v5486_v54 = vunpack.c.h.bf16 %v5581_v37 }
  0xb1   : > { %v2473_v22 = vrot.slane %v2471_v7, 1  ;;  %v6312_v39 = vld [vmem:[%s8081_s1 + $0x1a8] sm:$0xff]   ;;  %v7077_v45 = vld [vmem:[#allocation2 + $0x50] ss:$0 sps:$4 sm:$0x11]   ;;  %v5117_v8 = vcombine.low %v2297_v40, %v7070_v34  ;;  %v2721_v32 = vsel %vm1632_vm9, %v2719_v16, %v2720_v41  ;;  %v2480_v56 = vrot.slane %v2478_v42, 1 }
  0xb2   : > { %2010 = vmatmul.mubr.bf16.gmra.mxu0 %v5018_v11  ;;  %v2461_v11 = vrot.slane %v2459_v49, 1  ;;  %v7080_v4 = vld [vmem:[#allocation2 + $0x5c] ss:$0 sps:$4 sm:$0x11]   ;;  %v6310_v19 = vld [vmem:[%s8081_s1 + $0x230] sm:$0xff]   ;;  %v426_v31 = vmul.f32 %v6858_v30, %v5485_v13  ;;  %v7094_v49 = vcombine.low %v2249_v43, %v2250_v58  ;;  %v2483_v55 = vshll.u32 %v7028_v48, 16 }
  0xb3   : > { %6069 = vmatprep.mubr.bf16.mxu0 %v2709_v46  ;;  %6046 = vmatmul.mubr.bf16.gmra.mxu1 %v1674_v53  ;;  %v2476_v46 = vshrl.u32 %v7053_v27, 16  ;;  %v7088_v53 = vld [vmem:[#allocation2 + $0x64] sm:$0xf]  ;;  %v2251_v50 = vld [vmem:[#allocation2 + $0x3c] sm:$0xf]  ;;  %v2474_v62 = vsel %vm1375_vm1, %v2469_v44, %v2473_v22  ;;  %v2722_v58 = vrot.slane %v5116_v47, 1 }
  0xb4   : > { %6049 = vmatprep.mubr.bf16.mxu1 %v1677_v9  ;;  %v2462_v28 = vsel %vm1375_vm1, %v2457_v2, %v2461_v11  ;;  %v6319_v9 = vld [vmem:[%s8081_s1 + $0x1e0] sm:$0xff]   ;;  %v7097_v52 = vld [vmem:[#allocation2 + $0x68] ss:$0 sps:$4 sm:$0x11]   ;;  %v427_v2 = vmul.f32 %v6858_v30, %v5486_v54  ;;  %v465_v11 = vadd.f32 %v6874_v36, %v426_v31  ;;  %v2723_v6 = vrot.slane %v7077_v45, 1  ;;  %v6328_v30 = vld [vmem:[%s8081_s1 + $0x1d8] sm:$0xff]  }
  0xb5   : > { %v6320_v61 = vld [vmem:[%s8081_s1 + $0x1a0] sm:$0xff]   ;;  %v2725_v48 = vrot.slane %v5117_v8, 1  ;;  %v2299_v3 = vld [vmem:[#allocation2 + $0x6c] sm:$0xe]  ;;  %v2481_v20 = vor.u32 %v2480_v56, %v2476_v46  ;;  %v7120_v57 = vcombine.low %v2251_v50, %v7037_v0  ;;  %v6329_v0 = vld [vmem:[%s8081_s1 + $0x198] sm:$0xff]   ;;  %v2495_v22 = vshll.u32 %v7039_v51, 16 }
  0xb6   : > { %v2298_v1 = vld [vmem:[#allocation2 + $0x60] sm:$0xe]  ;;  %v7117_v25 = vld [vmem:[#allocation2 + $0x74] ss:$0 sps:$4 sm:$0x11]   ;;  %v6345_v56 = vld [vmem:[%s8081_s1 + $0x1c8] sm:$0xff]  }
  0xb7   : > { %v6336_v16 = vld [vmem:[%s8081_s1 + $0x1d0] sm:$0xff]   ;;  %v2732_v47 = vrot.slane %v7117_v25, 1  ;;  %v7145_v8 = vld [vmem:[#allocation2 + $0x7c] sm:$0xf]  ;;  %v1029_v51 = vld [vmem:[#allocation2 + $0xc0] sm:$0xf] }
  0xb8   : > { %v2253_v54 = vld [vmem:[#allocation2 + $0x48] sm:$0xf]  ;;  %v7167_v5 = vld [vmem:[#allocation2 + $0x8c] ss:$0 sps:$4 sm:$0x11]   ;;  %v2500_v59 = vshrl.u32 %v7120_v57, 16 }
  0xb9   : > { %v7148_v50 = vld [vmem:[#allocation2 + $0x88] sm:$0xf] }
  0xba   : > { %6070 = vmatmul.mubr.bf16.vlgmr.msra.gmra.mxu0 %v2712_v17  ;;  %v2726_v17 = vrot.slane %v7080_v4, 1 }
  0xbb   : > { %5870 = vmatpush3.bf16.msra.mxu0 %v6294_v18  ;;  %6073 = vmatprep.mubr.bf16.mxu0 %v2715_v23  ;;  %v7108_v18 = vld [vmem:[#allocation2 + $0x70] sm:$0xf]  ;;  %v466_v23 = vadd.f32 %v6874_v36, %v427_v2  ;;  %v6327_v36 = vld [vmem:[%s8081_s1 + $0x228] sm:$0xff]   ;;  %v2497_v2 = vrot.slane %v2495_v22, 1 }
  0xbc   : > { %6050 = vmatmul.mubr.bf16.gmra.mxu1 %v7015_v29  ;;  %5871 = vmatprep.subr.bf16.mxu0 %v6302_v26  ;;  %v2718_v29 = vsel %vm1632_vm9, %v2716_v15, %v2717_v21  ;;  %v497_v26 = vmax.f32 %v465_v11, 0.0  ;;  %v2727_v37 = vsel %vm1632_vm9, %v2725_v48, %v2726_v17  ;;  %v2729_v15 = vrot.slane %v7097_v52, 1  ;;  %v2301_v11 = vld [vmem:[#allocation2 + $0x84] sm:$0xe] }
  0xbd   : > { %2996 = vmatprep.mubr.bf16.mxu1 %v2462_v28  ;;  %v5118_v28 = vcombine.low %v2298_v1, %v7088_v53  ;;  %v498_v7 = vmax.f32 %v466_v23, 0.0  ;;  %v2488_v21 = vshrl.u32 %v7094_v49, 16  ;;  %v5119_v60 = vcombine.low %v2299_v3, %v7108_v18  ;;  %v6357_v3 = vld [vmem:[%s8081_s1 + $0x218] sm:$0xff]   ;;  %v7160_v23 = vld [vmem:[#allocation2 + $0x80] ss:$0 sps:$4 sm:$0x11]  }
  0xbf   : > { %5872 = vmatpush3.bf16.msra.mxu0 %v6303_v12  ;;  %v2485_v12 = vrot.slane %v2483_v55, 1  ;;  %v5386_v41 = vpack.c.bf16 %v498_v7, %v498_v7  ;;  %v2728_v43 = vrot.slane %v5118_v28, 1  ;;  %v2731_v31 = vrot.slane %v5119_v60, 1  ;;  %v6353_v7 = vld [vmem:[%s8081_s1 + $0x1c0] sm:$0xff]  }
  0xc0   : > { %5873 = vmatprep.subr.bf16.mxu0 %v6311_v38  ;;  %v5385_v38 = vpack.c.bf16 %v497_v26, %v497_v26  ;;  %v5121_v28 = vcombine.low %v2301_v11, %v7148_v50  ;;  %v2735_v60 = vrot.slane %v7160_v23, 1 }
  0xc1   : > { %v2486_v13 = vsel %vm1375_vm1, %v2481_v20, %v2485_v12  ;;  %v6346_v20 = vld [vmem:[%s8081_s1 + $0x188] sm:$0xff]   ;;  %v2733_v12 = vsel %vm1632_vm9, %v2731_v31, %v2732_v47 }
  0xc2   : > { %6074 = vmatmul.mubr.bf16.gmra.mxu0 %v2718_v29  ;;  %v854_v40 = vshrl.u32 %v5385_v38, 16  ;;  %v857_v42 = vshll.u32 %v5385_v38, 16  ;;  %v6344_v29 = vld [vmem:[%s8081_s1 + $0x220] sm:$0xff]   ;;  %v7178_v38 = vcombine.low %v2253_v54, %v7061_v14  ;;  %v6362_v14 = vld [vmem:[%s8081_s1 + $0x210] sm:$0xff]  }
  0xc3   : > { %6077 = vmatprep.mubr.bf16.mxu0 %v2721_v32  ;;  %5874 = vmatpush3.bf16.msra.mxu0 %v6312_v39  ;;  %v6337_v39 = vld [vmem:[%s8081_s1 + $0x190] sm:$0xff]   ;;  %v2300_v32 = vld [vmem:[#allocation2 + $0x78] sm:$0xe] }
  0xc4   : > { %2997 = vmatmul.mubr.bf16.vlgmr.msra.gmra.mxu1 %v7020_v33  ;;  %5875 = vmatprep.subr.bf16.mxu0 %v6319_v9  ;;  %v2490_v33 = vshll.u32 %v7094_v49, 16  ;;  %v856_v46 = vrot.slane %v854_v40, 7  ;;  %v865_v9 = vshll.u32 %v5386_v41, 16  ;;  %v5120_v26 = vcombine.low %v2300_v32, %v7145_v8 }
  0xc5   : > { %6102 = vmatpush3.bf16.msra.mxu1 %v6982_v24  ;;  %3004 = vmatprep.mubr.bf16.mxu1 %v2474_v62  ;;  %v2724_v24 = vsel %vm1632_vm9, %v2722_v58, %v2723_v6  ;;  %v1033_v58 = vld [vmem:[#allocation2 + $0xc8] sm:$0x1]  ;;  %v2738_v40 = vrot.slane %v7167_v5, 1  ;;  %v2519_v32 = vshll.u32 %v7077_v45, 16  ;;  %v7215_v45 = vld [vmem:[#allocation2 + $0xac] sm:$0xf] }
  0xc6   : > { %6103 = vmatprep.subr.bf16.mxu1 %v6310_v19  ;;  %v2492_v44 = vrot.slane %v2490_v33, 1  ;;  %v859_v55 = vor.u32 %v857_v42, %v856_v46  ;;  %v7194_v42 = vld [vmem:[#allocation2 + $0xa0] sm:$0xf] }
  0xc7   : > { %5876 = vmatpush3.bf16.msra.mxu0 %v6320_v61  ;;  %v860_v61 = vrot.slane %v856_v46, 4  ;;  %v7205_v46 = vld [vmem:[#allocation2 + $0xa4] ss:$0 sps:$4 sm:$0x11]  }
  0xc8   : > { %5877 = vmatprep.subr.bf16.mxu0 %v6328_v30  ;;  %v2493_v1 = vor.u32 %v2492_v44, %v2488_v21  ;;  %v1030_v17 = vsel %vm6609_vm8, %v859_v55, %v1029_v51  ;;  %v2730_v30 = vsel %vm1632_vm9, %v2728_v43, %v2729_v15  ;;  %v2507_v15 = vshll.u32 %v7046_v10, 16  ;;  %v7186_v21 = vld [vmem:[#allocation2 + $0x94] sm:$0xf]  ;;  %v2303_v10 = vld [vmem:[#allocation2 + $0x9c] sm:$0xe] }
  0xc9   : > { %6104 = vmatpush3.bf16.msra.mxu1 %v6310_v19  ;;  %v862_v19 = vshrl.u32 %v5386_v41, 16  ;;  %1031 = vst [vmem:[#allocation2 + $0xc0] sm:$0xf] %v1030_v17  ;;  %v2737_v41 = vrot.slane %v5121_v28, 1  ;;  %v2514_v43 = vshll.u32 %v7178_v38, 16  ;;  %v2512_v51 = vshrl.u32 %v7178_v38, 16 }
  0xca   : > { %6078 = vmatmul.mubr.bf16.gmra.mxu0 %v2724_v24  ;;  %6105 = vmatprep.subr.bf16.mxu1 %v6327_v36  ;;  %v6354_v24 = vld [vmem:[%s8081_s1 + $0x180] sm:$0xff]   ;;  %v2498_v63 = vsel %vm1375_vm1, %v2493_v1, %v2497_v2  ;;  %v2509_v22 = vrot.slane %v2507_v15, 1  ;;  %v2521_v1 = vrot.slane %v2519_v32, 1  ;;  %v2744_v11 = vrot.slane %v7205_v46, 1 }
  0xcb   : > { %6081 = vmatprep.mubr.bf16.mxu0 %v2727_v37  ;;  %5878 = vmatpush3.bf16.msra.mxu0 %v6329_v0  ;;  %v864_v62 = vrot.slane %v862_v19, 7  ;;  %v2734_v0 = vrot.slane %v5120_v26, 1  ;;  %v5123_v19 = vcombine.low %v2303_v10, %v7194_v42  ;;  %v2516_v54 = vrot.slane %v2514_v43, 1  ;;  %v3386_v10 = vld [vmem:[#allocation2 + $0x28] sm:$0xf] }
  0xcc   : > { %3005 = vmatmul.mubr.bf16.gmra.mxu1 %v7033_v35  ;;  %5879 = vmatprep.subr.bf16.mxu0 %v6336_v16  ;;  %v2502_v35 = vshll.u32 %v7120_v57, 16  ;;  %v2302_v16 = vld [vmem:[#allocation2 + $0x90] sm:$0xe]  ;;  %v2543_v32 = vshll.u32 %v7097_v52, 16 }
  0xcd   : > { %3012 = vmatprep.mubr.bf16.mxu1 %v2486_v13  ;;  %6106 = vmatpush3.bf16.msra.mxu1 %v6327_v36  ;;  %v867_v6 = vor.u32 %v865_v9, %v864_v62  ;;  %v869_v48 = vrot.slane %v864_v62, 4  ;;  %v2255_v13 = vld [vmem:[#allocation2 + $0x54] sm:$0xf]  ;;  %v5122_v47 = vcombine.low %v2302_v16, %v7186_v21  ;;  %v2739_v9 = vsel %vm1632_vm9, %v2737_v41, %v2738_v40  ;;  %v7246_v16 = vld [vmem:[#allocation2 + $0x20] ss:$0 sps:$4 sm:$0x11]  }
  0xce   : > { %6107 = vmatprep.subr.bf16.mxu1 %v6344_v29  ;;  %v2504_v37 = vrot.slane %v2502_v35, 1  ;;  %v7211_v31 = vcombine.low %v2255_v13, %v7070_v34  ;;  %v2743_v2 = vrot.slane %v5123_v19, 1  ;;  %v2304_v34 = vld [vmem:[#allocation2 + $0xa8] sm:$0xe]  ;;  %v2517_v17 = vor.u32 %v2516_v54, %v2512_v51  ;;  %v2259_v13 = vld [vmem:[#allocation2 + $0x6c] sm:$0xf] }
  0xcf   : > { %5880 = vmatpush3.bf16.msra.mxu0 %v6337_v39  ;;  %v868_v33 = vsel %vm6602_vm7, %v860_v61, %v867_v6  ;;  %v1034_v36 = vsel %vm6595_vm6, %v869_v48, %v1033_v58  ;;  %v7197_v39 = vld [vmem:[#allocation2 + $0x98] ss:$0 sps:$4 sm:$0x11]   ;;  %v6372_v61 = vld [vmem:[%s8081_s1 + $0x200] sm:$0xff]   ;;  %v2740_v62 = vrot.slane %v5122_v47, 1  ;;  %v5124_v26 = vcombine.low %v2304_v34, %v7215_v45 }
  0xd0   : > { %5881 = vmatprep.subr.bf16.mxu0 %v6345_v56  ;;  %1032 = vst [vmem:[#allocation2 + $0xc4] sm:$0xf] %v868_v33  ;;  %1035 = vst [vmem:[#allocation2 + $0xc8] sm:$0x1] %v1034_v36  ;;  %v2505_v44 = vor.u32 %v2504_v37, %v2500_v59  ;;  %v2741_v55 = vrot.slane %v7197_v39, 1  ;;  %v2745_v33 = vsel %vm1632_vm9, %v2743_v2, %v2744_v11  ;;  %v2531_v59 = vshll.u32 %v7080_v4, 16 }
  0xd1   : > { %6108 = vmatpush3.bf16.msra.mxu1 %v6344_v29  ;;  %v2736_v29 = vsel %vm1632_vm9, %v2734_v0, %v2735_v60  ;;  %v2257_v58 = vld [vmem:[#allocation2 + $0x60] sm:$0xf]  ;;  %v7222_v35 = vld [vmem:[#allocation2 + $0xb0] ss:$0 sps:$4 sm:$0x11]   ;;  %v2746_v37 = vrot.slane %v5124_v26, 1 }
  0xd2   : > { %6082 = vmatmul.mubr.bf16.gmra.mxu0 %v2730_v30  ;;  %6109 = vmatprep.subr.bf16.mxu1 %v6357_v3  ;;  %v2510_v56 = vsel %vm1375_vm1, %v2505_v44, %v2509_v22  ;;  %v7224_v6 = vld [vmem:[#allocation2 + $0xb8] sm:$0xf]  ;;  %v2305_v48 = vld [vmem:[#allocation2 + $0xb4] sm:$0xe]  ;;  %v7226_v30 = vld [vmem:[#allocation2 + $0x1c] sm:$0xf] }
  0xd3   : > { %6085 = vmatprep.mubr.bf16.mxu0 %v2733_v12  ;;  %5882 = vmatpush3.bf16.msra.mxu0 %v6346_v20  ;;  %v2526_v20 = vshll.u32 %v7211_v31, 16  ;;  %v7230_v12 = vld [vmem:[#allocation2 + $0xbc] ss:$0 sps:$4 sm:$0x11]   ;;  %v5125_v28 = vcombine.low %v2305_v48, %v7224_v6  ;;  %v2747_v15 = vrot.slane %v7222_v35, 1  ;;  %v2533_v44 = vrot.slane %v2531_v59, 1 }
  0xd4   : > { %3013 = vmatmul.mubr.bf16.gmra.mxu1 %v7053_v27  ;;  %5883 = vmatprep.subr.bf16.mxu0 %v6353_v7  ;;  %v6367_v27 = vld [vmem:[%s8081_s1 + $0x208] sm:$0xff]   ;;  %v7239_v7 = vcombine.low %v2257_v58, %v7088_v53  ;;  %v2750_v0 = vrot.slane %v7230_v12, 1  ;;  %v2306_v41 = vld [vmem:[#allocation2 + $0xc0] sm:$0xe]  ;;  %v3385_v4 = vld [vmem:[#allocation2 + $0x24] sm:$0xf] }
  0xd5   : > { %3020 = vmatprep.mubr.bf16.mxu1 %v2498_v63  ;;  %6110 = vmatpush3.bf16.msra.mxu1 %v6357_v3  ;;  %v3383_v3 = vld [vmem:[#allocation2 + $0x18] sm:$0xf]  ;;  %v2524_v63 = vshrl.u32 %v7211_v31, 16  ;;  %v2749_v60 = vrot.slane %v5125_v28, 1  ;;  %v3599_v51 = vshll.u32 %v7246_v16, 16  ;;  %v7261_v54 = vcombine.low %v3385_v4, %v3386_v10 }
  0xd6   : > { %6111 = vmatprep.subr.bf16.mxu1 %v6362_v14  ;;  %v7236_v36 = vcombine.low %v3383_v3, %v7226_v30  ;;  %v2538_v22 = vshll.u32 %v7239_v7, 16  ;;  %v2545_v11 = vrot.slane %v2543_v32, 1  ;;  %v3431_v3 = vld [vmem:[#allocation2 + $0x18] sm:$0xe]  ;;  %v3432_v26 = vld [vmem:[#allocation2 + $0x24] sm:$0xe] }
  0xd7   : > { %5884 = vmatpush3.bf16.msra.mxu0 %v6354_v24  ;;  %v2522_v24 = vsel %vm1375_vm1, %v2517_v17, %v2521_v1  ;;  %v7249_v53 = vld [vmem:[#allocation2 + $0xc4] sm:$0xf]  ;;  %v7255_v47 = vld [vmem:[#allocation2 + $0xc8] ss:$0 sps:$4 sm:$0x11]   ;;  %v3606_v17 = vshll.u32 %v7261_v54, 16 }
  0xd8   : > { %v3594_v40 = vshll.u32 %v7236_v36, 16  ;;  %v3592_v19 = vshrl.u32 %v7236_v36, 16  ;;  %v6359_v1 = vld [vmem:[#allocation2 + $0x2c] ss:$0 sps:$4 sm:$0x11]   ;;  %v2753_v52 = vrot.slane %v7255_v47, 1 }
  0xd9   : > { %6112 = vmatpush3.bf16.msra.mxu1 %v6362_v14  ;;  %v2528_v14 = vrot.slane %v2526_v20, 1  ;;  %v2261_v20 = vld [vmem:[#allocation2 + $0x78] sm:$0xf]  ;;  %v3387_v28 = vld [vmem:[#allocation2 + $0x30] sm:$0xf]  ;;  %v3848_v59 = vrot.slane %v7246_v16, 1 }
  0xda   : > { %6086 = vmatmul.mubr.bf16.gmra.mxu0 %v2736_v29  ;;  %6113 = vmatprep.subr.bf16.mxu1 %v6367_v27  ;;  %v2751_v29 = vsel %vm1632_vm9, %v2749_v60, %v2750_v0  ;;  %v3433_v0 = vld [vmem:[#allocation2 + $0x30] sm:$0xe]  ;;  %v3434_v16 = vld [vmem:[#allocation2 + $0x3c] sm:$0xe] }
  0xdb   : > { %6089 = vmatprep.mubr.bf16.mxu0 %v2739_v9  ;;  %v2529_v43 = vor.u32 %v2528_v14, %v2524_v63  ;;  %v3596_v9 = vrot.slane %v3594_v40, 1  ;;  %v5231_v63 = vcombine.low %v3431_v3, %v7226_v30  ;;  %v6361_v40 = vld [vmem:[#allocation2 + $0x38] ss:$0 sps:$4 sm:$0x11]  }
  0xdc   : > { %3021 = vmatmul.mubr.bf16.gmra.mxu1 %v7094_v49  ;;  %v2742_v49 = vsel %vm1632_vm9, %v2740_v62, %v2741_v55  ;;  %v2536_v55 = vshrl.u32 %v7239_v7, 16  ;;  %v2540_v62 = vrot.slane %v2538_v22, 1 }
  0xdd   : > { %3028 = vmatprep.mubr.bf16.mxu1 %v2510_v56  ;;  %6114 = vmatpush3.bf16.msra.mxu1 %v6367_v27  ;;  %v2748_v27 = vsel %vm1632_vm9, %v2746_v37, %v2747_v15  ;;  %v7264_v56 = vcombine.low %v2259_v13, %v7108_v18  ;;  %v3597_v48 = vor.u32 %v3596_v9, %v3592_v19  ;;  %v3601_v18 = vrot.slane %v3599_v51, 1 }
  0xde   : > { %6115 = vmatprep.subr.bf16.mxu1 %v6372_v61  ;;  %v2541_v37 = vor.u32 %v2540_v62, %v2536_v55  ;;  %v3611_v15 = vshll.u32 %v6359_v1, 16  ;;  %v3847_v4 = vrot.slane %v5231_v63, 1  ;;  %v5232_v13 = vcombine.low %v3432_v26, %v3386_v10  ;;  %v7290_v55 = vld [vmem:[#allocation2 + $0x44] ss:$0 sps:$4 sm:$0x11]  }
  0xdf   : > { %v2548_v34 = vshrl.u32 %v7264_v56, 16  ;;  %v3854_v19 = vrot.slane %v6361_v40, 1  ;;  %v7286_v9 = vcombine.low %v2261_v20, %v7145_v8  ;;  %v2555_v51 = vshll.u32 %v7117_v25, 16 }
  0xe0   : > { %v3850_v32 = vrot.slane %v5232_v13, 1  ;;  %v2546_v10 = vsel %vm1375_vm1, %v2541_v37, %v2545_v11  ;;  %v3389_v11 = vld [vmem:[#allocation2 + $0x3c] sm:$0xf]  ;;  %v3623_v20 = vshll.u32 %v6361_v40, 16  ;;  %v7320_v40 = vld [vmem:[#allocation2 + $0x4c] sm:$0xf] }
  0xe1   : > { %6116 = vmatpush3.bf16.msra.mxu1 %v6372_v61  ;;  %v2534_v61 = vsel %vm1375_vm1, %v2529_v43, %v2533_v44  ;;  %v3602_v43 = vsel %vm1375_vm1, %v3597_v48, %v3601_v18  ;;  %v3608_v44 = vrot.slane %v3606_v17, 1  ;;  %v2263_v18 = vld [vmem:[#allocation2 + $0x84] sm:$0xf]  ;;  %v2557_v3 = vrot.slane %v2555_v51, 1 }
  0xe2   : > { %6090 = vmatmul.mubr.bf16.gmra.mxu0 %v2742_v49  ;;  %v2550_v49 = vshll.u32 %v7264_v56, 16  ;;  %v2562_v26 = vshll.u32 %v7286_v9, 16  ;;  %v7310_v63 = vcombine.low %v2263_v18, %v7148_v50  ;;  %v3391_v50 = vld [vmem:[#allocation2 + $0x48] sm:$0xf]  ;;  %v3393_v18 = vld [vmem:[#allocation2 + $0x54] sm:$0xf] }
  0xe3   : > { %6093 = vmatprep.mubr.bf16.mxu0 %v2745_v33  ;;  %v3388_v33 = vld [vmem:[#allocation2 + $0x34] sm:$0xf] }
  0xe4   : > { %3029 = vmatmul.mubr.bf16.gmra.mxu1 %v7120_v57  ;;  %v5126_v57 = vcombine.low %v2306_v41, %v7249_v53  ;;  %v3851_v41 = vrot.slane %v6359_v1, 1  ;;  %v7280_v22 = vcombine.low %v3387_v28, %v3388_v33  ;;  %v5233_v30 = vcombine.low %v3433_v0, %v3388_v33 }
  0xe5   : > { %3036 = vmatprep.mubr.bf16.mxu1 %v2522_v24  ;;  %v2564_v37 = vrot.slane %v2562_v26, 1 }
  0xe6   : > { %v2752_v2 = vrot.slane %v5126_v57, 1  ;;  %v7283_v57 = vsel %vm1632_vm9, %v3847_v4, %v3848_v59  ;;  %v3853_v62 = vrot.slane %v5233_v30, 1  ;;  %v3618_v8 = vshll.u32 %v7280_v22, 16 }
  0xe7   : > { %v3616_v28 = vshrl.u32 %v7280_v22, 16  ;;  %v2560_v59 = vshrl.u32 %v7286_v9, 16 }
  0xe8   : > { %v2754_v60 = vsel %vm1632_vm9, %v2752_v2, %v2753_v52  ;;  %v3613_v52 = vrot.slane %v3611_v15, 1  ;;  %v7299_v25 = vsel %vm1632_vm9, %v3853_v62, %v3854_v19  ;;  %v3620_v33 = vrot.slane %v3618_v8, 1 }
  0xe9   : > { %v2565_v4 = vor.u32 %v2564_v37, %v2560_v59  ;;  %v2572_v62 = vshrl.u32 %v7310_v63, 16 }
  0xea   : > { %6094 = vmatmul.mubr.bf16.gmra.mxu0 %v2748_v27  ;;  %v2552_v27 = vrot.slane %v2550_v49, 1  ;;  %v3621_v0 = vor.u32 %v3620_v33, %v3616_v28 }
  0xeb   : > { %6097 = vmatprep.mubr.bf16.mxu0 %v2751_v29  ;;  %v3390_v29 = vld [vmem:[#allocation2 + $0x40] sm:$0xf] }
  0xec   : > { %3037 = vmatmul.mubr.bf16.gmra.mxu1 %v7178_v38  ;;  %v3604_v38 = vshrl.u32 %v7261_v54, 16  ;;  %v5234_v1 = vcombine.low %v3434_v16, %v3390_v29  ;;  %v2553_v17 = vor.u32 %v2552_v27, %v2548_v34  ;;  %v3635_v27 = vshll.u32 %v7290_v55, 16 }
  0xed   : > { %3044 = vmatprep.mubr.bf16.mxu1 %v2534_v61  ;;  %v7293_v61 = vsel %vm1632_vm9, %v3850_v32, %v3851_v41 }
  0xee   : > { %v3609_v2 = vor.u32 %v3608_v44, %v3604_v38  ;;  %v3856_v48 = vrot.slane %v5234_v1, 1  ;;  %v2558_v34 = vsel %vm1375_vm1, %v2553_v17, %v2557_v3  ;;  %v2567_v38 = vshll.u32 %v7160_v23, 16  ;;  %v7344_v17 = vld [vmem:[#allocation2 + $0x58] sm:$0xf] }
  0xef   : > { %v5613_v58 = vpop.f32.mrf.mxu0 }
  0xf0   : > { %v3614_v49 = vsel %vm1375_vm1, %v3609_v2, %v3613_v52  ;;  %v2569_v13 = vrot.slane %v2567_v38, 1  ;;  %v2579_v2 = vshll.u32 %v7167_v5, 16  ;;  %v2267_v5 = vld [vmem:[#allocation2 + $0x9c] sm:$0xf]  ;;  %v7355_v38 = vcombine.low %v3393_v18, %v7344_v17 }
  0xf1   : > { %v5614_v24 = vpop.f32.mrf.mxu0 }
  0xf2   : > { %v7276_v14 = vadd.f32 %v5614_v24, %v5613_v58  ;;  %6098 = vmatmul.mubr.bf16.gmra.mxu0 %v2754_v60  ;;  %v3857_v58 = vrot.slane %v7290_v55, 1  ;;  %v7307_v24 = vcombine.low %v3389_v11, %v3390_v29  ;;  %v3625_v60 = vrot.slane %v3623_v20, 1  ;;  %v7340_v55 = vld [vmem:[#allocation2 + $0x50] ss:$0 sps:$4 sm:$0x11]  }
  0xf3   : > { %4136 = vmatprep.mubr.bf16.mxu0 %v3602_v43  ;;  %v7316_v15 = vpop.f32.mrf.mxu0  ;;  %v2574_v43 = vshll.u32 %v7310_v63, 16  ;;  %v7329_v29 = vcombine.low %v3391_v50, %v7320_v40  ;;  %v2570_v51 = vsel %vm1375_vm1, %v2565_v4, %v2569_v13  ;;  %v2581_v20 = vrot.slane %v2579_v2, 1 }
  0xf4   : > { %3045 = vmatmul.mubr.bf16.gmra.mxu1 %v7211_v31  ;;  %v7303_v31 = vsel %vm1632_vm9, %v3856_v48, %v3857_v58  ;;  %v3630_v41 = vshll.u32 %v7307_v24, 16  ;;  %v3628_v23 = vshrl.u32 %v7307_v24, 16  ;;  %v3637_v58 = vrot.slane %v3635_v27, 1  ;;  %v2269_v27 = vld [vmem:[#allocation2 + $0xa8] sm:$0xf] }
  0xf5   : > { %3052 = vmatprep.mubr.bf16.mxu1 %v2546_v10  ;;  %v7324_v30 = vpop.f32.mrf.mxu0  ;;  %v2576_v1 = vrot.slane %v2574_v43, 1  ;;  %v3642_v11 = vshll.u32 %v7329_v29, 16  ;;  %v3647_v37 = vshll.u32 %v7340_v55, 16  ;;  %v2591_v4 = vshll.u32 %v7197_v39, 16 }
  0xf6   : > { %v3632_v16 = vrot.slane %v3630_v41, 1 }
  0xf7   : > { %v2577_v26 = vor.u32 %v2576_v1, %v2572_v62  ;;  %v3644_v59 = vrot.slane %v3642_v11, 1  ;;  %v3652_v1 = vshrl.u32 %v7355_v38, 16  ;;  %v7382_v11 = vcombine.low %v2269_v27, %v7215_v45  ;;  %v7391_v45 = vld [vmem:[#allocation2 + $0x68] ss:$0 sps:$4 sm:$0x11]  }
  0xf9   : > { %v2582_v50 = vsel %vm1375_vm1, %v2577_v26, %v2581_v20  ;;  %v2608_v27 = vshrl.u32 %v7382_v11, 16 }
  0xfa   : > { %4137 = vmatmul.mubr.bf16.vlgmr.msra.gmra.mxu0 %v7236_v36  ;;  %v2265_v36 = vld [vmem:[#allocation2 + $0x90] sm:$0xf] }
  0xfb   : > { %4144 = vmatprep.mubr.bf16.mxu0 %v3614_v49  ;;  %v7332_v19 = vcombine.low %v2265_v36, %v7186_v21  ;;  %v3633_v21 = vor.u32 %v3632_v16, %v3628_v23  ;;  %v7367_v23 = vld [vmem:[#allocation2 + $0x5c] ss:$0 sps:$4 sm:$0x11]   ;;  %v3395_v16 = vld [vmem:[#allocation2 + $0x60] sm:$0xf] }
  0xfc   : > { %3053 = vmatmul.mubr.bf16.gmra.mxu1 %v7239_v7  ;;  %v3626_v7 = vsel %vm1375_vm1, %v3621_v0, %v3625_v60  ;;  %v7358_v0 = vcombine.low %v2267_v5, %v7194_v42  ;;  %v3654_v42 = vshll.u32 %v7355_v38, 16  ;;  %v2603_v5 = vshll.u32 %v7205_v46, 16 }
  0xfd   : > { %3060 = vmatprep.mubr.bf16.mxu1 %v2558_v34  ;;  %v2586_v49 = vshll.u32 %v7332_v19, 16  ;;  %v3638_v34 = vsel %vm1375_vm1, %v3633_v21, %v3637_v58  ;;  %v2584_v60 = vshrl.u32 %v7332_v19, 16 }
  0xfe   : > { %v5685_v44 = vpop.f32.mrf.mxu1  ;;  %v2598_v39 = vshll.u32 %v7358_v0, 16 }
  0xff   : > { %v2588_v36 = vrot.slane %v2586_v49, 1 }
 0x100   : > { %v5686_v32 = vpop.f32.mrf.mxu1  ;;  %v2600_v18 = vrot.slane %v2598_v39, 1 }
 0x101   : > { %v7334_v10 = vadd.f32 %v5686_v32, %v5685_v44  ;;  %v3649_v44 = vrot.slane %v3647_v37, 1  ;;  %v2589_v32 = vor.u32 %v2588_v36, %v2584_v60  ;;  %v7394_v37 = vld [vmem:[#allocation2 + $0x70] sm:$0xf]  ;;  %v2271_v60 = vld [vmem:[#allocation2 + $0xb4] sm:$0xf] }
 0x102   : > { %4145 = vmatmul.mubr.bf16.gmra.mxu0 %v7261_v54  ;;  %v5688_v52 = vpop.f32.mrf.mxu1 }
 0x103   : > { %4152 = vmatprep.mubr.bf16.mxu0 %v3626_v7 }
 0x104   : > { %v5619_v8 = vpop.f32.mrf.mxu0  ;;  %3061 = vmatmul.mubr.bf16.gmra.mxu1 %v7264_v56  ;;  %v5689_v48 = vpop.f32.mrf.mxu1  ;;  %v3640_v56 = vshrl.u32 %v7329_v29, 16 }
 0x105   : > { %3068 = vmatprep.mubr.bf16.mxu1 %v2570_v51  ;;  %v7346_v3 = vadd.f32 %v5689_v48, %v5688_v52  ;;  %v2593_v51 = vrot.slane %v2591_v4, 1  ;;  %v3656_v52 = vrot.slane %v3654_v42, 1  ;;  %v3671_v42 = vshll.u32 %v7391_v45, 16 }
 0x106   : > { %v5620_v54 = vpop.f32.mrf.mxu0  ;;  %v3645_v43 = vor.u32 %v3644_v59, %v3640_v56  ;;  %v3397_v59 = vld [vmem:[#allocation2 + $0x6c] sm:$0xf] }
 0x107   : > { %v7349_v28 = vadd.f32 %v5620_v54, %v5619_v8  ;;  %v3659_v8 = vshll.u32 %v7367_v23, 16  ;;  %v2594_v48 = vsel %vm1375_vm1, %v2589_v32, %v2593_v51  ;;  %v2596_v54 = vshrl.u32 %v7358_v0, 16 }
 0x108   : > { %v5622_v33 = vpop.f32.mrf.mxu0  ;;  %v3650_v2 = vsel %vm1375_vm1, %v3645_v43, %v3649_v44  ;;  %v3657_v56 = vor.u32 %v3656_v52, %v3652_v1  ;;  %v2615_v1 = vshll.u32 %v7222_v35, 16  ;;  %v2273_v35 = vld [vmem:[#allocation2 + $0xc0] sm:$0xf] }
 0x109   : > { %v2601_v46 = vor.u32 %v2600_v18, %v2596_v54  ;;  %v3399_v18 = vld [vmem:[#allocation2 + $0x78] sm:$0xf] }
 0x10a   : > { %v5623_v41 = vpop.f32.mrf.mxu0  ;;  %4153 = vmatmul.mubr.bf16.gmra.mxu0 %v7280_v22  ;;  %v7370_v22 = vld [vmem:[#allocation2 + $0x64] sm:$0xf] }
 0x10b   : > { %v7364_v13 = vadd.f32 %v5623_v41, %v5622_v33  ;;  %4160 = vmatprep.mubr.bf16.mxu0 %v3638_v34  ;;  %v7379_v21 = vcombine.low %v3395_v16, %v7370_v22  ;;  %v3661_v33 = vrot.slane %v3659_v8, 1  ;;  %v2605_v41 = vrot.slane %v2603_v5, 1  ;;  %v7414_v8 = vld [vmem:[#allocation2 + $0x74] ss:$0 sps:$4 sm:$0x11]  }
 0x10c   : > { %3069 = vmatmul.mubr.bf16.gmra.mxu1 %v7286_v9  ;;  %v5691_v7 = vpop.f32.mrf.mxu1  ;;  %v7406_v16 = vcombine.low %v2271_v60, %v7224_v6  ;;  %v7420_v5 = vld [vmem:[#allocation2 + $0x7c] sm:$0xf] }
 0x10d   : > { %3076 = vmatprep.mubr.bf16.mxu1 %v2582_v50  ;;  %v2610_v50 = vshll.u32 %v7382_v11, 16  ;;  %v3662_v43 = vsel %vm1375_vm1, %v3657_v56, %v3661_v33  ;;  %v2606_v39 = vsel %vm1375_vm1, %v2601_v46, %v2605_v41  ;;  %v7429_v46 = vcombine.low %v3399_v18, %v7420_v5 }
 0x10e   : > { %v5692_v62 = vpop.f32.mrf.mxu1  ;;  %v2622_v56 = vshll.u32 %v7406_v16, 16  ;;  %v7432_v41 = vcombine.low %v2273_v35, %v7249_v53 }
 0x10f   : > { %v7374_v9 = vadd.f32 %v5692_v62, %v5691_v7  ;;  %v7403_v7 = vcombine.low %v3397_v59, %v7394_v37  ;;  %v2612_v62 = vrot.slane %v2610_v50, 1 }
 0x110   : > { %v5694_v58 = vpop.f32.mrf.mxu1 }
 0x111   : > { %v3678_v54 = vshll.u32 %v7403_v7, 16  ;;  %v3676_v33 = vshrl.u32 %v7403_v7, 16 }
 0x112   : > { %4161 = vmatmul.mubr.bf16.gmra.mxu0 %v7307_v24  ;;  %v5695_v26 = vpop.f32.mrf.mxu1  ;;  %v5625_v20 = vpop.f32.mrf.mxu0  ;;  %v3666_v24 = vshll.u32 %v7379_v21, 16 }
 0x113   : > { %4168 = vmatprep.mubr.bf16.mxu0 %v3650_v2  ;;  %v7388_v49 = vadd.f32 %v5695_v26, %v5694_v58  ;;  %v3673_v58 = vrot.slane %v3671_v42, 1  ;;  %v2613_v26 = vor.u32 %v2612_v62, %v2608_v27  ;;  %v3680_v59 = vrot.slane %v3678_v54, 1  ;;  %v7438_v27 = vld [vmem:[#allocation2 + $0x80] ss:$0 sps:$4 sm:$0x11]  }
 0x114   : > { %3077 = vmatmul.mubr.bf16.gmra.mxu1 %v7310_v63  ;;  %v5626_v34 = vpop.f32.mrf.mxu0  ;;  %v3664_v63 = vshrl.u32 %v7379_v21, 16  ;;  %v3668_v44 = vrot.slane %v3666_v24, 1  ;;  %v7444_v62 = vld [vmem:[#allocation2 + $0x88] sm:$0xf] }
 0x115   : > { %3084 = vmatprep.mubr.bf16.mxu1 %v2594_v48  ;;  %v7397_v36 = vadd.f32 %v5626_v34, %v5625_v20  ;;  %v2617_v20 = vrot.slane %v2615_v1, 1  ;;  %v3681_v53 = vor.u32 %v3680_v59, %v3676_v33 }
 0x116   : > { %v5628_v4 = vpop.f32.mrf.mxu0  ;;  %v3669_v6 = vor.u32 %v3668_v44, %v3664_v63  ;;  %v2627_v44 = vshll.u32 %v7230_v12, 16  ;;  %v2634_v12 = vshll.u32 %v7432_v41, 16 }
 0x117   : > { %v2618_v63 = vsel %vm1375_vm1, %v2613_v26, %v2617_v20  ;;  %v3688_v26 = vshrl.u32 %v7429_v46, 16 }
 0x118   : > { %v5629_v32 = vpop.f32.mrf.mxu0  ;;  %v3674_v34 = vsel %vm1375_vm1, %v3669_v6, %v3673_v58  ;;  %v2629_v6 = vrot.slane %v2627_v44, 1 }
 0x119   : > { %v5697_v51 = vpop.f32.mrf.mxu1  ;;  %v7412_v2 = vadd.f32 %v5629_v32, %v5628_v4  ;;  %v2620_v4 = vshrl.u32 %v7406_v16, 16 }
 0x11a   : > { %4169 = vmatmul.mubr.bf16.gmra.mxu0 %v7329_v29 }
 0x11b   : > { %4176 = vmatprep.mubr.bf16.mxu0 %v3662_v43  ;;  %v5698_v52 = vpop.f32.mrf.mxu1  ;;  %v2624_v43 = vrot.slane %v2622_v56, 1  ;;  %v2632_v56 = vshrl.u32 %v7432_v41, 16 }
 0x11c   : > { %3085 = vmatmul.mubr.bf16.gmra.mxu1 %v7332_v19  ;;  %v7417_v48 = vadd.f32 %v5698_v52, %v5697_v51  ;;  %v3683_v19 = vshll.u32 %v7414_v8, 16 }
 0x11d   : > { %3092 = vmatprep.mubr.bf16.mxu1 %v2606_v39  ;;  %v5700_v29 = vpop.f32.mrf.mxu1  ;;  %v3690_v39 = vshll.u32 %v7429_v46, 16  ;;  %v2625_v52 = vor.u32 %v2624_v43, %v2620_v4 }
 0x11e   : > { %v3685_v51 = vrot.slane %v3683_v19, 1 }
 0x11f   : > { %v5701_v24 = vpop.f32.mrf.mxu1  ;;  %v3692_v20 = vrot.slane %v3690_v39, 1  ;;  %v2630_v19 = vsel %vm1375_vm1, %v2625_v52, %v2629_v6 }
 0x120   : > { %v7426_v60 = vadd.f32 %v5701_v24, %v5700_v29  ;;  %v3695_v29 = vshll.u32 %v7438_v27, 16  ;;  %v3686_v18 = vsel %vm1375_vm1, %v3681_v53, %v3685_v51  ;;  %v2636_v24 = vrot.slane %v2634_v12, 1  ;;  %v7465_v53 = vld [vmem:[#allocation2 + $0x94] sm:$0xf] }
 0x121   : > { %v5631_v50 = vpop.f32.mrf.mxu0  ;;  %v3693_v43 = vor.u32 %v3692_v20, %v3688_v26 }
 0x122   : > { %4177 = vmatmul.mubr.bf16.gmra.mxu0 %v7355_v38  ;;  %v3401_v38 = vld [vmem:[#allocation2 + $0x84] sm:$0xf]  ;;  %v3697_v44 = vrot.slane %v3695_v29, 1  ;;  %v2637_v51 = vor.u32 %v2636_v24, %v2632_v56  ;;  %v7483_v24 = vld [vmem:[#allocation2 + $0x98] ss:$0 sps:$4 sm:$0x11]  }
 0x123   : > { %4184 = vmatprep.mubr.bf16.mxu0 %v3674_v34  ;;  %v5632_v42 = vpop.f32.mrf.mxu0  ;;  %v2639_v34 = vshll.u32 %v7255_v47, 16 }
 0x124   : > { %3093 = vmatmul.mubr.bf16.gmra.mxu1 %v7358_v0  ;;  %v7441_v32 = vadd.f32 %v5632_v42, %v5631_v50  ;;  %v7449_v0 = vcombine.low %v3401_v38, %v7444_v62  ;;  %v3698_v12 = vsel %vm1375_vm1, %v3693_v43, %v3697_v44  ;;  %v3405_v43 = vld [vmem:[#allocation2 + $0x9c] sm:$0xf]  ;;  %v7492_v44 = vld [vmem:[#allocation2 + $0xa0] sm:$0xf] }
 0x125   : > { %3100 = vmatprep.mubr.bf16.mxu1 %v2618_v63  ;;  %v5634_v1 = vpop.f32.mrf.mxu0  ;;  %v7461_v63 = vld [vmem:[#allocation2 + $0x8c] ss:$0 sps:$4 sm:$0x11]   ;;  %v2641_v39 = vrot.slane %v2639_v34, 1 }
 0x126   : > { %v3702_v4 = vshll.u32 %v7449_v0, 16  ;;  %v3707_v6 = vshll.u32 %v7461_v63, 16 }
 0x127   : > { %v5635_v58 = vpop.f32.mrf.mxu0  ;;  %v5703_v54 = vpop.f32.mrf.mxu1 }
 0x128   : > { %v7452_v35 = vadd.f32 %v5635_v58, %v5634_v1  ;;  %v3700_v1 = vshrl.u32 %v7449_v0, 16  ;;  %v3704_v52 = vrot.slane %v3702_v4, 1 }
 0x129   : > { %v5704_v33 = vpop.f32.mrf.mxu1 }
 0x12a   : > { %4185 = vmatmul.mubr.bf16.gmra.mxu0 %v7379_v21  ;;  %v7459_v59 = vadd.f32 %v5704_v33, %v5703_v54  ;;  %v3403_v21 = vld [vmem:[#allocation2 + $0x90] sm:$0xf]  ;;  %v3705_v56 = vor.u32 %v3704_v52, %v3700_v1  ;;  %v3709_v33 = vrot.slane %v3707_v6, 1  ;;  %v7503_v1 = vcombine.low %v3405_v43, %v7492_v44 }
 0x12b   : > { %4192 = vmatprep.mubr.bf16.mxu0 %v3686_v18  ;;  %v5706_v50 = vpop.f32.mrf.mxu1  ;;  %v7476_v58 = vcombine.low %v3403_v21, %v7465_v53  ;;  %v2642_v18 = vsel %vm1375_vm1, %v2637_v51, %v2641_v39 }
 0x12c   : > { %3101 = vmatmul.mubr.bf16.gmra.mxu1 %v7382_v11  ;;  %v3710_v51 = vsel %vm1375_vm1, %v3705_v56, %v3709_v33  ;;  %v3726_v56 = vshll.u32 %v7503_v1, 16  ;;  %v3724_v43 = vshrl.u32 %v7503_v1, 16 }
 0x12d   : > { %3108 = vmatprep.mubr.bf16.mxu1 %v2630_v19  ;;  %v5707_v42 = vpop.f32.mrf.mxu1 }
 0x12e   : > { %v7467_v47 = vadd.f32 %v5707_v42, %v5706_v50  ;;  %v3714_v50 = vshll.u32 %v7476_v58, 16 }
 0x12f   : > { %v6023_v38 = vpop.f32.mrf.mxu1 }
 0x130   : > { %v7473_v11 = vadd.f32 %v6023_v38, %v7349_v28  ;;  %v5618_v28 = vadd.f32 %v7324_v30, %v7316_v15  ;;  %v3712_v30 = vshrl.u32 %v7476_v58, 16  ;;  %v3716_v38 = vrot.slane %v3714_v50, 1 }
 0x131   : > { %v5637_v54 = vpop.f32.mrf.mxu0  ;;  %v2084_v29 = vpop.f32.mrf.mxu1 }
 0x132   : > { %4193 = vmatmul.mubr.bf16.gmra.mxu0 %v7403_v7  ;;  %v7481_v26 = vadd.f32 %v7276_v14, %v2084_v29  ;;  %v7509_v29 = vld [vmem:[#allocation2 + $0xa4] ss:$0 sps:$4 sm:$0x11]  }
 0x133   : > { %v5638_v20 = vpop.f32.mrf.mxu0  ;;  %4200 = vmatprep.mubr.bf16.mxu0 %v3698_v12  ;;  %v6024_v19 = vpop.f32.mrf.mxu1 }
 0x134   : > { %3109 = vmatmul.mubr.bf16.gmra.mxu1 %v7406_v16  ;;  %v5639_v34 = vadd.f32 %v5638_v20, %v5637_v54  ;;  %v7489_v7 = vadd.f32 %v6024_v19, %v7364_v13  ;;  %v3719_v16 = vshll.u32 %v7483_v24, 16  ;;  %v7517_v19 = vld [vmem:[#allocation2 + $0xac] sm:$0xf] }
 0x135   : > { %3116 = vmatprep.mubr.bf16.mxu1 %v2642_v18  ;;  %v5640_v14 = vpop.f32.mrf.mxu0  ;;  %v2087_v4 = vpop.f32.mrf.mxu1  ;;  %v3717_v18 = vor.u32 %v3716_v38, %v3712_v30 }
 0x136   : > { %v7494_v42 = vadd.f32 %v5618_v28, %v2087_v4 }
 0x137   : > { %v5641_v21 = vpop.f32.mrf.mxu0  ;;  %v6027_v15 = vpop.f32.mrf.mxu1 }
 0x138   : > { %v5642_v13 = vadd.f32 %v5641_v21, %v5640_v14  ;;  %v7500_v39 = vadd.f32 %v6027_v15, %v7441_v32  ;;  %v3721_v32 = vrot.slane %v3719_v16, 1 }
 0x139   : > { %v2100_v52 = vpop.f32.mrf.mxu1 }
 0x13a   : > { %4201 = vmatmul.mubr.bf16.gmra.mxu0 %v7429_v46  ;;  %v7507_v6 = vadd.f32 %v7397_v36, %v2100_v52  ;;  %v3407_v36 = vld [vmem:[#allocation2 + $0xa8] sm:$0xf]  ;;  %v3722_v21 = vsel %vm1375_vm1, %v3717_v18, %v3721_v32 }
 0x13b   : > { %v5643_v12 = vpop.f32.mrf.mxu0  ;;  %4208 = vmatprep.mubr.bf16.mxu0 %v3710_v51  ;;  %v6028_v54 = vpop.f32.mrf.mxu1  ;;  %v7528_v15 = vcombine.low %v3407_v36, %v7517_v19  ;;  %v3409_v36 = vld [vmem:[#allocation2 + $0xb4] sm:$0xf] }
 0x13c   : > { %3117 = vmatmul.mubr.bf16.gmra.mxu1 %v7432_v41  ;;  %v7513_v20 = vadd.f32 %v6028_v54, %v7452_v35  ;;  %v3435_v41 = vld [vmem:[#allocation2 + $0x48] sm:$0xe]  ;;  %v3731_v35 = vshll.u32 %v7509_v29, 16  ;;  %v7534_v54 = vld [vmem:[#allocation2 + $0xb0] ss:$0 sps:$4 sm:$0x11]  }
 0x13d   : > { %6117 = vmatprep.mubr.bf16.mxu1 %v7283_v57  ;;  %v5644_v46 = vpop.f32.mrf.mxu0  ;;  %v2103_v33 = vpop.f32.mrf.mxu1  ;;  %v3728_v57 = vrot.slane %v3726_v56, 1  ;;  %v5235_v38 = vcombine.low %v3435_v41, %v7320_v40  ;;  %v7541_v40 = vld [vmem:[#allocation2 + $0xb8] sm:$0xf]  ;;  %v3436_v41 = vld [vmem:[#allocation2 + $0x54] sm:$0xe] }
 0x13e   : > { %v5645_v28 = vadd.f32 %v5644_v46, %v5643_v12  ;;  %v7520_v50 = vadd.f32 %v7412_v2, %v2103_v33  ;;  %v3733_v56 = vrot.slane %v3731_v35, 1  ;;  %v3738_v33 = vshll.u32 %v7528_v15, 16 }
 0x13f   : > { %v5646_v14 = vpop.f32.mrf.mxu0  ;;  %v6031_v4 = vpop.f32.mrf.mxu1  ;;  %v3729_v32 = vor.u32 %v3728_v57, %v3724_v43  ;;  %v3437_v43 = vld [vmem:[#allocation2 + $0x60] sm:$0xe]  ;;  %v3743_v35 = vshll.u32 %v7534_v54, 16 }
 0x140   : > { %v7525_v51 = vadd.f32 %v6031_v4, %v5645_v28  ;;  %v3859_v28 = vrot.slane %v5235_v38, 1  ;;  %v5237_v38 = vcombine.low %v3437_v43, %v7370_v22 }
 0x141   : > { %v5647_v30 = vpop.f32.mrf.mxu0  ;;  %v2116_v16 = vpop.f32.mrf.mxu1  ;;  %v3734_v57 = vsel %vm1375_vm1, %v3729_v32, %v3733_v56  ;;  %v3745_v56 = vrot.slane %v3743_v35, 1 }
 0x142   : > { %4209 = vmatmul.mubr.bf16.gmra.mxu0 %v7449_v0  ;;  %v5648_v2 = vadd.f32 %v5647_v30, %v5646_v14  ;;  %v7532_v52 = vadd.f32 %v5639_v34, %v2116_v16  ;;  %v3860_v14 = vrot.slane %v7340_v55, 1  ;;  %v3740_v30 = vrot.slane %v3738_v33, 1 }
 0x143   : > { %4216 = vmatprep.mubr.bf16.mxu0 %v3722_v21  ;;  %v6032_v12 = vpop.f32.mrf.mxu1  ;;  %v7550_v16 = vcombine.low %v3409_v36, %v7541_v40  ;;  %v3865_v22 = vrot.slane %v5237_v38, 1 }
 0x144   : > { %6118 = vmatmul.mubr.bf16.vlgmr.msra.gmra.mxu1 %v7293_v61  ;;  %v5649_v18 = vpop.f32.mrf.mxu0  ;;  %v7537_v46 = vadd.f32 %v6032_v12, %v5648_v2  ;;  %v5236_v2 = vcombine.low %v3436_v41, %v7344_v17  ;;  %v3438_v41 = vld [vmem:[#allocation2 + $0x6c] sm:$0xe] }
 0x145   : > { %6121 = vmatprep.mubr.bf16.mxu1 %v7299_v25  ;;  %v2119_v0 = vpop.f32.mrf.mxu1  ;;  %v3736_v25 = vshrl.u32 %v7528_v15, 16  ;;  %v3750_v33 = vshll.u32 %v7550_v16, 16 }
 0x146   : > { %v5650_v34 = vpop.f32.mrf.mxu0  ;;  %v7544_v4 = vadd.f32 %v5642_v13, %v2119_v0  ;;  %v3861_v13 = vsel %vm1632_vm9, %v3859_v28, %v3860_v14  ;;  %v7556_v0 = vld [vmem:[#allocation2 + $0xbc] ss:$0 sps:$4 sm:$0x11]   ;;  %v3862_v17 = vrot.slane %v5236_v2, 1  ;;  %v7561_v28 = vld [vmem:[#allocation2 + $0xc4] sm:$0xf] }
 0x147   : > { %v5651_v61 = vadd.f32 %v5650_v34, %v5649_v18  ;;  %v3741_v32 = vor.u32 %v3740_v30, %v3736_v25  ;;  %v3411_v34 = vld [vmem:[#allocation2 + $0xc0] sm:$0xf]  ;;  %v3866_v14 = vrot.slane %v7391_v45, 1  ;;  %v3755_v35 = vshll.u32 %v7556_v0, 16 }
 0x148   : > { %v5652_v21 = vpop.f32.mrf.mxu0  ;;  %v3748_v30 = vshrl.u32 %v7550_v16, 16  ;;  %v7570_v2 = vcombine.low %v3411_v34, %v7561_v28  ;;  %v5238_v45 = vcombine.low %v3438_v41, %v7394_v37 }
 0x149   : > { %v3746_v25 = vsel %vm1375_vm1, %v3741_v32, %v3745_v56 }
 0x14a   : > { %4217 = vmatmul.mubr.bf16.gmra.mxu0 %v7476_v58  ;;  %v5653_v55 = vpop.f32.mrf.mxu0  ;;  %v3863_v58 = vrot.slane %v7367_v23, 1  ;;  %v3752_v23 = vrot.slane %v3750_v33, 1  ;;  %v7579_v33 = vld [vmem:[#allocation2 + $0xc8] ss:$0 sps:$4 sm:$0x11]   ;;  %v3762_v37 = vshll.u32 %v7570_v2, 16 }
 0x14b   : > { %v5654_v12 = vadd.f32 %v5653_v55, %v5652_v21  ;;  %4224 = vmatprep.mubr.bf16.mxu0 %v3734_v57  ;;  %v6035_v18 = vpop.f32.mrf.mxu1  ;;  %v3439_v57 = vld [vmem:[#allocation2 + $0x78] sm:$0xe] }
 0x14c   : > { %6122 = vmatmul.mubr.bf16.gmra.mxu1 %v7303_v31  ;;  %v3864_v55 = vsel %vm1632_vm9, %v3862_v17, %v3863_v58  ;;  %v5239_v32 = vcombine.low %v3439_v57, %v7420_v5  ;;  %v3753_v17 = vor.u32 %v3752_v23, %v3748_v30  ;;  %v3757_v58 = vrot.slane %v3755_v35, 1 }
 0x14d   : > { %6125 = vmatprep.mubr.bf16.mxu1 %v3861_v13  ;;  %v2132_v36 = vpop.f32.mrf.mxu1  ;;  %v3872_v57 = vrot.slane %v7438_v27, 1  ;;  %v3760_v30 = vshrl.u32 %v7570_v2, 16  ;;  %v3767_v35 = vshll.u32 %v7579_v33, 16 }
 0x14e   : > { %v7564_v43 = vadd.f32 %v5651_v61, %v2132_v36  ;;  %v3867_v36 = vsel %vm1632_vm9, %v3865_v22, %v3866_v14  ;;  %v3869_v22 = vrot.slane %v7414_v8, 1  ;;  %v7585_v14 = vld [vmem:[#allocation2 + $0xd0] sm:$0xf] }
 0x14f   : > { %v5655_v21 = vpop.f32.mrf.mxu0  ;;  %v6036_v31 = vpop.f32.mrf.mxu1 }
 0x150   : > { %8092 = vst [vmem:[#allocation4_spill] sm:$0xff] %v7564_v43 }
 0x151   : > { %v5656_v13 = vpop.f32.mrf.mxu0  ;;  %v2135_v61 = vpop.f32.mrf.mxu1 }
 0x152   : > { %v5657_v38 = vadd.f32 %v5656_v13, %v5655_v21  ;;  %4225 = vmatmul.mubr.bf16.gmra.mxu0 %v7503_v1  ;;  %v7576_v43 = vadd.f32 %v5654_v12, %v2135_v61  ;;  %v3868_v1 = vrot.slane %v5238_v45, 1  ;;  %v3413_v12 = vld [vmem:[#allocation2 + $0xcc] sm:$0xf]  ;;  %v3871_v21 = vrot.slane %v5239_v32, 1 }
 0x153   : > { %v5658_v56 = vpop.f32.mrf.mxu0  ;;  %4232 = vmatprep.mubr.bf16.mxu0 %v3746_v25  ;;  %v3440_v25 = vld [vmem:[#allocation2 + $0x84] sm:$0xe]  ;;  %v3758_v13 = vsel %vm1375_vm1, %v3753_v17, %v3757_v58  ;;  %v3764_v45 = vrot.slane %v3762_v37, 1  ;;  %v7594_v8 = vcombine.low %v3413_v12, %v7585_v14  ;;  %v3769_v58 = vrot.slane %v3767_v35, 1 }
 0x154   : > { %6126 = vmatmul.mubr.bf16.gmra.mxu1 %v3864_v55  ;;  %v7581_v34 = vadd.f32 %v6035_v18, %v5657_v38  ;;  %v3441_v18 = vld [vmem:[#allocation2 + $0x90] sm:$0xe]  ;;  %v3870_v61 = vsel %vm1632_vm9, %v3868_v1, %v3869_v22  ;;  %v5240_v27 = vcombine.low %v3440_v25, %v7444_v62  ;;  %v3873_v32 = vsel %vm1632_vm9, %v3871_v21, %v3872_v57  ;;  %v3443_v25 = vld [vmem:[#allocation2 + $0xa8] sm:$0xe] }
 0x155   : > { %v5659_v41 = vpop.f32.mrf.mxu0  ;;  %6129 = vmatprep.mubr.bf16.mxu1 %v3867_v36  ;;  %v3765_v17 = vor.u32 %v3764_v45, %v3760_v30  ;;  %v3774_v37 = vshll.u32 %v7594_v8, 16  ;;  %v3875_v12 = vrot.slane %v7461_v63, 1  ;;  %v3878_v21 = vrot.slane %v7483_v24, 1 }
 0x156   : > { %v5660_v5 = vadd.f32 %v5659_v41, %v5658_v56  ;;  %v5241_v56 = vcombine.low %v3441_v18, %v7465_v53  ;;  %v7601_v41 = vld [vmem:[#allocation2 + $0xd4] ss:$0 sps:$4 sm:$0x11]   ;;  %v3874_v62 = vrot.slane %v5240_v27, 1  ;;  %v3442_v53 = vld [vmem:[#allocation2 + $0x9c] sm:$0xe]  ;;  %v5243_v27 = vcombine.low %v3443_v25, %v7517_v19 }
 0x157   : > { %v5661_v55 = vpop.f32.mrf.mxu0  ;;  %v3770_v30 = vsel %vm1375_vm1, %v3765_v17, %v3769_v58  ;;  %v3772_v35 = vshrl.u32 %v7594_v8, 16  ;;  %v3444_v19 = vld [vmem:[#allocation2 + $0xb4] sm:$0xe] }
 0x158   : > { %v7590_v23 = vadd.f32 %v6036_v31, %v5660_v5  ;;  %v3877_v5 = vrot.slane %v5241_v56, 1  ;;  %v3876_v45 = vsel %vm1632_vm9, %v3874_v62, %v3875_v12  ;;  %v3884_v12 = vrot.slane %v7534_v54, 1 }
 0x159   : > { %v5662_v38 = vpop.f32.mrf.mxu0  ;;  %v5244_v25 = vcombine.low %v3444_v19, %v7541_v40 }
 0x15a   : > { %v5663_v36 = vadd.f32 %v5662_v38, %v5661_v55  ;;  %4233 = vmatmul.mubr.bf16.gmra.mxu0 %v7528_v15  ;;  %v3779_v55 = vshll.u32 %v7601_v41, 16  ;;  %v5242_v38 = vcombine.low %v3442_v53, %v7492_v44  ;;  %v3879_v24 = vsel %vm1632_vm9, %v3877_v5, %v3878_v21  ;;  %v3445_v21 = vld [vmem:[#allocation2 + $0xc0] sm:$0xe] }
 0x15b   : > { %v5664_v31 = vpop.f32.mrf.mxu0  ;;  %4240 = vmatprep.mubr.bf16.mxu0 %v3758_v13  ;;  %v3776_v13 = vrot.slane %v3774_v37, 1  ;;  %v3881_v44 = vrot.slane %v7509_v29, 1 }
 0x15c   : > { %6130 = vmatmul.mubr.bf16.gmra.mxu1 %v3870_v61  ;;  %v6039_v22 = vpop.f32.mrf.mxu1  ;;  %v3781_v58 = vrot.slane %v3779_v55, 1 }
 0x15d   : > { %v5665_v1 = vpop.f32.mrf.mxu0  ;;  %6133 = vmatprep.mubr.bf16.mxu1 %v3873_v32  ;;  %v3777_v17 = vor.u32 %v3776_v13, %v3772_v35 }
 0x15e   : > { %v5666_v15 = vadd.f32 %v5665_v1, %v5664_v31  ;;  %v2148_v57 = vpop.f32.mrf.mxu1  ;;  %v3880_v1 = vrot.slane %v5242_v38, 1 }
 0x15f   : > { %v7607_v18 = vadd.f32 %v5663_v36, %v2148_v57  ;;  %v3782_v57 = vsel %vm1375_vm1, %v3777_v17, %v3781_v58 }
 0x160   : > { %v5667_v61 = vpop.f32.mrf.mxu0  ;;  %v6040_v63 = vpop.f32.mrf.mxu1 }
 0x162   : > { %4241 = vmatmul.mubr.bf16.gmra.mxu0 %v7550_v16  ;;  %v5668_v32 = vpop.f32.mrf.mxu0  ;;  %v2151_v36 = vpop.f32.mrf.mxu1  ;;  %v3883_v16 = vrot.slane %v5243_v27, 1  ;;  %v3446_v27 = vld [vmem:[#allocation2 + $0xcc] sm:$0xe] }
 0x163   : > { %4248 = vmatprep.mubr.bf16.mxu0 %v3770_v30  ;;  %v5669_v56 = vadd.f32 %v5668_v32, %v5667_v61  ;;  %v7616_v31 = vadd.f32 %v5666_v15, %v2151_v36  ;;  %v3882_v15 = vsel %vm1632_vm9, %v3880_v1, %v3881_v44  ;;  %v3887_v61 = vrot.slane %v7556_v0, 1 }
 0x164   : > { %6134 = vmatmul.mubr.bf16.gmra.mxu1 %v3876_v45  ;;  %v5670_v37 = vpop.f32.mrf.mxu0  ;;  %v3885_v29 = vsel %vm1632_vm9, %v3883_v16, %v3884_v12  ;;  %v3886_v45 = vrot.slane %v5244_v25, 1  ;;  %v5246_v17 = vcombine.low %v3446_v27, %v7585_v14 }
 0x165   : > { %6137 = vmatprep.mubr.bf16.mxu1 %v3879_v24  ;;  %v7619_v62 = vadd.f32 %v6039_v22, %v5669_v56  ;;  %v5245_v22 = vcombine.low %v3445_v21, %v7561_v28  ;;  %v3890_v24 = vrot.slane %v7579_v33, 1 }
 0x166   : > { %v5671_v5 = vpop.f32.mrf.mxu0  ;;  %v3888_v56 = vsel %vm1632_vm9, %v3886_v45, %v3887_v61  ;;  %v3892_v19 = vrot.slane %v5246_v17, 1 }
 0x167   : > { %v5672_v53 = vadd.f32 %v5671_v5, %v5670_v37  ;;  %v3893_v5 = vrot.slane %v7601_v41, 1 }
 0x169   : > { %v7625_v55 = vadd.f32 %v6040_v63, %v5672_v53  ;;  %v3889_v63 = vrot.slane %v5245_v22, 1 }
 0x16a   : > { %v5673_v30 = vpop.f32.mrf.mxu0  ;;  %4249 = vmatmul.mubr.bf16.gmra.mxu0 %v7570_v2 }
 0x16b   : > { %4256 = vmatprep.mubr.bf16.mxu0 %v3782_v57  ;;  %v6043_v54 = vpop.f32.mrf.mxu1  ;;  %v3891_v0 = vsel %vm1632_vm9, %v3889_v63, %v3890_v24 }
 0x16c   : > { %6138 = vmatmul.mubr.bf16.gmra.mxu1 %v3882_v15  ;;  %v5674_v35 = vpop.f32.mrf.mxu0 }
 0x16d   : > { %v5675_v13 = vadd.f32 %v5674_v35, %v5673_v30  ;;  %6141 = vmatprep.mubr.bf16.mxu1 %v3885_v29  ;;  %v2164_v38 = vpop.f32.mrf.mxu1 }
 0x16e   : > { %v5676_v40 = vpop.f32.mrf.mxu0 }
 0x16f   : > { %v7632_v2 = vadd.f32 %v5675_v13, %v2164_v38  ;;  %v6044_v32 = vpop.f32.mrf.mxu1 }
 0x170   : > { %v5677_v36 = vpop.f32.mrf.mxu0 }
 0x171   : > { %v5678_v28 = vadd.f32 %v5677_v36, %v5676_v40  ;;  %v2167_v58 = vpop.f32.mrf.mxu1 }
 0x172   : > { %v5679_v37 = vpop.f32.mrf.mxu0  ;;  %4257 = vmatmul.mubr.bf16.gmra.mxu0 %v7594_v8 }
 0x173   : > { %v7638_v1 = vadd.f32 %v5678_v28, %v2167_v58  ;;  %v6047_v44 = vpop.f32.mrf.mxu1 }
 0x174   : > { %6142 = vmatmul.mubr.bf16.gmra.mxu1 %v3888_v56  ;;  %v5680_v33 = vpop.f32.mrf.mxu0  ;;  %v7641_v16 = vadd.f32 %v6047_v44, %v7374_v9  ;;  %v3894_v9 = vsel %vm1632_vm9, %v3892_v19, %v3893_v5 }
 0x175   : > { %v5681_v12 = vadd.f32 %v5680_v33, %v5679_v37  ;;  %6145 = vmatprep.mubr.bf16.mxu1 %v3891_v0  ;;  %v2180_v14 = vpop.f32.mrf.mxu1 }
 0x176   : > { %v5682_v21 = vpop.f32.mrf.mxu0  ;;  %v7645_v53 = vadd.f32 %v7334_v10, %v2180_v14 }
 0x177   : > { %v7647_v8 = vadd.f32 %v6043_v54, %v5681_v12  ;;  %v6048_v57 = vpop.f32.mrf.mxu1 }
 0x178   : > { %v5683_v15 = vpop.f32.mrf.mxu0  ;;  %v7650_v25 = vadd.f32 %v6048_v57, %v7388_v49 }
 0x179   : > { %v5684_v30 = vadd.f32 %v5683_v15, %v5682_v21  ;;  %v2183_v29 = vpop.f32.mrf.mxu1 }
 0x17a   : > { %v6071_v22 = vpop.f32.mrf.mxu0  ;;  %v7654_v35 = vadd.f32 %v7346_v3, %v2183_v29 }
 0x17b   : > { %v7656_v41 = vadd.f32 %v6044_v32, %v5684_v30 }
 0x17c   : > { %v6051_v13 = vpop.f32.mrf.mxu1  ;;  %6146 = vmatmul.mubr.bf16.gmra.mxu1 %v3894_v9  ;;  %v3159_v10 = vpop.f32.mrf.mxu0 }
 0x17d   : > { %v7659_v54 = vadd.f32 %v6051_v13, %v7459_v59 }
 0x17e   : > { %v2196_v45 = vpop.f32.mrf.mxu1  ;;  %v6072_v61 = vpop.f32.mrf.mxu0 }
 0x17f   : > { %v7662_v49 = vadd.f32 %v7417_v48, %v2196_v45 }
 0x180   : > { %v6052_v38 = vpop.f32.mrf.mxu1  ;;  %v3162_v40 = vpop.f32.mrf.mxu0 }
 0x181   : > { %v7665_v63 = vadd.f32 %v6052_v38, %v7467_v47 }
 0x182   : > { %v2199_v3 = vpop.f32.mrf.mxu1  ;;  %v6075_v24 = vpop.f32.mrf.mxu0 }
 0x183   : > { %8093 = vst [vmem:[#allocation5_spill] sm:$0xff] %v7665_v63  ;;  %v7668_v27 = vadd.f32 %v7426_v60, %v2199_v3 }
 0x184   : > { %v5749_v32 = vpop.f32.mrf.mxu1  ;;  %v3175_v36 = vpop.f32.mrf.mxu0 }
 0x186   : > { %v5750_v28 = vpop.f32.mrf.mxu1  ;;  %v6076_v59 = vpop.f32.mrf.mxu0 }
 0x187   : > { %v5751_v56 = vadd.f32 %v5750_v28, %v5749_v32 }
 0x188   : > { %v5752_v17 = vpop.f32.mrf.mxu1  ;;  %v3178_v58 = vpop.f32.mrf.mxu0 }
 0x189   : > { %v3160_v37 = vadd.f32 %v5751_v56, %v3159_v10 }
 0x18a   : > { %v5753_v48 = vpop.f32.mrf.mxu1  ;;  %v7670_v0 = vpop.f32.mrf.mxu0 }
 0x18b   : > { %v5754_v44 = vadd.f32 %v5753_v48, %v5752_v17  ;;  %v7673_v47 = vadd.f32 %v3160_v37, %v7481_v26 }
 0x18c   : > { %v5755_v33 = vpop.f32.mrf.mxu1  ;;  %v3191_v12 = vpop.f32.mrf.mxu0 }
 0x18d   : > { %v3163_v19 = vadd.f32 %v5754_v44, %v3162_v40 }
 0x18e   : > { %v5756_v60 = vpop.f32.mrf.mxu1  ;;  %v7675_v5 = vpop.f32.mrf.mxu0 }
 0x18f   : > { %v5757_v14 = vadd.f32 %v5756_v60, %v5755_v33  ;;  %v7678_v21 = vadd.f32 %v3163_v19, %v7494_v42 }
 0x190   : > { %v5758_v57 = vpop.f32.mrf.mxu1  ;;  %v3194_v15 = vpop.f32.mrf.mxu0 }
 0x191   : > { %v3168_v30 = vadd.f32 %v6071_v22, %v5757_v14 }
 0x192   : > { %v5759_v9 = vpop.f32.mrf.mxu1  ;;  %v7680_v29 = vpop.f32.mrf.mxu0 }
 0x193   : > { %v5760_v13 = vadd.f32 %v5759_v9, %v5758_v57  ;;  %v7683_v26 = vadd.f32 %v3168_v30, %v7473_v11 }
 0x194   : > { %v5761_v10 = vpop.f32.mrf.mxu1  ;;  %v7685_v45 = vpop.f32.mrf.mxu0 }
 0x195   : > { %v3171_v38 = vadd.f32 %v6072_v61, %v5760_v13 }
 0x196   : > { %v5762_v40 = vpop.f32.mrf.mxu1  ;;  %v7687_v3 = vpop.f32.mrf.mxu0 }
 0x197   : > { %v5763_v32 = vadd.f32 %v5762_v40, %v5761_v10  ;;  %v7690_v42 = vadd.f32 %v3171_v38, %v7489_v7 }
 0x198   : > { %v5764_v28 = vpop.f32.mrf.mxu1  ;;  %v7692_v22 = vpop.f32.mrf.mxu0 }
 0x199   : > { %v3176_v56 = vadd.f32 %v5763_v32, %v3175_v36 }
 0x19a   : > { %v5765_v17 = vpop.f32.mrf.mxu1  ;;  %v7694_v37 = vpop.f32.mrf.mxu0 }
 0x19b   : > { %v5766_v11 = vadd.f32 %v5765_v17, %v5764_v28  ;;  %v7697_v48 = vadd.f32 %v3176_v56, %v7507_v6 }
 0x19c   : > { %v5767_v44 = vpop.f32.mrf.mxu1  ;;  %v7699_v61 = vpop.f32.mrf.mxu0 }
 0x19d   : > { %v3179_v33 = vadd.f32 %v5766_v11, %v3178_v58 }
 0x19e   : > { %v5768_v19 = vpop.f32.mrf.mxu1  ;;  %v7701_v60 = vpop.f32.mrf.mxu0 }
 0x19f   : > { %v5769_v7 = vadd.f32 %v5768_v19, %v5767_v44  ;;  %v7704_v14 = vadd.f32 %v3179_v33, %v7520_v50 }
 0x1a0   : > { %v5770_v57 = vpop.f32.mrf.mxu1  ;;  %v7706_v36 = vpop.f32.mrf.mxu0 }
 0x1a1   : > { %v3184_v30 = vadd.f32 %v6075_v24, %v5769_v7 }
 0x1a2   : > { %v5771_v9 = vpop.f32.mrf.mxu1  ;;  %v7708_v13 = vpop.f32.mrf.mxu0 }
 0x1a3   : > { %v5772_v6 = vadd.f32 %v5771_v9, %v5770_v57  ;;  %v7711_v10 = vadd.f32 %v3184_v30, %v7500_v39 }
 0x1a4   : > { %v5773_v38 = vpop.f32.mrf.mxu1  ;;  %v7713_v58 = vpop.f32.mrf.mxu0 }
 0x1a5   : > { %v3187_v40 = vadd.f32 %v6076_v59, %v5772_v6 }
 0x1a6   : > { %v5774_v32 = vpop.f32.mrf.mxu1  ;;  %v7715_v28 = vpop.f32.mrf.mxu0 }
 0x1a7   : > { %v5775_v50 = vadd.f32 %v5774_v32, %v5773_v38  ;;  %v7718_v56 = vadd.f32 %v3187_v40, %v7513_v20 }
 0x1a8   : > { %v5776_v17 = vpop.f32.mrf.mxu1  ;;  %v7720_v24 = vpop.f32.mrf.mxu0 }
 0x1a9   : > { %v3192_v11 = vadd.f32 %v5775_v50, %v3191_v12 }
 0x1aa   : > { %v5777_v44 = vpop.f32.mrf.mxu1  ;;  %v7722_v33 = vpop.f32.mrf.mxu0 }
 0x1ab   : > { %v5778_v39 = vadd.f32 %v5777_v44, %v5776_v17  ;;  %v7725_v19 = vadd.f32 %v3192_v11, %v7532_v52 }
 0x1ac   : > { %v5779_v7 = vpop.f32.mrf.mxu1  ;;  %v7727_v59 = vpop.f32.mrf.mxu0 }
 0x1ad   : > { %v3195_v57 = vadd.f32 %v5778_v39, %v3194_v15 }
 0x1ae   : > { %v5780_v30 = vpop.f32.mrf.mxu1  ;;  %v7729_v9 = vpop.f32.mrf.mxu0 }
 0x1af   : > { %v5781_v20 = vadd.f32 %v5780_v30, %v5779_v7  ;;  %v7732_v6 = vadd.f32 %v3195_v57, %v7544_v4 }
 0x1b0   : > { %v5782_v38 = vpop.f32.mrf.mxu1  ;;  %v7734_v12 = vpop.f32.mrf.mxu0 }
 0x1b1   : > { %8094 = vst [vmem:[#allocation6_spill] sm:$0xff] %v7732_v6  ;;  %v3200_v40 = vadd.f32 %v7670_v0, %v5781_v20 }
 0x1b2   : > { %v5783_v32 = vpop.f32.mrf.mxu1  ;;  %v7737_v50 = vpop.f32.mrf.mxu0 }
 0x1b3   : > { %v5784_v52 = vadd.f32 %v5783_v32, %v5782_v38  ;;  %v7740_v17 = vadd.f32 %v3200_v40, %v7525_v51  ;;  %v8097_v32 = vld [vmem:[#allocation4_spill] sm:$0xff] }
 0x1b4   : > { %v5785_v15 = vpop.f32.mrf.mxu1  ;;  %v7742_v11 = vpop.f32.mrf.mxu0 }
 0x1b5   : > { %v3203_v44 = vadd.f32 %v7675_v5, %v5784_v52 }
 0x1b6   : > { %v5786_v39 = vpop.f32.mrf.mxu1  ;;  %v7745_v4 = vpop.f32.mrf.mxu0 }
 0x1b7   : > { %8095 = vst [vmem:[#allocation7_spill] sm:$0xff] %v7745_v4  ;;  %v5787_v7 = vadd.f32 %v5786_v39, %v5785_v15  ;;  %v7748_v57 = vadd.f32 %v3203_v44, %v7537_v46 }
 0x1b8   : > { %v5788_v0 = vpop.f32.mrf.mxu1  ;;  %v7750_v30 = vpop.f32.mrf.mxu0 }
 0x1b9   : > { %8096 = vst [vmem:[#allocation8_spill] sm:$0xff] %v7748_v57  ;;  %v3208_v20 = vadd.f32 %v5787_v7, %v7685_v45 }
 0x1ba   : > { %v5789_v38 = vpop.f32.mrf.mxu1  ;;  %v5885_v51 = vpop.f32.mrf.mxu0 }
 0x1bb   : > { %v5790_v40 = vadd.f32 %v5789_v38, %v5788_v0  ;;  %v7754_v63 = vadd.f32 %v3208_v20, %v8097_v32 }
 0x1bc   : > { %v5791_v6 = vpop.f32.mrf.mxu1  ;;  %v5886_v5 = vpop.f32.mrf.mxu0 }
 0x1bd   : > { %v3211_v52 = vadd.f32 %v5790_v40, %v7692_v22  ;;  %v7757_v4 = vadd.f32 %v5886_v5, %v5885_v51 }
 0x1be   : > { %v5792_v15 = vpop.f32.mrf.mxu1  ;;  %v5888_v46 = vpop.f32.mrf.mxu0 }
 0x1bf   : > { %v5793_v44 = vadd.f32 %v5792_v15, %v5791_v6  ;;  %v7760_v39 = vadd.f32 %v3211_v52, %v7576_v43 }
 0x1c0   : > { %v5794_v57 = vpop.f32.mrf.mxu1  ;;  %v5889_v45 = vpop.f32.mrf.mxu0 }
 0x1c1   : > { %8098 = vst [vmem:[#allocation4_spill] sm:$0xff] %v7760_v39  ;;  %v3216_v7 = vadd.f32 %v7680_v29, %v5793_v44  ;;  %v7763_v0 = vadd.f32 %v5889_v45, %v5888_v46  ;;  %v6440_v44 = vmov 0.0  }
 0x1c2   : > { %v5795_v20 = vpop.f32.mrf.mxu1  ;;  %v7765_v38 = vpop.f32.mrf.mxu0  ;;  %267 = vst [vmem:[%s7785_s25] sm:$0x3] %v6440_v44 }
 0x1c3   : > { %v5796_v32 = vadd.f32 %v5795_v20, %v5794_v57  ;;  %v7768_v22 = vadd.f32 %v3216_v7, %v7581_v34 }
 0x1c4   : > { %v5797_v51 = vpop.f32.mrf.mxu1  ;;  %v7770_v40 = vpop.f32.mrf.mxu0 }
 0x1c5   : > { %v3219_v43 = vadd.f32 %v7687_v3, %v5796_v32 }
 0x1c6   : > { %v5798_v6 = vpop.f32.mrf.mxu1  ;;  %v7773_v5 = vpop.f32.mrf.mxu0 }
 0x1c7   : > { %v5799_v52 = vadd.f32 %v5798_v6, %v5797_v51  ;;  %v7776_v29 = vadd.f32 %v3219_v43, %v7590_v23 }
 0x1c8   : > { %v5800_v15 = vpop.f32.mrf.mxu1  ;;  %v7778_v46 = vpop.f32.mrf.mxu0 }
 0x1c9   : > { %v3224_v57 = vadd.f32 %v5799_v52, %v7699_v61 }
 0x1ca   : > { %v5801_v34 = vpop.f32.mrf.mxu1  ;;  %v7787_v3 = vpop.f32.mrf.mxu0 }
 0x1cb   : > { %v5802_v45 = vadd.f32 %v5801_v34, %v5800_v15  ;;  %v7791_v23 = vadd.f32 %v3224_v57, %v7607_v18 }
 0x1cc   : > { %v5803_v7 = vpop.f32.mrf.mxu1  ;;  %v7793_v20 = vpop.f32.mrf.mxu0 }
 0x1cd   : > { %v3227_v61 = vadd.f32 %v5802_v45, %v7706_v36 }
 0x1ce   : > { %v5804_v32 = vpop.f32.mrf.mxu1  ;;  %v7796_v51 = vpop.f32.mrf.mxu0 }
 0x1cf   : > { %v5805_v43 = vadd.f32 %v5804_v32, %v5803_v7  ;;  %v7799_v6 = vadd.f32 %v3227_v61, %v7616_v31 }
 0x1d0   : > { %v5806_v52 = vpop.f32.mrf.mxu1  ;;  %v7801_v39 = vpop.f32.mrf.mxu0 }
 0x1d1   : > { %8099 = vst [vmem:[#allocation9_spill] sm:$0xff] %v7799_v6  ;;  %v3232_v15 = vadd.f32 %v7694_v37, %v5805_v43 }
 0x1d2   : > { %v5807_v34 = vpop.f32.mrf.mxu1  ;;  %v7804_v18 = vpop.f32.mrf.mxu0 }
 0x1d3   : > { %v5808_v57 = vadd.f32 %v5807_v34, %v5806_v52  ;;  %v7807_v44 = vadd.f32 %v3232_v15, %v7619_v62 }
 0x1d4   : > { %v5809_v36 = vpop.f32.mrf.mxu1  ;;  %v7809_v45 = vpop.f32.mrf.mxu0 }
 0x1d5   : > { %8100 = vst [vmem:[#allocation10_spill] sm:$0xff] %v7807_v44  ;;  %v3235_v7 = vadd.f32 %v7701_v60, %v5808_v57 }
 0x1d6   : > { %v5810_v32 = vpop.f32.mrf.mxu1  ;;  %v7812_v31 = vpop.f32.mrf.mxu0 }
 0x1d7   : > { %v5811_v61 = vadd.f32 %v5810_v32, %v5809_v36  ;;  %v7815_v6 = vadd.f32 %v3235_v7, %v7625_v55 }
 0x1d8   : > { %v5812_v37 = vpop.f32.mrf.mxu1  ;;  %v7817_v43 = vpop.f32.mrf.mxu0 }
 0x1d9   : > { %8101 = vst [vmem:[#allocation11_spill] sm:$0xff] %v7815_v6  ;;  %v3240_v52 = vadd.f32 %v5811_v61, %v7713_v58 }
 0x1da   : > { %v5813_v34 = vpop.f32.mrf.mxu1  ;;  %v7820_v62 = vpop.f32.mrf.mxu0 }
 0x1db   : > { %v5814_v15 = vadd.f32 %v5813_v34, %v5812_v37  ;;  %v7823_v44 = vadd.f32 %v3240_v52, %v7632_v2 }
 0x1dc   : > { %v5815_v60 = vpop.f32.mrf.mxu1  ;;  %v7825_v57 = vpop.f32.mrf.mxu0 }
 0x1dd   : > { %8102 = vst [vmem:[#allocation12_spill] sm:$0xff] %v7823_v44  ;;  %v3243_v36 = vadd.f32 %v5814_v15, %v7720_v24 }
 0x1de   : > { %v5816_v32 = vpop.f32.mrf.mxu1  ;;  %v7828_v55 = vpop.f32.mrf.mxu0 }
 0x1df   : > { %v5817_v7 = vadd.f32 %v5816_v32, %v5815_v60  ;;  %v7831_v6 = vadd.f32 %v3243_v36, %v7638_v1 }
 0x1e0   : > { %v5818_v58 = vpop.f32.mrf.mxu1  ;;  %v7833_v61 = vpop.f32.mrf.mxu0 }
 0x1e1   : > { %8103 = vst [vmem:[#allocation13_spill] sm:$0xff] %v7831_v6  ;;  %v3248_v37 = vadd.f32 %v7708_v13, %v5817_v7 }
 0x1e2   : > { %v5819_v34 = vpop.f32.mrf.mxu1  ;;  %v7836_v2 = vpop.f32.mrf.mxu0 }
 0x1e3   : > { %v5820_v52 = vadd.f32 %v5819_v34, %v5818_v58  ;;  %v7839_v44 = vadd.f32 %v3248_v37, %v7647_v8 }
 0x1e4   : > { %v5821_v24 = vpop.f32.mrf.mxu1  ;;  %v7841_v15 = vpop.f32.mrf.mxu0 }
 0x1e5   : > { %8104 = vst [vmem:[#allocation14_spill] sm:$0xff] %v7839_v44  ;;  %v3251_v60 = vadd.f32 %v7715_v28, %v5820_v52 }
 0x1e6   : > { %v5822_v32 = vpop.f32.mrf.mxu1  ;;  %v7844_v1 = vpop.f32.mrf.mxu0 }
 0x1e7   : > { %v5823_v36 = vadd.f32 %v5822_v32, %v5821_v24  ;;  %v7847_v6 = vadd.f32 %v3251_v60, %v7656_v41 }
 0x1e8   : > { %v5824_v13 = vpop.f32.mrf.mxu1  ;;  %v7849_v7 = vpop.f32.mrf.mxu0 }
 0x1e9   : > { %8105 = vst [vmem:[#allocation15_spill] sm:$0xff] %v7847_v6  ;;  %v3256_v58 = vadd.f32 %v5823_v36, %v7727_v59 }
 0x1ea   : > { %v5825_v34 = vpop.f32.mrf.mxu1  ;;  %v7852_v8 = vpop.f32.mrf.mxu0 }
 0x1eb   : > { %v5826_v37 = vadd.f32 %v5825_v34, %v5824_v13  ;;  %v7855_v44 = vadd.f32 %v3256_v58, %v7645_v53 }
 0x1ec   : > { %v5827_v28 = vpop.f32.mrf.mxu1  ;;  %v7857_v52 = vpop.f32.mrf.mxu0 }
 0x1ed   : > { %8106 = vst [vmem:[#allocation16_spill] sm:$0xff] %v7855_v44  ;;  %v3259_v24 = vadd.f32 %v5826_v37, %v7734_v12 }
 0x1ee   : > { %v5828_v32 = vpop.f32.mrf.mxu1  ;;  %v7860_v41 = vpop.f32.mrf.mxu0 }
 0x1ef   : > { %v5829_v60 = vadd.f32 %v5828_v32, %v5827_v28  ;;  %v7863_v6 = vadd.f32 %v3259_v24, %v7654_v35 }
 0x1f0   : > { %v5830_v59 = vpop.f32.mrf.mxu1  ;;  %v7865_v36 = vpop.f32.mrf.mxu0 }
 0x1f1   : > { %8107 = vst [vmem:[#allocation17_spill] sm:$0xff] %v7863_v6  ;;  %v3264_v13 = vadd.f32 %v7722_v33, %v5829_v60 }
 0x1f2   : > { %v5831_v34 = vpop.f32.mrf.mxu1  ;;  %v7868_v53 = vpop.f32.mrf.mxu0 }
 0x1f3   : > { %v5832_v58 = vadd.f32 %v5831_v34, %v5830_v59  ;;  %v7871_v44 = vadd.f32 %v3264_v13, %v7641_v16 }
 0x1f4   : > { %v5833_v12 = vpop.f32.mrf.mxu1  ;;  %v7873_v37 = vpop.f32.mrf.mxu0 }
 0x1f5   : > { %8108 = vst [vmem:[#allocation18_spill] sm:$0xff] %v7871_v44  ;;  %v3267_v28 = vadd.f32 %v7729_v9, %v5832_v58 }
 0x1f6   : > { %v5834_v32 = vpop.f32.mrf.mxu1  ;;  %v7876_v35 = vpop.f32.mrf.mxu0 }
 0x1f7   : > { %v5835_v24 = vadd.f32 %v5834_v32, %v5833_v12  ;;  %v7879_v6 = vadd.f32 %v3267_v28, %v7650_v25 }
 0x1f8   : > { %v5836_v33 = vpop.f32.mrf.mxu1  ;;  %v7881_v60 = vpop.f32.mrf.mxu0 }
 0x1f9   : > { %8109 = vst [vmem:[#allocation19_spill] sm:$0xff] %v7879_v6  ;;  %v3272_v59 = vadd.f32 %v5835_v24, %v7742_v11 }
 0x1fa   : > { %v5837_v34 = vpop.f32.mrf.mxu1  ;;  %v7884_v16 = vpop.f32.mrf.mxu0 }
 0x1fb   : > { %v5838_v13 = vadd.f32 %v5837_v34, %v5836_v33  ;;  %v7887_v44 = vadd.f32 %v3272_v59, %v7662_v49 }
 0x1fc   : > { %v5839_v9 = vpop.f32.mrf.mxu1  ;;  %v7889_v58 = vpop.f32.mrf.mxu0 }
 0x1fd   : > { %8110 = vst [vmem:[#allocation20_spill] sm:$0xff] %v7887_v44  ;;  %v3275_v12 = vadd.f32 %v5838_v13, %v7750_v30 }
 0x1fe   : > { %v5840_v32 = vpop.f32.mrf.mxu1  ;;  %v7892_v25 = vpop.f32.mrf.mxu0 }
 0x1ff   : > { %v5841_v28 = vadd.f32 %v5840_v32, %v5839_v9  ;;  %v7895_v6 = vadd.f32 %v3275_v12, %v7668_v27  ;;  %v5893_v27 = vadd.f32 %v7770_v40, %v7765_v38 }
 0x200   : > { %v7897_v11 = vpop.f32.mrf.mxu1  ;;  %v7899_v24 = vpop.f32.mrf.mxu0 }
 0x201   : > { %8111 = vst [vmem:[#allocation21_spill] sm:$0xff] %v7895_v6  ;;  %8112 = vst [vmem:[#allocation22_spill] sm:$0xff] %v7897_v11  ;;  %v3280_v33 = vadd.f32 %v7737_v50, %v5841_v28  ;;  %v5896_v50 = vadd.f32 %v7778_v46, %v7773_v5  ;;  %v5905_v5 = vadd.f32 %v7809_v45, %v7804_v18 }
 0x202   : > { %v7902_v49 = vpop.f32.mrf.mxu1  ;;  %v7904_v59 = vpop.f32.mrf.mxu0 }
 0x203   : > { %8113 = vst [vmem:[#allocation23_spill] sm:$0xff] %v7902_v49  ;;  %v7907_v34 = vadd.f32 %v3280_v33, %v7659_v54 }
 0x204   : > { %v6119_v30 = vpop.f32.mrf.mxu1  ;;  %v7909_v13 = vpop.f32.mrf.mxu0 }
 0x205   : > { %8114 = vst [vmem:[#allocation24_spill] sm:$0xff] %v7907_v34  ;;  %v4308_v32 = vadd.f32 %v6119_v30, %v5893_v27 }
 0x206   : > { %v4299_v9 = vpop.f32.mrf.mxu1  ;;  %v7913_v12 = vpop.f32.mrf.mxu0 }
 0x207   : > { %v4300_v28 = vadd.f32 %v7757_v4, %v4299_v9  ;;  %v4460_v38 = vadd.f32 %v4308_v32, %v7683_v26 }
 0x208   : > { %v6120_v6 = vpop.f32.mrf.mxu1  ;;  %v7918_v44 = vpop.f32.mrf.mxu0 }
 0x209   : > { %v4458_v54 = vadd.f32 %v4300_v28, %v7673_v47  ;;  %v4311_v33 = vadd.f32 %v6120_v6, %v5896_v50  ;;  %v5902_v50 = vadd.f32 %v7801_v39, %v7796_v51 }
 0x20a   : > { %v4302_v34 = vpop.f32.mrf.mxu1  ;;  %v7921_v49 = vpop.f32.mrf.mxu0 }
 0x20b   : > { %v4461_v40 = vadd.f32 %v4311_v33, %v7690_v42  ;;  %v4303_v11 = vadd.f32 %v7763_v0, %v4302_v34  ;;  %v5899_v42 = vadd.f32 %v7793_v20, %v7787_v3  ;;  %v5908_v0 = vadd.f32 %v7817_v43, %v7812_v31 }
 0x20c   : > { %v6123_v47 = vpop.f32.mrf.mxu1  ;;  %v7935_v4 = vpop.f32.mrf.mxu0  ;;  %v4752_v34 = vmul.f32 %v4458_v54, %v4458_v54  ;;  %v4754_v3 = vmul.f32 %v4460_v38, %v4460_v38 }
 0x20d   : > { %v5495_v46 = vpack.c.bf16 %v4461_v40, %v4460_v38  ;;  %v4459_v26 = vadd.f32 %v4303_v11, %v7678_v21  ;;  %v4324_v6 = vadd.f32 %v6123_v47, %v5905_v5  ;;  %v4755_v28 = vmul.f32 %v4461_v40, %v4461_v40 }
 0x20e   : > { %v4315_v18 = vpop.f32.mrf.mxu1  ;;  %v7942_v45 = vpop.f32.mrf.mxu0 }
 0x20f   : > { %5582 = vst [vmem:[%s7933_s27 + $0x8] sm:$0xff] %v5495_v46   ;;  %v5490_v30 = vpack.c.bf16 %v4459_v26, %v4458_v54  ;;  %v4715_v27 = vadd.f32 %v4459_v26, %v4458_v54  ;;  %v4753_v9 = vmul.f32 %v4459_v26, %v4459_v26  ;;  %v4316_v21 = vadd.f32 %v5899_v42, %v4315_v18 }
 0x210   : > { %v6124_v11 = vpop.f32.mrf.mxu1  ;;  %v7947_v32 = vpop.f32.mrf.mxu0  ;;  %v4464_v33 = vadd.f32 %v4324_v6, %v7711_v10  ;;  %v5911_v42 = vadd.f32 %v7825_v57, %v7820_v62 }
 0x211   : > { %5491 = vst [vmem:[%s7933_s27] sm:$0xff] %v5490_v30   ;;  %v4716_v20 = vadd.f32 %v4715_v27, %v4460_v38  ;;  %v4784_v31 = vadd.f32 %v4753_v9, %v4752_v34  ;;  %v4327_v43 = vadd.f32 %v6124_v11, %v5908_v0  ;;  %v4462_v5 = vadd.f32 %v4316_v21, %v7697_v48 }
 0x212   : > { %v4318_v47 = vpop.f32.mrf.mxu1  ;;  %v7952_v54 = vpop.f32.mrf.mxu0  ;;  %v5917_v38 = vadd.f32 %v7841_v15, %v7836_v2 }
 0x213   : > { %v4785_v46 = vadd.f32 %v4784_v31, %v4754_v3  ;;  %v4717_v26 = vadd.f32 %v4716_v20, %v4461_v40  ;;  %v4465_v39 = vadd.f32 %v4327_v43, %v7718_v56  ;;  %v4319_v51 = vadd.f32 %v5902_v50, %v4318_v47  ;;  %v8115_v47 = vld [vmem:[#allocation8_spill] sm:$0xff] }
 0x214   : > { %v6127_v0 = vpop.f32.mrf.mxu1  ;;  %v7959_v18 = vpop.f32.mrf.mxu0  ;;  %v4756_v48 = vmul.f32 %v4462_v5, %v4462_v5  ;;  %v5920_v56 = vadd.f32 %v7849_v7, %v7844_v1  ;;  %v4758_v20 = vmul.f32 %v4464_v33, %v4464_v33 }
 0x215   : > { %v4718_v10 = vadd.f32 %v4717_v26, %v4462_v5  ;;  %v4786_v6 = vadd.f32 %v4785_v46, %v4755_v28  ;;  %v5505_v34 = vpack.c.bf16 %v4465_v39, %v4464_v33  ;;  %v4463_v30 = vadd.f32 %v4319_v51, %v7704_v14 }
 0x216   : > { %v4331_v40 = vpop.f32.mrf.mxu1  ;;  %v7962_v27 = vpop.f32.mrf.mxu0  ;;  %v4340_v57 = vadd.f32 %v6127_v0, %v5917_v38  ;;  %v5914_v14 = vadd.f32 %v7833_v61, %v7828_v55  ;;  %v4759_v51 = vmul.f32 %v4465_v39, %v4465_v39 }
 0x217   : > { %v4787_v62 = vadd.f32 %v4786_v6, %v4756_v48  ;;  %5584 = vst [vmem:[%s7933_s27 + $0x18] sm:$0xff] %v5505_v34   ;;  %v4332_v2 = vadd.f32 %v5911_v42, %v4331_v40  ;;  %v5500_v15 = vpack.c.bf16 %v4463_v30, %v4462_v5  ;;  %v4719_v9 = vadd.f32 %v4718_v10, %v4463_v30  ;;  %v8116_v10 = vld [vmem:[#allocation6_spill] sm:$0xff] }
 0x218   : > { %v4757_v50 = vmul.f32 %v4463_v30, %v4463_v30  ;;  %v6128_v21 = vpop.f32.mrf.mxu1  ;;  %v7967_v11 = vpop.f32.mrf.mxu0  ;;  %v4468_v5 = vadd.f32 %v4340_v57, %v7740_v17  ;;  %v5932_v17 = vadd.f32 %v7881_v60, %v7876_v35  ;;  %v5926_v35 = vadd.f32 %v7865_v36, %v7860_v41 }
 0x219   : > { %v4343_v3 = vadd.f32 %v6128_v21, %v5920_v56  ;;  %5583 = vst [vmem:[%s7933_s27 + $0x10] sm:$0xff] %v5500_v15   ;;  %v4720_v31 = vadd.f32 %v4719_v9, %v4464_v33  ;;  %v4466_v1 = vadd.f32 %v4332_v2, %v7725_v19  ;;  %v5923_v33 = vadd.f32 %v7857_v52, %v7852_v8 }
 0x21a   : > { %v4788_v43 = vadd.f32 %v4787_v62, %v4757_v50  ;;  %v4334_v7 = vpop.f32.mrf.mxu1  ;;  %v7973_v28 = vpop.f32.mrf.mxu0  ;;  %v5929_v19 = vadd.f32 %v7873_v37, %v7868_v53  ;;  %v4762_v15 = vmul.f32 %v4468_v5, %v4468_v5 }
 0x21b   : > { %v4469_v46 = vadd.f32 %v4343_v3, %v8115_v47  ;;  %v4335_v26 = vadd.f32 %v5914_v14, %v4334_v7  ;;  %v4721_v38 = vadd.f32 %v4720_v31, %v4465_v39  ;;  %v4760_v34 = vmul.f32 %v4466_v1, %v4466_v1 }
 0x21c   : > { %v4789_v42 = vadd.f32 %v4788_v43, %v4758_v20  ;;  %v6131_v55 = vpop.f32.mrf.mxu1  ;;  %v7977_v61 = vpop.f32.mrf.mxu0 }
 0x21d   : > { %v5515_v0 = vpack.c.bf16 %v4469_v46, %v4468_v5  ;;  %v4467_v48 = vadd.f32 %v4335_v26, %v8116_v10  ;;  %v4722_v6 = vadd.f32 %v4721_v38, %v4466_v1  ;;  %v4356_v8 = vadd.f32 %v6131_v55, %v5929_v19 }
 0x21e   : > { %v4790_v30 = vadd.f32 %v4789_v42, %v4759_v51  ;;  %v4347_v39 = vpop.f32.mrf.mxu1  ;;  %v7986_v40 = vpop.f32.mrf.mxu0  ;;  %v8117_v51 = vld [vmem:[#allocation4_spill] sm:$0xff] }
 0x21f   : > { %5586 = vst [vmem:[%s7933_s27 + $0x28] sm:$0xff] %v5515_v0   ;;  %v5510_v56 = vpack.c.bf16 %v4467_v48, %v4466_v1  ;;  %v4761_v62 = vmul.f32 %v4467_v48, %v4467_v48  ;;  %v4348_v52 = vadd.f32 %v5923_v33, %v4347_v39  ;;  %v4723_v53 = vadd.f32 %v4722_v6, %v4467_v48 }
 0x220   : > { %v4791_v57 = vadd.f32 %v4790_v30, %v4760_v34  ;;  %v6132_v37 = vpop.f32.mrf.mxu1  ;;  %v7989_v2 = vpop.f32.mrf.mxu0  ;;  %v4472_v20 = vadd.f32 %v4356_v8, %v7768_v22  ;;  %v4763_v1 = vmul.f32 %v4469_v46, %v4469_v46  ;;  %v5944_v22 = vadd.f32 %v7918_v44, %v7913_v12 }
 0x221   : > { %5585 = vst [vmem:[%s7933_s27 + $0x20] sm:$0xff] %v5510_v56   ;;  %v4359_v60 = vadd.f32 %v6132_v37, %v5932_v17  ;;  %v4724_v9 = vadd.f32 %v4723_v53, %v4468_v5  ;;  %v4470_v21 = vadd.f32 %v4348_v52, %v7754_v63  ;;  %v5935_v5 = vadd.f32 %v7889_v58, %v7884_v16  ;;  %v8119_v52 = vld [vmem:[#allocation11_spill] sm:$0xff] }
 0x222   : > { %v4792_v50 = vadd.f32 %v4791_v57, %v4761_v62  ;;  %v4350_v14 = vpop.f32.mrf.mxu1  ;;  %v7995_v3 = vpop.f32.mrf.mxu0  ;;  %v5941_v63 = vadd.f32 %v7909_v13, %v7904_v59  ;;  %v5938_v17 = vadd.f32 %v7899_v24, %v7892_v25  ;;  %v4766_v12 = vmul.f32 %v4472_v20, %v4472_v20  ;;  %v8118_v62 = vld [vmem:[#allocation10_spill] sm:$0xff] }
 0x223   : > { %v4473_v31 = vadd.f32 %v4359_v60, %v7776_v29  ;;  %v4351_v43 = vadd.f32 %v5926_v35, %v4350_v14  ;;  %v4725_v47 = vadd.f32 %v4724_v9, %v4469_v46  ;;  %v4764_v38 = vmul.f32 %v4470_v21, %v4470_v21 }
 0x224   : > { %v4793_v7 = vadd.f32 %v4792_v50, %v4762_v15  ;;  %v6135_v41 = vpop.f32.mrf.mxu1  ;;  %v7999_v36 = vpop.f32.mrf.mxu0  ;;  %v5947_v15 = vadd.f32 %v7935_v4, %v7921_v49  ;;  %v8120_v50 = vld [vmem:[#allocation9_spill] sm:$0xff]  ;;  %v5956_v14 = vadd.f32 %v7967_v11, %v7962_v27  ;;  %v5950_v27 = vadd.f32 %v7947_v32, %v7942_v45 }
 0x225   : > { %v5525_v26 = vpack.c.bf16 %v4473_v31, %v4472_v20  ;;  %v4471_v42 = vadd.f32 %v4351_v43, %v8117_v51  ;;  %v4726_v29 = vadd.f32 %v4725_v47, %v4470_v21  ;;  %v4372_v16 = vadd.f32 %v6135_v41, %v5941_v63 }
 0x226   : > { %v4794_v55 = vadd.f32 %v4793_v7, %v4763_v1  ;;  %v4363_v46 = vpop.f32.mrf.mxu1  ;;  %v8008_v33 = vpop.f32.mrf.mxu0  ;;  %v4767_v37 = vmul.f32 %v4473_v31, %v4473_v31  ;;  %v5959_v32 = vadd.f32 %v7977_v61, %v7973_v28  ;;  %v8125_v28 = vld [vmem:[#allocation22_spill] sm:$0xff]  ;;  %v8126_v61 = vld [vmem:[#allocation23_spill] sm:$0xff] }
 0x227   : > { %5588 = vst [vmem:[%s7933_s27 + $0x38] sm:$0xff] %v5525_v26   ;;  %v5520_v19 = vpack.c.bf16 %v4471_v42, %v4470_v21  ;;  %v4765_v0 = vmul.f32 %v4471_v42, %v4471_v42  ;;  %v4364_v58 = vadd.f32 %v5935_v5, %v4363_v46  ;;  %v4727_v59 = vadd.f32 %v4726_v29, %v4471_v42  ;;  %v8122_v46 = vld [vmem:[#allocation14_spill] sm:$0xff] }
 0x228   : > { %v4795_v10 = vadd.f32 %v4794_v55, %v4764_v38  ;;  %v6136_v13 = vpop.f32.mrf.mxu1  ;;  %v5967_v48 = vpop.f32.mrf.mxu0  ;;  %v4476_v8 = vadd.f32 %v4372_v16, %v8118_v62 }
 0x229   : > { %5587 = vst [vmem:[%s7933_s27 + $0x30] sm:$0xff] %v5520_v19   ;;  %v4375_v44 = vadd.f32 %v6136_v13, %v5944_v22  ;;  %v4728_v6 = vadd.f32 %v4727_v59, %v4472_v20  ;;  %v4474_v30 = vadd.f32 %v4364_v58, %v7791_v23  ;;  %v5953_v23 = vadd.f32 %v7959_v18, %v7952_v54  ;;  %v8121_v22 = vld [vmem:[#allocation12_spill] sm:$0xff] }
 0x22a   : > { %v4796_v34 = vadd.f32 %v4795_v10, %v4765_v0  ;;  %v4366_v39 = vpop.f32.mrf.mxu1  ;;  %v8015_v56 = vpop.f32.mrf.mxu0  ;;  %v4770_v26 = vmul.f32 %v4476_v8, %v4476_v8  ;;  %v8123_v0 = vld [vmem:[#allocation15_spill] sm:$0xff] }
 0x22b   : > { %v4477_v57 = vadd.f32 %v4375_v44, %v8119_v52  ;;  %v4367_v53 = vadd.f32 %v5938_v17, %v4366_v39  ;;  %v4729_v60 = vadd.f32 %v4728_v6, %v4473_v31  ;;  %v4768_v43 = vmul.f32 %v4474_v30, %v4474_v30  ;;  %v8124_v6 = vld [vmem:[#allocation13_spill] sm:$0xff] }
 0x22c   : > { %v4797_v35 = vadd.f32 %v4796_v34, %v4766_v12  ;;  %v6139_v25 = vpop.f32.mrf.mxu1  ;;  %v8019_v24 = vpop.f32.mrf.mxu0  ;;  %v5965_v44 = vadd.f32 %v7999_v36, %v7995_v3 }
 0x22d   : > { %v5535_v9 = vpack.c.bf16 %v4477_v57, %v4476_v8  ;;  %v4475_v21 = vadd.f32 %v4367_v53, %v8120_v50  ;;  %v4730_v20 = vadd.f32 %v4729_v60, %v4474_v30  ;;  %v4388_v49 = vadd.f32 %v6139_v25, %v5953_v23 }
 0x22e   : > { %v4798_v1 = vadd.f32 %v4797_v35, %v4767_v37  ;;  %v4379_v31 = vpop.f32.mrf.mxu1  ;;  %v8028_v7 = vpop.f32.mrf.mxu0  ;;  %v4771_v10 = vmul.f32 %v4477_v57, %v4477_v57  ;;  %v5844_v25 = vadd.f32 %v8126_v61, %v8125_v28 }
 0x22f   : > { %5590 = vst [vmem:[%s7933_s27 + $0x48] sm:$0xff] %v5535_v9   ;;  %v5530_v47 = vpack.c.bf16 %v4475_v21, %v4474_v30  ;;  %v4769_v41 = vmul.f32 %v4475_v21, %v4475_v21  ;;  %v4380_v4 = vadd.f32 %v5947_v15, %v4379_v31  ;;  %v4731_v54 = vadd.f32 %v4730_v20, %v4475_v21  ;;  %v8127_v21 = vld [vmem:[#allocation16_spill] sm:$0xff] }
 0x230   : > { %v4799_v5 = vadd.f32 %v4798_v1, %v4768_v43  ;;  %v6140_v18 = vpop.f32.mrf.mxu1  ;;  %v8031_v63 = vpop.f32.mrf.mxu0  ;;  %v4480_v19 = vadd.f32 %v4388_v49, %v8122_v46  ;;  %v5968_v30 = vadd.f32 %v5967_v48, %v8008_v33  ;;  %v5962_v33 = vadd.f32 %v7989_v2, %v7986_v40  ;;  %v8128_v1 = vld [vmem:[#allocation18_spill] sm:$0xff] }
 0x231   : > { %5589 = vst [vmem:[%s7933_s27 + $0x40] sm:$0xff] %v5530_v47   ;;  %v4391_v11 = vadd.f32 %v6140_v18, %v5956_v14  ;;  %v4732_v51 = vadd.f32 %v4731_v54, %v4476_v8  ;;  %v4478_v29 = vadd.f32 %v4380_v4, %v8121_v22  ;;  %v8129_v47 = vld [vmem:[#allocation19_spill] sm:$0xff] }
 0x232   : > { %v4800_v42 = vadd.f32 %v4799_v5, %v4769_v41  ;;  %v4382_v38 = vpop.f32.mrf.mxu1  ;;  %v5975_v55 = vpop.f32.mrf.mxu0  ;;  %v4774_v23 = vmul.f32 %v4480_v19, %v4480_v19  ;;  %v8130_v5 = vld [vmem:[#allocation7_spill] sm:$0xff] }
 0x233   : > { %v4481_v16 = vadd.f32 %v4391_v11, %v8123_v0  ;;  %v4383_v58 = vadd.f32 %v5950_v27, %v4382_v38  ;;  %v4733_v13 = vadd.f32 %v4732_v51, %v4477_v57  ;;  %v4772_v62 = vmul.f32 %v4478_v29, %v4478_v29  ;;  %v8131_v51 = vld [vmem:[#allocation17_spill] sm:$0xff] }
 0x234   : > { %v4801_v59 = vadd.f32 %v4800_v42, %v4770_v26  ;;  %v6143_v17 = vpop.f32.mrf.mxu1  ;;  %v5976_v45 = vpop.f32.mrf.mxu0  ;;  %v3283_v54 = vadd.f32 %v8130_v5, %v5844_v25  ;;  %v5971_v11 = vadd.f32 %v8019_v24, %v8015_v56  ;;  %v5974_v56 = vadd.f32 %v8031_v63, %v8028_v7  ;;  %v8132_v24 = vld [vmem:[#allocation5_spill] sm:$0xff] }
 0x235   : > { %v5545_v12 = vpack.c.bf16 %v4481_v16, %v4480_v19  ;;  %v4479_v34 = vadd.f32 %v4383_v58, %v8124_v6  ;;  %v4734_v39 = vadd.f32 %v4733_v13, %v4478_v29  ;;  %v4404_v35 = vadd.f32 %v6143_v17, %v5965_v44  ;;  %v8133_v6 = vld [vmem:[#allocation20_spill] sm:$0xff]  ;;  %v8135_v63 = vld [vmem:[#allocation21_spill] sm:$0xff] }
 0x236   : > { %v4802_v8 = vadd.f32 %v4801_v59, %v4771_v10  ;;  %v4395_v52 = vpop.f32.mrf.mxu1  ;;  %v5978_v53 = vpop.f32.mrf.mxu0  ;;  %v5977_v49 = vadd.f32 %v5976_v45, %v5975_v55  ;;  %v4775_v18 = vmul.f32 %v4481_v16, %v4481_v16  ;;  %v3349_v17 = vadd.f32 %v3283_v54, %v8132_v24 }
 0x237   : > { %5592 = vst [vmem:[%s7933_s27 + $0x58] sm:$0xff] %v5545_v12   ;;  %v5540_v57 = vpack.c.bf16 %v4479_v34, %v4478_v29  ;;  %v4773_v37 = vmul.f32 %v4479_v34, %v4479_v34  ;;  %v4396_v60 = vadd.f32 %v5959_v32, %v4395_v52  ;;  %v4735_v36 = vadd.f32 %v4734_v39, %v4479_v34  ;;  %v8134_v39 = vld [vmem:[#allocation24_spill] sm:$0xff] }
 0x238   : > { %v4803_v3 = vadd.f32 %v4802_v8, %v4772_v62  ;;  %v6144_v15 = vpop.f32.mrf.mxu1  ;;  %v5979_v43 = vpop.f32.mrf.mxu0  ;;  %v4484_v31 = vadd.f32 %v4404_v35, %v8128_v1 }
 0x239   : > { %5591 = vst [vmem:[%s7933_s27 + $0x50] sm:$0xff] %v5540_v57   ;;  %v4407_v48 = vadd.f32 %v6144_v15, %v5968_v30  ;;  %v4736_v9 = vadd.f32 %v4735_v36, %v4480_v19  ;;  %v4482_v14 = vadd.f32 %v4396_v60, %v8127_v21  ;;  %v5980_v22 = vadd.f32 %v5979_v43, %v5978_v53 }
 0x23a   : > { %v4804_v50 = vadd.f32 %v4803_v3, %v4773_v37  ;;  %v4398_v20 = vpop.f32.mrf.mxu1  ;;  %v4778_v32 = vmul.f32 %v4484_v31, %v4484_v31 }
 0x23b   : > { %v4485_v41 = vadd.f32 %v4407_v48, %v8129_v47  ;;  %v4399_v4 = vadd.f32 %v5962_v33, %v4398_v20  ;;  %v4737_v2 = vadd.f32 %v4736_v9, %v4481_v16  ;;  %v4776_v38 = vmul.f32 %v4482_v14, %v4482_v14 }
 0x23c   : > { %v4805_v40 = vadd.f32 %v4804_v50, %v4774_v23  ;;  %v6147_v27 = vpop.f32.mrf.mxu1 }
 0x23d   : > { %v5555_v26 = vpack.c.bf16 %v4485_v41, %v4484_v31  ;;  %v4483_v42 = vadd.f32 %v4399_v4, %v8131_v51  ;;  %v4738_v29 = vadd.f32 %v4737_v2, %v4482_v14  ;;  %v4420_v58 = vadd.f32 %v6147_v27, %v5977_v49 }
 0x23e   : > { %v4806_v46 = vadd.f32 %v4805_v40, %v4775_v18  ;;  %v4411_v19 = vpop.f32.mrf.mxu1  ;;  %v4779_v53 = vmul.f32 %v4485_v41, %v4485_v41  ;;  %v4714_v18 = vld [vmem:[%s7785_s25] sm:$0x3] }
 0x23f   : > { %5594 = vst [vmem:[%s7933_s27 + $0x68] sm:$0xff] %v5555_v26   ;;  %v5550_v55 = vpack.c.bf16 %v4483_v42, %v4482_v14  ;;  %v4777_v0 = vmul.f32 %v4483_v42, %v4483_v42  ;;  %v4412_v10 = vadd.f32 %v5971_v11, %v4411_v19  ;;  %v4739_v16 = vadd.f32 %v4738_v29, %v4483_v42 }
 0x240   : > { %v4807_v59 = vadd.f32 %v4806_v46, %v4776_v38  ;;  %v6148_v13 = vpop.f32.mrf.mxu1  ;;  %v4488_v62 = vadd.f32 %v4420_v58, %v8134_v39 }
 0x241   : > { %5593 = vst [vmem:[%s7933_s27 + $0x60] sm:$0xff] %v5550_v55   ;;  %v4423_v45 = vadd.f32 %v6148_v13, %v5980_v22  ;;  %v4740_v44 = vadd.f32 %v4739_v16, %v4484_v31  ;;  %v4486_v34 = vadd.f32 %v4412_v10, %v8133_v6 }
 0x242   : > { %v4808_v12 = vadd.f32 %v4807_v59, %v4777_v0  ;;  %v4414_v30 = vpop.f32.mrf.mxu1  ;;  %v4782_v33 = vmul.f32 %v4488_v62, %v4488_v62 }
 0x243   : > { %v4489_v8 = vadd.f32 %v4423_v45, %v3349_v17  ;;  %v4415_v52 = vadd.f32 %v5974_v56, %v4414_v30  ;;  %v4741_v37 = vadd.f32 %v4740_v44, %v4485_v41  ;;  %v4780_v28 = vmul.f32 %v4486_v34, %v4486_v34 }
 0x244   : > { %v4809_v57 = vadd.f32 %v4808_v12, %v4778_v32 }
 0x245   : > { %v5565_v7 = vpack.c.bf16 %v4489_v8, %v4488_v62  ;;  %v4487_v35 = vadd.f32 %v4415_v52, %v8135_v63  ;;  %v4742_v60 = vadd.f32 %v4741_v37, %v4486_v34  ;;  %v4783_v9 = vmul.f32 %v4489_v8, %v4489_v8 }
 0x246   : > { %v4810_v61 = vadd.f32 %v4809_v57, %v4779_v53 }
 0x247   : > { %5596 = vst [vmem:[%s7933_s27 + $0x78] sm:$0xff] %v5565_v7   ;;  %v5560_v25 = vpack.c.bf16 %v4487_v35, %v4486_v34  ;;  %v4781_v3 = vmul.f32 %v4487_v35, %v4487_v35  ;;  %v4743_v15 = vadd.f32 %v4742_v60, %v4487_v35 }
 0x248   : > { %v4811_v36 = vadd.f32 %v4810_v61, %v4780_v28 }
 0x249   : > { %5595 = vst [vmem:[%s7933_s27 + $0x70] sm:$0xff] %v5560_v25   ;;  %v4744_v48 = vadd.f32 %v4743_v15, %v4488_v62 }
 0x24a   : > { %v4812_v23 = vadd.f32 %v4811_v36, %v4781_v3 }
 0x24b   : > { %v4745_v50 = vadd.f32 %v4744_v48, %v4489_v8 }
 0x24c   : > { %v4813_v21 = vadd.f32 %v4812_v23, %v4782_v33 }
 0x24d   : > { %v4746_v14 = vrot.slane %v4745_v50, 4 }
 0x24e   : > { %v4814_v20 = vadd.f32 %v4813_v21, %v4783_v9 }
 0x24f   : > { %v4747_v43 = vadd.f32 %v4746_v14, %v4745_v50 }
 0x250   : > { %v4815_v1 = vrot.slane %v4814_v20, 4 }
 0x251   : > { %v4748_v31 = vrot.slane %v4747_v43, 2 }
 0x252   : > { %v4816_v47 = vadd.f32 %v4815_v1, %v4814_v20 }
 0x253   : > { %v4749_v41 = vadd.f32 %v4748_v31, %v4747_v43 }
 0x254   : > { %v4817_v49 = vrot.slane %v4816_v47, 2 }
 0x255   : > { %v4750_v4 = vrot.slane %v4749_v41, 1 }
 0x256   : > { %v4818_v5 = vadd.f32 %v4817_v49, %v4816_v47 }
 0x257   : > { %v4751_v40 = vadd.f32 %v4750_v4, %v4749_v41 }
 0x258   : > { %v4819_v54 = vrot.slane %v4818_v5, 1 }
 0x25a   : > { %v4820_v2 = vadd.f32 %v4819_v54, %v4818_v5 }
 0x25c   : > { %v4822_v27 = vsel %vm926_vm2, %v4751_v40, %v4820_v2 }
 0x25d   : > { %v4823_v11 = vadd.f32 %v4822_v27, %v4714_v18 }
 0x25f   : > { %4824 = vst [vmem:[%s7785_s25] sm:$0x3] %v4823_v11 }
 0x260 PF: > { %s16_s20 = sadd.s32 1, %s6437_s20   ;;  %s8136_s18 = smov %s6433_s19 }
 0x261   : > { %p13_p5 = scmp.ge.s32.totalorder %s16_s20, 4   ;;  %s8137_s19 = smov %s8139_s21 }
 0x263   :  { %15 = sbr.rel (!%p13_p5) target bundleno = 2 (0x2), region = 98 }

// kernel: residual_block_forward.3
= control target key start
LH: loop header
LB: loop body
LE: loop exit
PB: predicated region body
PF: predicated region fallthrough
CT: control target
= control target key end

     0   :  { %s6018_s18 = smov 0   ;;  %s6020_s19 = smov 0   ;;  %s7515_s0 = inlined_call_operand.vmem [shape: bf16[2,16,16,128], index: 0, kind: input, shape index: {}]   ;;  %s7516_s1 = inlined_call_operand.vmem [shape: bf16[3,384,128], index: 1, kind: input, shape index: {}]   ;;  %s7517_s2 = inlined_call_operand.vmem [shape: f32[1,128], index: 2, kind: input, shape index: {}]   ;;  %s7518_s3 = inlined_call_operand.vmem [shape: f32[1,128], index: 3, kind: input, shape index: {}]   ;;  %s7519_s4 = inlined_call_operand.vmem [shape: bf16[2,16,16,128], index: 4, kind: output, shape index: {0}]   ;;  %s7520_s5 = inlined_call_operand.vmem [shape: f32[2,2,128], index: 5, kind: output, shape index: {1}]  }
   0x1   :  { %s6022_s20 = smov 0  }
   0x2 LB: > { %s28_s2 = sadd.s32 1, %s5980_s19  ;;  %p4661_p0 = scmp.ge.s32.totalorder %s5984_s20, 1  ;;  %s5984_s20 = sphi %s6022_s20, %s16_s20   ;;  %s5980_s19 = sphi %s6020_s19, %s7566_s19   ;;  %s5976_s18 = sphi %s6018_s18, %s7565_s18  }
   0x3   : > { %p30_p1 = scmp.ge.s32.totalorder %s28_s2, 2  ;;  %p204_p2 = scmp.lt.s32.totalorder %s5984_s20, 3 }
   0x5   : > { %s7568_s2 = smov (%p30_p1, %s28_s2), 0  ;;  %p205_p3 = pnand %p4661_p0, %p204_p2 }
   0x7   : > { %208 = sbr.rel (%p205_p3) target bundleno = 585 (0x249), region = 36 }
   0xc   : > { %v5740_v0 = vld [vmem:[%s7516_s1 + $0x78] sm:$0xff]   ;;  %v5986_v2 = vmov 0   ;;  %v5742_v3 = vld [vmem:[%s7516_s1 + $0x70] sm:$0xff]   ;;  %v5744_v5 = vld [vmem:[%s7516_s1 + $0x68] sm:$0xff]   ;;  %p241_p4 = scmp.lt.s32.totalorder %s5976_s18, 1  ;;  %vm681_vm0 = vcmask 1043456  }
   0xd   : > { %v5741_v1 = vld [vmem:[%s7516_s1 + $0x38] sm:$0xff]   ;;  %268 = vst [vmem:[#allocation2] sm:$0xf] %v5986_v2  ;;  %269 = vst [vmem:[#allocation2 + $0x4] sm:$0xf] %v5986_v2  ;;  %5146 = vmatprep.subr.bf16.mxu0 %v5740_v0  ;;  %5698 = vmatprep.subr.bf16.mxu1 %v5740_v0  ;;  %v5743_v4 = vld [vmem:[%s7516_s1 + $0x30] sm:$0xff]  }
   0xe   : > { %270 = vst [vmem:[#allocation2 + $0x8] sm:$0x1] %v5986_v2  ;;  %271 = vst [vmem:[#allocation2 + $0xc] sm:$0xf] %v5986_v2  ;;  %5147 = vmatpush3.bf16.msra.mxu0 %v5741_v1  ;;  %5706 = vmatpush3.bf16.msra.mxu1 %v5741_v1  ;;  %v5745_v6 = vld [vmem:[%s7516_s1 + $0x28] sm:$0xff]   ;;  %v5746_v7 = vld [vmem:[%s7516_s1 + $0x60] sm:$0xff]  }
   0xf   : > { %272 = vst [vmem:[#allocation2 + $0x10] sm:$0xf] %v5986_v2  ;;  %273 = vst [vmem:[#allocation2 + $0x14] sm:$0x1] %v5986_v2  ;;  %5148 = vmatprep.subr.bf16.mxu0 %v5742_v3  ;;  %5699 = vmatprep.subr.bf16.mxu1 %v5742_v3  ;;  %s7570_s18 = smov (!%p241_p4, %s5976_s18), 1  ;;  %v5747_v8 = vld [vmem:[%s7516_s1 + $0x20] sm:$0xff]  }
  0x10   : > { %274 = vst [vmem:[#allocation2 + $0x18] sm:$0xf] %v5986_v2  ;;  %275 = vst [vmem:[#allocation2 + $0x1c] sm:$0xf] %v5986_v2  ;;  %v5748_v9 = vld [vmem:[%s7516_s1 + $0x58] sm:$0xff]   ;;  %s5017_s13 = sshll.u32 %s7570_s18, 7 }
  0x11   : > { %276 = vst [vmem:[#allocation2 + $0x20] sm:$0x1] %v5986_v2  ;;  %277 = vst [vmem:[#allocation2 + $0x24] sm:$0xf] %v5986_v2  ;;  %v5749_v10 = vld [vmem:[%s7516_s1 + $0x18] sm:$0xff]   ;;  %v5750_v11 = vld [vmem:[%s7516_s1 + $0x50] sm:$0xff]   ;;  %s6081_s22 = scalar_lea.vmem %s7515_s0, %s5017_s13  ;;  %s7376_s24 = scalar_lea.vmem %s7519_s4, %s5017_s13 }
  0x12   : > { %278 = vst [vmem:[#allocation2 + $0x28] sm:$0xf] %v5986_v2  ;;  %279 = vst [vmem:[#allocation2 + $0x2c] sm:$0x1] %v5986_v2  ;;  %5149 = vmatpush3.bf16.msra.mxu0 %v5743_v4  ;;  %5707 = vmatpush3.bf16.msra.mxu1 %v5743_v4  ;;  %vm1081_vm1 = vsmask.f32 7424 }
  0x13   : > { %280 = vst [vmem:[#allocation2 + $0x30] sm:$0xf] %v5986_v2  ;;  %281 = vst [vmem:[#allocation2 + $0x34] sm:$0xf] %v5986_v2  ;;  %5150 = vmatprep.subr.bf16.mxu0 %v5744_v5  ;;  %5700 = vmatprep.subr.bf16.mxu1 %v5744_v5  ;;  %vm688_vm2 = vcmask 1040384   ;;  %v5751_v18 = vld [vmem:[%s7516_s1 + $0x10] sm:$0xff]  }
  0x14   : > { %282 = vst [vmem:[#allocation2 + $0x38] sm:$0x1] %v5986_v2  ;;  %283 = vst [vmem:[#allocation2 + $0x3c] sm:$0xf] %v5986_v2  ;;  %v873_v12 = vld [vmem:[#allocation2] sm:$0xf] }
  0x15   : > { %284 = vst [vmem:[#allocation2 + $0x40] sm:$0xf] %v5986_v2  ;;  %285 = vst [vmem:[#allocation2 + $0x44] sm:$0x1] %v5986_v2  ;;  %v6083_v13 = vld [vmem:[#allocation2 + $0x4] sm:$0xf] }
  0x16   : > { %286 = vst [vmem:[#allocation2 + $0x48] sm:$0xf] %v5986_v2  ;;  %287 = vst [vmem:[#allocation2 + $0x4c] sm:$0xf] %v5986_v2  ;;  %5151 = vmatpush3.bf16.msra.mxu0 %v5745_v6  ;;  %5708 = vmatpush3.bf16.msra.mxu1 %v5745_v6  ;;  %v6086_v14 = vcombine.low %v873_v12, %v6083_v13  ;;  %v347_v16 = vld [vmem:[%s6081_s22 + $0x58] sm:$0xf] }
  0x17   : > { %288 = vst [vmem:[#allocation2 + $0x50] sm:$0x1] %v5986_v2  ;;  %289 = vst [vmem:[#allocation2 + $0x54] sm:$0xf] %v5986_v2  ;;  %5152 = vmatprep.subr.bf16.mxu0 %v5746_v7  ;;  %5701 = vmatprep.subr.bf16.mxu1 %v5746_v7  ;;  %v348_v17 = vld [vmem:[%s6081_s22 + $0x5c] sm:$0xf] }
  0x18   : > { %290 = vst [vmem:[#allocation2 + $0x58] sm:$0xf] %v5986_v2  ;;  %291 = vst [vmem:[#allocation2 + $0x5c] sm:$0x1] %v5986_v2  ;;  %vm357_vm3 = vsmask.f32 256 }
  0x19   : > { %292 = vst [vmem:[#allocation2 + $0x60] sm:$0xf] %v5986_v2  ;;  %293 = vst [vmem:[#allocation2 + $0x64] sm:$0xf] %v5986_v2  ;;  %v1083_v19 = vshrl.u32 %v6086_v14, 16  ;;  %v1085_v20 = vshll.u32 %v6086_v14, 16 }
  0x1a   : > { %294 = vst [vmem:[#allocation2 + $0x68] sm:$0x1] %v5986_v2  ;;  %295 = vst [vmem:[#allocation2 + $0x6c] sm:$0xf] %v5986_v2  ;;  %5153 = vmatpush3.bf16.msra.mxu0 %v5747_v8  ;;  %5709 = vmatpush3.bf16.msra.mxu1 %v5747_v8  ;;  %vm358_vm4 = vsmask.f32 4368 }
  0x1b   : > { %296 = vst [vmem:[#allocation2 + $0x70] sm:$0xf] %v5986_v2  ;;  %297 = vst [vmem:[#allocation2 + $0x74] sm:$0x1] %v5986_v2  ;;  %5154 = vmatprep.subr.bf16.mxu0 %v5748_v9  ;;  %5702 = vmatprep.subr.bf16.mxu1 %v5748_v9  ;;  %v5752_v22 = vld [vmem:[%s7516_s1 + $0x48] sm:$0xff]   ;;  %v548_v23 = vshrl.u32 %v347_v16, 16 }
  0x1c   : > { %298 = vst [vmem:[#allocation2 + $0x78] sm:$0xf] %v5986_v2  ;;  %299 = vst [vmem:[#allocation2 + $0x7c] sm:$0xf] %v5986_v2  ;;  %v551_v24 = vshll.u32 %v347_v16, 16  ;;  %v556_v25 = vshrl.u32 %v348_v17, 16 }
  0x1d   : > { %300 = vst [vmem:[#allocation2 + $0x80] sm:$0x1] %v5986_v2  ;;  %301 = vst [vmem:[#allocation2 + $0x84] sm:$0xf] %v5986_v2  ;;  %v559_v26 = vshll.u32 %v348_v17, 16  ;;  %v5753_v28 = vld [vmem:[%s7516_s1 + $0x8] sm:$0xff]  }
  0x1e   : > { %302 = vst [vmem:[#allocation2 + $0x88] sm:$0xf] %v5986_v2  ;;  %303 = vst [vmem:[#allocation2 + $0x8c] sm:$0x1] %v5986_v2  ;;  %5155 = vmatpush3.bf16.msra.mxu0 %v5749_v10  ;;  %5710 = vmatpush3.bf16.msra.mxu1 %v5749_v10  ;;  %v1087_v29 = vrot.slane %v1085_v20, 1  ;;  %v550_v34 = vrot.slane %v548_v23, 7 }
  0x1f   : > { %304 = vst [vmem:[#allocation2 + $0x90] sm:$0xf] %v5986_v2  ;;  %305 = vst [vmem:[#allocation2 + $0x94] sm:$0xf] %v5986_v2  ;;  %5156 = vmatprep.subr.bf16.mxu0 %v5750_v11  ;;  %5703 = vmatprep.subr.bf16.mxu1 %v5750_v11  ;;  %vm682_vm7 = vsmask.f32 7938 }
  0x20   : > { %306 = vst [vmem:[#allocation2 + $0x98] sm:$0x1] %v5986_v2  ;;  %307 = vst [vmem:[#allocation2 + $0x9c] sm:$0xf] %v5986_v2  ;;  %v558_v35 = vrot.slane %v556_v25, 7  ;;  %v1088_v37 = vor.u32 %v1087_v29, %v1083_v19  ;;  %v5754_v38 = vld [vmem:[%s7516_s1 + $0x40] sm:$0xff]   ;;  %v553_v39 = vor.u32 %v551_v24, %v550_v34 }
  0x21   : > { %308 = vst [vmem:[#allocation2 + $0xa0] sm:$0xf] %v5986_v2  ;;  %309 = vst [vmem:[#allocation2 + $0xa4] sm:$0x1] %v5986_v2  ;;  %v554_v40 = vrot.slane %v550_v34, 4  ;;  %v5755_v43 = vld [vmem:[%s7516_s1] sm:$0xff]  }
  0x22   : > { %310 = vst [vmem:[#allocation2 + $0xa8] sm:$0xf] %v5986_v2  ;;  %311 = vst [vmem:[#allocation2 + $0xac] sm:$0xf] %v5986_v2  ;;  %5157 = vmatpush3.bf16.msra.mxu0 %v5751_v18  ;;  %5711 = vmatpush3.bf16.msra.mxu1 %v5751_v18  ;;  %v561_v41 = vor.u32 %v559_v26, %v558_v35  ;;  %v563_v42 = vrot.slane %v558_v35, 4  ;;  %v6138_v50 = vld [vmem:[%s7516_s1 + $0xb8] sm:$0xff]  }
  0x23   : > { %312 = vst [vmem:[#allocation2 + $0xb0] sm:$0x1] %v5986_v2  ;;  %313 = vst [vmem:[#allocation2 + $0xb4] sm:$0xf] %v5986_v2  ;;  %5158 = vmatprep.subr.bf16.mxu0 %v5752_v22  ;;  %5704 = vmatprep.subr.bf16.mxu1 %v5752_v22  ;;  %v325_v45 = vld [vmem:[%s6081_s22] sm:$0xf] }
  0x24   : > { %314 = vst [vmem:[#allocation2 + $0xb8] sm:$0xf] %v5986_v2  ;;  %315 = vst [vmem:[#allocation2 + $0xbc] sm:$0x1] %v5986_v2  ;;  %v326_v46 = vld [vmem:[%s6081_s22 + $0x4] sm:$0xf] }
  0x25   : > { %316 = vst [vmem:[#allocation2 + $0xc0] sm:$0xf] %v5986_v2  ;;  %317 = vst [vmem:[#allocation2 + $0xc4] sm:$0xf] %v5986_v2  ;;  %v5761_v51 = vld [vmem:[%s7516_s1 + $0x178] sm:$0xff]   ;;  %v361_v52 = vshrl.u32 %v325_v45, 16 }
  0x26   : > { %318 = vst [vmem:[#allocation2 + $0xc8] sm:$0x1] %v5986_v2  ;;  %319 = vst [vmem:[#allocation2 + $0xcc] sm:$0xf] %v5986_v2  ;;  %v763_v32 = vld [vmem:[#allocation2 + $0x90] sm:$0xf]  ;;  %5159 = vmatpush3.bf16.msra.mxu0 %v5753_v28  ;;  %5712 = vmatpush3.bf16.msra.mxu1 %v5753_v28 }
  0x27   : > { %320 = vst [vmem:[#allocation2 + $0xd0] sm:$0xf] %v5986_v2  ;;  %321 = vst [vmem:[#allocation2 + $0xd4] sm:$0x1] %v5986_v2  ;;  %v767_v33 = vld [vmem:[#allocation2 + $0x98] sm:$0x1]  ;;  %5160 = vmatprep.subr.bf16.mxu0 %v5754_v38  ;;  %5705 = vmatprep.subr.bf16.mxu1 %v5754_v38 }
  0x28   : > { %v6088_v15 = vld [vmem:[#allocation2 + $0x8] ss:$0 sps:$4 sm:$0x11]   ;;  %vm6103_vm5 = vmand %vm688_vm2, %vm357_vm3  ;;  %v349_v53 = vld [vmem:[%s6081_s22 + $0x60] sm:$0xf]  ;;  %v364_v54 = vshll.u32 %v325_v45, 16 }
  0x29   : > { %v1090_v21 = vshll.u32 %v6088_v15, 16  ;;  %vm6111_vm6 = vmor %vm357_vm3, %vm358_vm4  ;;  %v768_v49 = vsel %vm6103_vm5, %v563_v42, %v767_v33  ;;  %v369_v55 = vshrl.u32 %v326_v46, 16  ;;  %v372_v56 = vshll.u32 %v326_v46, 16  ;;  %v684_v57 = vld [vmem:[#allocation2 + $0xc] sm:$0xf]  ;;  %v5769_v18 = vld [vmem:[%s7516_s1 + $0x170] sm:$0xff]  }
  0x2a   : > { %vm6116_vm8 = vmand %vm681_vm0, %vm682_vm7  ;;  %v562_v47 = vsel %vm6111_vm6, %v554_v40, %v561_v41  ;;  %769 = vst [vmem:[#allocation2 + $0x98] sm:$0x1] %v768_v49  ;;  %v350_v58 = vld [vmem:[%s6081_s22 + $0x64] sm:$0xf]  ;;  %v565_v59 = vshrl.u32 %v349_v53, 16  ;;  %v363_v60 = vrot.slane %v361_v52, 7  ;;  %5161 = vmatpush3.bf16.msra.mxu0 %v5755_v43  ;;  %5713 = vmatpush3.bf16.msra.mxu1 %v5755_v43 }
  0x2b   : > { %v1092_v30 = vrot.slane %v1090_v21, 1  ;;  %v764_v48 = vsel %vm6116_vm8, %v553_v39, %v763_v32  ;;  %766 = vst [vmem:[#allocation2 + $0x94] sm:$0xf] %v562_v47  ;;  %v690_v61 = vld [vmem:[#allocation2 + $0x14] sm:$0x1]  ;;  %v568_v62 = vshll.u32 %v349_v53, 16  ;;  %5554 = vmatprep.subr.bf16.mxu1 %v6138_v50  ;;  %5602 = vmatprep.subr.bf16.mxu0 %v5761_v51 }
  0x2c   : > { %765 = vst [vmem:[#allocation2 + $0x90] sm:$0xf] %v764_v48  ;;  %v573_v63 = vshrl.u32 %v350_v58, 16  ;;  %v576_v0 = vshll.u32 %v350_v58, 16  ;;  %v770_v1 = vld [vmem:[#allocation2 + $0x9c] sm:$0xf]  ;;  %v366_v5 = vor.u32 %v364_v54, %v363_v60 }
  0x2d   : > { %v1093_v44 = vsel %vm1081_vm1, %v1088_v37, %v1092_v30  ;;  %v371_v2 = vrot.slane %v369_v55, 7  ;;  %v567_v3 = vrot.slane %v565_v59, 7  ;;  %v774_v4 = vld [vmem:[#allocation2 + $0xa4] sm:$0x1]  ;;  %v367_v6 = vrot.slane %v363_v60, 4  ;;  %v5781_v54 = vld [vmem:[%s7516_s1 + $0x168] sm:$0xff]  }
  0x2e   : > { %1627 = vmatprep.mubr.bf16.mxu0 %v1093_v44  ;;  %v575_v7 = vrot.slane %v573_v63, 7  ;;  %v685_v12 = vsel %vm6116_vm8, %v366_v5, %v684_v57  ;;  %v327_v19 = vld [vmem:[%s6081_s22 + $0x8] sm:$0xf]  ;;  %v328_v23 = vld [vmem:[%s6081_s22 + $0xc] sm:$0xf]  ;;  %vm1338_vm9 = vcmask 1046528  }
  0x2f   : > { %v374_v8 = vor.u32 %v372_v56, %v371_v2  ;;  %v376_v9 = vrot.slane %v371_v2, 4  ;;  %v570_v10 = vor.u32 %v568_v62, %v567_v3  ;;  %v571_v11 = vrot.slane %v567_v3, 4  ;;  %686 = vst [vmem:[#allocation2 + $0xc] sm:$0xf] %v685_v12  ;;  %1628 = vmatmul.mubr.bf16.vlgmr.msra.gmra.mxu0 %v6086_v14  ;;  %v693_v37 = vld [vmem:[#allocation2 + $0x18] sm:$0xf] }
  0x30   : > { %v578_v16 = vor.u32 %v576_v0, %v575_v7  ;;  %v580_v17 = vrot.slane %v575_v7, 4  ;;  %v378_v24 = vshrl.u32 %v327_v19, 16  ;;  %5603 = vmatpush3.bf16.msra.mxu0 %v5761_v51  ;;  %v381_v34 = vshll.u32 %v327_v19, 16  ;;  %v351_v38 = vld [vmem:[%s6081_s22 + $0x68] sm:$0xf]  ;;  %v5762_v0 = vld [vmem:[%s7516_s1 + $0xb0] sm:$0xff]  }
  0x31   : > { %v375_v20 = vsel %vm6111_vm6, %v367_v6, %v374_v8  ;;  %v691_v21 = vsel %vm6103_vm5, %v376_v9, %v690_v61  ;;  %v771_v22 = vsel %vm6116_vm8, %v570_v10, %v770_v1  ;;  %v5759_v32 = vld [vmem:[#allocation2 + $0x98] ss:$0 sps:$4 sm:$0x11]   ;;  %v386_v35 = vshrl.u32 %v328_v23, 16  ;;  %5604 = vmatprep.subr.bf16.mxu0 %v5769_v18  ;;  %v352_v43 = vld [vmem:[%s6081_s22 + $0x6c] sm:$0xf] }
  0x32   : > { %v898_v26 = vld [vmem:[#allocation2 + $0x94] sm:$0xf]  ;;  %687 = vst [vmem:[#allocation2 + $0x10] sm:$0xf] %v375_v20  ;;  %692 = vst [vmem:[#allocation2 + $0x14] sm:$0x1] %v691_v21  ;;  %v579_v28 = vsel %vm6111_vm6, %v571_v11, %v578_v16  ;;  %v775_v29 = vsel %vm6103_vm5, %v580_v17, %v774_v4 }
  0x33   : > { %v897_v25 = vld [vmem:[#allocation2 + $0x90] sm:$0xf]  ;;  %772 = vst [vmem:[#allocation2 + $0x9c] sm:$0xf] %v771_v22  ;;  %773 = vst [vmem:[#allocation2 + $0xa0] sm:$0xf] %v579_v28 }
  0x34   : > { %v4683_v30 = vcombine.low %v897_v25, %v898_v26  ;;  %776 = vst [vmem:[#allocation2 + $0xa4] sm:$0x1] %v775_v29  ;;  %v380_v33 = vrot.slane %v378_v24, 7  ;;  %v389_v14 = vshll.u32 %v328_v23, 16  ;;  %v1234_v41 = vshll.u32 %v5759_v32, 16  ;;  %5605 = vmatpush3.bf16.msra.mxu0 %v5769_v18  ;;  %v5789_v28 = vld [vmem:[%s7516_s1 + $0x160] sm:$0xff]  }
  0x35   : > { %v388_v45 = vrot.slane %v386_v35, 7  ;;  %v582_v46 = vshrl.u32 %v351_v38, 16  ;;  %v585_v47 = vshll.u32 %v351_v38, 16  ;;  %v697_v52 = vld [vmem:[#allocation2 + $0x20] sm:$0x1]  ;;  %v590_v53 = vshrl.u32 %v352_v43, 16  ;;  %5606 = vmatprep.subr.bf16.mxu0 %v5781_v54 }
  0x36   : > { %v1227_v39 = vshrl.u32 %v4683_v30, 16  ;;  %v1229_v40 = vshll.u32 %v4683_v30, 16  ;;  %v383_v42 = vor.u32 %v381_v34, %v380_v33  ;;  %v384_v44 = vrot.slane %v380_v33, 4  ;;  %v875_v55 = vld [vmem:[#allocation2 + $0xc] sm:$0xf]  ;;  %s4666_s15 = sshll.u32 %s7570_s18, 1 }
  0x37   : > { %v1236_v49 = vrot.slane %v1234_v41, 1  ;;  %v391_v56 = vor.u32 %v389_v14, %v388_v45  ;;  %v393_v57 = vrot.slane %v388_v45, 4  ;;  %v584_v58 = vrot.slane %v582_v46, 7  ;;  %v777_v60 = vld [vmem:[#allocation2 + $0xa8] sm:$0xf]  ;;  %v5768_v46 = vld [vmem:[%s7516_s1 + $0xa0] sm:$0xff]   ;;  %s7228_s3 = scalar_lea.vmem %s7520_s5, %s4666_s15 }
  0x38   : > { %v1231_v48 = vrot.slane %v1229_v40, 1  ;;  %v694_v51 = vsel %vm6116_vm8, %v383_v42, %v693_v37  ;;  %v593_v59 = vshll.u32 %v352_v43, 16  ;;  %v781_v11 = vld [vmem:[#allocation2 + $0xb0] sm:$0x1]  ;;  %5607 = vmatpush3.bf16.msra.mxu0 %v5781_v54  ;;  %v592_v18 = vrot.slane %v590_v53, 7  ;;  %v5767_v32 = vld [vmem:[%s7516_s1 + $0xa8] sm:$0xff]  }
  0x39   : > { %695 = vst [vmem:[#allocation2 + $0x18] sm:$0xf] %v694_v51  ;;  %v6171_v62 = vld [vmem:[#allocation2 + $0x10] sm:$0xf]  ;;  %v392_v4 = vsel %vm6111_vm6, %v384_v44, %v391_v56  ;;  %v698_v5 = vsel %vm6103_vm5, %v393_v57, %v697_v52  ;;  %v587_v6 = vor.u32 %v585_v47, %v584_v58  ;;  %v588_v10 = vrot.slane %v584_v58, 4  ;;  %5608 = vmatprep.subr.bf16.mxu0 %v5789_v28 }
  0x3a   : > { %v1232_v61 = vor.u32 %v1231_v48, %v1227_v39  ;;  %v899_v63 = vld [vmem:[#allocation2 + $0x9c] sm:$0xf]  ;;  %v4672_v1 = vcombine.low %v875_v55, %v6171_v62  ;;  %v6177_v2 = vld [vmem:[#allocation2 + $0x14] ss:$0 sps:$4 sm:$0x11]   ;;  %v595_v25 = vor.u32 %v593_v59, %v592_v18  ;;  %v597_v26 = vrot.slane %v592_v18, 4 }
  0x3b   : > { %v900_v3 = vld [vmem:[#allocation2 + $0xa0] sm:$0xf]  ;;  %v5766_v9 = vld [vmem:[#allocation2 + $0xa4] ss:$0 sps:$4 sm:$0x11]   ;;  %v1102_v17 = vshll.u32 %v6177_v2, 16  ;;  %v778_v22 = vsel %vm6116_vm8, %v587_v6, %v777_v60 }
  0x3c   : > { %v1237_v7 = vsel %vm1081_vm1, %v1232_v61, %v1236_v49  ;;  %v4684_v8 = vcombine.low %v899_v63, %v900_v3  ;;  %696 = vst [vmem:[#allocation2 + $0x1c] sm:$0xf] %v392_v4  ;;  %699 = vst [vmem:[#allocation2 + $0x20] sm:$0x1] %v698_v5  ;;  %v1095_v12 = vshrl.u32 %v4672_v1, 16  ;;  %v1097_v16 = vshll.u32 %v4672_v1, 16  ;;  %5609 = vmatpush3.bf16.msra.mxu0 %v5789_v28 }
  0x3d   : > { %1723 = vmatprep.mubr.bf16.mxu1 %v1237_v7  ;;  %v1246_v21 = vshll.u32 %v5766_v9, 16  ;;  %v1104_v24 = vrot.slane %v1102_v17, 1  ;;  %779 = vst [vmem:[#allocation2 + $0xa8] sm:$0xf] %v778_v22  ;;  %v782_v35 = vsel %vm6103_vm5, %v597_v26, %v781_v11  ;;  %v329_v14 = vld [vmem:[%s6081_s22 + $0x10] sm:$0xf] }
  0x3e   : > { %1724 = vmatmul.mubr.bf16.vlgmr.msra.gmra.mxu1 %v4683_v30  ;;  %v1239_v19 = vshrl.u32 %v4684_v8, 16  ;;  %v1241_v20 = vshll.u32 %v4684_v8, 16  ;;  %v1099_v23 = vrot.slane %v1097_v16, 1  ;;  %v330_v37 = vld [vmem:[%s6081_s22 + $0x14] sm:$0xf]  ;;  %v395_v39 = vshrl.u32 %v329_v14, 16 }
  0x3f   : > { %5555 = vmatpush3.bf16.msra.mxu1 %v6138_v50  ;;  %v1248_v30 = vrot.slane %v1246_v21, 1  ;;  %v596_v50 = vsel %vm6111_vm6, %v588_v10, %v595_v25  ;;  %783 = vst [vmem:[#allocation2 + $0xb0] sm:$0x1] %v782_v35  ;;  %v398_v40 = vshll.u32 %v329_v14, 16  ;;  %v403_v41 = vshrl.u32 %v330_v37, 16  ;;  %v5774_v61 = vld [vmem:[%s7516_s1 + $0x98] sm:$0xff]  }
  0x40   : > { %5556 = vmatprep.subr.bf16.mxu1 %v5762_v0  ;;  %v1243_v29 = vrot.slane %v1241_v20, 1  ;;  %v1100_v33 = vor.u32 %v1099_v23, %v1095_v12  ;;  %v877_v34 = vld [vmem:[#allocation2 + $0x18] sm:$0xf]  ;;  %780 = vst [vmem:[#allocation2 + $0xac] sm:$0xf] %v596_v50  ;;  %v406_v44 = vshll.u32 %v330_v37, 16 }
  0x41   : > { %v397_v49 = vrot.slane %v395_v39, 7  ;;  %v405_v51 = vrot.slane %v403_v41, 7  ;;  %v700_v52 = vld [vmem:[#allocation2 + $0x24] sm:$0xf]  ;;  %v704_v53 = vld [vmem:[#allocation2 + $0x2c] sm:$0x1] }
  0x42   : > { %v1244_v38 = vor.u32 %v1243_v29, %v1239_v19  ;;  %v1105_v42 = vsel %vm1081_vm1, %v1100_v33, %v1104_v24  ;;  %v353_v54 = vld [vmem:[%s6081_s22 + $0x70] sm:$0xf]  ;;  %v354_v59 = vld [vmem:[%s6081_s22 + $0x74] sm:$0xf]  ;;  %v5802_v9 = vld [vmem:[%s7516_s1 + $0x158] sm:$0xff]  }
  0x43   : > { %5557 = vmatpush3.bf16.msra.mxu1 %v5762_v0  ;;  %v6201_v43 = vld [vmem:[#allocation2 + $0x1c] sm:$0xf]  ;;  %1635 = vmatprep.mubr.bf16.mxu0 %v1105_v42  ;;  %v6208_v48 = vld [vmem:[#allocation2 + $0x20] ss:$0 sps:$4 sm:$0x11]   ;;  %v400_v58 = vor.u32 %v398_v40, %v397_v49  ;;  %v401_v63 = vrot.slane %v397_v49, 4  ;;  %v408_v0 = vor.u32 %v406_v44, %v405_v51 }
  0x44   : > { %v1249_v45 = vsel %vm1081_vm1, %v1244_v38, %v1248_v30  ;;  %5558 = vmatprep.subr.bf16.mxu1 %v5767_v32  ;;  %v4673_v47 = vcombine.low %v877_v34, %v6201_v43  ;;  %1636 = vmatmul.mubr.bf16.gmra.mxu0 %v4672_v1  ;;  %v1114_v57 = vshll.u32 %v6208_v48, 16  ;;  %v901_v60 = vld [vmem:[#allocation2 + $0xa8] sm:$0xf]  ;;  %v410_v3 = vrot.slane %v405_v51, 4  ;;  %v788_v22 = vld [vmem:[#allocation2 + $0xbc] sm:$0x1] }
  0x45   : > { %1731 = vmatprep.mubr.bf16.mxu1 %v1249_v45  ;;  %v599_v1 = vshrl.u32 %v353_v54, 16  ;;  %v701_v6 = vsel %vm6116_vm8, %v400_v58, %v700_v52  ;;  %v602_v7 = vshll.u32 %v353_v54, 16  ;;  %v409_v11 = vsel %vm6111_vm6, %v401_v63, %v408_v0  ;;  %5610 = vmatprep.subr.bf16.mxu0 %v5802_v9  ;;  %v331_v35 = vld [vmem:[%s6081_s22 + $0x18] sm:$0xf]  ;;  %v332_v38 = vld [vmem:[%s6081_s22 + $0x1c] sm:$0xf] }
  0x46   : > { %1732 = vmatmul.mubr.bf16.gmra.mxu1 %v4684_v8  ;;  %v1107_v55 = vshrl.u32 %v4673_v47, 16  ;;  %v1109_v56 = vshll.u32 %v4673_v47, 16  ;;  %v1116_v5 = vrot.slane %v1114_v57, 1  ;;  %v784_v8 = vld [vmem:[#allocation2 + $0xb4] sm:$0xf]  ;;  %v705_v12 = vsel %vm6103_vm5, %v410_v3, %v704_v53  ;;  %5611 = vmatpush3.bf16.msra.mxu0 %v5802_v9 }
  0x47   : > { %5559 = vmatpush3.bf16.msra.mxu1 %v5767_v32  ;;  %v902_v10 = vld [vmem:[#allocation2 + $0xac] sm:$0xf]  ;;  %702 = vst [vmem:[#allocation2 + $0x24] sm:$0xf] %v701_v6  ;;  %v601_v16 = vrot.slane %v599_v1, 7  ;;  %v607_v17 = vshrl.u32 %v354_v59, 16 }
  0x48   : > { %5560 = vmatprep.subr.bf16.mxu1 %v5768_v46  ;;  %v1111_v4 = vrot.slane %v1109_v56, 1  ;;  %v4685_v19 = vcombine.low %v901_v60, %v902_v10  ;;  %v5773_v20 = vld [vmem:[#allocation2 + $0xb0] ss:$0 sps:$4 sm:$0x11]   ;;  %703 = vst [vmem:[#allocation2 + $0x28] sm:$0xf] %v409_v11 }
  0x49   : > { %706 = vst [vmem:[#allocation2 + $0x2c] sm:$0x1] %v705_v12  ;;  %v610_v21 = vshll.u32 %v354_v59, 16  ;;  %v604_v23 = vor.u32 %v602_v7, %v601_v16  ;;  %v605_v24 = vrot.slane %v601_v16, 4  ;;  %v609_v25 = vrot.slane %v607_v17, 7  ;;  %v5775_v32 = vld [vmem:[%s7516_s1 + $0x90] sm:$0xff]  }
  0x4a   : > { %v1112_v18 = vor.u32 %v1111_v4, %v1107_v55  ;;  %v1251_v28 = vshrl.u32 %v4685_v19, 16  ;;  %v1253_v29 = vshll.u32 %v4685_v19, 16  ;;  %v1258_v30 = vshll.u32 %v5773_v20, 16  ;;  %v921_v53 = vld [vmem:[#allocation2] sm:$0xe]  ;;  %v5809_v10 = vld [vmem:[%s7516_s1 + $0x150] sm:$0xff]  }
  0x4b   : > { %5561 = vmatpush3.bf16.msra.mxu1 %v5768_v46  ;;  %v612_v33 = vor.u32 %v610_v21, %v609_v25  ;;  %v614_v34 = vrot.slane %v609_v25, 4  ;;  %v785_v50 = vsel %vm6116_vm8, %v604_v23, %v784_v8  ;;  %v412_v39 = vshrl.u32 %v331_v35, 16  ;;  %v707_v46 = vld [vmem:[#allocation2 + $0x30] sm:$0xf]  ;;  %v711_v3 = vld [vmem:[#allocation2 + $0x38] sm:$0x1]  ;;  %5612 = vmatprep.subr.bf16.mxu0 %v5809_v10 }
  0x4c   : > { %v1117_v26 = vsel %vm1081_vm1, %v1112_v18, %v1116_v5  ;;  %5562 = vmatprep.subr.bf16.mxu1 %v5774_v61  ;;  %v1255_v14 = vrot.slane %v1253_v29, 1  ;;  %v1260_v37 = vrot.slane %v1258_v30, 1  ;;  %786 = vst [vmem:[#allocation2 + $0xb4] sm:$0xf] %v785_v50  ;;  %v415_v40 = vshll.u32 %v331_v35, 16  ;;  %v5787_v21 = vld [vmem:[%s7516_s1 + $0x138] sm:$0xff]   ;;  %5613 = vmatpush3.bf16.msra.mxu0 %v5809_v10 }
  0x4d   : > { %1643 = vmatprep.mubr.bf16.mxu0 %v1117_v26  ;;  %v613_v41 = vsel %vm6111_vm6, %v605_v24, %v612_v33  ;;  %v789_v42 = vsel %vm6103_vm5, %v614_v34, %v788_v22  ;;  %v420_v44 = vshrl.u32 %v332_v38, 16  ;;  %v423_v45 = vshll.u32 %v332_v38, 16  ;;  %v922_v9 = vld [vmem:[#allocation2 + $0xc] sm:$0xe]  ;;  %v333_v23 = vld [vmem:[%s6081_s22 + $0x20] sm:$0xf] }
  0x4e   : > { %1644 = vmatmul.mubr.bf16.gmra.mxu0 %v4673_v47  ;;  %v1256_v49 = vor.u32 %v1255_v14, %v1251_v28  ;;  %v879_v51 = vld [vmem:[#allocation2 + $0x24] sm:$0xf]  ;;  %787 = vst [vmem:[#allocation2 + $0xb8] sm:$0xf] %v613_v41  ;;  %790 = vst [vmem:[#allocation2 + $0xbc] sm:$0x1] %v789_v42  ;;  %v4703_v56 = vcombine.low %v921_v53, %v6083_v13  ;;  %v4704_v30 = vcombine.low %v922_v9, %v6171_v62 }
  0x4f   : > { %5563 = vmatpush3.bf16.msra.mxu1 %v5774_v61  ;;  %v5780_v47 = vld [vmem:[%s7516_s1 + $0x88] sm:$0xff]   ;;  %v414_v52 = vrot.slane %v412_v39, 7  ;;  %v422_v55 = vrot.slane %v420_v44, 7  ;;  %v1340_v57 = vrot.slane %v6088_v15, 1  ;;  %v5782_v61 = vld [vmem:[%s7516_s1 + $0x80] sm:$0xff]   ;;  %v1343_v13 = vrot.slane %v6177_v2, 1 }
  0x50   : > { %5564 = vmatprep.subr.bf16.mxu1 %v5775_v32  ;;  %v6240_v54 = vld [vmem:[#allocation2 + $0x28] sm:$0xf]  ;;  %v1261_v58 = vsel %vm1081_vm1, %v1256_v49, %v1260_v37  ;;  %v6246_v60 = vld [vmem:[#allocation2 + $0x2c] ss:$0 sps:$4 sm:$0x11]   ;;  %v1339_v17 = vrot.slane %v4703_v56, 1 }
  0x51   : > { %v4674_v59 = vcombine.low %v879_v51, %v6240_v54  ;;  %v417_v63 = vor.u32 %v415_v40, %v414_v52  ;;  %v418_v0 = vrot.slane %v414_v52, 4  ;;  %1739 = vmatprep.mubr.bf16.mxu1 %v1261_v58  ;;  %v425_v1 = vor.u32 %v423_v45, %v422_v55  ;;  %v334_v28 = vld [vmem:[%s6081_s22 + $0x24] sm:$0xf]  ;;  %v714_v38 = vld [vmem:[#allocation2 + $0x3c] sm:$0xf]  ;;  %v5794_v2 = vld [vmem:[%s7516_s1 + $0x130] sm:$0xff]  }
  0x52   : > { %v427_v4 = vrot.slane %v422_v55, 4  ;;  %1740 = vmatmul.mubr.bf16.gmra.mxu1 %v4685_v19  ;;  %v1126_v7 = vshll.u32 %v6246_v60, 16  ;;  %v1346_v18 = vrot.slane %v6208_v48, 1  ;;  %v429_v29 = vshrl.u32 %v333_v23, 16  ;;  %v718_v41 = vld [vmem:[#allocation2 + $0x44] sm:$0x1] }
  0x53   : > { %5565 = vmatpush3.bf16.msra.mxu1 %v5775_v32  ;;  %v1119_v5 = vshrl.u32 %v4674_v59, 16  ;;  %v1121_v6 = vshll.u32 %v4674_v59, 16  ;;  %v708_v8 = vsel %vm6116_vm8, %v417_v63, %v707_v46  ;;  %v903_v11 = vld [vmem:[#allocation2 + $0xb4] sm:$0xf]  ;;  %v426_v12 = vsel %vm6111_vm6, %v418_v0, %v425_v1  ;;  %v923_v42 = vld [vmem:[#allocation2 + $0x18] sm:$0xe] }
  0x54   : > { %5566 = vmatprep.subr.bf16.mxu1 %v5780_v47  ;;  %709 = vst [vmem:[#allocation2 + $0x30] sm:$0xf] %v708_v8  ;;  %v712_v16 = vsel %vm6103_vm5, %v427_v4, %v711_v3  ;;  %v1128_v20 = vrot.slane %v1126_v7, 1  ;;  %710 = vst [vmem:[#allocation2 + $0x34] sm:$0xf] %v426_v12  ;;  %v432_v32 = vshll.u32 %v333_v23, 16  ;;  %v1341_v58 = vsel %vm1338_vm9, %v1339_v17, %v1340_v57 }
  0x55   : > { %v1123_v19 = vrot.slane %v1121_v6, 1  ;;  %713 = vst [vmem:[#allocation2 + $0x38] sm:$0x1] %v712_v16  ;;  %v6266_v22 = vld [vmem:[#allocation2 + $0xb8] sm:$0xf]  ;;  %v437_v33 = vshrl.u32 %v334_v28, 16  ;;  %v4705_v1 = vcombine.low %v923_v42, %v6201_v43 }
  0x56   : > { %v4686_v25 = vcombine.low %v903_v11, %v6266_v22  ;;  %v6270_v26 = vld [vmem:[#allocation2 + $0xbc] ss:$0 sps:$4 sm:$0x11]   ;;  %v440_v34 = vshll.u32 %v334_v28, 16  ;;  %v431_v39 = vrot.slane %v429_v29, 7  ;;  %v1349_v8 = vrot.slane %v6246_v60, 1 }
  0x57   : > { %5567 = vmatpush3.bf16.msra.mxu1 %v5780_v47  ;;  %v1124_v24 = vor.u32 %v1123_v19, %v1119_v5  ;;  %v1270_v37 = vshll.u32 %v6270_v26, 16  ;;  %v439_v40 = vrot.slane %v437_v33, 7  ;;  %v335_v6 = vld [vmem:[%s6081_s22 + $0x28] sm:$0xf]  ;;  %v336_v9 = vld [vmem:[%s6081_s22 + $0x2c] sm:$0xf] }
  0x58   : > { %5568 = vmatprep.subr.bf16.mxu1 %v5782_v61  ;;  %v1263_v35 = vshrl.u32 %v4686_v25, 16  ;;  %v1265_v14 = vshll.u32 %v4686_v25, 16  ;;  %v434_v49 = vor.u32 %v432_v32, %v431_v39  ;;  %v435_v51 = vrot.slane %v431_v39, 4  ;;  %v721_v19 = vld [vmem:[#allocation2 + $0x48] sm:$0xf] }
  0x59   : > { %v1129_v50 = vsel %vm1081_vm1, %v1124_v24, %v1128_v20  ;;  %v1272_v45 = vrot.slane %v1270_v37, 1  ;;  %v442_v47 = vor.u32 %v440_v34, %v439_v40  ;;  %v444_v52 = vrot.slane %v439_v40, 4  ;;  %v725_v23 = vld [vmem:[#allocation2 + $0x50] sm:$0x1]  ;;  %v5788_v34 = vld [vmem:[%s7516_s1 + $0xf8] sm:$0xff]  }
  0x5a   : > { %1651 = vmatprep.mubr.bf16.mxu0 %v1129_v50  ;;  %v1267_v44 = vrot.slane %v1265_v14, 1  ;;  %v715_v0 = vsel %vm6116_vm8, %v434_v49, %v714_v38  ;;  %v446_v10 = vshrl.u32 %v335_v6, 16  ;;  %v449_v11 = vshll.u32 %v335_v6, 16  ;;  %v337_v37 = vld [vmem:[%s6081_s22 + $0x30] sm:$0xf] }
  0x5b   : > { %5569 = vmatpush3.bf16.msra.mxu1 %v5782_v61  ;;  %1652 = vmatmul.mubr.bf16.gmra.mxu0 %v4674_v59  ;;  %v881_v62 = vld [vmem:[#allocation2 + $0x30] sm:$0xf]  ;;  %v6276_v46 = vld [vmem:[#allocation2 + $0x34] sm:$0xf]  ;;  %v1342_v61 = vrot.slane %v4704_v30, 1  ;;  %v443_v63 = vsel %vm6111_vm6, %v435_v51, %v442_v47  ;;  %v719_v3 = vsel %vm6103_vm5, %v444_v52, %v718_v41  ;;  %v454_v16 = vshrl.u32 %v336_v9, 16 }
  0x5c   : > { %5282 = vmatprep.subr.bf16.mxu1 %v5787_v21  ;;  %v1268_v53 = vor.u32 %v1267_v44, %v1263_v35  ;;  %v4675_v55 = vcombine.low %v881_v62, %v6276_v46  ;;  %v6279_v56 = vld [vmem:[#allocation2 + $0x38] ss:$0 sps:$4 sm:$0x11]   ;;  %v924_v59 = vld [vmem:[#allocation2 + $0x24] sm:$0xe]  ;;  %v457_v17 = vshll.u32 %v336_v9, 16 }
  0x5d   : > { %v1138_v57 = vshll.u32 %v6279_v56, 16  ;;  %716 = vst [vmem:[#allocation2 + $0x3c] sm:$0xf] %v715_v0  ;;  %717 = vst [vmem:[#allocation2 + $0x40] sm:$0xf] %v443_v63  ;;  %v4706_v7 = vcombine.low %v924_v59, %v6240_v54  ;;  %v1345_v20 = vrot.slane %v4705_v1, 1  ;;  %v1344_v38 = vsel %vm1338_vm9, %v1342_v61, %v1343_v13 }
  0x5e   : > { %v1273_v4 = vsel %vm1081_vm1, %v1268_v53, %v1272_v45  ;;  %v1131_v5 = vshrl.u32 %v4675_v55, 16  ;;  %v1133_v15 = vshll.u32 %v4675_v55, 16  ;;  %720 = vst [vmem:[#allocation2 + $0x44] sm:$0x1] %v719_v3  ;;  %v448_v21 = vrot.slane %v446_v10, 7  ;;  %v5826_v54 = vld [vmem:[%s7516_s1 + $0x148] sm:$0xff]  }
  0x5f   : > { %1747 = vmatprep.mubr.bf16.mxu1 %v1273_v4  ;;  %v1140_v12 = vrot.slane %v1138_v57, 1  ;;  %v925_v24 = vld [vmem:[#allocation2 + $0x30] sm:$0xe]  ;;  %v456_v29 = vrot.slane %v454_v16, 7  ;;  %v1348_v30 = vrot.slane %v4706_v7, 1  ;;  %5614 = vmatprep.subr.bf16.mxu0 %v5826_v54  ;;  %v1347_v41 = vsel %vm1338_vm9, %v1345_v20, %v1346_v18 }
  0x60   : > { %1748 = vmatmul.mubr.bf16.gmra.mxu1 %v4686_v25  ;;  %v1135_v43 = vrot.slane %v1133_v15, 1  ;;  %v451_v32 = vor.u32 %v449_v11, %v448_v21  ;;  %v452_v25 = vrot.slane %v448_v21, 4  ;;  %v4707_v14 = vcombine.low %v925_v24, %v6276_v46  ;;  %5615 = vmatpush3.bf16.msra.mxu0 %v5826_v54  ;;  %v5795_v62 = vld [vmem:[%s7516_s1 + $0xf0] sm:$0xff]   ;;  %v5801_v15 = vld [vmem:[%s7516_s1 + $0xe8] sm:$0xff]   ;;  %v340_v16 = vld [vmem:[%s6081_s22 + $0x3c] sm:$0xf] }
  0x61   : > { %5570 = vmatprep.mubr.bf16.mxu1 %v1341_v58  ;;  %v459_v50 = vor.u32 %v457_v17, %v456_v29  ;;  %v461_v35 = vrot.slane %v456_v29, 4  ;;  %v1352_v18 = vrot.slane %v6279_v56, 1  ;;  %v338_v49 = vld [vmem:[%s6081_s22 + $0x34] sm:$0xf]  ;;  %v463_v51 = vshrl.u32 %v337_v37, 16  ;;  %v5800_v56 = vld [vmem:[%s7516_s1 + $0x128] sm:$0xff]  }
  0x62   : > { %v1136_v28 = vor.u32 %v1135_v43, %v1131_v5  ;;  %v722_v42 = vsel %vm6116_vm8, %v451_v32, %v721_v19  ;;  %v466_v47 = vshll.u32 %v337_v37, 16  ;;  %v1351_v58 = vrot.slane %v4707_v14, 1  ;;  %v728_v61 = vld [vmem:[#allocation2 + $0x54] sm:$0xf]  ;;  %v732_v5 = vld [vmem:[#allocation2 + $0x5c] sm:$0x1] }
  0x63   : > { %v460_v13 = vsel %vm6111_vm6, %v452_v25, %v459_v50  ;;  %723 = vst [vmem:[#allocation2 + $0x48] sm:$0xf] %v722_v42  ;;  %v726_v48 = vsel %vm6103_vm5, %v461_v35, %v725_v23  ;;  %v465_v63 = vrot.slane %v463_v51, 7  ;;  %v471_v0 = vshrl.u32 %v338_v49, 16  ;;  %v5807_v43 = vld [vmem:[%s7516_s1 + $0x120] sm:$0xff]  }
  0x64   : > { %v1141_v33 = vsel %vm1081_vm1, %v1136_v28, %v1140_v12  ;;  %v883_v39 = vld [vmem:[#allocation2 + $0x3c] sm:$0xf]  ;;  %v6309_v40 = vld [vmem:[#allocation2 + $0x40] sm:$0xf]  ;;  %724 = vst [vmem:[#allocation2 + $0x4c] sm:$0xf] %v460_v13  ;;  %v1350_v10 = vsel %vm1338_vm9, %v1348_v30, %v1349_v8  ;;  %v1353_v28 = vsel %vm1338_vm9, %v1351_v58, %v1352_v18 }
  0x65   : > { %1659 = vmatprep.mubr.bf16.mxu0 %v1141_v33  ;;  %v4676_v44 = vcombine.low %v883_v39, %v6309_v40  ;;  %v6317_v45 = vld [vmem:[#allocation2 + $0x44] ss:$0 sps:$4 sm:$0x11]   ;;  %727 = vst [vmem:[#allocation2 + $0x50] sm:$0x1] %v726_v48  ;;  %v474_v3 = vshll.u32 %v338_v49, 16  ;;  %v468_v57 = vor.u32 %v466_v47, %v465_v63 }
  0x66   : > { %1660 = vmatmul.mubr.bf16.gmra.mxu0 %v4675_v55  ;;  %v926_v46 = vld [vmem:[#allocation2 + $0x3c] sm:$0xe]  ;;  %v1150_v55 = vshll.u32 %v6317_v45, 16  ;;  %v1355_v59 = vrot.slane %v6317_v45, 1  ;;  %v469_v6 = vrot.slane %v465_v63, 4  ;;  %v473_v7 = vrot.slane %v471_v0, 7 }
  0x67   : > { %v1143_v52 = vshrl.u32 %v4676_v44, 16  ;;  %v1145_v53 = vshll.u32 %v4676_v44, 16  ;;  %v4708_v11 = vcombine.low %v926_v46, %v6309_v40  ;;  %v339_v12 = vld [vmem:[%s6081_s22 + $0x38] sm:$0xf]  ;;  %v729_v21 = vsel %vm6116_vm8, %v468_v57, %v728_v61  ;;  %v5808_v50 = vld [vmem:[%s7516_s1 + $0xe0] sm:$0xff]  }
  0x68   : > { %5571 = vmatmul.mubr.bf16.vlgmr.msra.gmra.mxu1 %v1344_v38  ;;  %v1152_v4 = vrot.slane %v1150_v55, 1  ;;  %v476_v19 = vor.u32 %v474_v3, %v473_v7  ;;  %v478_v20 = vrot.slane %v473_v7, 4  ;;  %v480_v24 = vshrl.u32 %v339_v12, 16  ;;  %730 = vst [vmem:[#allocation2 + $0x54] sm:$0xf] %v729_v21  ;;  %v5816_v40 = vld [vmem:[%s7516_s1 + $0x118] sm:$0xff]  }
  0x69   : > { %5283 = vmatpush3.bf16.msra.mxu1 %v5788_v34  ;;  %5574 = vmatprep.mubr.bf16.mxu1 %v1347_v41  ;;  %v1147_v1 = vrot.slane %v1145_v53, 1  ;;  %v483_v29 = vshll.u32 %v339_v12, 16  ;;  %v488_v54 = vshrl.u32 %v340_v16, 16  ;;  %v1354_v35 = vrot.slane %v4708_v11, 1  ;;  %v735_v39 = vld [vmem:[#allocation2 + $0x60] sm:$0xf] }
  0x6a   : > { %5284 = vmatprep.subr.bf16.mxu1 %v5794_v2  ;;  %v885_v17 = vld [vmem:[#allocation2 + $0x48] sm:$0xf]  ;;  %v477_v25 = vsel %vm6111_vm6, %v469_v6, %v476_v19  ;;  %v733_v33 = vsel %vm6103_vm5, %v478_v20, %v732_v5  ;;  %v482_v14 = vrot.slane %v480_v24, 7  ;;  %v491_v38 = vshll.u32 %v340_v16, 16  ;;  %v341_v13 = vld [vmem:[%s6081_s22 + $0x40] sm:$0xf] }
  0x6b   : > { %v1148_v9 = vor.u32 %v1147_v1, %v1143_v52  ;;  %v927_v23 = vld [vmem:[#allocation2 + $0x48] sm:$0xe]  ;;  %v886_v8 = vld [vmem:[#allocation2 + $0x4c] sm:$0xf]  ;;  %731 = vst [vmem:[#allocation2 + $0x58] sm:$0xf] %v477_v25  ;;  %v1356_v58 = vsel %vm1338_vm9, %v1354_v35, %v1355_v59 }
  0x6c   : > { %v6352_v30 = vcombine.low %v885_v17, %v886_v8  ;;  %v5797_v32 = vld [vmem:[#allocation2 + $0x50] ss:$0 sps:$4 sm:$0x11]   ;;  %v4709_v34 = vcombine.low %v927_v23, %v886_v8  ;;  %734 = vst [vmem:[#allocation2 + $0x5c] sm:$0x1] %v733_v33  ;;  %v490_v37 = vrot.slane %v488_v54, 7  ;;  %v485_v18 = vor.u32 %v483_v29, %v482_v14 }
  0x6d   : > { %5285 = vmatpush3.bf16.msra.mxu1 %v5795_v62  ;;  %v1153_v60 = vsel %vm1081_vm1, %v1148_v9, %v1152_v4  ;;  %v1162_v2 = vshll.u32 %v5797_v32, 16  ;;  %v1358_v48 = vrot.slane %v5797_v32, 1  ;;  %v486_v62 = vrot.slane %v482_v14, 4  ;;  %v739_v49 = vld [vmem:[#allocation2 + $0x68] sm:$0x1]  ;;  %v5817_v3 = vld [vmem:[%s7516_s1 + $0xd8] sm:$0xff]  }
  0x6e   : > { %5286 = vmatprep.subr.bf16.mxu1 %v5800_v56  ;;  %1667 = vmatprep.mubr.bf16.mxu0 %v1153_v60  ;;  %v1155_v41 = vshrl.u32 %v6352_v30, 16  ;;  %v1157_v42 = vshll.u32 %v6352_v30, 16  ;;  %v493_v46 = vor.u32 %v491_v38, %v490_v37  ;;  %v342_v51 = vld [vmem:[%s6081_s22 + $0x44] sm:$0xf]  ;;  %v495_v53 = vrot.slane %v490_v37, 4  ;;  %v5825_v33 = vld [vmem:[%s7516_s1 + $0xd0] sm:$0xff]  }
  0x6f   : > { %1668 = vmatmul.mubr.bf16.gmra.mxu0 %v4676_v44  ;;  %v1357_v44 = vrot.slane %v4709_v34, 1  ;;  %v1164_v52 = vrot.slane %v1162_v2, 1  ;;  %v497_v55 = vshrl.u32 %v341_v13, 16  ;;  %v736_v61 = vsel %vm6116_vm8, %v485_v18, %v735_v39  ;;  %v742_v0 = vld [vmem:[#allocation2 + $0x6c] sm:$0xf]  ;;  %v5831_v1 = vld [vmem:[%s7516_s1 + $0x140] sm:$0xff]  }
  0x70   : > { %5575 = vmatmul.mubr.bf16.gmra.mxu1 %v1350_v10  ;;  %v1159_v47 = vrot.slane %v1157_v42, 1  ;;  %v494_v56 = vsel %vm6111_vm6, %v486_v62, %v493_v46  ;;  %v500_v63 = vshll.u32 %v341_v13, 16  ;;  %v887_v45 = vld [vmem:[#allocation2 + $0x54] sm:$0xf]  ;;  %737 = vst [vmem:[#allocation2 + $0x60] sm:$0xf] %v736_v61  ;;  %v740_v59 = vsel %vm6103_vm5, %v495_v53, %v739_v49  ;;  %5616 = vmatprep.subr.bf16.mxu0 %v5831_v1 }
  0x71   : > { %5578 = vmatprep.mubr.bf16.mxu1 %v1353_v28  ;;  %5287 = vmatpush3.bf16.msra.mxu1 %v5801_v15  ;;  %v928_v5 = vld [vmem:[#allocation2 + $0x54] sm:$0xe]  ;;  %738 = vst [vmem:[#allocation2 + $0x64] sm:$0xf] %v494_v56  ;;  %v499_v15 = vrot.slane %v497_v55, 7  ;;  %v505_v57 = vshrl.u32 %v342_v51, 16  ;;  %v1359_v6 = vsel %vm1338_vm9, %v1357_v44, %v1358_v48 }
  0x72   : > { %5288 = vmatprep.subr.bf16.mxu1 %v5807_v43  ;;  %v1160_v4 = vor.u32 %v1159_v47, %v1155_v41  ;;  %741 = vst [vmem:[#allocation2 + $0x68] sm:$0x1] %v740_v59  ;;  %v508_v7 = vshll.u32 %v342_v51, 16  ;;  %v746_v9 = vld [vmem:[#allocation2 + $0x74] sm:$0x1]  ;;  %5617 = vmatpush3.bf16.msra.mxu0 %v5831_v1  ;;  %v5829_v37 = vld [vmem:[%s7516_s1 + $0x108] sm:$0xff]  }
  0x73   : > { %v5824_v10 = vld [vmem:[%s7516_s1 + $0x110] sm:$0xff]   ;;  %v888_v43 = vld [vmem:[#allocation2 + $0x58] sm:$0xf]  ;;  %v502_v12 = vor.u32 %v500_v63, %v499_v15  ;;  %v503_v16 = vrot.slane %v499_v15, 4  ;;  %v507_v17 = vrot.slane %v505_v57, 7 }
  0x74   : > { %v1165_v11 = vsel %vm1081_vm1, %v1160_v4, %v1164_v52  ;;  %v4678_v19 = vcombine.low %v887_v45, %v888_v43  ;;  %v5804_v20 = vld [vmem:[#allocation2 + $0x5c] ss:$0 sps:$4 sm:$0x11]   ;;  %v4710_v21 = vcombine.low %v928_v5, %v888_v43  ;;  %v343_v23 = vld [vmem:[%s6081_s22 + $0x48] sm:$0xf]  ;;  %v5835_v5 = vld [vmem:[%s7516_s1 + $0xc0] sm:$0xff]  }
  0x75   : > { %5289 = vmatpush3.bf16.msra.mxu1 %v5808_v50  ;;  %1675 = vmatprep.mubr.bf16.mxu0 %v1165_v11  ;;  %v510_v24 = vor.u32 %v508_v7, %v507_v17  ;;  %v512_v60 = vrot.slane %v507_v17, 4  ;;  %v743_v8 = vsel %vm6116_vm8, %v502_v12, %v742_v0  ;;  %v514_v28 = vshrl.u32 %v343_v23, 16  ;;  %v344_v35 = vld [vmem:[%s6081_s22 + $0x4c] sm:$0xf]  ;;  %v345_v42 = vld [vmem:[%s6081_s22 + $0x50] sm:$0xf] }
  0x76   : > { %5290 = vmatprep.subr.bf16.mxu1 %v5816_v40  ;;  %v1167_v29 = vshrl.u32 %v4678_v19, 16  ;;  %v1169_v54 = vshll.u32 %v4678_v19, 16  ;;  %v1174_v32 = vshll.u32 %v5804_v20, 16  ;;  %v1360_v25 = vrot.slane %v4710_v21, 1  ;;  %744 = vst [vmem:[#allocation2 + $0x6c] sm:$0xf] %v743_v8 }
  0x77   : > { %1676 = vmatmul.mubr.bf16.gmra.mxu0 %v6352_v30  ;;  %v1361_v30 = vrot.slane %v5804_v20, 1  ;;  %v511_v34 = vsel %vm6111_vm6, %v503_v16, %v510_v24  ;;  %v747_v50 = vsel %vm6103_vm5, %v512_v60, %v746_v9  ;;  %v6400_v14 = vrot.slane %v514_v28, 7  ;;  %v889_v40 = vld [vmem:[#allocation2 + $0x60] sm:$0xf]  ;;  %v749_v18 = vld [vmem:[#allocation2 + $0x78] sm:$0xf] }
  0x78   : > { %5579 = vmatmul.mubr.bf16.gmra.mxu1 %v1356_v58  ;;  %v1171_v38 = vrot.slane %v1169_v54, 1  ;;  %v1176_v39 = vrot.slane %v1174_v32, 1  ;;  %v890_v41 = vld [vmem:[#allocation2 + $0x64] sm:$0xf]  ;;  %745 = vst [vmem:[#allocation2 + $0x70] sm:$0xf] %v511_v34 }
  0x79   : > { %5582 = vmatprep.mubr.bf16.mxu1 %v1359_v6  ;;  %5291 = vmatpush3.bf16.msra.mxu1 %v5817_v3  ;;  %748 = vst [vmem:[#allocation2 + $0x74] sm:$0x1] %v747_v50  ;;  %v1362_v2 = vsel %vm1338_vm9, %v1360_v25, %v1361_v30  ;;  %v6407_v44 = vcombine.low %v889_v40, %v890_v41  ;;  %v5811_v13 = vld [vmem:[#allocation2 + $0x68] ss:$0 sps:$4 sm:$0x11]   ;;  %v517_v48 = vshll.u32 %v343_v23, 16 }
  0x7a   : > { %5292 = vmatprep.subr.bf16.mxu1 %v5824_v10  ;;  %v1172_v62 = vor.u32 %v1171_v38, %v1167_v29  ;;  %v929_v46 = vld [vmem:[#allocation2 + $0x60] sm:$0xe]  ;;  %v520_v49 = vrot.slane %v6400_v14, 4  ;;  %v522_v51 = vshrl.u32 %v344_v35, 16  ;;  %v525_v47 = vshll.u32 %v344_v35, 16  ;;  %v5830_v52 = vld [vmem:[%s7516_s1 + $0xc8] sm:$0xff]  }
  0x7b   : > { %v1179_v53 = vshrl.u32 %v6407_v44, 16  ;;  %v1181_v55 = vshll.u32 %v6407_v44, 16  ;;  %v1186_v58 = vshll.u32 %v5811_v13, 16  ;;  %v4711_v56 = vcombine.low %v929_v46, %v890_v41  ;;  %v753_v61 = vld [vmem:[#allocation2 + $0x80] sm:$0x1]  ;;  %v6436_v32 = vld [vmem:[%s7516_s1 + $0x238] sm:$0xff]  }
  0x7c   : > { %v346_v63 = vld [vmem:[%s6081_s22 + $0x54] sm:$0xf]  ;;  %v5834_v0 = vld [vmem:[%s7516_s1 + $0x100] sm:$0xff]   ;;  %v1177_v3 = vsel %vm1081_vm1, %v1172_v62, %v1176_v39  ;;  %v1364_v1 = vrot.slane %v5811_v13, 1  ;;  %v519_v4 = vor.u32 %v517_v48, %v6400_v14  ;;  %v524_v45 = vrot.slane %v522_v51, 7 }
  0x7d   : > { %5293 = vmatpush3.bf16.msra.mxu1 %v5825_v33  ;;  %1683 = vmatprep.mubr.bf16.mxu0 %v1177_v3  ;;  %v1183_v59 = vrot.slane %v1181_v55, 1  ;;  %v1188_v15 = vrot.slane %v1186_v58, 1  ;;  %v1363_v57 = vrot.slane %v4711_v56, 1  ;;  %v891_v6 = vld [vmem:[#allocation2 + $0x6c] sm:$0xf]  ;;  %v531_v7 = vshrl.u32 %v345_v42, 16 }
  0x7e   : > { %5294 = vmatprep.subr.bf16.mxu1 %v5829_v37  ;;  %v930_v9 = vld [vmem:[#allocation2 + $0x6c] sm:$0xe]  ;;  %v527_v10 = vor.u32 %v525_v47, %v524_v45  ;;  %v529_v11 = vrot.slane %v524_v45, 4  ;;  %v750_v43 = vsel %vm6116_vm8, %v519_v4, %v749_v18  ;;  %v534_v12 = vshll.u32 %v345_v42, 16  ;;  %v756_v16 = vld [vmem:[#allocation2 + $0x84] sm:$0xf] }
  0x7f   : > { %1684 = vmatmul.mubr.bf16.gmra.mxu0 %v4678_v19  ;;  %v1184_v17 = vor.u32 %v1183_v59, %v1179_v53  ;;  %v1365_v20 = vsel %vm1338_vm9, %v1363_v57, %v1364_v1  ;;  %v892_v21 = vld [vmem:[#allocation2 + $0x70] sm:$0xf]  ;;  %751 = vst [vmem:[#allocation2 + $0x78] sm:$0xf] %v750_v43  ;;  %v533_v23 = vrot.slane %v531_v7, 7  ;;  %v539_v24 = vshrl.u32 %v346_v63, 16 }
  0x80   : > { %5583 = vmatmul.mubr.bf16.gmra.mxu1 %v1362_v2  ;;  %v6427_v60 = vcombine.low %v891_v6, %v892_v21  ;;  %v5814_v19 = vld [vmem:[#allocation2 + $0x74] ss:$0 sps:$4 sm:$0x11]   ;;  %v4712_v8 = vcombine.low %v930_v9, %v892_v21  ;;  %v528_v28 = vsel %vm6111_vm6, %v520_v49, %v527_v10  ;;  %v754_v29 = vsel %vm6103_vm5, %v529_v11, %v753_v61  ;;  %v760_v54 = vld [vmem:[#allocation2 + $0x8c] sm:$0x1]  ;;  %v5842_v42 = vld [vmem:[%s7516_s1 + $0x1f8] sm:$0xff]  }
  0x81   : > { %5295 = vmatpush3.bf16.msra.mxu1 %v5830_v52  ;;  %5586 = vmatprep.mubr.bf16.mxu1 %v1365_v20  ;;  %v1189_v25 = vsel %vm1081_vm1, %v1184_v17, %v1188_v15  ;;  %752 = vst [vmem:[#allocation2 + $0x7c] sm:$0xf] %v528_v28  ;;  %755 = vst [vmem:[#allocation2 + $0x80] sm:$0x1] %v754_v29  ;;  %v536_v33 = vor.u32 %v534_v12, %v533_v23  ;;  %v537_v30 = vrot.slane %v533_v23, 4 }
  0x82   : > { %5296 = vmatprep.subr.bf16.mxu1 %v5834_v0  ;;  %v541_v34 = vrot.slane %v539_v24, 7  ;;  %1691 = vmatprep.mubr.bf16.mxu0 %v1189_v25  ;;  %v1366_v50 = vrot.slane %v4712_v8, 1  ;;  %v1367_v35 = vrot.slane %v5814_v19, 1  ;;  %v1191_v14 = vshrl.u32 %v6427_v60, 16  ;;  %v933_v52 = vld [vmem:[#allocation2 + $0x90] sm:$0xe] }
  0x83   : > { %v1193_v37 = vshll.u32 %v6427_v60, 16  ;;  %v1198_v38 = vshll.u32 %v5814_v19, 16  ;;  %v542_v39 = vshll.u32 %v346_v63, 16  ;;  %v757_v41 = vsel %vm6116_vm8, %v536_v33, %v756_v16  ;;  %5418 = vmatprep.subr.bf16.mxu0 %v5842_v42  ;;  %v936_v0 = vld [vmem:[#allocation2 + $0xb4] sm:$0xe] }
  0x84   : > { %v546_v40 = vrot.slane %v541_v34, 4  ;;  %v1368_v2 = vsel %vm1338_vm9, %v1366_v50, %v1367_v35  ;;  %758 = vst [vmem:[#allocation2 + $0x84] sm:$0xf] %v757_v41  ;;  %v1385_v63 = vrot.slane %v6270_v26, 1  ;;  %v5956_v45 = vld [vmem:[#allocation2 + $0x94] sm:$0xf]  ;;  %v4718_v59 = vcombine.low %v936_v0, %v6266_v22 }
  0x85   : > { %5297 = vmatpush3.bf16.msra.mxu1 %v5835_v5  ;;  %v1195_v13 = vrot.slane %v1193_v37, 1  ;;  %v1200_v48 = vrot.slane %v1198_v38, 1  ;;  %v544_v18 = vor.u32 %v542_v39, %v541_v34  ;;  %v4715_v5 = vcombine.low %v933_v52, %v5956_v45  ;;  %v5957_v7 = vld [vmem:[#allocation2 + $0x98] ss:$0 sps:$4 sm:$0x11]  }
  0x86   : > { %5650 = vmatprep.subr.bf16.mxu1 %v6436_v32  ;;  %v761_v62 = vsel %vm6103_vm5, %v546_v40, %v760_v54  ;;  %v893_v49 = vld [vmem:[#allocation2 + $0x78] sm:$0xf]  ;;  %v1376_v9 = vrot.slane %v5957_v7, 1  ;;  %v934_v10 = vld [vmem:[#allocation2 + $0x9c] sm:$0xe]  ;;  %v1384_v26 = vrot.slane %v4718_v59, 1 }
  0x87   : > { %1692 = vmatmul.mubr.bf16.gmra.mxu0 %v6407_v44  ;;  %v1196_v46 = vor.u32 %v1195_v13, %v1191_v14  ;;  %v931_v51 = vld [vmem:[#allocation2 + $0x78] sm:$0xe]  ;;  %762 = vst [vmem:[#allocation2 + $0x8c] sm:$0x1] %v761_v62  ;;  %v545_v47 = vsel %vm6111_vm6, %v537_v30, %v544_v18  ;;  %v935_v11 = vld [vmem:[#allocation2 + $0xa8] sm:$0xe] }
  0x88   : > { %5587 = vmatmul.mubr.bf16.gmra.mxu1 %v1368_v2  ;;  %v894_v55 = vld [vmem:[#allocation2 + $0x7c] sm:$0xf]  ;;  %759 = vst [vmem:[#allocation2 + $0x88] sm:$0xf] %v545_v47  ;;  %v1949_v20 = vld [vmem:[#allocation2 + $0xc] sm:$0xf]  ;;  %v6459_v24 = vsel %vm1338_vm9, %v1384_v26, %v1385_v63 }
  0x89   : > { %v1201_v53 = vsel %vm1081_vm1, %v1196_v46, %v1200_v48  ;;  %v4681_v58 = vcombine.low %v893_v49, %v894_v55  ;;  %v5819_v56 = vld [vmem:[#allocation2 + $0x80] ss:$0 sps:$4 sm:$0x11]   ;;  %v4713_v61 = vcombine.low %v931_v51, %v894_v55  ;;  %v1375_v22 = vrot.slane %v4715_v5, 1  ;;  %v1950_v19 = vld [vmem:[#allocation2 + $0x10] sm:$0xf] }
  0x8a   : > { %1699 = vmatprep.mubr.bf16.mxu0 %v1201_v53  ;;  %v1370_v3 = vrot.slane %v5819_v56, 1  ;;  %v1210_v6 = vshll.u32 %v5819_v56, 16  ;;  %v5958_v25 = vld [vmem:[#allocation2 + $0xa0] sm:$0xf]  ;;  %v5959_v30 = vld [vmem:[#allocation2 + $0xac] sm:$0xf]  ;;  %v6461_v50 = vcombine.low %v1949_v20, %v1950_v19 }
  0x8b   : > { %v1369_v44 = vrot.slane %v4713_v61, 1  ;;  %v895_v1 = vld [vmem:[#allocation2 + $0x84] sm:$0xf]  ;;  %v1203_v15 = vshrl.u32 %v4681_v58, 16  ;;  %v1205_v57 = vshll.u32 %v4681_v58, 16  ;;  %v4716_v33 = vcombine.low %v934_v10, %v5958_v25 }
  0x8c   : > { %v932_v4 = vld [vmem:[#allocation2 + $0x84] sm:$0xe]  ;;  %v1212_v17 = vrot.slane %v1210_v6, 1  ;;  %v4717_v34 = vcombine.low %v935_v11, %v5959_v30  ;;  %v1377_v39 = vsel %vm1338_vm9, %v1375_v22, %v1376_v9  ;;  %v5960_v40 = vld [vmem:[#allocation2 + $0xa4] ss:$0 sps:$4 sm:$0x11]  }
  0x8d   : > { %v1371_v43 = vsel %vm1338_vm9, %v1369_v44, %v1370_v3  ;;  %v1207_v16 = vrot.slane %v1205_v57, 1  ;;  %v1379_v41 = vrot.slane %v5960_v40, 1  ;;  %v5961_v42 = vld [vmem:[#allocation2 + $0xb0] ss:$0 sps:$4 sm:$0x11]   ;;  %v1378_v46 = vrot.slane %v4716_v33, 1 }
  0x8e   : > { %v5822_v12 = vld [vmem:[#allocation2 + $0x8c] ss:$0 sps:$4 sm:$0x11]   ;;  %5590 = vmatprep.mubr.bf16.mxu1 %v1371_v43  ;;  %v1382_v2 = vrot.slane %v5961_v42, 1  ;;  %v1381_v47 = vrot.slane %v4717_v34, 1  ;;  %v2160_v52 = vshll.u32 %v6461_v50, 16 }
  0x8f   : > { %1700 = vmatmul.mubr.bf16.gmra.mxu0 %v6427_v60  ;;  %v896_v21 = vld [vmem:[#allocation2 + $0x88] sm:$0xf]  ;;  %v1373_v23 = vrot.slane %v5822_v12, 1  ;;  %v1208_v29 = vor.u32 %v1207_v16, %v1203_v15  ;;  %v1222_v54 = vshll.u32 %v5822_v12, 16  ;;  %v1997_v60 = vld [vmem:[#allocation2 + $0xc] sm:$0xe] }
  0x90   : > { %v4682_v8 = vcombine.low %v895_v1, %v896_v21  ;;  %v4714_v28 = vcombine.low %v932_v4, %v896_v21  ;;  %v4775_v62 = vcombine.low %v1997_v60, %v1950_v19  ;;  %v5837_v49 = vld [vmem:[#allocation2 + $0x14] ss:$0 sps:$4 sm:$0x11]   ;;  %v1952_v53 = vld [vmem:[#allocation2 + $0x1c] sm:$0xf]  ;;  %v1380_v4 = vsel %vm1338_vm9, %v1378_v46, %v1379_v41 }
  0x91   : > { %v1213_v14 = vsel %vm1081_vm1, %v1208_v29, %v1212_v17  ;;  %v1224_v18 = vrot.slane %v1222_v54, 1  ;;  %v2414_v61 = vrot.slane %v5837_v49, 1  ;;  %v1998_v63 = vld [vmem:[#allocation2 + $0x18] sm:$0xe]  ;;  %v1954_v3 = vld [vmem:[#allocation2 + $0x28] sm:$0xf]  ;;  %v1383_v5 = vsel %vm1338_vm9, %v1381_v47, %v1382_v2 }
  0x92   : > { %v1372_v35 = vrot.slane %v4714_v28, 1  ;;  %v1215_v37 = vshrl.u32 %v4682_v8, 16  ;;  %v1217_v38 = vshll.u32 %v4682_v8, 16  ;;  %1707 = vmatprep.mubr.bf16.mxu0 %v1213_v14  ;;  %v2413_v56 = vrot.slane %v4775_v62, 1  ;;  %v1951_v0 = vld [vmem:[#allocation2 + $0x18] sm:$0xf] }
  0x93   : > { %v6468_v44 = vcombine.low %v1951_v0, %v1952_v53  ;;  %v1999_v1 = vld [vmem:[#allocation2 + $0x24] sm:$0xe]  ;;  %v2165_v45 = vshll.u32 %v5837_v49, 16  ;;  %v2162_v59 = vrot.slane %v2160_v52, 1  ;;  %v4776_v57 = vcombine.low %v1998_v63, %v1952_v53  ;;  %v1956_v17 = vld [vmem:[#allocation2 + $0x34] sm:$0xf] }
  0x94   : > { %v1374_v13 = vsel %vm1338_vm9, %v1372_v35, %v1373_v23  ;;  %v1219_v48 = vrot.slane %v1217_v38, 1  ;;  %v5839_v15 = vld [vmem:[#allocation2 + $0x20] ss:$0 sps:$4 sm:$0x11]   ;;  %v2415_v6 = vsel %vm1338_vm9, %v2413_v56, %v2414_v61  ;;  %v4777_v9 = vcombine.low %v1999_v1, %v1954_v3  ;;  %v1953_v16 = vld [vmem:[#allocation2 + $0x24] sm:$0xf] }
  0x95   : > { %5591 = vmatmul.mubr.bf16.gmra.mxu1 %v1374_v13  ;;  %v6474_v7 = vld [vmem:[#allocation2 + $0x2c] ss:$0 sps:$4 sm:$0x11]   ;;  %v2172_v10 = vshll.u32 %v6468_v44, 16  ;;  %v2167_v11 = vrot.slane %v2165_v45, 1  ;;  %v2416_v12 = vrot.slane %v4776_v57, 1  ;;  %v6486_v34 = vcombine.low %v1953_v16, %v1954_v3 }
  0x96   : > { %5594 = vmatprep.mubr.bf16.mxu1 %v1377_v39  ;;  %v1220_v51 = vor.u32 %v1219_v48, %v1215_v37  ;;  %v2417_v26 = vrot.slane %v5839_v15, 1  ;;  %v2419_v20 = vrot.slane %v4777_v9, 1  ;;  %v2420_v21 = vrot.slane %v6474_v7, 1  ;;  %v2000_v23 = vld [vmem:[#allocation2 + $0x30] sm:$0xe]  ;;  %v5843_v22 = vld [vmem:[%s7516_s1 + $0x1b8] sm:$0xff]  }
  0x97   : > { %1708 = vmatmul.mubr.bf16.gmra.mxu0 %v4681_v58  ;;  %v2158_v58 = vshrl.u32 %v6461_v50, 16  ;;  %v2170_v19 = vshrl.u32 %v6468_v44, 16  ;;  %v2174_v28 = vrot.slane %v2172_v10, 1  ;;  %v2177_v29 = vshll.u32 %v5839_v15, 16  ;;  %v6482_v54 = vld [vmem:[#allocation2 + $0x40] sm:$0xf] }
  0x98   : > { %v1225_v55 = vsel %vm1081_vm1, %v1220_v51, %v1224_v18  ;;  %v2001_v25 = vld [vmem:[#allocation2 + $0x3c] sm:$0xe]  ;;  %v2418_v30 = vsel %vm1338_vm9, %v2416_v12, %v2417_v26  ;;  %v6488_v60 = vld [vmem:[#allocation2 + $0x38] ss:$0 sps:$4 sm:$0x11]   ;;  %v4778_v35 = vcombine.low %v2000_v23, %v1956_v17  ;;  %v2421_v37 = vsel %vm1338_vm9, %v2419_v20, %v2420_v21  ;;  %v5851_v38 = vld [vmem:[%s7516_s1 + $0x1f0] sm:$0xff]  }
  0x99   : > { %1715 = vmatprep.mubr.bf16.mxu0 %v1225_v55  ;;  %v2163_v43 = vor.u32 %v2162_v59, %v2158_v58  ;;  %v6490_v14 = vld [vmem:[#allocation2 + $0x44] ss:$0 sps:$4 sm:$0x11]   ;;  %v4779_v39 = vcombine.low %v2001_v25, %v6482_v54  ;;  %v2179_v40 = vrot.slane %v2177_v29, 1  ;;  %v2175_v42 = vor.u32 %v2174_v28, %v2170_v19  ;;  %v5852_v48 = vld [vmem:[%s7516_s1 + $0x1b0] sm:$0xff]   ;;  %v5861_v1 = vld [vmem:[%s7516_s1 + $0x1a8] sm:$0xff]  }
  0x9a   : > { %v2422_v2 = vrot.slane %v4778_v35, 1  ;;  %v2423_v13 = vrot.slane %v6488_v60, 1  ;;  %v2184_v18 = vshll.u32 %v6486_v34, 16  ;;  %v6508_v62 = vld [vmem:[#allocation2 + $0x4c] sm:$0xf]  ;;  %v2426_v51 = vrot.slane %v6490_v14, 1 }
  0x9b   : > { %v2168_v33 = vsel %vm1081_vm1, %v2163_v43, %v2167_v11  ;;  %v2002_v46 = vld [vmem:[#allocation2 + $0x48] sm:$0xe]  ;;  %v2425_v49 = vrot.slane %v4779_v39, 1  ;;  %v5859_v47 = vld [vmem:[%s7516_s1 + $0x230] sm:$0xff]   ;;  %v6514_v52 = vld [vmem:[#allocation2 + $0x58] sm:$0xf]  ;;  %v2180_v61 = vsel %vm1081_vm1, %v2175_v42, %v2179_v40 }
  0x9c   : > { %v2003_v53 = vld [vmem:[#allocation2 + $0x54] sm:$0xe]  ;;  %v2182_v55 = vshrl.u32 %v6486_v34, 16  ;;  %v2189_v56 = vshll.u32 %v6474_v7, 16  ;;  %v2186_v63 = vrot.slane %v2184_v18, 1  ;;  %v4780_v3 = vcombine.low %v2002_v46, %v6508_v62  ;;  %v5868_v15 = vld [vmem:[%s7516_s1 + $0x1e0] sm:$0xff]  }
  0x9d   : > { %5595 = vmatmul.mubr.bf16.gmra.mxu1 %v1380_v4  ;;  %v6519_v0 = vld [vmem:[#allocation2 + $0x50] ss:$0 sps:$4 sm:$0x11]   ;;  %v2424_v58 = vsel %vm1338_vm9, %v2422_v2, %v2423_v13  ;;  %v4781_v45 = vcombine.low %v2003_v53, %v6514_v52  ;;  %v6530_v59 = vld [vmem:[#allocation2 + $0x5c] ss:$0 sps:$4 sm:$0x11]  }
  0x9e   : > { %5598 = vmatprep.mubr.bf16.mxu1 %v1383_v5  ;;  %v2427_v5 = vsel %vm1338_vm9, %v2425_v49, %v2426_v51  ;;  %v5876_v57 = vld [vmem:[%s7516_s1 + $0x228] sm:$0xff]   ;;  %v1957_v7 = vld [vmem:[#allocation2 + $0x3c] sm:$0xf]  ;;  %v2187_v10 = vor.u32 %v2186_v63, %v2182_v55  ;;  %v2428_v11 = vrot.slane %v4780_v3, 1  ;;  %v2429_v43 = vrot.slane %v6519_v0, 1 }
  0x9f   : > { %1716 = vmatmul.mubr.bf16.gmra.mxu0 %v4682_v8  ;;  %v1955_v8 = vld [vmem:[#allocation2 + $0x30] sm:$0xf]  ;;  %v2201_v12 = vshll.u32 %v6488_v60, 16  ;;  %v6545_v26 = vld [vmem:[#allocation2 + $0x64] sm:$0xf]  ;;  %v2432_v21 = vrot.slane %v6530_v59, 1 }
  0xa0   : > { %5618 = vmatprep.mubr.bf16.mxu0 %v2415_v6  ;;  %v6498_v41 = vcombine.low %v1955_v8, %v1956_v17  ;;  %v2191_v6 = vrot.slane %v2189_v56, 1  ;;  %v2431_v17 = vrot.slane %v4781_v45, 1  ;;  %v2004_v20 = vld [vmem:[#allocation2 + $0x60] sm:$0xe]  ;;  %v6556_v19 = vld [vmem:[#allocation2 + $0x70] sm:$0xf] }
  0xa1   : > { %v6551_v23 = vld [vmem:[#allocation2 + $0x68] ss:$0 sps:$4 sm:$0x11]   ;;  %v2005_v28 = vld [vmem:[#allocation2 + $0x6c] sm:$0xe]  ;;  %v5878_v29 = vld [vmem:[%s7516_s1 + $0x198] sm:$0xff]   ;;  %v4782_v25 = vcombine.low %v2004_v20, %v6545_v26 }
  0xa2   : > { %v2196_v4 = vshll.u32 %v6498_v41, 16  ;;  %v2194_v9 = vshrl.u32 %v6498_v41, 16  ;;  %v2192_v8 = vsel %vm1081_vm1, %v2187_v10, %v2191_v6  ;;  %v2433_v60 = vsel %vm1338_vm9, %v2431_v17, %v2432_v21  ;;  %v6569_v35 = vld [vmem:[#allocation2 + $0x74] ss:$0 sps:$4 sm:$0x11]   ;;  %v5894_v45 = vld [vmem:[%s7516_s1 + $0x1c8] sm:$0xff]  }
  0xa3   : > { %v2203_v39 = vrot.slane %v2201_v12, 1  ;;  %v6576_v42 = vld [vmem:[#allocation2 + $0x7c] sm:$0xf]  ;;  %v2006_v2 = vld [vmem:[#allocation2 + $0x78] sm:$0xe]  ;;  %v2435_v18 = vrot.slane %v6551_v23, 1 }
  0xa4   : > { %v2198_v16 = vrot.slane %v2196_v4, 1  ;;  %v2213_v49 = vshll.u32 %v6490_v14, 16  ;;  %v6588_v51 = vld [vmem:[#allocation2 + $0x80] ss:$0 sps:$4 sm:$0x11]   ;;  %v2438_v56 = vrot.slane %v6569_v35, 1 }
  0xa5   : > { %5599 = vmatmul.mubr.bf16.gmra.mxu1 %v6459_v24  ;;  %v5860_v24 = vld [vmem:[%s7516_s1 + $0x1e8] sm:$0xff]   ;;  %v2008_v12 = vld [vmem:[#allocation2 + $0x90] sm:$0xe]  ;;  %v2009_v17 = vld [vmem:[#allocation2 + $0x9c] sm:$0xe] }
  0xa6   : > { %2702 = vmatprep.mubr.bf16.mxu1 %v2168_v33  ;;  %v1959_v33 = vld [vmem:[#allocation2 + $0x48] sm:$0xf]  ;;  %v2199_v13 = vor.u32 %v2198_v16, %v2194_v9  ;;  %v6590_v53 = vld [vmem:[#allocation2 + $0x8c] ss:$0 sps:$4 sm:$0x11]   ;;  %v5903_v21 = vld [vmem:[%s7516_s1 + $0x180] sm:$0xff]  }
  0xa7   : > { %5619 = vmatmul.mubr.bf16.vlgmr.msra.gmra.mxu0 %v2418_v30  ;;  %v2430_v30 = vsel %vm1338_vm9, %v2428_v11, %v2429_v43  ;;  %v6585_v46 = vcombine.low %v1959_v33, %v6508_v62  ;;  %v5895_v9 = vld [vmem:[%s7516_s1 + $0x188] sm:$0xff]   ;;  %v2444_v10 = vrot.slane %v6590_v53, 1  ;;  %v6611_v11 = vld [vmem:[#allocation2 + $0x94] sm:$0xf] }
  0xa8   : > { %5419 = vmatpush3.bf16.msra.mxu0 %v5843_v22  ;;  %5622 = vmatprep.mubr.bf16.mxu0 %v2421_v37  ;;  %v6554_v22 = vcombine.low %v1957_v7, %v6482_v54  ;;  %v5893_v54 = vld [vmem:[%s7516_s1 + $0x220] sm:$0xff]   ;;  %v4783_v37 = vcombine.low %v2005_v28, %v6556_v19  ;;  %v2204_v63 = vsel %vm1081_vm1, %v2199_v13, %v2203_v39  ;;  %v2225_v7 = vshll.u32 %v6519_v0, 16  ;;  %v6621_v20 = vld [vmem:[#allocation2 + $0x98] ss:$0 sps:$4 sm:$0x11]  }
  0xa9   : > { %5420 = vmatprep.subr.bf16.mxu0 %v5851_v38  ;;  %v5885_v38 = vld [vmem:[%s7516_s1 + $0x1d0] sm:$0xff]   ;;  %v2218_v4 = vshrl.u32 %v6585_v46, 16  ;;  %v5902_v0 = vld [vmem:[%s7516_s1 + $0x1c0] sm:$0xff]   ;;  %v1965_v31 = vld [vmem:[#allocation2 + $0x6c] sm:$0xf] }
  0xaa   : > { %v2208_v40 = vshll.u32 %v6554_v22, 16  ;;  %v2437_v55 = vrot.slane %v4783_v37, 1  ;;  %v2206_v62 = vshrl.u32 %v6554_v22, 16  ;;  %v1963_v37 = vld [vmem:[#allocation2 + $0x60] sm:$0xf] }
  0xab   : > { %v6635_v39 = vld [vmem:[#allocation2 + $0xa4] ss:$0 sps:$4 sm:$0x11]  }
  0xac   : > { %5421 = vmatpush3.bf16.msra.mxu0 %v5852_v48  ;;  %v2434_v48 = vrot.slane %v4782_v25, 1  ;;  %v2210_v3 = vrot.slane %v2208_v40, 1  ;;  %v4786_v25 = vcombine.low %v2008_v12, %v6611_v11  ;;  %v356_v40 = vld [vmem:[%s6081_s22 + $0x7c] sm:$0xf] }
  0xad   : > { %5422 = vmatprep.subr.bf16.mxu0 %v5860_v24  ;;  %2703 = vmatmul.mubr.bf16.vlgmr.msra.gmra.mxu1 %v6461_v50  ;;  %v5869_v50 = vld [vmem:[%s7516_s1 + $0x1a0] sm:$0xff]   ;;  %v6582_v24 = vld [vmem:[#allocation2 + $0x88] sm:$0xf] }
  0xae   : > { %5651 = vmatpush3.bf16.msra.mxu1 %v6436_v32  ;;  %2710 = vmatprep.mubr.bf16.mxu1 %v2180_v61  ;;  %v5877_v32 = vld [vmem:[%s7516_s1 + $0x1d8] sm:$0xff]   ;;  %v4784_v61 = vcombine.low %v2006_v2, %v6576_v42 }
  0xaf   : > { %5623 = vmatmul.mubr.bf16.gmra.mxu0 %v2424_v58  ;;  %5652 = vmatprep.subr.bf16.mxu1 %v5859_v47  ;;  %v2220_v58 = vshll.u32 %v6585_v46, 16 }
  0xb0   : > { %5626 = vmatprep.mubr.bf16.mxu0 %v2427_v5  ;;  %5423 = vmatpush3.bf16.msra.mxu0 %v5861_v1  ;;  %v2436_v1 = vsel %vm1338_vm9, %v2434_v48, %v2435_v18  ;;  %v1961_v5 = vld [vmem:[#allocation2 + $0x54] sm:$0xf]  ;;  %v2440_v6 = vrot.slane %v4784_v61, 1  ;;  %v624_v48 = vshrl.u32 %v356_v40, 16  ;;  %v627_v18 = vshll.u32 %v356_v40, 16 }
  0xb1   : > { %5424 = vmatprep.subr.bf16.mxu0 %v5868_v15  ;;  %v2215_v15 = vrot.slane %v2213_v49, 1  ;;  %v6619_v16 = vcombine.low %v1961_v5, %v6514_v52  ;;  %v5906_v49 = vld [vmem:[%s7516_s1 + $0x218] sm:$0xff]   ;;  %v6682_v40 = vcombine.low %v1965_v31, %v6556_v19 }
  0xb2   : > { %5653 = vmatpush3.bf16.msra.mxu1 %v5859_v47  ;;  %v2007_v47 = vld [vmem:[#allocation2 + $0x84] sm:$0xe]  ;;  %v6644_v61 = vld [vmem:[#allocation2 + $0xb8] sm:$0xf] }
  0xb3   : > { %5654 = vmatprep.subr.bf16.mxu1 %v5876_v57  ;;  %v4785_v14 = vcombine.low %v2007_v47, %v6582_v24  ;;  %v2230_v33 = vshrl.u32 %v6619_v16, 16 }
  0xb4   : > { %5425 = vmatpush3.bf16.msra.mxu0 %v5869_v50  ;;  %v2441_v50 = vrot.slane %v6588_v51, 1 }
  0xb5   : > { %2711 = vmatmul.mubr.bf16.gmra.mxu1 %v6468_v44  ;;  %5426 = vmatprep.subr.bf16.mxu0 %v5877_v32  ;;  %v5886_v44 = vld [vmem:[%s7516_s1 + $0x190] sm:$0xff]   ;;  %v2443_v43 = vrot.slane %v4785_v14, 1  ;;  %v6613_v32 = vld [vmem:[#allocation2 + $0xa0] sm:$0xf]  ;;  %v795_v14 = vld [vmem:[#allocation2 + $0xc8] sm:$0x1] }
  0xb6   : > { %2718 = vmatprep.mubr.bf16.mxu1 %v2192_v8  ;;  %5655 = vmatpush3.bf16.msra.mxu1 %v5876_v57  ;;  %v2439_v57 = vsel %vm1338_vm9, %v2437_v55, %v2438_v56  ;;  %v2227_v8 = vrot.slane %v2225_v7, 1  ;;  %v2442_v52 = vsel %vm1338_vm9, %v2440_v6, %v2441_v50  ;;  %v6642_v55 = vld [vmem:[#allocation2 + $0xac] sm:$0xf]  ;;  %v2010_v56 = vld [vmem:[#allocation2 + $0xa8] sm:$0xe] }
  0xb7   : > { %5627 = vmatmul.mubr.bf16.gmra.mxu0 %v2430_v30  ;;  %5656 = vmatprep.subr.bf16.mxu1 %v5893_v54  ;;  %v2232_v30 = vshll.u32 %v6619_v16, 16  ;;  %v6651_v6 = vld [vmem:[#allocation2 + $0xb0] ss:$0 sps:$4 sm:$0x11]   ;;  %v3089_v50 = vld [vmem:[#allocation2 + $0x18] sm:$0xf] }
  0xb8   : > { %5630 = vmatprep.mubr.bf16.mxu0 %v2433_v60  ;;  %5427 = vmatpush3.bf16.msra.mxu0 %v5878_v29  ;;  %v2222_v29 = vrot.slane %v2220_v58, 1  ;;  %v355_v60 = vld [vmem:[%s6081_s22 + $0x78] sm:$0xf]  ;;  %v626_v58 = vrot.slane %v624_v48, 7 }
  0xb9   : > { %5428 = vmatprep.subr.bf16.mxu0 %v5885_v38  ;;  %v2445_v38 = vsel %vm1338_vm9, %v2443_v43, %v2444_v10  ;;  %v616_v2 = vshrl.u32 %v355_v60, 16  ;;  %v619_v13 = vshll.u32 %v355_v60, 16  ;;  %v6653_v10 = vld [vmem:[#allocation2 + $0x1c] sm:$0xf]  ;;  %v2234_v12 = vrot.slane %v2232_v30, 1 }
  0xba   : > { %5657 = vmatpush3.bf16.msra.mxu1 %v5893_v54  ;;  %v4787_v54 = vcombine.low %v2009_v17, %v6613_v32  ;;  %v2223_v47 = vor.u32 %v2222_v29, %v2218_v4  ;;  %v6648_v4 = vcombine.low %v1963_v37, %v6545_v26  ;;  %v629_v7 = vor.u32 %v627_v18, %v626_v58  ;;  %v5911_v29 = vld [vmem:[%s7516_s1 + $0x210] sm:$0xff]   ;;  %v6678_v37 = vld [vmem:[#allocation2 + $0x20] ss:$0 sps:$4 sm:$0x11]  }
  0xbb   : > { %5658 = vmatprep.subr.bf16.mxu1 %v5906_v49  ;;  %v4788_v17 = vcombine.low %v2010_v56, %v6642_v55  ;;  %v2249_v18 = vshll.u32 %v6551_v23, 16 }
  0xbc   : > { %5429 = vmatpush3.bf16.msra.mxu0 %v5886_v44  ;;  %v2447_v44 = vrot.slane %v6621_v20, 1 }
  0xbd   : > { %2719 = vmatmul.mubr.bf16.gmra.mxu1 %v6486_v34  ;;  %5430 = vmatprep.subr.bf16.mxu0 %v5894_v45  ;;  %v2211_v34 = vor.u32 %v2210_v3, %v2206_v62  ;;  %v618_v62 = vrot.slane %v616_v2, 7  ;;  %v791_v3 = vld [vmem:[#allocation2 + $0xc0] sm:$0xf]  ;;  %v2450_v45 = vrot.slane %v6635_v39, 1  ;;  %v2452_v30 = vrot.slane %v4788_v17, 1 }
  0xbe   : > { %2726 = vmatprep.mubr.bf16.mxu1 %v2204_v63  ;;  %v2011_v63 = vld [vmem:[#allocation2 + $0xb4] sm:$0xe]  ;;  %5659 = vmatpush3.bf16.msra.mxu1 %v5906_v49  ;;  %v3091_v2 = vld [vmem:[#allocation2 + $0x24] sm:$0xf] }
  0xbf   : > { %5631 = vmatmul.mubr.bf16.gmra.mxu0 %v2436_v1  ;;  %v2216_v28 = vsel %vm1081_vm1, %v2211_v34, %v2215_v15  ;;  %v2449_v1 = vrot.slane %v4787_v54, 1  ;;  %v621_v5 = vor.u32 %v619_v13, %v618_v62  ;;  %v622_v15 = vrot.slane %v618_v62, 4  ;;  %5660 = vmatprep.subr.bf16.mxu1 %v5911_v29  ;;  %v6716_v17 = vld [vmem:[#allocation2 + $0x34] sm:$0xf] }
  0xc0   : > { %5634 = vmatprep.mubr.bf16.mxu0 %v2439_v57  ;;  %5431 = vmatpush3.bf16.msra.mxu0 %v5895_v9  ;;  %v2237_v57 = vshll.u32 %v6530_v59, 16  ;;  %v631_v9 = vrot.slane %v626_v58, 4  ;;  %v2228_v34 = vsel %vm1081_vm1, %v2223_v47, %v2227_v8  ;;  %v4789_v59 = vcombine.low %v2011_v63, %v6644_v61  ;;  %v5916_v47 = vld [vmem:[%s7516_s1 + $0x208] sm:$0xff]   ;;  %v5921_v58 = vld [vmem:[%s7516_s1 + $0x200] sm:$0xff]  }
  0xc1   : > { %5432 = vmatprep.subr.bf16.mxu0 %v5902_v0  ;;  %v6657_v0 = vld [vmem:[#allocation2 + $0xbc] ss:$0 sps:$4 sm:$0x11]   ;;  %v792_v26 = vsel %vm6116_vm8, %v621_v5, %v791_v3  ;;  %v2451_v36 = vsel %vm1338_vm9, %v2449_v1, %v2450_v45  ;;  %v6673_v8 = vcombine.low %v3089_v50, %v6653_v10  ;;  %v2242_v13 = vshrl.u32 %v6648_v4, 16  ;;  %v1967_v45 = vld [vmem:[#allocation2 + $0x78] sm:$0xf] }
  0xc2   : > { %793 = vst [vmem:[#allocation2 + $0xc0] sm:$0xf] %v792_v26  ;;  %v2239_v27 = vrot.slane %v2237_v57, 1  ;;  %5661 = vmatpush3.bf16.msra.mxu1 %v5911_v29  ;;  %v2455_v54 = vrot.slane %v4789_v59, 1  ;;  %v2456_v60 = vrot.slane %v6657_v0, 1  ;;  %v2251_v5 = vrot.slane %v2249_v18, 1 }
  0xc3   : > { %v3298_v63 = vshrl.u32 %v6673_v8, 16  ;;  %5662 = vmatprep.subr.bf16.mxu1 %v5916_v47  ;;  %v3093_v26 = vld [vmem:[#allocation2 + $0x30] sm:$0xf]  ;;  %v2261_v29 = vshll.u32 %v6569_v35, 16 }
  0xc4   : > { %5433 = vmatpush3.bf16.msra.mxu0 %v5903_v21  ;;  %v630_v21 = vsel %vm6111_vm6, %v622_v15, %v629_v7  ;;  %v2457_v19 = vsel %vm1338_vm9, %v2455_v54, %v2456_v60  ;;  %v2256_v15 = vshll.u32 %v6682_v40, 16  ;;  %v6730_v60 = vld [vmem:[#allocation2 + $0x38] ss:$0 sps:$4 sm:$0x11]  }
  0xc5   : > { %2727 = vmatmul.mubr.bf16.gmra.mxu1 %v6498_v41  ;;  %v2446_v41 = vrot.slane %v4786_v25, 1  ;;  %794 = vst [vmem:[#allocation2 + $0xc4] sm:$0xf] %v630_v21  ;;  %v2235_v25 = vor.u32 %v2234_v12, %v2230_v33  ;;  %v6684_v33 = vld [vmem:[#allocation2 + $0x28] sm:$0xf]  ;;  %v6714_v12 = vcombine.low %v1967_v45, %v6576_v42  ;;  %v2254_v21 = vshrl.u32 %v6682_v40, 16 }
  0xc6   : > { %2734 = vmatprep.mubr.bf16.mxu1 %v2216_v28  ;;  %v796_v28 = vsel %vm6103_vm5, %v631_v9, %v795_v14  ;;  %v3305_v14 = vshll.u32 %v6678_v37, 16  ;;  %v6703_v1 = vcombine.low %v3091_v2, %v6684_v33  ;;  %5663 = vmatpush3.bf16.msra.mxu1 %v5916_v47  ;;  %v2263_v54 = vrot.slane %v2261_v29, 1 }
  0xc7   : > { %5635 = vmatmul.mubr.bf16.gmra.mxu0 %v2442_v52  ;;  %v2448_v43 = vsel %vm1338_vm9, %v2446_v41, %v2447_v44  ;;  %797 = vst [vmem:[#allocation2 + $0xc8] sm:$0x1] %v796_v28  ;;  %v2244_v52 = vshll.u32 %v6648_v4, 16  ;;  %v2240_v44 = vsel %vm1081_vm1, %v2235_v25, %v2239_v27  ;;  %5664 = vmatprep.subr.bf16.mxu1 %v5921_v58  ;;  %v2258_v28 = vrot.slane %v2256_v15, 1 }
  0xc8   : > { %5638 = vmatprep.mubr.bf16.mxu0 %v2445_v38  ;;  %v3300_v38 = vshll.u32 %v6673_v8, 16  ;;  %v3307_v50 = vrot.slane %v3305_v14, 1  ;;  %v3310_v31 = vshrl.u32 %v6703_v1, 16  ;;  %v2268_v35 = vshll.u32 %v6714_v12, 16 }
  0xc9   : > { %v2246_v48 = vrot.slane %v2244_v52, 1  ;;  %v2012_v49 = vld [vmem:[#allocation2 + $0xc0] sm:$0xe]  ;;  %v6727_v52 = vcombine.low %v3093_v26, %v6716_v17  ;;  %v2266_v18 = vshrl.u32 %v6714_v12, 16 }
  0xca   : > { %v3302_v23 = vrot.slane %v3300_v38, 1  ;;  %5665 = vmatpush3.bf16.msra.mxu1 %v5921_v58  ;;  %v2270_v47 = vrot.slane %v2268_v35, 1  ;;  %v3139_v35 = vld [vmem:[#allocation2 + $0x30] sm:$0xe] }
  0xcb   : > { %v3324_v2 = vshll.u32 %v6727_v52, 16 }
  0xcc   : > { %v6694_v56 = vld [vmem:[#allocation2 + $0xc4] sm:$0xf]  ;;  %v3303_v9 = vor.u32 %v3302_v23, %v3298_v63  ;;  %v2271_v58 = vor.u32 %v2270_v47, %v2266_v18  ;;  %v3140_v18 = vld [vmem:[#allocation2 + $0x3c] sm:$0xe] }
  0xcd   : > { %2735 = vmatmul.mubr.bf16.gmra.mxu1 %v6554_v22  ;;  %v2453_v22 = vrot.slane %v6651_v6, 1  ;;  %v4790_v3 = vcombine.low %v2012_v49, %v6694_v56  ;;  %v3326_v23 = vrot.slane %v3324_v2, 1 }
  0xce   : > { %2742 = vmatprep.mubr.bf16.mxu1 %v2228_v34  ;;  %v6698_v62 = vld [vmem:[#allocation2 + $0xc8] ss:$0 sps:$4 sm:$0x11]   ;;  %v6710_v34 = vld [vmem:[#allocation2 + $0x2c] ss:$0 sps:$4 sm:$0x11]   ;;  %v3308_v42 = vsel %vm1081_vm1, %v3303_v9, %v3307_v50 }
  0xcf   : > { %5639 = vmatmul.mubr.bf16.gmra.mxu0 %v2448_v43  ;;  %v2454_v41 = vsel %vm1338_vm9, %v2452_v30, %v2453_v22  ;;  %v2458_v57 = vrot.slane %v4790_v3, 1  ;;  %v2459_v7 = vrot.slane %v6698_v62, 1  ;;  %v3312_v43 = vshll.u32 %v6703_v1, 16  ;;  %v1969_v30 = vld [vmem:[#allocation2 + $0x84] sm:$0xf] }
  0xd0   : > { %5642 = vmatprep.mubr.bf16.mxu0 %v2451_v36  ;;  %v3317_v27 = vshll.u32 %v6710_v34, 16  ;;  %v2259_v22 = vor.u32 %v2258_v28, %v2254_v21  ;;  %v3322_v3 = vshrl.u32 %v6727_v52, 16  ;;  %v3137_v21 = vld [vmem:[#allocation2 + $0x18] sm:$0xe]  ;;  %v3138_v28 = vld [vmem:[#allocation2 + $0x24] sm:$0xe] }
  0xd1   : > { %v2460_v36 = vsel %vm1338_vm9, %v2458_v57, %v2459_v7  ;;  %v3314_v25 = vrot.slane %v3312_v43, 1  ;;  %v3097_v57 = vld [vmem:[#allocation2 + $0x48] sm:$0xf]  ;;  %v6753_v7 = vld [vmem:[#allocation2 + $0x4c] sm:$0xf]  ;;  %v2285_v43 = vshll.u32 %v6590_v53, 16 }
  0xd2   : > { %v2264_v49 = vsel %vm1081_vm1, %v2259_v22, %v2263_v54  ;;  %v3557_v29 = vrot.slane %v6710_v34, 1  ;;  %v1973_v22 = vld [vmem:[#allocation2 + $0x9c] sm:$0xf] }
  0xd3   : > { %v3315_v38 = vor.u32 %v3314_v25, %v3310_v31  ;;  %v4895_v25 = vcombine.low %v3137_v21, %v6653_v10  ;;  %v2287_v54 = vrot.slane %v2285_v43, 1 }
  0xd5   : > { %2743 = vmatmul.mubr.bf16.gmra.mxu1 %v6585_v46  ;;  %v2247_v46 = vor.u32 %v2246_v48, %v2242_v13  ;;  %v6733_v13 = vld [vmem:[#allocation2 + $0x40] sm:$0xf]  ;;  %v6736_v48 = vcombine.low %v1969_v30, %v6582_v24  ;;  %v3329_v24 = vshll.u32 %v6730_v60, 16  ;;  %v4896_v30 = vcombine.low %v3138_v28, %v6684_v33 }
  0xd6   : > { %2750 = vmatprep.mubr.bf16.mxu1 %v2240_v44  ;;  %v3095_v44 = vld [vmem:[#allocation2 + $0x3c] sm:$0xf]  ;;  %v3553_v2 = vrot.slane %v4895_v25, 1 }
  0xd7   : > { %5643 = vmatmul.mubr.bf16.gmra.mxu0 %v2454_v41  ;;  %v2252_v59 = vsel %vm1081_vm1, %v2247_v46, %v2251_v5  ;;  %v2273_v41 = vshll.u32 %v6588_v51, 16  ;;  %v2280_v14 = vshll.u32 %v6736_v48, 16  ;;  %v6750_v51 = vld [vmem:[#allocation2 + $0x44] ss:$0 sps:$4 sm:$0x11]   ;;  %v3327_v5 = vor.u32 %v3326_v23, %v3322_v3 }
  0xd8   : > { %5646 = vmatprep.mubr.bf16.mxu0 %v2457_v19  ;;  %v6742_v19 = vcombine.low %v3095_v44, %v6733_v13  ;;  %v1971_v46 = vld [vmem:[#allocation2 + $0x90] sm:$0xf]  ;;  %v3331_v15 = vrot.slane %v3329_v24, 1  ;;  %v2278_v9 = vshrl.u32 %v6736_v48, 16  ;;  %v3556_v44 = vrot.slane %v4896_v30, 1 }
  0xd9   : > { %v2275_v45 = vrot.slane %v2273_v41, 1  ;;  %v2282_v50 = vrot.slane %v2280_v14, 1  ;;  %v3560_v3 = vrot.slane %v6730_v60, 1  ;;  %v6788_v23 = vcombine.low %v1973_v22, %v6613_v32  ;;  %v3099_v14 = vld [vmem:[#allocation2 + $0x54] sm:$0xf] }
  0xda   : > { %v3332_v53 = vsel %vm1081_vm1, %v3327_v5, %v3331_v15  ;;  %v2297_v15 = vshll.u32 %v6621_v20, 16  ;;  %v3101_v22 = vld [vmem:[#allocation2 + $0x60] sm:$0xf] }
  0xdb   : > { %v2276_v26 = vsel %vm1081_vm1, %v2271_v58, %v2275_v45  ;;  %v2283_v34 = vor.u32 %v2282_v50, %v2278_v9  ;;  %v6791_v58 = vld [vmem:[#allocation2 + $0x58] sm:$0xf]  ;;  %v4898_v45 = vcombine.low %v3140_v18, %v6733_v13 }
  0xdc   : > { %v2299_v28 = vrot.slane %v2297_v15, 1 }
  0xdd   : > { %2751 = vmatmul.mubr.bf16.gmra.mxu1 %v6619_v16  ;;  %v3319_v16 = vrot.slane %v3317_v27, 1  ;;  %v3554_v27 = vrot.slane %v6678_v37, 1  ;;  %v3562_v50 = vrot.slane %v4898_v45, 1 }
  0xde   : > { %2758 = vmatprep.mubr.bf16.mxu1 %v2252_v59  ;;  %v3341_v59 = vshll.u32 %v6750_v51, 16 }
  0xdf   : > { %5647 = vmatmul.mubr.bf16.gmra.mxu0 %v2460_v36  ;;  %v3320_v63 = vsel %vm1081_vm1, %v3315_v38, %v3319_v16  ;;  %v3334_v36 = vshrl.u32 %v6742_v19, 16  ;;  %v6780_v41 = vsel %vm1338_vm9, %v3553_v2, %v3554_v27  ;;  %v2302_v27 = vshrl.u32 %v6788_v23, 16 }
  0xe0   : > { %3842 = vmatprep.mubr.bf16.mxu0 %v3308_v42  ;;  %v6765_v42 = vcombine.low %v3097_v57, %v6753_v7  ;;  %v3343_v16 = vrot.slane %v3341_v59, 1  ;;  %v1975_v59 = vld [vmem:[#allocation2 + $0xa8] sm:$0xf] }
  0xe1   : > { %v6818_v25 = vcombine.low %v1975_v59, %v6642_v55 }
  0xe2   : > { %v3348_v37 = vshll.u32 %v6765_v42, 16  ;;  %v3346_v60 = vshrl.u32 %v6765_v42, 16 }
  0xe4   : > { %v3350_v43 = vrot.slane %v3348_v37, 1  ;;  %v1977_v37 = vld [vmem:[#allocation2 + $0xb4] sm:$0xf] }
  0xe5   : > { %2759 = vmatmul.mubr.bf16.gmra.mxu1 %v6648_v4  ;;  %v3336_v4 = vshll.u32 %v6742_v19, 16  ;;  %v6842_v15 = vcombine.low %v1977_v37, %v6644_v61  ;;  %v3105_v37 = vld [vmem:[#allocation2 + $0x78] sm:$0xf] }
  0xe6   : > { %2766 = vmatprep.mubr.bf16.mxu1 %v2264_v49  ;;  %v6774_v49 = vld [vmem:[#allocation2 + $0x50] ss:$0 sps:$4 sm:$0x11]  }
  0xe7   : > { %3843 = vmatmul.mubr.bf16.vlgmr.msra.gmra.mxu0 %v6673_v8  ;;  %v6758_v8 = vcombine.low %v1971_v46, %v6611_v11  ;;  %v3338_v31 = vrot.slane %v3336_v4, 1  ;;  %v3563_v46 = vrot.slane %v6750_v51, 1  ;;  %v2288_v4 = vsel %vm1081_vm1, %v2283_v34, %v2287_v54 }
  0xe8   : > { %3850 = vmatprep.mubr.bf16.mxu0 %v3320_v63  ;;  %v4897_v63 = vcombine.low %v3139_v35, %v6716_v17  ;;  %v3353_v32 = vshll.u32 %v6774_v49, 16  ;;  %v6804_v51 = vcombine.low %v3099_v14, %v6791_v58  ;;  %v2309_v35 = vshll.u32 %v6635_v39, 16 }
  0xe9   : > { %v2292_v38 = vshll.u32 %v6758_v8, 16  ;;  %v3339_v10 = vor.u32 %v3338_v31, %v3334_v36  ;;  %v2290_v24 = vshrl.u32 %v6758_v8, 16  ;;  %v6810_v20 = vsel %vm1338_vm9, %v3562_v50, %v3563_v46 }
  0xea   : > { %v3559_v57 = vrot.slane %v4897_v63, 1  ;;  %v3351_v36 = vor.u32 %v3350_v43, %v3346_v60  ;;  %v3355_v31 = vrot.slane %v3353_v32, 1  ;;  %v3103_v60 = vld [vmem:[#allocation2 + $0x6c] sm:$0xf]  ;;  %v6847_v32 = vld [vmem:[#allocation2 + $0x70] sm:$0xf] }
  0xeb   : > { %v2294_v5 = vrot.slane %v2292_v38, 1  ;;  %v3344_v13 = vsel %vm1081_vm1, %v3339_v10, %v3343_v16  ;;  %v2321_v43 = vshll.u32 %v6651_v6, 16 }
  0xec   : > { %v3356_v55 = vsel %vm1081_vm1, %v3351_v36, %v3355_v31 }
  0xed   : > { %2767 = vmatmul.mubr.bf16.gmra.mxu1 %v6682_v40  ;;  %v2295_v21 = vor.u32 %v2294_v5, %v2290_v24 }
  0xee   : > { %2774 = vmatprep.mubr.bf16.mxu1 %v2276_v26  ;;  %v6807_v26 = vsel %vm1338_vm9, %v3559_v57, %v3560_v3  ;;  %v2316_v3 = vshll.u32 %v6818_v25, 16 }
  0xef   : > { %v5162_v11 = vpop.f32.mrf.mxu0  ;;  %3851 = vmatmul.mubr.bf16.gmra.mxu0 %v6703_v1  ;;  %v6783_v1 = vsel %vm1338_vm9, %v3556_v44, %v3557_v29  ;;  %v2300_v34 = vsel %vm1081_vm1, %v2295_v21, %v2299_v28 }
  0xf0   : > { %3858 = vmatprep.mubr.bf16.mxu0 %v3332_v53  ;;  %v6814_v53 = vld [vmem:[#allocation2 + $0x5c] ss:$0 sps:$4 sm:$0x11]  }
  0xf1   : > { %v5163_v40 = vpop.f32.mrf.mxu0  ;;  %v3365_v44 = vshll.u32 %v6814_v53, 16 }
  0xf2   : > { %v6777_v33 = vadd.f32 %v5163_v40, %v5162_v11  ;;  %v3360_v11 = vshll.u32 %v6804_v51, 16  ;;  %v3358_v40 = vshrl.u32 %v6804_v51, 16 }
  0xf3   : > { %v5165_v47 = vpop.f32.mrf.mxu0  ;;  %v3367_v45 = vrot.slane %v3365_v44, 1 }
  0xf4   : > { %v3362_v2 = vrot.slane %v3360_v11, 1  ;;  %v6858_v11 = vcombine.low %v3103_v60, %v6847_v32 }
  0xf5   : > { %v5166_v17 = vpop.f32.mrf.mxu0  ;;  %2775 = vmatmul.mubr.bf16.gmra.mxu1 %v6714_v12  ;;  %v2304_v12 = vshll.u32 %v6788_v23, 16 }
  0xf6   : > { %v6799_v9 = vadd.f32 %v5166_v17, %v5165_v47  ;;  %2782 = vmatprep.mubr.bf16.mxu1 %v2288_v4  ;;  %v2311_v47 = vrot.slane %v2309_v35, 1  ;;  %v3363_v14 = vor.u32 %v3362_v2, %v3358_v40  ;;  %v6838_v4 = vld [vmem:[#allocation2 + $0x68] ss:$0 sps:$4 sm:$0x11]   ;;  %v3384_v2 = vshll.u32 %v6858_v11, 16 }
  0xf7   : > { %3859 = vmatmul.mubr.bf16.gmra.mxu0 %v6727_v52  ;;  %v6821_v52 = vld [vmem:[#allocation2 + $0x64] sm:$0xf]  ;;  %v2306_v54 = vrot.slane %v2304_v12, 1  ;;  %v3377_v31 = vshll.u32 %v6838_v4, 16 }
  0xf8   : > { %3866 = vmatprep.mubr.bf16.mxu0 %v3344_v13  ;;  %v6832_v18 = vcombine.low %v3101_v22, %v6821_v52  ;;  %v2318_v13 = vrot.slane %v2316_v3, 1  ;;  %v3368_v12 = vsel %vm1081_vm1, %v3363_v14, %v3367_v45  ;;  %v3382_v45 = vshrl.u32 %v6858_v11, 16 }
  0xf9   : > { %v2307_v39 = vor.u32 %v2306_v54, %v2302_v27  ;;  %v3379_v40 = vrot.slane %v3377_v31, 1  ;;  %v6895_v31 = vld [vmem:[#allocation2 + $0x88] sm:$0xf] }
  0xfa   : > { %v3372_v5 = vshll.u32 %v6832_v18, 16  ;;  %v3370_v61 = vshrl.u32 %v6832_v18, 16 }
  0xfb   : > { %v2312_v50 = vsel %vm1081_vm1, %v2307_v39, %v2311_v47  ;;  %v6873_v39 = vld [vmem:[#allocation2 + $0x7c] sm:$0xf] }
  0xfc   : > { %v3374_v36 = vrot.slane %v3372_v5, 1 }
  0xfd   : > { %2783 = vmatmul.mubr.bf16.gmra.mxu1 %v6736_v48 }
  0xfe   : > { %v5234_v29 = vpop.f32.mrf.mxu1  ;;  %2790 = vmatprep.mubr.bf16.mxu1 %v2300_v34  ;;  %v2323_v34 = vrot.slane %v2321_v43, 1 }
  0xff   : > { %3867 = vmatmul.mubr.bf16.gmra.mxu0 %v6742_v19  ;;  %v2314_v19 = vshrl.u32 %v6818_v25, 16 }
 0x100   : > { %v5235_v30 = vpop.f32.mrf.mxu1  ;;  %3874 = vmatprep.mubr.bf16.mxu0 %v3356_v55  ;;  %v6866_v55 = vld [vmem:[#allocation2 + $0x74] ss:$0 sps:$4 sm:$0x11]  }
 0x101   : > { %v6825_v38 = vadd.f32 %v5235_v30, %v5234_v29  ;;  %v1979_v30 = vld [vmem:[#allocation2 + $0xc0] sm:$0xf]  ;;  %v2319_v22 = vor.u32 %v2318_v13, %v2314_v19  ;;  %v3389_v5 = vshll.u32 %v6866_v55, 16  ;;  %v6884_v19 = vcombine.low %v3105_v37, %v6873_v39 }
 0x102   : > { %v5237_v16 = vpop.f32.mrf.mxu1  ;;  %v6870_v44 = vcombine.low %v1979_v30, %v6694_v56 }
 0x103   : > { %v2324_v47 = vsel %vm1081_vm1, %v2319_v22, %v2323_v34  ;;  %v2345_v34 = vshll.u32 %v6698_v62, 16 }
 0x104   : > { %v5238_v10 = vpop.f32.mrf.mxu1  ;;  %v5168_v48 = vpop.f32.mrf.mxu0  ;;  %v2340_v43 = vshll.u32 %v6870_v44, 16  ;;  %v2338_v30 = vshrl.u32 %v6870_v44, 16 }
 0x105   : > { %v6835_v63 = vadd.f32 %v5238_v10, %v5237_v16  ;;  %2791 = vmatmul.mubr.bf16.gmra.mxu1 %v6758_v8  ;;  %v2328_v8 = vshll.u32 %v6842_v15, 16  ;;  %v3375_v16 = vor.u32 %v3374_v36, %v3370_v61  ;;  %v2326_v10 = vshrl.u32 %v6842_v15, 16  ;;  %v3107_v36 = vld [vmem:[#allocation2 + $0x84] sm:$0xf] }
 0x106   : > { %v5240_v24 = vpop.f32.mrf.mxu1  ;;  %v5169_v46 = vpop.f32.mrf.mxu0  ;;  %2798 = vmatprep.mubr.bf16.mxu1 %v2312_v50  ;;  %v2342_v22 = vrot.slane %v2340_v43, 1 }
 0x107   : > { %v6845_v17 = vadd.f32 %v5169_v46, %v5168_v48  ;;  %3875 = vmatmul.mubr.bf16.gmra.mxu0 %v6765_v42  ;;  %v2330_v3 = vrot.slane %v2328_v8, 1  ;;  %v2333_v48 = vshll.u32 %v6657_v0, 16  ;;  %v3380_v56 = vsel %vm1081_vm1, %v3375_v16, %v3379_v40 }
 0x108   : > { %v5241_v57 = vpop.f32.mrf.mxu1  ;;  %v5171_v21 = vpop.f32.mrf.mxu0  ;;  %3882 = vmatprep.mubr.bf16.mxu0 %v3368_v12  ;;  %v3386_v46 = vrot.slane %v3384_v2, 1  ;;  %v3391_v12 = vrot.slane %v3389_v5, 1  ;;  %v6902_v16 = vcombine.low %v3107_v36, %v6895_v31  ;;  %v2343_v62 = vor.u32 %v2342_v22, %v2338_v30  ;;  %v3109_v5 = vld [vmem:[#allocation2 + $0x90] sm:$0xf] }
 0x109   : > { %v6851_v59 = vadd.f32 %v5241_v57, %v5240_v24  ;;  %v2331_v0 = vor.u32 %v2330_v3, %v2326_v10  ;;  %v2335_v50 = vrot.slane %v2333_v48, 1  ;;  %v6910_v48 = vld [vmem:[#allocation2 + $0x8c] ss:$0 sps:$4 sm:$0x11]  }
 0x10a   : > { %v5243_v28 = vpop.f32.mrf.mxu1  ;;  %v5172_v29 = vpop.f32.mrf.mxu0  ;;  %v3387_v61 = vor.u32 %v3386_v46, %v3382_v45 }
 0x10b   : > { %v6860_v27 = vadd.f32 %v5172_v29, %v5171_v21  ;;  %v6890_v21 = vld [vmem:[#allocation2 + $0x80] ss:$0 sps:$4 sm:$0x11]   ;;  %v3396_v29 = vshll.u32 %v6884_v19, 16 }
 0x10c   : > { %v5244_v6 = vpop.f32.mrf.mxu1  ;;  %v3392_v2 = vsel %vm1081_vm1, %v3387_v61, %v3391_v12 }
 0x10d   : > { %v6863_v54 = vadd.f32 %v5244_v6, %v5243_v28  ;;  %2799 = vmatmul.mubr.bf16.gmra.mxu1 %v6788_v23  ;;  %v2336_v6 = vsel %vm1081_vm1, %v2331_v0, %v2335_v50  ;;  %v3398_v10 = vrot.slane %v3396_v29, 1  ;;  %v3406_v50 = vshrl.u32 %v6902_v16, 16 }
 0x10e   : > { %v5174_v35 = vpop.f32.mrf.mxu0  ;;  %2806 = vmatprep.mubr.bf16.mxu1 %v2324_v47  ;;  %v2347_v47 = vrot.slane %v2345_v34, 1  ;;  %v6930_v34 = vld [vmem:[#allocation2 + $0x98] ss:$0 sps:$4 sm:$0x11]  }
 0x10f   : > { %3883 = vmatmul.mubr.bf16.gmra.mxu0 %v6804_v51 }
 0x110   : > { %v5175_v42 = vpop.f32.mrf.mxu0  ;;  %3890 = vmatprep.mubr.bf16.mxu0 %v3380_v56 }
 0x111   : > { %v6877_v24 = vadd.f32 %v5175_v42, %v5174_v35  ;;  %v3394_v35 = vshrl.u32 %v6884_v19, 16  ;;  %v3401_v42 = vshll.u32 %v6890_v21, 16 }
 0x112   : > { %v5177_v14 = vpop.f32.mrf.mxu0  ;;  %v5246_v57 = vpop.f32.mrf.mxu1 }
 0x113   : > { %v3399_v45 = vor.u32 %v3398_v10, %v3394_v35  ;;  %v3403_v56 = vrot.slane %v3401_v42, 1  ;;  %v6933_v10 = vld [vmem:[#allocation2 + $0xa0] sm:$0xf] }
 0x114   : > { %v5178_v60 = vpop.f32.mrf.mxu0  ;;  %v5247_v23 = vpop.f32.mrf.mxu1 }
 0x115   : > { %v6887_v13 = vadd.f32 %v5178_v60, %v5177_v14  ;;  %v6892_v28 = vadd.f32 %v5247_v23, %v5246_v57  ;;  %2807 = vmatmul.mubr.bf16.gmra.mxu1 %v6818_v25  ;;  %v3408_v14 = vshll.u32 %v6902_v16, 16  ;;  %v6915_v57 = vld [vmem:[#allocation2 + $0x94] sm:$0xf]  ;;  %v2348_v60 = vsel %vm1081_vm1, %v2343_v62, %v2347_v47 }
 0x116   : > { %v5249_v51 = vpop.f32.mrf.mxu1  ;;  %2814 = vmatprep.mubr.bf16.mxu1 %v2336_v6  ;;  %v3413_v23 = vshll.u32 %v6910_v48, 16  ;;  %v3404_v12 = vsel %vm1081_vm1, %v3399_v45, %v3403_v56  ;;  %v6925_v29 = vcombine.low %v3109_v5, %v6915_v57 }
 0x117   : > { %3891 = vmatmul.mubr.bf16.gmra.mxu0 %v6832_v18  ;;  %v3410_v43 = vrot.slane %v3408_v14, 1 }
 0x118   : > { %v5250_v8 = vpop.f32.mrf.mxu1  ;;  %3898 = vmatprep.mubr.bf16.mxu0 %v3392_v2  ;;  %v3415_v22 = vrot.slane %v3413_v23, 1  ;;  %v3111_v2 = vld [vmem:[#allocation2 + $0x9c] sm:$0xf]  ;;  %v3418_v47 = vshrl.u32 %v6925_v29, 16 }
 0x119   : > { %v6905_v40 = vadd.f32 %v5250_v8, %v5249_v51  ;;  %v3411_v30 = vor.u32 %v3410_v43, %v3406_v50  ;;  %v3141_v50 = vld [vmem:[#allocation2 + $0x48] sm:$0xe]  ;;  %v6954_v43 = vld [vmem:[#allocation2 + $0xa4] ss:$0 sps:$4 sm:$0x11]  }
 0x11b   : > { %v5180_v37 = vpop.f32.mrf.mxu0 }
 0x11d   : > { %v5181_v3 = vpop.f32.mrf.mxu0  ;;  %2815 = vmatmul.mubr.bf16.gmra.mxu1 %v6842_v15  ;;  %v3420_v15 = vshll.u32 %v6925_v29, 16 }
 0x11e   : > { %v6913_v25 = vadd.f32 %v5181_v3, %v5180_v37  ;;  %2822 = vmatprep.mubr.bf16.mxu1 %v2348_v60  ;;  %v3425_v3 = vshll.u32 %v6930_v34, 16 }
 0x11f   : > { %v5183_v46 = vpop.f32.mrf.mxu0  ;;  %3899 = vmatmul.mubr.bf16.gmra.mxu0 %v6858_v11  ;;  %v3416_v11 = vsel %vm1081_vm1, %v3411_v30, %v3415_v22  ;;  %v3422_v56 = vrot.slane %v3420_v15, 1  ;;  %v6962_v30 = vld [vmem:[#allocation2 + $0xac] sm:$0xf]  ;;  %v4899_v22 = vcombine.low %v3141_v50, %v6753_v7 }
 0x120   : > { %v5252_v0 = vpop.f32.mrf.mxu1  ;;  %3906 = vmatprep.mubr.bf16.mxu0 %v3404_v12 }
 0x121   : > { %v5184_v18 = vpop.f32.mrf.mxu0 }
 0x122   : > { %v6921_v61 = vadd.f32 %v5184_v18, %v5183_v46  ;;  %v5253_v36 = vpop.f32.mrf.mxu1  ;;  %v6947_v46 = vcombine.low %v3111_v2, %v6933_v10 }
 0x123   : > { %v6928_v51 = vadd.f32 %v5253_v36, %v5252_v0 }
 0x124   : > { %v5255_v6 = vpop.f32.mrf.mxu1  ;;  %v3432_v36 = vshll.u32 %v6947_v46, 16 }
 0x125   : > { %2823 = vmatmul.mubr.bf16.gmra.mxu1 %v6870_v44 }
 0x126   : > { %v5256_v8 = vpop.f32.mrf.mxu1  ;;  %v5186_v35 = vpop.f32.mrf.mxu0  ;;  %5666 = vmatprep.mubr.bf16.mxu1 %v6780_v41  ;;  %v3423_v41 = vor.u32 %v3422_v56, %v3418_v47  ;;  %v3142_v56 = vld [vmem:[#allocation2 + $0x54] sm:$0xe] }
 0x127   : > { %v6935_v42 = vadd.f32 %v5256_v8, %v5255_v6  ;;  %3907 = vmatmul.mubr.bf16.gmra.mxu0 %v6884_v19  ;;  %v3113_v19 = vld [vmem:[#allocation2 + $0xa8] sm:$0xf] }
 0x128   : > { %v5572_v37 = vpop.f32.mrf.mxu1  ;;  %v5187_v62 = vpop.f32.mrf.mxu0  ;;  %3914 = vmatprep.mubr.bf16.mxu0 %v3416_v11  ;;  %v6976_v11 = vcombine.low %v3113_v19, %v6962_v30 }
 0x129   : > { %v6942_v14 = vadd.f32 %v5572_v37, %v6845_v17  ;;  %v6944_v45 = vadd.f32 %v5187_v62, %v5186_v35  ;;  %v3427_v17 = vrot.slane %v3425_v3, 1  ;;  %v3430_v35 = vshrl.u32 %v6947_v46, 16 }
 0x12a   : > { %v1790_v5 = vpop.f32.mrf.mxu1  ;;  %v5189_v60 = vpop.f32.mrf.mxu0  ;;  %v3434_v62 = vrot.slane %v3432_v36, 1  ;;  %v4900_v36 = vcombine.low %v3142_v56, %v6791_v58 }
 0x12b   : > { %v6952_v0 = vadd.f32 %v6777_v33, %v1790_v5  ;;  %v3428_v37 = vsel %vm1081_vm1, %v3423_v41, %v3427_v17 }
 0x12c   : > { %v5573_v18 = vpop.f32.mrf.mxu1  ;;  %v5190_v44 = vpop.f32.mrf.mxu0  ;;  %v3435_v17 = vor.u32 %v3434_v62, %v3430_v35  ;;  %v3442_v35 = vshrl.u32 %v6976_v11, 16 }
 0x12d   : > { %v6957_v23 = vadd.f32 %v5573_v18, %v6860_v27  ;;  %v6959_v12 = vadd.f32 %v5190_v44, %v5189_v60  ;;  %v3437_v27 = vshll.u32 %v6954_v43, 16  ;;  %5667 = vmatmul.mubr.bf16.vlgmr.msra.gmra.mxu1 %v6783_v1  ;;  %v3565_v1 = vrot.slane %v4899_v22, 1  ;;  %v3143_v18 = vld [vmem:[#allocation2 + $0x60] sm:$0xe] }
 0x12e   : > { %v1793_v6 = vpop.f32.mrf.mxu1  ;;  %5670 = vmatprep.mubr.bf16.mxu1 %v6807_v26  ;;  %v6984_v44 = vld [vmem:[#allocation2 + $0xb0] ss:$0 sps:$4 sm:$0x11]  }
 0x12f   : > { %v6965_v33 = vadd.f32 %v6799_v9, %v1793_v6  ;;  %v5192_v15 = vpop.f32.mrf.mxu0  ;;  %3915 = vmatmul.mubr.bf16.gmra.mxu0 %v6902_v16  ;;  %v3439_v50 = vrot.slane %v3437_v27, 1  ;;  %v3444_v16 = vshll.u32 %v6976_v11, 16  ;;  %v3115_v6 = vld [vmem:[#allocation2 + $0xb4] sm:$0xf]  ;;  %v3449_v27 = vshll.u32 %v6984_v44, 16 }
 0x130   : > { %v5576_v8 = vpop.f32.mrf.mxu1  ;;  %3922 = vmatprep.mubr.bf16.mxu0 %v3428_v37 }
 0x131   : > { %v6972_v2 = vadd.f32 %v5576_v8, %v6913_v25  ;;  %v5193_v7 = vpop.f32.mrf.mxu0  ;;  %v3566_v25 = vrot.slane %v6774_v49, 1  ;;  %v6991_v49 = vld [vmem:[#allocation2 + $0xb8] sm:$0xf]  ;;  %v3440_v62 = vsel %vm1081_vm1, %v3435_v17, %v3439_v50  ;;  %v7013_v50 = vld [vmem:[#allocation2 + $0xbc] ss:$0 sps:$4 sm:$0x11]  }
 0x132   : > { %v1806_v9 = vpop.f32.mrf.mxu1  ;;  %v5194_v47 = vadd.f32 %v5193_v7, %v5192_v15  ;;  %v3446_v7 = vrot.slane %v3444_v16, 1  ;;  %v3145_v17 = vld [vmem:[#allocation2 + $0x78] sm:$0xe] }
 0x133   : > { %v6981_v3 = vadd.f32 %v6877_v24, %v1806_v9  ;;  %v5195_v5 = vpop.f32.mrf.mxu0  ;;  %v3567_v15 = vsel %vm1338_vm9, %v3565_v1, %v3566_v25  ;;  %v3568_v9 = vrot.slane %v4900_v36, 1 }
 0x134   : > { %v5577_v60 = vpop.f32.mrf.mxu1 }
 0x135   : > { %v6987_v26 = vadd.f32 %v5577_v60, %v6921_v61  ;;  %v5196_v41 = vpop.f32.mrf.mxu0  ;;  %v4901_v61 = vcombine.low %v3143_v18, %v6821_v52  ;;  %5671 = vmatmul.mubr.bf16.gmra.mxu1 %v6810_v20  ;;  %v3569_v52 = vrot.slane %v6814_v53, 1  ;;  %v3447_v53 = vor.u32 %v3446_v7, %v3442_v35 }
 0x136   : > { %v1809_v24 = vpop.f32.mrf.mxu1  ;;  %v5197_v19 = vadd.f32 %v5196_v41, %v5195_v5  ;;  %5674 = vmatprep.mubr.bf16.mxu1 %v3567_v15  ;;  %v3144_v5 = vld [vmem:[#allocation2 + $0x6c] sm:$0xe]  ;;  %v7020_v15 = vld [vmem:[#allocation2 + $0xc4] sm:$0xf] }
 0x137   : > { %v6994_v22 = vadd.f32 %v6887_v13, %v1809_v24  ;;  %v5198_v37 = vpop.f32.mrf.mxu0  ;;  %v7005_v13 = vcombine.low %v3115_v6, %v6991_v49  ;;  %3923 = vmatmul.mubr.bf16.gmra.mxu0 %v6925_v29  ;;  %v3571_v20 = vrot.slane %v4901_v61, 1  ;;  %v3451_v24 = vrot.slane %v3449_v27, 1 }
 0x138   : > { %v5580_v8 = vpop.f32.mrf.mxu1  ;;  %3930 = vmatprep.mubr.bf16.mxu0 %v3440_v62  ;;  %v4902_v6 = vcombine.low %v3144_v5, %v6847_v32  ;;  %v3461_v62 = vshll.u32 %v7013_v50, 16  ;;  %v3578_v5 = vrot.slane %v6890_v21, 1  ;;  %v7043_v21 = vld [vmem:[#allocation2 + $0xd0] sm:$0xf] }
 0x139   : > { %v7001_v58 = vadd.f32 %v5580_v8, %v5194_v47  ;;  %v5199_v25 = vpop.f32.mrf.mxu0  ;;  %v3572_v47 = vrot.slane %v6838_v4, 1  ;;  %v3456_v29 = vshll.u32 %v7005_v13, 16  ;;  %v3117_v4 = vld [vmem:[#allocation2 + $0xc0] sm:$0xf]  ;;  %v3452_v7 = vsel %vm1081_vm1, %v3447_v53, %v3451_v24  ;;  %v3147_v53 = vld [vmem:[#allocation2 + $0x90] sm:$0xe] }
 0x13a   : > { %v1822_v1 = vpop.f32.mrf.mxu1  ;;  %v5200_v60 = vadd.f32 %v5199_v25, %v5198_v37  ;;  %v3454_v32 = vshrl.u32 %v7005_v13, 16  ;;  %v3575_v25 = vrot.slane %v6866_v55, 1  ;;  %v7038_v24 = vld [vmem:[#allocation2 + $0xc8] ss:$0 sps:$4 sm:$0x11]  }
 0x13b   : > { %v7010_v56 = vadd.f32 %v6944_v45, %v1822_v1  ;;  %v5201_v16 = vpop.f32.mrf.mxu0  ;;  %v3570_v45 = vsel %vm1338_vm9, %v3568_v9, %v3569_v52  ;;  %v3573_v37 = vsel %vm1338_vm9, %v3571_v20, %v3572_v47  ;;  %v3458_v9 = vrot.slane %v3456_v29, 1 }
 0x13c   : > { %v5581_v18 = vpop.f32.mrf.mxu1  ;;  %v7031_v52 = vcombine.low %v3117_v4, %v7020_v15  ;;  %v3574_v1 = vrot.slane %v4902_v6, 1 }
 0x13d   : > { %v7015_v41 = vadd.f32 %v5581_v18, %v5197_v19  ;;  %v5202_v61 = vpop.f32.mrf.mxu0  ;;  %v4903_v19 = vcombine.low %v3145_v17, %v6873_v39  ;;  %5675 = vmatmul.mubr.bf16.gmra.mxu1 %v3570_v45  ;;  %v3146_v18 = vld [vmem:[#allocation2 + $0x84] sm:$0xe]  ;;  %v3459_v45 = vor.u32 %v3458_v9, %v3454_v32  ;;  %v4905_v32 = vcombine.low %v3147_v53, %v6915_v57 }
 0x13e   : > { %v1825_v36 = vpop.f32.mrf.mxu1  ;;  %v5203_v35 = vadd.f32 %v5202_v61, %v5201_v16  ;;  %5678 = vmatprep.mubr.bf16.mxu1 %v3573_v37  ;;  %v3468_v55 = vshll.u32 %v7031_v52, 16  ;;  %v3576_v6 = vsel %vm1338_vm9, %v3574_v1, %v3575_v25  ;;  %v4904_v4 = vcombine.low %v3146_v18, %v6895_v31  ;;  %v3119_v61 = vld [vmem:[#allocation2 + $0xcc] sm:$0xf] }
 0x13f   : > { %v7023_v8 = vadd.f32 %v6959_v12, %v1825_v36  ;;  %v5204_v12 = vpop.f32.mrf.mxu0  ;;  %3931 = vmatmul.mubr.bf16.gmra.mxu0 %v6947_v46  ;;  %v3577_v47 = vrot.slane %v4903_v19, 1  ;;  %v3463_v36 = vrot.slane %v3461_v62, 1  ;;  %v3466_v9 = vshrl.u32 %v7031_v52, 16 }
 0x140   : > { %v5584_v27 = vpop.f32.mrf.mxu1  ;;  %3938 = vmatprep.mubr.bf16.mxu0 %v3452_v7  ;;  %v3580_v18 = vrot.slane %v4904_v4, 1  ;;  %v3584_v53 = vrot.slane %v6930_v34, 1 }
 0x141   : > { %v5205_v17 = vpop.f32.mrf.mxu0  ;;  %v3579_v7 = vsel %vm1338_vm9, %v3577_v47, %v3578_v5  ;;  %v3464_v31 = vsel %vm1081_vm1, %v3459_v45, %v3463_v36  ;;  %v3581_v47 = vrot.slane %v6910_v48, 1  ;;  %v3149_v45 = vld [vmem:[#allocation2 + $0xa8] sm:$0xe]  ;;  %v7062_v36 = vld [vmem:[#allocation2 + $0xd4] ss:$0 sps:$4 sm:$0x11]  }
 0x142   : > { %v1838_v20 = vpop.f32.mrf.mxu1  ;;  %v5206_v29 = vadd.f32 %v5205_v17, %v5204_v12  ;;  %v3473_v12 = vshll.u32 %v7038_v24, 16  ;;  %v3583_v17 = vrot.slane %v4905_v32, 1  ;;  %v4907_v32 = vcombine.low %v3149_v45, %v6962_v30 }
 0x143   : > { %v7035_v39 = vadd.f32 %v5200_v60, %v1838_v20  ;;  %v5207_v46 = vpop.f32.mrf.mxu0  ;;  %v3470_v20 = vrot.slane %v3468_v55, 1  ;;  %v3582_v48 = vsel %vm1338_vm9, %v3580_v18, %v3581_v47  ;;  %v3587_v47 = vrot.slane %v6954_v43, 1 }
 0x144   : > { %v5585_v16 = vpop.f32.mrf.mxu1  ;;  %v7045_v37 = vadd.f32 %v5584_v27, %v5206_v29  ;;  %v7055_v27 = vcombine.low %v3119_v61, %v7043_v21  ;;  %v3148_v29 = vld [vmem:[#allocation2 + $0x9c] sm:$0xe]  ;;  %v3585_v34 = vsel %vm1338_vm9, %v3583_v17, %v3584_v53  ;;  %v3589_v30 = vrot.slane %v4907_v32, 1  ;;  %v3150_v53 = vld [vmem:[#allocation2 + $0xb4] sm:$0xe] }
 0x145   : > { %v5208_v62 = vpop.f32.mrf.mxu0  ;;  %5679 = vmatmul.mubr.bf16.gmra.mxu1 %v3576_v6  ;;  %v3590_v17 = vrot.slane %v6984_v44, 1 }
 0x146   : > { %v1841_v60 = vpop.f32.mrf.mxu1  ;;  %v5209_v1 = vadd.f32 %v5208_v62, %v5207_v46  ;;  %5682 = vmatprep.mubr.bf16.mxu1 %v3579_v7  ;;  %v3471_v46 = vor.u32 %v3470_v20, %v3466_v9  ;;  %v3480_v4 = vshll.u32 %v7055_v27, 16 }
 0x147   : > { %v7047_v19 = vadd.f32 %v5203_v35, %v1841_v60  ;;  %v5210_v35 = vpop.f32.mrf.mxu0  ;;  %3939 = vmatmul.mubr.bf16.gmra.mxu0 %v6976_v11  ;;  %v3475_v60 = vrot.slane %v3473_v12, 1  ;;  %v4906_v11 = vcombine.low %v3148_v29, %v6933_v10 }
 0x148   : > { %v5588_v25 = vpop.f32.mrf.mxu1  ;;  %v7058_v57 = vadd.f32 %v5585_v16, %v5209_v1  ;;  %3946 = vmatprep.mubr.bf16.mxu0 %v3464_v31  ;;  %v3485_v1 = vshll.u32 %v7062_v36, 16  ;;  %v3478_v31 = vshrl.u32 %v7055_v27, 16  ;;  %v3482_v20 = vrot.slane %v3480_v4, 1 }
 0x149   : > { %v5211_v6 = vpop.f32.mrf.mxu0  ;;  %v3476_v12 = vsel %vm1081_vm1, %v3471_v46, %v3475_v60  ;;  %v3586_v10 = vrot.slane %v4906_v11, 1 }
 0x14a   : > { %v1854_v5 = vpop.f32.mrf.mxu1  ;;  %v5212_v55 = vadd.f32 %v5211_v6, %v5210_v35  ;;  %v3151_v6 = vld [vmem:[#allocation2 + $0xc0] sm:$0xe]  ;;  %v3487_v46 = vrot.slane %v3485_v1, 1 }
 0x14b   : > { %v5213_v16 = vpop.f32.mrf.mxu0  ;;  %v3588_v60 = vsel %vm1338_vm9, %v3586_v10, %v3587_v47 }
 0x14c   : > { %v5589_v61 = vpop.f32.mrf.mxu1  ;;  %v7067_v7 = vadd.f32 %v5212_v55, %v1854_v5  ;;  %v3483_v55 = vor.u32 %v3482_v20, %v3478_v31 }
 0x14d   : > { %v5214_v62 = vpop.f32.mrf.mxu0  ;;  %5683 = vmatmul.mubr.bf16.gmra.mxu1 %v3582_v48  ;;  %v4908_v48 = vcombine.low %v3150_v53, %v6991_v49 }
 0x14e   : > { %v5215_v9 = vadd.f32 %v5214_v62, %v5213_v16  ;;  %v1857_v35 = vpop.f32.mrf.mxu1  ;;  %5686 = vmatprep.mubr.bf16.mxu1 %v3585_v34  ;;  %v3591_v16 = vsel %vm1338_vm9, %v3589_v30, %v3590_v17  ;;  %v3488_v32 = vsel %vm1081_vm1, %v3483_v55, %v3487_v46  ;;  %v3599_v55 = vrot.slane %v7062_v36, 1 }
 0x14f   : > { %v5216_v18 = vpop.f32.mrf.mxu0  ;;  %3947 = vmatmul.mubr.bf16.gmra.mxu0 %v7005_v13  ;;  %v4909_v13 = vcombine.low %v3151_v6, %v7020_v15  ;;  %v3592_v1 = vrot.slane %v4908_v48, 1  ;;  %v3152_v15 = vld [vmem:[#allocation2 + $0xcc] sm:$0xe] }
 0x150   : > { %v7075_v5 = vadd.f32 %v5215_v9, %v1857_v35  ;;  %3954 = vmatprep.mubr.bf16.mxu0 %v3476_v12  ;;  %v3593_v9 = vrot.slane %v7013_v50, 1  ;;  %v4910_v30 = vcombine.low %v3152_v15, %v7043_v21 }
 0x151   : > { %v5217_v29 = vpop.f32.mrf.mxu0  ;;  %v3595_v49 = vrot.slane %v4909_v13, 1 }
 0x152   : > { %v5218_v45 = vadd.f32 %v5217_v29, %v5216_v18  ;;  %v3594_v10 = vsel %vm1338_vm9, %v3592_v1, %v3593_v9 }
 0x153   : > { %v5219_v4 = vpop.f32.mrf.mxu0 }
 0x154   : > { %v7081_v43 = vadd.f32 %v5588_v25, %v5218_v45  ;;  %v3596_v25 = vrot.slane %v7038_v24, 1  ;;  %v3598_v45 = vrot.slane %v4910_v30, 1 }
 0x155   : > { %v5220_v11 = vpop.f32.mrf.mxu0  ;;  %v5592_v44 = vpop.f32.mrf.mxu1  ;;  %5687 = vmatmul.mubr.bf16.gmra.mxu1 %v3588_v60 }
 0x156   : > { %v5221_v34 = vadd.f32 %v5220_v11, %v5219_v4  ;;  %5690 = vmatprep.mubr.bf16.mxu1 %v3591_v16 }
 0x157   : > { %v5222_v62 = vpop.f32.mrf.mxu0  ;;  %v1870_v12 = vpop.f32.mrf.mxu1  ;;  %3955 = vmatmul.mubr.bf16.gmra.mxu0 %v7031_v52 }
 0x158   : > { %v7087_v31 = vadd.f32 %v5589_v61, %v5221_v34  ;;  %3962 = vmatprep.mubr.bf16.mxu0 %v3488_v32  ;;  %v3597_v61 = vsel %vm1338_vm9, %v3595_v49, %v3596_v25 }
 0x159   : > { %v5223_v20 = vpop.f32.mrf.mxu0  ;;  %v5593_v35 = vpop.f32.mrf.mxu1 }
 0x15a   : > { %v5224_v18 = vadd.f32 %v5223_v20, %v5222_v62 }
 0x15b   : > { %v5225_v47 = vpop.f32.mrf.mxu0  ;;  %v1873_v17 = vpop.f32.mrf.mxu1 }
 0x15c   : > { %v7093_v50 = vadd.f32 %v5224_v18, %v1870_v12 }
 0x15d   : > { %v5226_v53 = vpop.f32.mrf.mxu0  ;;  %v5596_v52 = vpop.f32.mrf.mxu1  ;;  %5691 = vmatmul.mubr.bf16.gmra.mxu1 %v3594_v10 }
 0x15e   : > { %v5227_v29 = vadd.f32 %v5226_v53, %v5225_v47  ;;  %v7097_v24 = vadd.f32 %v5596_v52, %v6851_v59  ;;  %5694 = vmatprep.mubr.bf16.mxu1 %v3597_v61  ;;  %v3600_v59 = vsel %vm1338_vm9, %v3598_v45, %v3599_v55 }
 0x15f   : > { %v5228_v6 = vpop.f32.mrf.mxu0  ;;  %v1886_v46 = vpop.f32.mrf.mxu1  ;;  %3963 = vmatmul.mubr.bf16.gmra.mxu0 %v7055_v27 }
 0x160   : > { %v7100_v60 = vadd.f32 %v5227_v29, %v1873_v17  ;;  %v7104_v21 = vadd.f32 %v6825_v38, %v1886_v46 }
 0x161   : > { %v5229_v4 = vpop.f32.mrf.mxu0  ;;  %v5597_v48 = vpop.f32.mrf.mxu1 }
 0x162   : > { %v5230_v16 = vadd.f32 %v5229_v4, %v5228_v6  ;;  %v7107_v13 = vadd.f32 %v5597_v48, %v6863_v54 }
 0x163   : > { %v5231_v11 = vpop.f32.mrf.mxu0  ;;  %v1889_v34 = vpop.f32.mrf.mxu1 }
 0x164   : > { %v7110_v32 = vadd.f32 %v5592_v44, %v5230_v16  ;;  %v7113_v36 = vadd.f32 %v6835_v63, %v1889_v34 }
 0x165   : > { %v5232_v62 = vpop.f32.mrf.mxu0  ;;  %v5600_v27 = vpop.f32.mrf.mxu1  ;;  %5695 = vmatmul.mubr.bf16.gmra.mxu1 %v3600_v59 }
 0x166   : > { %v5233_v38 = vadd.f32 %v5232_v62, %v5231_v11  ;;  %v7116_v1 = vadd.f32 %v5600_v27, %v6928_v51 }
 0x167   : > { %v5620_v9 = vpop.f32.mrf.mxu0  ;;  %v1902_v12 = vpop.f32.mrf.mxu1 }
 0x168   : > { %v7118_v54 = vadd.f32 %v5593_v35, %v5233_v38  ;;  %v7121_v49 = vadd.f32 %v6892_v28, %v1902_v12 }
 0x169   : > { %v2865_v25 = vpop.f32.mrf.mxu0  ;;  %v5601_v44 = vpop.f32.mrf.mxu1 }
 0x16a   : > { %v7124_v15 = vadd.f32 %v5601_v44, %v6935_v42 }
 0x16b   : > { %v5621_v63 = vpop.f32.mrf.mxu0  ;;  %v1905_v20 = vpop.f32.mrf.mxu1 }
 0x16c   : > { %7527 = vst [vmem:[#allocation4_spill] sm:$0xff] %v7124_v15  ;;  %v7127_v18 = vadd.f32 %v6905_v40, %v1905_v20 }
 0x16d   : > { %v2868_v10 = vpop.f32.mrf.mxu0  ;;  %v5298_v51 = vpop.f32.mrf.mxu1 }
 0x16f   : > { %v5299_v47 = vpop.f32.mrf.mxu1  ;;  %v5624_v30 = vpop.f32.mrf.mxu0 }
 0x170   : > { %v5300_v17 = vadd.f32 %v5299_v47, %v5298_v51 }
 0x171   : > { %v5301_v35 = vpop.f32.mrf.mxu1  ;;  %v2881_v61 = vpop.f32.mrf.mxu0 }
 0x172   : > { %v2866_v53 = vadd.f32 %v5300_v17, %v2865_v25 }
 0x173   : > { %v5302_v28 = vpop.f32.mrf.mxu1  ;;  %v5625_v52 = vpop.f32.mrf.mxu0 }
 0x174   : > { %v7130_v29 = vadd.f32 %v2866_v53, %v6952_v0  ;;  %v5303_v42 = vadd.f32 %v5302_v28, %v5301_v35 }
 0x175   : > { %v5304_v6 = vpop.f32.mrf.mxu1  ;;  %v2884_v45 = vpop.f32.mrf.mxu0 }
 0x176   : > { %v2869_v55 = vadd.f32 %v5303_v42, %v2868_v10 }
 0x177   : > { %v5305_v46 = vpop.f32.mrf.mxu1  ;;  %v5628_v40 = vpop.f32.mrf.mxu0 }
 0x178   : > { %v7133_v4 = vadd.f32 %v2869_v55, %v6965_v33  ;;  %v5306_v48 = vadd.f32 %v5305_v46, %v5304_v6 }
 0x179   : > { %v5307_v16 = vpop.f32.mrf.mxu1  ;;  %v2897_v59 = vpop.f32.mrf.mxu0 }
 0x17a   : > { %v2874_v11 = vadd.f32 %v5620_v9, %v5306_v48 }
 0x17b   : > { %v5308_v34 = vpop.f32.mrf.mxu1  ;;  %v5629_v62 = vpop.f32.mrf.mxu0 }
 0x17c   : > { %v5309_v27 = vadd.f32 %v5308_v34, %v5307_v16  ;;  %v7136_v38 = vadd.f32 %v2874_v11, %v6942_v14 }
 0x17d   : > { %v5310_v0 = vpop.f32.mrf.mxu1  ;;  %v2900_v12 = vpop.f32.mrf.mxu0 }
 0x17e   : > { %v2877_v25 = vadd.f32 %v5621_v63, %v5309_v27 }
 0x17f   : > { %v5311_v44 = vpop.f32.mrf.mxu1  ;;  %v7138_v20 = vpop.f32.mrf.mxu0 }
 0x180   : > { %v5312_v10 = vadd.f32 %v5311_v44, %v5310_v0  ;;  %v7141_v33 = vadd.f32 %v2877_v25, %v6957_v23 }
 0x181   : > { %v5313_v51 = vpop.f32.mrf.mxu1  ;;  %v2913_v47 = vpop.f32.mrf.mxu0 }
 0x182   : > { %v2882_v17 = vadd.f32 %v5312_v10, %v2881_v61 }
 0x183   : > { %v5314_v9 = vpop.f32.mrf.mxu1  ;;  %v7143_v35 = vpop.f32.mrf.mxu0 }
 0x184   : > { %v5315_v53 = vadd.f32 %v5314_v9, %v5313_v51  ;;  %v7146_v14 = vadd.f32 %v2882_v17, %v6981_v3 }
 0x185   : > { %v5316_v28 = vpop.f32.mrf.mxu1  ;;  %v2916_v42 = vpop.f32.mrf.mxu0 }
 0x186   : > { %v2885_v63 = vadd.f32 %v5315_v53, %v2884_v45 }
 0x187   : > { %v5317_v6 = vpop.f32.mrf.mxu1  ;;  %v7148_v55 = vpop.f32.mrf.mxu0 }
 0x188   : > { %v5318_v46 = vadd.f32 %v5317_v6, %v5316_v28  ;;  %v7151_v23 = vadd.f32 %v2885_v63, %v6994_v22 }
 0x189   : > { %v5319_v48 = vpop.f32.mrf.mxu1  ;;  %v7153_v16 = vpop.f32.mrf.mxu0 }
 0x18a   : > { %v2890_v61 = vadd.f32 %v5624_v30, %v5318_v46 }
 0x18b   : > { %v5320_v11 = vpop.f32.mrf.mxu1  ;;  %v7155_v34 = vpop.f32.mrf.mxu0 }
 0x18c   : > { %v5321_v27 = vadd.f32 %v5320_v11, %v5319_v48  ;;  %v7158_v3 = vadd.f32 %v2890_v61, %v6972_v2 }
 0x18d   : > { %v5322_v0 = vpop.f32.mrf.mxu1  ;;  %v7160_v45 = vpop.f32.mrf.mxu0 }
 0x18e   : > { %v2893_v25 = vadd.f32 %v5625_v52, %v5321_v27 }
 0x18f   : > { %v5323_v44 = vpop.f32.mrf.mxu1  ;;  %v7162_v10 = vpop.f32.mrf.mxu0 }
 0x190   : > { %v5324_v22 = vadd.f32 %v5323_v44, %v5322_v0  ;;  %v7165_v51 = vadd.f32 %v2893_v25, %v6987_v26 }
 0x191   : > { %v5325_v17 = vpop.f32.mrf.mxu1  ;;  %v7167_v30 = vpop.f32.mrf.mxu0 }
 0x192   : > { %v2898_v9 = vadd.f32 %v5324_v22, %v2897_v59 }
 0x193   : > { %v5326_v53 = vpop.f32.mrf.mxu1  ;;  %v7169_v28 = vpop.f32.mrf.mxu0 }
 0x194   : > { %v5327_v2 = vadd.f32 %v5326_v53, %v5325_v17  ;;  %v7172_v63 = vadd.f32 %v2898_v9, %v7010_v56 }
 0x195   : > { %v5328_v6 = vpop.f32.mrf.mxu1  ;;  %v7174_v52 = vpop.f32.mrf.mxu0 }
 0x196   : > { %v2901_v46 = vadd.f32 %v5327_v2, %v2900_v12 }
 0x197   : > { %v5329_v48 = vpop.f32.mrf.mxu1  ;;  %v7176_v61 = vpop.f32.mrf.mxu0 }
 0x198   : > { %v5330_v26 = vadd.f32 %v5329_v48, %v5328_v6  ;;  %v7179_v11 = vadd.f32 %v2901_v46, %v7023_v8 }
 0x199   : > { %v5331_v27 = vpop.f32.mrf.mxu1  ;;  %v7181_v59 = vpop.f32.mrf.mxu0 }
 0x19a   : > { %7528 = vst [vmem:[#allocation5_spill] sm:$0xff] %v7179_v11  ;;  %v2906_v0 = vadd.f32 %v5628_v40, %v5330_v26 }
 0x19b   : > { %v5332_v25 = vpop.f32.mrf.mxu1  ;;  %v7183_v44 = vpop.f32.mrf.mxu0 }
 0x19c   : > { %v5333_v56 = vadd.f32 %v5332_v25, %v5331_v27  ;;  %v7186_v22 = vadd.f32 %v2906_v0, %v7001_v58 }
 0x19d   : > { %v5334_v17 = vpop.f32.mrf.mxu1  ;;  %v7188_v12 = vpop.f32.mrf.mxu0 }
 0x19e   : > { %v2909_v9 = vadd.f32 %v5629_v62, %v5333_v56 }
 0x19f   : > { %v5335_v53 = vpop.f32.mrf.mxu1  ;;  %v7190_v2 = vpop.f32.mrf.mxu0 }
 0x1a0   : > { %v5336_v8 = vadd.f32 %v5335_v53, %v5334_v17  ;;  %v7193_v6 = vadd.f32 %v2909_v9, %v7015_v41 }
 0x1a1   : > { %v5337_v46 = vpop.f32.mrf.mxu1  ;;  %v7195_v40 = vpop.f32.mrf.mxu0 }
 0x1a2   : > { %v2914_v48 = vadd.f32 %v5336_v8, %v2913_v47 }
 0x1a3   : > { %v5338_v26 = vpop.f32.mrf.mxu1  ;;  %v7197_v27 = vpop.f32.mrf.mxu0 }
 0x1a4   : > { %7529 = vst [vmem:[#allocation6_spill] sm:$0xff] %v7197_v27  ;;  %v5339_v58 = vadd.f32 %v5338_v26, %v5337_v46  ;;  %v7200_v0 = vadd.f32 %v2914_v48, %v7035_v39 }
 0x1a5   : > { %v5340_v25 = vpop.f32.mrf.mxu1  ;;  %v7202_v62 = vpop.f32.mrf.mxu0 }
 0x1a6   : > { %v2917_v56 = vadd.f32 %v5339_v58, %v2916_v42 }
 0x1a7   : > { %v5341_v15 = vpop.f32.mrf.mxu1  ;;  %v5434_v17 = vpop.f32.mrf.mxu0 }
 0x1a8   : > { %v5342_v53 = vadd.f32 %v5341_v15, %v5340_v25  ;;  %v7205_v41 = vadd.f32 %v2917_v56, %v7047_v19 }
 0x1a9   : > { %v5343_v9 = vpop.f32.mrf.mxu1  ;;  %v5435_v11 = vpop.f32.mrf.mxu0 }
 0x1aa   : > { %v2922_v47 = vadd.f32 %v7138_v20, %v5342_v53  ;;  %v7208_v8 = vadd.f32 %v5435_v11, %v5434_v17 }
 0x1ab   : > { %v5344_v46 = vpop.f32.mrf.mxu1  ;;  %v5437_v39 = vpop.f32.mrf.mxu0 }
 0x1ac   : > { %v5345_v48 = vadd.f32 %v5344_v46, %v5343_v9  ;;  %v7211_v26 = vadd.f32 %v2922_v47, %v7045_v37  ;;  %v5987_v9 = vmov 0.0  }
 0x1ad   : > { %v5346_v42 = vpop.f32.mrf.mxu1  ;;  %v5438_v58 = vpop.f32.mrf.mxu0  ;;  %267 = vst [vmem:[%s7228_s3] sm:$0x3] %v5987_v9 }
 0x1ae   : > { %v2925_v15 = vadd.f32 %v7143_v35, %v5345_v48  ;;  %v7214_v25 = vadd.f32 %v5438_v58, %v5437_v39 }
 0x1af   : > { %v5347_v19 = vpop.f32.mrf.mxu1  ;;  %v7216_v56 = vpop.f32.mrf.mxu0 }
 0x1b0   : > { %v5348_v27 = vadd.f32 %v5347_v19, %v5346_v42  ;;  %v7219_v20 = vadd.f32 %v2925_v15, %v7058_v57 }
 0x1b1   : > { %v5349_v11 = vpop.f32.mrf.mxu1  ;;  %v7221_v17 = vpop.f32.mrf.mxu0 }
 0x1b2   : > { %v2930_v37 = vadd.f32 %v5348_v27, %v7153_v16 }
 0x1b3   : > { %v5350_v35 = vpop.f32.mrf.mxu1  ;;  %v7230_v53 = vpop.f32.mrf.mxu0 }
 0x1b4   : > { %v5351_v47 = vadd.f32 %v5350_v35, %v5349_v11  ;;  %v7234_v57 = vadd.f32 %v2930_v37, %v7067_v7 }
 0x1b5   : > { %v5352_v46 = vpop.f32.mrf.mxu1  ;;  %v7236_v39 = vpop.f32.mrf.mxu0 }
 0x1b6   : > { %v2933_v16 = vadd.f32 %v5351_v47, %v7160_v45 }
 0x1b7   : > { %v5353_v27 = vpop.f32.mrf.mxu1  ;;  %v7239_v48 = vpop.f32.mrf.mxu0 }
 0x1b8   : > { %v5354_v42 = vadd.f32 %v5353_v27, %v5352_v46  ;;  %v7242_v58 = vadd.f32 %v2933_v16, %v7075_v5 }
 0x1b9   : > { %v5355_v15 = vpop.f32.mrf.mxu1  ;;  %v7244_v19 = vpop.f32.mrf.mxu0 }
 0x1ba   : > { %7530 = vst [vmem:[#allocation7_spill] sm:$0xff] %v7242_v58  ;;  %v2938_v11 = vadd.f32 %v7148_v55, %v5354_v42 }
 0x1bb   : > { %v5356_v35 = vpop.f32.mrf.mxu1  ;;  %v7247_v7 = vpop.f32.mrf.mxu0 }
 0x1bc   : > { %v5357_v37 = vadd.f32 %v5356_v35, %v5355_v15  ;;  %v7250_v9 = vadd.f32 %v2938_v11, %v7081_v43 }
 0x1bd   : > { %v5358_v45 = vpop.f32.mrf.mxu1  ;;  %v7252_v47 = vpop.f32.mrf.mxu0 }
 0x1be   : > { %7531 = vst [vmem:[#allocation8_spill] sm:$0xff] %v7250_v9  ;;  %v2941_v46 = vadd.f32 %v7155_v34, %v5357_v37 }
 0x1bf   : > { %v5359_v27 = vpop.f32.mrf.mxu1  ;;  %v7255_v5 = vpop.f32.mrf.mxu0 }
 0x1c0   : > { %v5360_v16 = vadd.f32 %v5359_v27, %v5358_v45  ;;  %v7258_v58 = vadd.f32 %v2941_v46, %v7087_v31 }
 0x1c1   : > { %v5361_v55 = vpop.f32.mrf.mxu1  ;;  %v7260_v42 = vpop.f32.mrf.mxu0 }
 0x1c2   : > { %7532 = vst [vmem:[#allocation9_spill] sm:$0xff] %v7258_v58  ;;  %v2946_v15 = vadd.f32 %v5360_v16, %v7167_v30 }
 0x1c3   : > { %v5362_v35 = vpop.f32.mrf.mxu1  ;;  %v7263_v43 = vpop.f32.mrf.mxu0 }
 0x1c4   : > { %v5363_v11 = vadd.f32 %v5362_v35, %v5361_v55  ;;  %v7266_v9 = vadd.f32 %v2946_v15, %v7093_v50 }
 0x1c5   : > { %v5364_v34 = vpop.f32.mrf.mxu1  ;;  %v7268_v37 = vpop.f32.mrf.mxu0 }
 0x1c6   : > { %7533 = vst [vmem:[#allocation10_spill] sm:$0xff] %v7266_v9  ;;  %v2949_v45 = vadd.f32 %v5363_v11, %v7174_v52 }
 0x1c7   : > { %v5365_v27 = vpop.f32.mrf.mxu1  ;;  %v7271_v31 = vpop.f32.mrf.mxu0 }
 0x1c8   : > { %v5366_v46 = vadd.f32 %v5365_v27, %v5364_v34  ;;  %v7274_v58 = vadd.f32 %v2949_v45, %v7100_v60 }
 0x1c9   : > { %v5367_v30 = vpop.f32.mrf.mxu1  ;;  %v7276_v16 = vpop.f32.mrf.mxu0 }
 0x1ca   : > { %7534 = vst [vmem:[#allocation11_spill] sm:$0xff] %v7274_v58  ;;  %v2954_v55 = vadd.f32 %v7162_v10, %v5366_v46 }
 0x1cb   : > { %v5368_v35 = vpop.f32.mrf.mxu1  ;;  %v7279_v50 = vpop.f32.mrf.mxu0 }
 0x1cc   : > { %v5369_v15 = vadd.f32 %v5368_v35, %v5367_v30  ;;  %v7282_v9 = vadd.f32 %v2954_v55, %v7110_v32 }
 0x1cd   : > { %v5370_v52 = vpop.f32.mrf.mxu1  ;;  %v7284_v11 = vpop.f32.mrf.mxu0 }
 0x1ce   : > { %7535 = vst [vmem:[#allocation12_spill] sm:$0xff] %v7282_v9  ;;  %v2957_v34 = vadd.f32 %v7169_v28, %v5369_v15 }
 0x1cf   : > { %v5371_v27 = vpop.f32.mrf.mxu1  ;;  %v7287_v60 = vpop.f32.mrf.mxu0 }
 0x1d0   : > { %v5372_v45 = vadd.f32 %v5371_v27, %v5370_v52  ;;  %v7290_v58 = vadd.f32 %v2957_v34, %v7118_v54 }
 0x1d1   : > { %v5373_v10 = vpop.f32.mrf.mxu1  ;;  %v7292_v46 = vpop.f32.mrf.mxu0 }
 0x1d2   : > { %7536 = vst [vmem:[#allocation13_spill] sm:$0xff] %v7290_v58  ;;  %v2962_v30 = vadd.f32 %v5372_v45, %v7181_v59 }
 0x1d3   : > { %v5374_v35 = vpop.f32.mrf.mxu1  ;;  %v7295_v32 = vpop.f32.mrf.mxu0 }
 0x1d4   : > { %v5375_v55 = vadd.f32 %v5374_v35, %v5373_v10  ;;  %v7298_v9 = vadd.f32 %v2962_v30, %v7104_v21 }
 0x1d5   : > { %v5376_v28 = vpop.f32.mrf.mxu1  ;;  %v7300_v15 = vpop.f32.mrf.mxu0 }
 0x1d6   : > { %7537 = vst [vmem:[#allocation14_spill] sm:$0xff] %v7298_v9  ;;  %v2965_v52 = vadd.f32 %v5375_v55, %v7188_v12 }
 0x1d7   : > { %v5377_v27 = vpop.f32.mrf.mxu1  ;;  %v7303_v54 = vpop.f32.mrf.mxu0 }
 0x1d8   : > { %v5378_v34 = vadd.f32 %v5377_v27, %v5376_v28  ;;  %v7306_v58 = vadd.f32 %v2965_v52, %v7113_v36 }
 0x1d9   : > { %v5379_v59 = vpop.f32.mrf.mxu1  ;;  %v7308_v45 = vpop.f32.mrf.mxu0 }
 0x1da   : > { %7538 = vst [vmem:[#allocation15_spill] sm:$0xff] %v7306_v58  ;;  %v2970_v10 = vadd.f32 %v7176_v61, %v5378_v34 }
 0x1db   : > { %v5380_v35 = vpop.f32.mrf.mxu1  ;;  %v7311_v21 = vpop.f32.mrf.mxu0 }
 0x1dc   : > { %v5381_v30 = vadd.f32 %v5380_v35, %v5379_v59  ;;  %v7314_v9 = vadd.f32 %v2970_v10, %v7097_v24 }
 0x1dd   : > { %v5382_v12 = vpop.f32.mrf.mxu1  ;;  %v7316_v55 = vpop.f32.mrf.mxu0 }
 0x1de   : > { %7539 = vst [vmem:[#allocation16_spill] sm:$0xff] %v7314_v9  ;;  %v2973_v28 = vadd.f32 %v7183_v44, %v5381_v30 }
 0x1df   : > { %v5383_v27 = vpop.f32.mrf.mxu1  ;;  %v7319_v36 = vpop.f32.mrf.mxu0 }
 0x1e0   : > { %v5384_v52 = vadd.f32 %v5383_v27, %v5382_v12  ;;  %v7322_v58 = vadd.f32 %v2973_v28, %v7107_v13 }
 0x1e1   : > { %v5385_v61 = vpop.f32.mrf.mxu1  ;;  %v7324_v34 = vpop.f32.mrf.mxu0 }
 0x1e2   : > { %7540 = vst [vmem:[#allocation17_spill] sm:$0xff] %v7322_v58  ;;  %v2978_v59 = vadd.f32 %v5384_v52, %v7195_v40 }
 0x1e3   : > { %v5386_v35 = vpop.f32.mrf.mxu1  ;;  %v7327_v24 = vpop.f32.mrf.mxu0 }
 0x1e4   : > { %v5387_v10 = vadd.f32 %v5386_v35, %v5385_v61  ;;  %v7330_v9 = vadd.f32 %v2978_v59, %v7121_v49 }
 0x1e5   : > { %v5388_v44 = vpop.f32.mrf.mxu1  ;;  %v7332_v30 = vpop.f32.mrf.mxu0 }
 0x1e6   : > { %7541 = vst [vmem:[#allocation18_spill] sm:$0xff] %v7330_v9  ;;  %v2981_v12 = vadd.f32 %v5387_v10, %v7202_v62 }
 0x1e7   : > { %v5389_v27 = vpop.f32.mrf.mxu1  ;;  %v7335_v13 = vpop.f32.mrf.mxu0 }
 0x1e8   : > { %v5390_v28 = vadd.f32 %v5389_v27, %v5388_v44  ;;  %v7338_v58 = vadd.f32 %v2981_v12, %v7127_v18  ;;  %v5442_v18 = vadd.f32 %v7221_v17, %v7216_v56 }
 0x1e9   : > { %v7340_v40 = vpop.f32.mrf.mxu1  ;;  %v7342_v52 = vpop.f32.mrf.mxu0 }
 0x1ea   : > { %7542 = vst [vmem:[#allocation19_spill] sm:$0xff] %v7338_v58  ;;  %7543 = vst [vmem:[#allocation20_spill] sm:$0xff] %v7340_v40  ;;  %v2986_v61 = vadd.f32 %v7190_v2, %v5390_v28  ;;  %v5445_v2 = vadd.f32 %v7236_v39, %v7230_v53  ;;  %v5454_v53 = vadd.f32 %v7260_v42, %v7255_v5 }
 0x1eb   : > { %v7345_v49 = vpop.f32.mrf.mxu1  ;;  %v7347_v59 = vpop.f32.mrf.mxu0 }
 0x1ec   : > { %7544 = vst [vmem:[#allocation21_spill] sm:$0xff] %v7345_v49  ;;  %v7350_v35 = vadd.f32 %v2986_v61, %v7116_v1 }
 0x1ed   : > { %v5668_v62 = vpop.f32.mrf.mxu1  ;;  %v7352_v10 = vpop.f32.mrf.mxu0 }
 0x1ee   : > { %7545 = vst [vmem:[#allocation22_spill] sm:$0xff] %v7350_v35  ;;  %v4014_v27 = vadd.f32 %v5668_v62, %v5442_v18 }
 0x1ef   : > { %v4005_v44 = vpop.f32.mrf.mxu1  ;;  %v7356_v12 = vpop.f32.mrf.mxu0 }
 0x1f0   : > { %v4006_v28 = vadd.f32 %v7208_v8, %v4005_v44  ;;  %v4166_v56 = vadd.f32 %v4014_v27, %v7136_v38 }
 0x1f1   : > { %v5669_v58 = vpop.f32.mrf.mxu1  ;;  %v7361_v9 = vpop.f32.mrf.mxu0 }
 0x1f2   : > { %v4164_v1 = vadd.f32 %v4006_v28, %v7130_v29  ;;  %v4017_v61 = vadd.f32 %v5669_v58, %v5445_v2  ;;  %v5451_v2 = vadd.f32 %v7252_v47, %v7247_v7 }
 0x1f3   : > { %v4008_v35 = vpop.f32.mrf.mxu1  ;;  %v7364_v49 = vpop.f32.mrf.mxu0 }
 0x1f4   : > { %v4167_v17 = vadd.f32 %v4017_v61, %v7141_v33  ;;  %v4009_v40 = vadd.f32 %v7214_v25, %v4008_v35  ;;  %v5448_v33 = vadd.f32 %v7244_v19, %v7239_v48  ;;  %v5457_v25 = vadd.f32 %v7268_v37, %v7263_v43 }
 0x1f5   : > { %v5672_v29 = vpop.f32.mrf.mxu1  ;;  %v7378_v8 = vpop.f32.mrf.mxu0  ;;  %v4458_v35 = vmul.f32 %v4164_v1, %v4164_v1  ;;  %v4460_v48 = vmul.f32 %v4166_v56, %v4166_v56 }
 0x1f6   : > { %v5059_v39 = vpack.c.bf16 %v4167_v17, %v4166_v56  ;;  %v4165_v38 = vadd.f32 %v4009_v40, %v7133_v4  ;;  %v4030_v58 = vadd.f32 %v5672_v29, %v5454_v53  ;;  %v4461_v28 = vmul.f32 %v4167_v17, %v4167_v17 }
 0x1f7   : > { %v4021_v5 = vpop.f32.mrf.mxu1  ;;  %v7385_v42 = vpop.f32.mrf.mxu0 }
 0x1f8   : > { %5131 = vst [vmem:[%s7376_s24 + $0x8] sm:$0xff] %v5059_v39   ;;  %v5054_v62 = vpack.c.bf16 %v4165_v38, %v4164_v1  ;;  %v4421_v18 = vadd.f32 %v4165_v38, %v4164_v1  ;;  %v4459_v44 = vmul.f32 %v4165_v38, %v4165_v38  ;;  %v4022_v4 = vadd.f32 %v5448_v33, %v4021_v5 }
 0x1f9   : > { %v5673_v40 = vpop.f32.mrf.mxu1  ;;  %v7390_v27 = vpop.f32.mrf.mxu0  ;;  %v4170_v61 = vadd.f32 %v4030_v58, %v7158_v3  ;;  %v5460_v33 = vadd.f32 %v7276_v16, %v7271_v31 }
 0x1fa   : > { %5055 = vst [vmem:[%s7376_s24] sm:$0xff] %v5054_v62   ;;  %v4422_v19 = vadd.f32 %v4421_v18, %v4166_v56  ;;  %v4490_v43 = vadd.f32 %v4459_v44, %v4458_v35  ;;  %v4033_v37 = vadd.f32 %v5673_v40, %v5457_v25  ;;  %v4168_v53 = vadd.f32 %v4022_v4, %v7146_v14 }
 0x1fb   : > { %v4024_v29 = vpop.f32.mrf.mxu1  ;;  %v7395_v1 = vpop.f32.mrf.mxu0  ;;  %v5466_v56 = vadd.f32 %v7292_v46, %v7287_v60 }
 0x1fc   : > { %v4491_v39 = vadd.f32 %v4490_v43, %v4460_v48  ;;  %v4423_v38 = vadd.f32 %v4422_v19, %v4167_v17  ;;  %v4171_v7 = vadd.f32 %v4033_v37, %v7165_v51  ;;  %v4025_v47 = vadd.f32 %v5451_v2, %v4024_v29 }
 0x1fd   : > { %v5676_v25 = vpop.f32.mrf.mxu1  ;;  %v7402_v5 = vpop.f32.mrf.mxu0  ;;  %v4462_v14 = vmul.f32 %v4168_v53, %v4168_v53  ;;  %v5469_v51 = vadd.f32 %v7300_v15, %v7295_v32  ;;  %v4464_v19 = vmul.f32 %v4170_v61, %v4170_v61 }
 0x1fe   : > { %v4424_v3 = vadd.f32 %v4423_v38, %v4168_v53  ;;  %v4492_v58 = vadd.f32 %v4491_v39, %v4461_v28  ;;  %v5069_v35 = vpack.c.bf16 %v4171_v7, %v4170_v61  ;;  %v4169_v62 = vadd.f32 %v4025_v47, %v7151_v23 }
 0x1ff   : > { %v4037_v17 = vpop.f32.mrf.mxu1  ;;  %v7405_v18 = vpop.f32.mrf.mxu0  ;;  %v4046_v16 = vadd.f32 %v5676_v25, %v5466_v56  ;;  %v5463_v23 = vadd.f32 %v7284_v11, %v7279_v50  ;;  %v4465_v38 = vmul.f32 %v4171_v7, %v4171_v7  ;;  %v7546_v25 = vld [vmem:[#allocation5_spill] sm:$0xff] }
 0x200   : > { %v4493_v31 = vadd.f32 %v4492_v58, %v4462_v14  ;;  %5133 = vst [vmem:[%s7376_s24 + $0x18] sm:$0xff] %v5069_v35   ;;  %v4038_v60 = vadd.f32 %v5460_v33, %v4037_v17  ;;  %v5064_v46 = vpack.c.bf16 %v4169_v62, %v4168_v53  ;;  %v4425_v44 = vadd.f32 %v4424_v3, %v4169_v62 }
 0x201   : > { %v4463_v2 = vmul.f32 %v4169_v62, %v4169_v62  ;;  %v5677_v4 = vpop.f32.mrf.mxu1  ;;  %v7410_v40 = vpop.f32.mrf.mxu0  ;;  %v4174_v53 = vadd.f32 %v4046_v16, %v7186_v22  ;;  %v5481_v22 = vadd.f32 %v7332_v30, %v7327_v24  ;;  %v5475_v24 = vadd.f32 %v7316_v55, %v7311_v21 }
 0x202   : > { %v4049_v48 = vadd.f32 %v5677_v4, %v5469_v51  ;;  %5132 = vst [vmem:[%s7376_s24 + $0x10] sm:$0xff] %v5064_v46   ;;  %v4426_v43 = vadd.f32 %v4425_v44, %v4170_v61  ;;  %v4172_v32 = vadd.f32 %v4038_v60, %v7172_v63  ;;  %v5472_v61 = vadd.f32 %v7308_v45, %v7303_v54 }
 0x203   : > { %v4494_v37 = vadd.f32 %v4493_v31, %v4463_v2  ;;  %v4040_v15 = vpop.f32.mrf.mxu1  ;;  %v7416_v28 = vpop.f32.mrf.mxu0  ;;  %v5478_v63 = vadd.f32 %v7324_v34, %v7319_v36  ;;  %v4468_v16 = vmul.f32 %v4174_v53, %v4174_v53 }
 0x204   : > { %v4175_v29 = vadd.f32 %v4049_v48, %v7193_v6  ;;  %v4041_v39 = vadd.f32 %v5463_v23, %v4040_v15  ;;  %v4427_v33 = vadd.f32 %v4426_v43, %v4171_v7  ;;  %v4466_v14 = vmul.f32 %v4172_v32, %v4172_v32 }
 0x205   : > { %v4495_v47 = vadd.f32 %v4494_v37, %v4464_v19  ;;  %v5680_v50 = vpop.f32.mrf.mxu1  ;;  %v7420_v11 = vpop.f32.mrf.mxu0  ;;  %v5484_v15 = vadd.f32 %v7342_v52, %v7335_v13 }
 0x206   : > { %v5079_v56 = vpack.c.bf16 %v4175_v29, %v4174_v53  ;;  %v4173_v3 = vadd.f32 %v4041_v39, %v7546_v25  ;;  %v4428_v6 = vadd.f32 %v4427_v33, %v4172_v32  ;;  %v4062_v54 = vadd.f32 %v5680_v50, %v5478_v63 }
 0x207   : > { %v4496_v58 = vadd.f32 %v4495_v47, %v4465_v38  ;;  %v4053_v7 = vpop.f32.mrf.mxu1  ;;  %v7429_v35 = vpop.f32.mrf.mxu0  ;;  %v4469_v43 = vmul.f32 %v4175_v29, %v4175_v29 }
 0x208   : > { %5135 = vst [vmem:[%s7376_s24 + $0x28] sm:$0xff] %v5079_v56   ;;  %v5074_v62 = vpack.c.bf16 %v4173_v3, %v4172_v32  ;;  %v4467_v17 = vmul.f32 %v4173_v3, %v4173_v3  ;;  %v4054_v45 = vadd.f32 %v5472_v61, %v4053_v7  ;;  %v4429_v36 = vadd.f32 %v4428_v6, %v4173_v3 }
 0x209   : > { %v4497_v51 = vadd.f32 %v4496_v58, %v4466_v14  ;;  %v5681_v34 = vpop.f32.mrf.mxu1  ;;  %v7432_v31 = vpop.f32.mrf.mxu0  ;;  %v4178_v23 = vadd.f32 %v4062_v54, %v7211_v26  ;;  %v5493_v26 = vadd.f32 %v7378_v8, %v7364_v49  ;;  %v7547_v58 = vld [vmem:[#allocation8_spill] sm:$0xff] }
 0x20a   : > { %5134 = vst [vmem:[%s7376_s24 + $0x20] sm:$0xff] %v5074_v62   ;;  %v4065_v30 = vadd.f32 %v5681_v34, %v5481_v22  ;;  %v4430_v60 = vadd.f32 %v4429_v36, %v4174_v53  ;;  %v4176_v44 = vadd.f32 %v4054_v45, %v7200_v0  ;;  %v5490_v0 = vadd.f32 %v7361_v9, %v7356_v12  ;;  %v7548_v62 = vld [vmem:[#allocation9_spill] sm:$0xff] }
 0x20b   : > { %v4498_v46 = vadd.f32 %v4497_v51, %v4467_v17  ;;  %v4056_v2 = vpop.f32.mrf.mxu1  ;;  %v7438_v4 = vpop.f32.mrf.mxu0  ;;  %v4472_v8 = vmul.f32 %v4178_v23, %v4178_v23 }
 0x20c   : > { %v4179_v48 = vadd.f32 %v4065_v30, %v7219_v20  ;;  %v4057_v19 = vadd.f32 %v5475_v24, %v4056_v2  ;;  %v4431_v32 = vadd.f32 %v4430_v60, %v4175_v29  ;;  %v4470_v38 = vmul.f32 %v4176_v44, %v4176_v44  ;;  %v7549_v30 = vld [vmem:[#allocation7_spill] sm:$0xff] }
 0x20d   : > { %v4499_v37 = vadd.f32 %v4498_v46, %v4468_v16  ;;  %v5684_v21 = vpop.f32.mrf.mxu1  ;;  %v7442_v55 = vpop.f32.mrf.mxu0  ;;  %v5502_v24 = vadd.f32 %v7410_v40, %v7405_v18  ;;  %v5505_v60 = vadd.f32 %v7420_v11, %v7416_v28 }
 0x20e   : > { %v5089_v53 = vpack.c.bf16 %v4179_v48, %v4178_v23  ;;  %v4177_v39 = vadd.f32 %v4057_v19, %v7205_v41  ;;  %v4432_v20 = vadd.f32 %v4431_v32, %v4176_v44  ;;  %v4078_v13 = vadd.f32 %v5684_v21, %v5490_v0 }
 0x20f   : > { %v4500_v47 = vadd.f32 %v4499_v37, %v4469_v43  ;;  %v4069_v29 = vpop.f32.mrf.mxu1  ;;  %v7451_v33 = vpop.f32.mrf.mxu0  ;;  %v5487_v41 = vadd.f32 %v7352_v10, %v7347_v59  ;;  %v4473_v45 = vmul.f32 %v4179_v48, %v4179_v48  ;;  %v5496_v10 = vadd.f32 %v7390_v27, %v7385_v42 }
 0x210   : > { %5137 = vst [vmem:[%s7376_s24 + $0x38] sm:$0xff] %v5089_v53   ;;  %v5084_v50 = vpack.c.bf16 %v4177_v39, %v4176_v44  ;;  %v4471_v61 = vmul.f32 %v4177_v39, %v4177_v39  ;;  %v4070_v52 = vadd.f32 %v5484_v15, %v4069_v29  ;;  %v4433_v9 = vadd.f32 %v4432_v20, %v4177_v39  ;;  %v7550_v53 = vld [vmem:[#allocation10_spill] sm:$0xff]  ;;  %v7552_v29 = vld [vmem:[#allocation13_spill] sm:$0xff] }
 0x211   : > { %v4501_v63 = vadd.f32 %v4500_v47, %v4470_v38  ;;  %v5685_v12 = vpop.f32.mrf.mxu1  ;;  %v5513_v56 = vpop.f32.mrf.mxu0  ;;  %v4182_v7 = vadd.f32 %v4078_v13, %v7547_v58  ;;  %v5499_v21 = vadd.f32 %v7402_v5, %v7395_v1  ;;  %v7551_v38 = vld [vmem:[#allocation12_spill] sm:$0xff] }
 0x212   : > { %5136 = vst [vmem:[%s7376_s24 + $0x30] sm:$0xff] %v5084_v50   ;;  %v4081_v49 = vadd.f32 %v5685_v12, %v5493_v26  ;;  %v4434_v25 = vadd.f32 %v4433_v9, %v4178_v23  ;;  %v4180_v22 = vadd.f32 %v4070_v52, %v7234_v57  ;;  %v5508_v9 = vadd.f32 %v7432_v31, %v7429_v35 }
 0x213   : > { %v4502_v3 = vadd.f32 %v4501_v63, %v4471_v61  ;;  %v4072_v6 = vpop.f32.mrf.mxu1  ;;  %v5515_v14 = vpop.f32.mrf.mxu0  ;;  %v4476_v11 = vmul.f32 %v4182_v7, %v4182_v7  ;;  %v5514_v12 = vadd.f32 %v5513_v56, %v7451_v33  ;;  %v7554_v33 = vld [vmem:[#allocation20_spill] sm:$0xff]  ;;  %v7555_v56 = vld [vmem:[#allocation21_spill] sm:$0xff] }
 0x214   : > { %v4183_v17 = vadd.f32 %v4081_v49, %v7548_v62  ;;  %v4073_v54 = vadd.f32 %v5487_v41, %v4072_v6  ;;  %v4435_v36 = vadd.f32 %v4434_v25, %v4179_v48  ;;  %v4474_v44 = vmul.f32 %v4180_v22, %v4180_v22  ;;  %v7553_v49 = vld [vmem:[#allocation11_spill] sm:$0xff] }
 0x215   : > { %v4503_v51 = vadd.f32 %v4502_v3, %v4472_v8  ;;  %v5688_v34 = vpop.f32.mrf.mxu1  ;;  %v5516_v59 = vpop.f32.mrf.mxu0 }
 0x216   : > { %v5099_v57 = vpack.c.bf16 %v4183_v17, %v4182_v7  ;;  %v4181_v16 = vadd.f32 %v4073_v54, %v7549_v30  ;;  %v4436_v46 = vadd.f32 %v4435_v36, %v4180_v22  ;;  %v4094_v42 = vadd.f32 %v5688_v34, %v5502_v24  ;;  %v7556_v30 = vld [vmem:[#allocation14_spill] sm:$0xff] }
 0x217   : > { %v4504_v2 = vadd.f32 %v4503_v51, %v4473_v45  ;;  %v4085_v23 = vpop.f32.mrf.mxu1  ;;  %v7467_v48 = vpop.f32.mrf.mxu0  ;;  %v4477_v13 = vmul.f32 %v4183_v17, %v4183_v17  ;;  %v5517_v6 = vadd.f32 %v5516_v59, %v5515_v14  ;;  %v5393_v34 = vadd.f32 %v7555_v56, %v7554_v33 }
 0x218   : > { %5139 = vst [vmem:[%s7376_s24 + $0x48] sm:$0xff] %v5099_v57   ;;  %v5094_v19 = vpack.c.bf16 %v4181_v16, %v4180_v22  ;;  %v4475_v43 = vmul.f32 %v4181_v16, %v4181_v16  ;;  %v4086_v27 = vadd.f32 %v5496_v10, %v4085_v23  ;;  %v4437_v18 = vadd.f32 %v4436_v46, %v4181_v16  ;;  %v7558_v23 = vld [vmem:[#allocation17_spill] sm:$0xff] }
 0x219   : > { %v4505_v37 = vadd.f32 %v4504_v2, %v4474_v44  ;;  %v5689_v40 = vpop.f32.mrf.mxu1  ;;  %v5519_v32 = vpop.f32.mrf.mxu0  ;;  %v4186_v47 = vadd.f32 %v4094_v42, %v7551_v38  ;;  %v5511_v10 = vadd.f32 %v7442_v55, %v7438_v4  ;;  %v7557_v44 = vld [vmem:[#allocation16_spill] sm:$0xff] }
 0x21a   : > { %5138 = vst [vmem:[%s7376_s24 + $0x40] sm:$0xff] %v5094_v19   ;;  %v4097_v28 = vadd.f32 %v5689_v40, %v5505_v60  ;;  %v4438_v15 = vadd.f32 %v4437_v18, %v4182_v7  ;;  %v4184_v39 = vadd.f32 %v4086_v27, %v7550_v53  ;;  %v7559_v40 = vld [vmem:[#allocation6_spill] sm:$0xff] }
 0x21b   : > { %v4506_v0 = vadd.f32 %v4505_v37, %v4475_v43  ;;  %v4088_v26 = vpop.f32.mrf.mxu1  ;;  %v7474_v20 = vpop.f32.mrf.mxu0  ;;  %v4480_v14 = vmul.f32 %v4186_v47, %v4186_v47 }
 0x21c   : > { %v4187_v50 = vadd.f32 %v4097_v28, %v7552_v29  ;;  %v4089_v61 = vadd.f32 %v5499_v21, %v4088_v26  ;;  %v4439_v63 = vadd.f32 %v4438_v15, %v4183_v17  ;;  %v4478_v3 = vmul.f32 %v4184_v39, %v4184_v39  ;;  %v7560_v15 = vld [vmem:[#allocation15_spill] sm:$0xff] }
 0x21d   : > { %v4507_v52 = vadd.f32 %v4506_v0, %v4476_v11  ;;  %v5692_v1 = vpop.f32.mrf.mxu1  ;;  %v5522_v5 = vpop.f32.mrf.mxu0  ;;  %v2989_v21 = vadd.f32 %v7559_v40, %v5393_v34  ;;  %v5520_v28 = vadd.f32 %v5519_v32, %v7467_v48 }
 0x21e   : > { %v5109_v41 = vpack.c.bf16 %v4187_v50, %v4186_v47  ;;  %v4185_v8 = vadd.f32 %v4089_v61, %v7553_v49  ;;  %v4440_v25 = vadd.f32 %v4439_v63, %v4184_v39  ;;  %v4110_v54 = vadd.f32 %v5692_v1, %v5514_v12 }
 0x21f   : > { %v4508_v22 = vadd.f32 %v4507_v52, %v4477_v13  ;;  %v4101_v58 = vpop.f32.mrf.mxu1  ;;  %v5524_v7 = vpop.f32.mrf.mxu0  ;;  %v4481_v27 = vmul.f32 %v4187_v50, %v4187_v50  ;;  %v5523_v48 = vadd.f32 %v5522_v5, %v7474_v20 }
 0x220   : > { %5141 = vst [vmem:[%s7376_s24 + $0x58] sm:$0xff] %v5109_v41   ;;  %v5104_v62 = vpack.c.bf16 %v4185_v8, %v4184_v39  ;;  %v4479_v17 = vmul.f32 %v4185_v8, %v4185_v8  ;;  %v4102_v45 = vadd.f32 %v5508_v9, %v4101_v58  ;;  %v4441_v36 = vadd.f32 %v4440_v25, %v4185_v8  ;;  %v7561_v9 = vld [vmem:[#allocation4_spill] sm:$0xff]  ;;  %v7562_v25 = vld [vmem:[#allocation18_spill] sm:$0xff] }
 0x221   : > { %v4509_v51 = vadd.f32 %v4508_v22, %v4478_v3  ;;  %v5693_v35 = vpop.f32.mrf.mxu1  ;;  %v5525_v31 = vpop.f32.mrf.mxu0  ;;  %v4190_v2 = vadd.f32 %v4110_v54, %v7557_v44  ;;  %v3055_v12 = vadd.f32 %v2989_v21, %v7561_v9 }
 0x222   : > { %5140 = vst [vmem:[%s7376_s24 + $0x50] sm:$0xff] %v5104_v62   ;;  %v4113_v24 = vadd.f32 %v5693_v35, %v5517_v6  ;;  %v4442_v59 = vadd.f32 %v4441_v36, %v4186_v47  ;;  %v4188_v16 = vadd.f32 %v4102_v45, %v7556_v30  ;;  %v5526_v42 = vadd.f32 %v5525_v31, %v5524_v7  ;;  %v7563_v6 = vld [vmem:[#allocation22_spill] sm:$0xff]  ;;  %v7564_v36 = vld [vmem:[#allocation19_spill] sm:$0xff] }
 0x223   : > { %v4510_v57 = vadd.f32 %v4509_v51, %v4479_v17  ;;  %v4104_v60 = vpop.f32.mrf.mxu1  ;;  %v5527_v46 = vpop.f32.mrf.mxu0  ;;  %v4484_v41 = vmul.f32 %v4190_v2, %v4190_v2 }
 0x224   : > { %v4191_v19 = vadd.f32 %v4113_v24, %v7558_v23  ;;  %v4105_v43 = vadd.f32 %v5511_v10, %v4104_v60  ;;  %v4443_v18 = vadd.f32 %v4442_v59, %v4187_v50  ;;  %v4482_v39 = vmul.f32 %v4188_v16, %v4188_v16 }
 0x225   : > { %v4511_v37 = vadd.f32 %v4510_v57, %v4480_v14  ;;  %v5696_v4 = vpop.f32.mrf.mxu1  ;;  %v5528_v55 = vpop.f32.mrf.mxu0 }
 0x226   : > { %v5119_v11 = vpack.c.bf16 %v4191_v19, %v4190_v2  ;;  %v4189_v0 = vadd.f32 %v4105_v43, %v7560_v15  ;;  %v4444_v53 = vadd.f32 %v4443_v18, %v4188_v16  ;;  %v5529_v47 = vadd.f32 %v5528_v55, %v5527_v46 }
 0x227   : > { %v4512_v26 = vadd.f32 %v4511_v37, %v4481_v27  ;;  %v4117_v38 = vpop.f32.mrf.mxu1  ;;  %v4126_v13 = vadd.f32 %v5696_v4, %v5526_v42  ;;  %v4485_v17 = vmul.f32 %v4191_v19, %v4191_v19  ;;  %v4420_v4 = vld [vmem:[%s7228_s3] sm:$0x3] }
 0x228   : > { %5143 = vst [vmem:[%s7376_s24 + $0x68] sm:$0xff] %v5119_v11   ;;  %v5114_v29 = vpack.c.bf16 %v4189_v0, %v4188_v16  ;;  %v4483_v61 = vmul.f32 %v4189_v0, %v4189_v0  ;;  %v4118_v50 = vadd.f32 %v5520_v28, %v4117_v38  ;;  %v4445_v63 = vadd.f32 %v4444_v53, %v4189_v0 }
 0x229   : > { %v4513_v52 = vadd.f32 %v4512_v26, %v4482_v39  ;;  %v5697_v1 = vpop.f32.mrf.mxu1  ;;  %v4194_v58 = vadd.f32 %v4126_v13, %v7563_v6 }
 0x22a   : > { %5142 = vst [vmem:[%s7376_s24 + $0x60] sm:$0xff] %v5114_v29   ;;  %v4129_v32 = vadd.f32 %v5697_v1, %v5529_v47  ;;  %v4446_v49 = vadd.f32 %v4445_v63, %v4190_v2  ;;  %v4192_v3 = vadd.f32 %v4118_v50, %v7562_v25 }
 0x22b   : > { %v4514_v8 = vadd.f32 %v4513_v52, %v4483_v61  ;;  %v4120_v22 = vpop.f32.mrf.mxu1  ;;  %v4488_v24 = vmul.f32 %v4194_v58, %v4194_v58 }
 0x22c   : > { %v4195_v7 = vadd.f32 %v4129_v32, %v3055_v12  ;;  %v4121_v62 = vadd.f32 %v5523_v48, %v4120_v22  ;;  %v4447_v45 = vadd.f32 %v4446_v49, %v4191_v19  ;;  %v4486_v35 = vmul.f32 %v4192_v3, %v4192_v3 }
 0x22d   : > { %v4515_v54 = vadd.f32 %v4514_v8, %v4484_v41 }
 0x22e   : > { %v5129_v51 = vpack.c.bf16 %v4195_v7, %v4194_v58  ;;  %v4193_v20 = vadd.f32 %v4121_v62, %v7564_v36  ;;  %v4448_v5 = vadd.f32 %v4447_v45, %v4192_v3  ;;  %v4489_v57 = vmul.f32 %v4195_v7, %v4195_v7 }
 0x22f   : > { %v4516_v31 = vadd.f32 %v4515_v54, %v4485_v17 }
 0x230   : > { %5145 = vst [vmem:[%s7376_s24 + $0x78] sm:$0xff] %v5129_v51   ;;  %v5124_v33 = vpack.c.bf16 %v4193_v20, %v4192_v3  ;;  %v4487_v56 = vmul.f32 %v4193_v20, %v4193_v20  ;;  %v4449_v10 = vadd.f32 %v4448_v5, %v4193_v20 }
 0x231   : > { %v4517_v34 = vadd.f32 %v4516_v31, %v4486_v35 }
 0x232   : > { %5144 = vst [vmem:[%s7376_s24 + $0x70] sm:$0xff] %v5124_v33   ;;  %v4450_v14 = vadd.f32 %v4449_v10, %v4194_v58 }
 0x233   : > { %v4518_v59 = vadd.f32 %v4517_v34, %v4487_v56 }
 0x234   : > { %v4451_v30 = vadd.f32 %v4450_v14, %v4195_v7 }
 0x235   : > { %v4519_v16 = vadd.f32 %v4518_v59, %v4488_v24 }
 0x236   : > { %v4452_v60 = vrot.slane %v4451_v30, 4 }
 0x237   : > { %v4520_v46 = vadd.f32 %v4519_v16, %v4489_v57 }
 0x238   : > { %v4453_v44 = vadd.f32 %v4452_v60, %v4451_v30 }
 0x239   : > { %v4521_v2 = vrot.slane %v4520_v46, 4 }
 0x23a   : > { %v4454_v23 = vrot.slane %v4453_v44, 2 }
 0x23b   : > { %v4522_v19 = vadd.f32 %v4521_v2, %v4520_v46 }
 0x23c   : > { %v4455_v43 = vadd.f32 %v4454_v23, %v4453_v44 }
 0x23d   : > { %v4523_v42 = vrot.slane %v4522_v19, 2 }
 0x23e   : > { %v4456_v27 = vrot.slane %v4455_v43, 1 }
 0x23f   : > { %v4524_v37 = vadd.f32 %v4523_v42, %v4522_v19 }
 0x240   : > { %v4457_v55 = vadd.f32 %v4456_v27, %v4455_v43 }
 0x241   : > { %v4525_v18 = vrot.slane %v4524_v37, 1 }
 0x243   : > { %v4526_v40 = vadd.f32 %v4525_v18, %v4524_v37 }
 0x245   : > { %v4528_v21 = vsel %vm688_vm2, %v4457_v55, %v4526_v40 }
 0x246   : > { %v4529_v28 = vadd.f32 %v4528_v21, %v4420_v4 }
 0x248   : > { %4530 = vst [vmem:[%s7228_s3] sm:$0x3] %v4529_v28 }
 0x249 PF: > { %s16_s20 = sadd.s32 1, %s5984_s20   ;;  %s7565_s18 = smov %s5980_s19 }
 0x24a   : > { %p13_p5 = scmp.ge.s32.totalorder %s16_s20, 4   ;;  %s7566_s19 = smov %s7568_s2 }
 0x24c   :  { %15 = sbr.rel (!%p13_p5) target bundleno = 2 (0x2), region = 98 }

</bundles_post_ra>
